<compile_context>
chip_gen: v6e
topology: v6e:2x2x1
jax: 0.10.0
libtpu: 0.0.40
codegen_flags: <defaults>
</compile_context>

<pallas_src>
import functools

import jax
import jax.numpy as jnp
from jax.experimental import pallas as pl
from jax.experimental.pallas import tpu as pltpu

# Explicit VMEM budget: well above actual use (~3 MiB) and safe on v5e/v6e (128 MiB
# physical) and v7x (64 MiB physical, 32 MiB default scoped).
_VMEM_LIMIT_BYTES = 32 * 1024 * 1024


def _round_up(x, m):
    return (x + m - 1) // m * m


def _pick_tm(m, cap=512):
    for t in (cap, 256, 128, 64, 32, 16, 8):
        if t <= m and m % t == 0:
            return t
    return m


# ----------------------------------------------------------------------------
# Kernel 1: GEMM with a single VMEM-resident weight block and a fused
#           per-column scale/bias + activation epilogue.
#           out = act(scale * (A @ B) + bias)
# ----------------------------------------------------------------------------
def _gemm_epilogue_kernel(a_ref, b_ref, scale_ref, bias_ref, o_ref, *, act):
    acc = jnp.dot(a_ref[...], b_ref[...], preferred_element_type=jnp.float32)
    y = acc * scale_ref[...] + bias_ref[...]
    if act == "relu":
        y = jnp.maximum(y, 0.0)
    elif act == "tanh":
        y = jnp.tanh(y)
    o_ref[...] = y.astype(o_ref.dtype)


def fused_gemm(a, b, scale, bias, *, act="none", out_dtype=jnp.float32, tm=None):
    M, K = a.shape
    K2, N = b.shape
    assert K == K2 and scale.shape == (1, N) and bias.shape == (1, N)
    if tm is None:
        tm = _pick_tm(M)
    return pl.pallas_call(
        functools.partial(_gemm_epilogue_kernel, act=act),
        out_shape=jax.ShapeDtypeStruct((M, N), out_dtype),
        grid=(M // tm,),
        in_specs=[
            pl.BlockSpec((tm, K), lambda i: (i, 0)),
            pl.BlockSpec((K, N), lambda i: (0, 0)),     # weight: VMEM resident
            pl.BlockSpec((1, N), lambda i: (0, 0)),
            pl.BlockSpec((1, N), lambda i: (0, 0)),
        ],
        out_specs=pl.BlockSpec((tm, N), lambda i: (i, 0)),
        compiler_params=pltpu.CompilerParams(
            dimension_semantics=("parallel",),
            vmem_limit_bytes=_VMEM_LIMIT_BYTES),
    )(a, b, scale, bias)


# ----------------------------------------------------------------------------
# Kernel 2: up3 phase GEMM fused with the final Conv2d(64,3,1x1) + Tanh.
#   h   = relu(scale * (A @ B1) + bias1)        (deconv + BN + ReLU)
#   out = tanh(h @ W2 + bias2)                  (1x1 conv + tanh)
# ----------------------------------------------------------------------------
def _gemm_bn_relu_proj_tanh_kernel(a_ref, b_ref, scale_ref, bias_ref,
                                   w2_ref, b2_ref, o_ref):
    acc = jnp.dot(a_ref[...], b_ref[...], preferred_element_type=jnp.float32)
    h = jnp.maximum(acc * scale_ref[...] + bias_ref[...], 0.0)
    z = jnp.dot(h.astype(w2_ref.dtype), w2_ref[...],
                preferred_element_type=jnp.float32)
    o_ref[...] = jnp.tanh(z + b2_ref[...]).astype(o_ref.dtype)


def fused_gemm_bn_relu_proj_tanh(a, b, scale, bias, w2, b2, *, tm=None):
    M, K = a.shape
    _, N1 = b.shape
    _, N2 = w2.shape
    if tm is None:
        tm = _pick_tm(M)
    return pl.pallas_call(
        _gemm_bn_relu_proj_tanh_kernel,
        out_shape=jax.ShapeDtypeStruct((M, N2), jnp.float32),
        grid=(M // tm,),
        in_specs=[
            pl.BlockSpec((tm, K), lambda i: (i, 0)),
            pl.BlockSpec((K, N1), lambda i: (0, 0)),
            pl.BlockSpec((1, N1), lambda i: (0, 0)),
            pl.BlockSpec((1, N1), lambda i: (0, 0)),
            pl.BlockSpec((N1, N2), lambda i: (0, 0)),
            pl.BlockSpec((1, N2), lambda i: (0, 0)),
        ],
        out_specs=pl.BlockSpec((tm, N2), lambda i: (i, 0)),
        compiler_params=pltpu.CompilerParams(
            dimension_semantics=("parallel",),
            vmem_limit_bytes=_VMEM_LIMIT_BYTES),
    )(a, b, scale, bias, w2, b2)


# ----------------------------------------------------------------------------
# Sub-pixel (output-phase) decomposition of ConvTranspose2d(4x4, stride 2, pad 1).
# For output phase (p, q):  out[:, 2o+p, 2u+q, :] =
#   sum_{a,c in {0,1}} x_pad[:, o+p+a, u+q+c, :] @ W[:, :, 3-p-2a, 3-q-2c]
# ----------------------------------------------------------------------------
def _phase_patches(xp, H, W, p, q, k_pad):
    """2x2 sub-pixel im2col: (B*H*W, k_pad) bf16, zero-padded in K if needed."""
    B, C = xp.shape[0], xp.shape[-1]
    taps = [xp[:, p + a:p + a + H, q + c:q + c + W, :]
            for a in (0, 1) for c in (0, 1)]
    if k_pad > 4 * C:
        taps.append(jnp.zeros((B, H, W, k_pad - 4 * C), xp.dtype))
    return jnp.concatenate(taps, axis=-1).reshape(B * H * W, k_pad)


def _interleave_phases(phases, B, H, W, C):
    """phases[(p,q)][b,o,u,c] -> out[b, 2o+p, 2u+q, c]."""
    row0 = jnp.stack([phases[(0, 0)], phases[(0, 1)]], axis=3)   # (B,H,W,2,C)
    row1 = jnp.stack([phases[(1, 0)], phases[(1, 1)]], axis=3)
    t = jnp.stack([row0, row1], axis=2)                          # (B,H,2,W,2,C)
    return t.reshape(B, 2 * H, 2 * W, C)


def upsample_block_bn_relu(x_nhwc, lp):
    """ConvTranspose2d(4,4,s=2,p=1) + BatchNorm2d(eval) + ReLU via 4 phase GEMMs."""
    B, H, W, _ = x_nhwc.shape
    xp = jnp.pad(x_nhwc, ((0, 0), (1, 1), (1, 1), (0, 0)))
    k_pad = lp["w"][(0, 0)].shape[0]
    cout = lp["scale"].shape[1]          # up1/up2: Cout is already 128-aligned
    outs = {}
    for p in (0, 1):
        for q in (0, 1):
            a = _phase_patches(xp, H, W, p, q, k_pad)
            y = fused_gemm(a, lp["w"][(p, q)], lp["scale"], lp["bias"],
                           act="relu", out_dtype=jnp.bfloat16)
            outs[(p, q)] = y.reshape(B, H, W, cout)
    return _interleave_phases(outs, B, H, W, cout)


def upsample_block_final(x_nhwc, lp, fp):
    """up3 (deconv + BN + ReLU) fused with Conv2d(64,3,1x1) + Tanh -> (B,2H,2W,3) f32."""
    B, H, W, _ = x_nhwc.shape
    xp = jnp.pad(x_nhwc, ((0, 0), (1, 1), (1, 1), (0, 0)))
    k_pad = lp["w"][(0, 0)].shape[0]
    outs = {}
    for p in (0, 1):
        for q in (0, 1):
            a = _phase_patches(xp, H, W, p, q, k_pad)
            y = fused_gemm_bn_relu_proj_tanh(a, lp["w"][(p, q)], lp["scale"],
                                             lp["bias"], fp["w"], fp["b"])
            outs[(p, q)] = y[:, :3].reshape(B, H, W, 3)
    return _interleave_phases(outs, B, H, W, 3)


# ----------------------------------------------------------------------------
# Parameters: deterministic synthetic init + one-time GEMM-friendly preparation.
# ----------------------------------------------------------------------------
def init_generator_params(key, classes):
    keys = iter(jax.random.split(key, 32))

    def nrm(shape, s=0.05):
        return jax.random.normal(next(keys), shape, jnp.float32) * s

    p = {
        "emb": nrm((classes, 64), 0.1),          # nn.Embedding(classes, 64)
        "lin_w": nrm((100, 4096)),               # stored (in,out); PyTorch nn.Linear is (out,in)
        "lin_b": nrm((4096,), 0.01),
        "cw": nrm((3, 64, 1, 1)),                # nn.Conv2d(64, 3, 1)
        "cb": nrm((3,), 0.01),
    }
    for name, cin, cout in (("up1", 65, 256), ("up2", 256, 128), ("up3", 128, 64)):
        p[name] = {
            "w": nrm((cin, cout, 4, 4)),         # ConvTranspose2d weight (Cin, Cout, kH, kW)
            "b": nrm((cout,), 0.01),
            "gamma": 1.0 + nrm((cout,), 0.1),
            "beta": nrm((cout,), 0.1),
            "mean": nrm((cout,), 0.1),
            "var": 0.5 + jax.random.uniform(next(keys), (cout,), jnp.float32),
        }
    return p


def _prep_deconv(blk, eps=1e-5):
    w, b = blk["w"], blk["b"]
    cin, cout = w.shape[0], w.shape[1]
    k_pad = _round_up(4 * cin, 128)
    n_pad = _round_up(cout, 128)
    scale = blk["gamma"] / jnp.sqrt(blk["var"] + eps)
    bias = blk["beta"] + scale * (b - blk["mean"])          # BN(eval) + conv bias fold
    phases = {}
    for p in (0, 1):
        for q in (0, 1):
            rows = [w[:, :, 3 - p - 2 * a, 3 - q - 2 * c]    # (Cin, Cout) per tap
                    for a in (0, 1) for c in (0, 1)]
            wm = jnp.concatenate(rows, axis=0)               # (4*Cin, Cout)
            phases[(p, q)] = (jnp.zeros((k_pad, n_pad), jnp.bfloat16)
                              .at[:4 * cin, :cout].set(wm.astype(jnp.bfloat16)))
    return {
        "w": phases,
        "scale": jnp.zeros((1, n_pad), jnp.float32).at[0, :cout].set(scale),
        "bias": jnp.zeros((1, n_pad), jnp.float32).at[0, :cout].set(bias),
    }


def prepare_gemm_params(p):
    """One-time: fold BN, split deconvs into sub-pixel GEMM weights, pad, cast bf16."""
    gp = {"emb": p["emb"].astype(jnp.bfloat16)}
    gp["lin"] = {                                            # Linear(100, 4096), K 100->128
        "w": (jnp.zeros((128, 4096), jnp.bfloat16)
              .at[:100].set(p["lin_w"].astype(jnp.bfloat16))),
        "scale": jnp.ones((1, 4096), jnp.float32),
        "bias": p["lin_b"].reshape(1, 4096).astype(jnp.float32),
    }
    for name in ("up1", "up2", "up3"):
        gp[name] = _prep_deconv(p[name])
    w2 = p["cw"].reshape(3, 64).T                            # 1x1 conv -> (64, 3)
    gp["final"] = {                                          # fused into up3 epilogue
        "w": (jnp.zeros((128, 128), jnp.bfloat16)
              .at[:64, :3].set(w2.astype(jnp.bfloat16))),
        "b": jnp.zeros((1, 128), jnp.float32).at[0, :3].set(p["cb"]),
    }
    return gp


# ----------------------------------------------------------------------------
# Forward pass.
# ----------------------------------------------------------------------------
def generator_forward(gp, x, label):
    B = x.shape[0]

    # latent_vector: Linear(100, 4096) + ReLU.  Pad M only to 8 (not 128).
    mp = max(8, _round_up(B, 8))
    xa = jnp.zeros((mp, 128), jnp.bfloat16).at[:B, :100].set(x.astype(jnp.bfloat16))
    lat = fused_gemm(xa, gp["lin"]["w"], gp["lin"]["scale"], gp["lin"]["bias"],
                     act="relu", out_dtype=jnp.bfloat16, tm=mp)[:B]
    lat = lat.reshape(B, 64, 8, 8).transpose(0, 2, 3, 1)          # NHWC (B,8,8,64)

    # embedding: gather + Unflatten(1, (1, 8, 8))  (plain-JAX glue)
    emb = jnp.take(gp["emb"], label, axis=0).reshape(B, 1, 8, 8).transpose(0, 2, 3, 1)

    # torch.concat(dim=1) == channel concat in NHWC
    h = jnp.concatenate([lat, emb], axis=-1)                      # (B,8,8,65) bf16

    h = upsample_block_bn_relu(h, gp["up1"])                      # (B,16,16,256)
    h = upsample_block_bn_relu(h, gp["up2"])                      # (B,32,32,128)
    rgb = upsample_block_final(h, gp["up3"], gp["final"])         # (B,64,64,3) f32

    return rgb.transpose(0, 3, 1, 2)                              # NCHW (B,3,64,64)


if __name__ == "__main__":
    classes = 10
    B = 2
    key = jax.random.PRNGKey(0)
    kp, kx, kl = jax.random.split(key, 3)

    params = init_generator_params(kp, classes)
    gemm_params = prepare_gemm_params(params)

    x = jax.random.normal(kx, (B, 100), jnp.float32)
    label = jax.random.randint(kl, (B,), 0, classes)

    fwd = jax.jit(generator_forward)
    out = jax.block_until_ready(fwd(gemm_params, x, label))

    assert out.shape == (B, 3, 64, 64), out.shape
    assert bool(jnp.all(jnp.isfinite(out)))
    assert bool(jnp.all(jnp.abs(out) <= 1.0))  # tanh range
    print("KERNEL_OK")
</pallas_src>

<mosaic_0001>
module attributes {stable_mosaic.version = 11 : i64} {
  func.func @_gemm_epilogue_kernel(%arg0: i32, %arg1: memref<8x128xbf16, #tpu.memory_space<vmem>>, %arg2: memref<128x4096xbf16, #tpu.memory_space<vmem>>, %arg3: memref<1x4096xf32, #tpu.memory_space<vmem>>, %arg4: memref<1x4096xf32, #tpu.memory_space<vmem>>, %arg5: memref<8x4096xbf16, #tpu.memory_space<vmem>>) attributes {dimension_semantics = [#tpu.dimension_semantics<parallel>], iteration_bounds = array<i64: 1>, scalar_prefetch = 0 : i64, scratch_operands = 0 : i64, tpu.core_type = #tpu.core_type<tc>, window_params = [{transform_indices = @transform_0, window_bounds = array<i64: 8, 128>}, {pipeline_mode = #tpu.pipeline_mode<synchronous>, transform_indices = @transform_1, window_bounds = array<i64: 128, 4096>}, {pipeline_mode = #tpu.pipeline_mode<synchronous>, transform_indices = @transform_2, window_bounds = array<i64: 1, 4096>}, {pipeline_mode = #tpu.pipeline_mode<synchronous>, transform_indices = @transform_3, window_bounds = array<i64: 1, 4096>}, {transform_indices = @transform_4, window_bounds = array<i64: 8, 4096>}]} {
    %c0 = arith.constant 0 : index
    %c0_0 = arith.constant 0 : index
    %0 = vector.load %arg1[%c0, %c0_0] : memref<8x128xbf16, #tpu.memory_space<vmem>>, vector<8x128xbf16>
    %c0_1 = arith.constant 0 : index
    %c0_2 = arith.constant 0 : index
    %1 = vector.load %arg2[%c0_1, %c0_2] : memref<128x4096xbf16, #tpu.memory_space<vmem>>, vector<128x4096xbf16>
    %cst = arith.constant dense<0.000000e+00> : vector<8x4096xf32>
    %2 = tpu.matmul %0, %1, %cst {dimension_numbers = #tpu.dot_dimension_numbers<[1], [0], [0], [1], [0, 0, 1, 1], [], []>} : vector<8x128xbf16>, vector<128x4096xbf16>, vector<8x4096xf32> -> vector<8x4096xf32>
    %c0_3 = arith.constant 0 : index
    %c0_4 = arith.constant 0 : index
    %3 = vector.load %arg3[%c0_3, %c0_4] : memref<1x4096xf32, #tpu.memory_space<vmem>>, vector<1x4096xf32>
    %4 = vector.broadcast %3 : vector<1x4096xf32> to vector<8x4096xf32>
    %5 = arith.mulf %2, %4 : vector<8x4096xf32>
    %c0_5 = arith.constant 0 : index
    %c0_6 = arith.constant 0 : index
    %6 = vector.load %arg4[%c0_5, %c0_6] : memref<1x4096xf32, #tpu.memory_space<vmem>>, vector<1x4096xf32>
    %7 = vector.broadcast %6 : vector<1x4096xf32> to vector<8x4096xf32>
    %8 = arith.addf %5, %7 : vector<8x4096xf32>
    %cst_7 = arith.constant 0.000000e+00 : f32
    %9 = vector.broadcast %cst_7 : f32 to vector<8x4096xf32>
    %10 = arith.maximumf %8, %9 : vector<8x4096xf32>
    %11 = arith.truncf %10 : vector<8x4096xf32> to vector<8x4096xbf16>
    %c0_8 = arith.constant 0 : index
    %c0_9 = arith.constant 0 : index
    %12 = vector.load %arg5[%c0_8, %c0_9] : memref<8x4096xbf16, #tpu.memory_space<vmem>>, vector<8x4096xbf16>
    tpu.vector_store %arg5[%c0_8, %c0_9], %11 {strides = array<i32>} : memref<8x4096xbf16, #tpu.memory_space<vmem>>, vector<8x4096xbf16>,
    return
  }
  func.func @transform_0(%arg0: i32) -> (i32, i32) {
    %c0_i32 = arith.constant 0 : i32
    %c0_i32_0 = arith.constant 0 : i32
    return %arg0, %c0_i32 : i32, i32
  }
  func.func @transform_1(%arg0: i32) -> (i32, i32) {
    %c0_i32 = arith.constant 0 : i32
    %c0_i32_0 = arith.constant 0 : i32
    %c0_i32_1 = arith.constant 0 : i32
    return %c0_i32, %c0_i32_0 : i32, i32
  }
  func.func @transform_2(%arg0: i32) -> (i32, i32) {
    %c0_i32 = arith.constant 0 : i32
    %c0_i32_0 = arith.constant 0 : i32
    %c0_i32_1 = arith.constant 0 : i32
    return %c0_i32, %c0_i32_0 : i32, i32
  }
  func.func @transform_3(%arg0: i32) -> (i32, i32) {
    %c0_i32 = arith.constant 0 : i32
    %c0_i32_0 = arith.constant 0 : i32
    %c0_i32_1 = arith.constant 0 : i32
    return %c0_i32, %c0_i32_0 : i32, i32
  }
  func.func @transform_4(%arg0: i32) -> (i32, i32) {
    %c0_i32 = arith.constant 0 : i32
    %c0_i32_0 = arith.constant 0 : i32
    return %arg0, %c0_i32 : i32, i32
  }
}

module attributes {stable_mosaic.version = 11 : i64} {
  func.func @_gemm_epilogue_kernel(%arg0: i32, %arg1: memref<128x384xbf16, #tpu.memory_space<vmem>>, %arg2: memref<384x256xbf16, #tpu.memory_space<vmem>>, %arg3: memref<1x256xf32, #tpu.memory_space<vmem>>, %arg4: memref<1x256xf32, #tpu.memory_space<vmem>>, %arg5: memref<128x256xbf16, #tpu.memory_space<vmem>>) attributes {dimension_semantics = [#tpu.dimension_semantics<parallel>], iteration_bounds = array<i64: 1>, scalar_prefetch = 0 : i64, scratch_operands = 0 : i64, tpu.core_type = #tpu.core_type<tc>, window_params = [{transform_indices = @transform_0, window_bounds = array<i64: 128, 384>}, {pipeline_mode = #tpu.pipeline_mode<synchronous>, transform_indices = @transform_1, window_bounds = array<i64: 384, 256>}, {pipeline_mode = #tpu.pipeline_mode<synchronous>, transform_indices = @transform_2, window_bounds = array<i64: 1, 256>}, {pipeline_mode = #tpu.pipeline_mode<synchronous>, transform_indices = @transform_3, window_bounds = array<i64: 1, 256>}, {transform_indices = @transform_4, window_bounds = array<i64: 128, 256>}]} {
    %c0 = arith.constant 0 : index
    %c0_0 = arith.constant 0 : index
    %0 = vector.load %arg1[%c0, %c0_0] : memref<128x384xbf16, #tpu.memory_space<vmem>>, vector<128x384xbf16>
    %c0_1 = arith.constant 0 : index
    %c0_2 = arith.constant 0 : index
    %1 = vector.load %arg2[%c0_1, %c0_2] : memref<384x256xbf16, #tpu.memory_space<vmem>>, vector<384x256xbf16>
    %cst = arith.constant dense<0.000000e+00> : vector<128x256xf32>
    %2 = tpu.matmul %0, %1, %cst {dimension_numbers = #tpu.dot_dimension_numbers<[1], [0], [0], [1], [0, 0, 1, 1], [], []>} : vector<128x384xbf16>, vector<384x256xbf16>, vector<128x256xf32> -> vector<128x256xf32>
    %c0_3 = arith.constant 0 : index
    %c0_4 = arith.constant 0 : index
    %3 = vector.load %arg3[%c0_3, %c0_4] : memref<1x256xf32, #tpu.memory_space<vmem>>, vector<1x256xf32>
    %4 = vector.broadcast %3 : vector<1x256xf32> to vector<128x256xf32>
    %5 = arith.mulf %2, %4 : vector<128x256xf32>
    %c0_5 = arith.constant 0 : index
    %c0_6 = arith.constant 0 : index
    %6 = vector.load %arg4[%c0_5, %c0_6] : memref<1x256xf32, #tpu.memory_space<vmem>>, vector<1x256xf32>
    %7 = vector.broadcast %6 : vector<1x256xf32> to vector<128x256xf32>
    %8 = arith.addf %5, %7 : vector<128x256xf32>
    %cst_7 = arith.constant 0.000000e+00 : f32
    %9 = vector.broadcast %cst_7 : f32 to vector<128x256xf32>
    %10 = arith.maximumf %8, %9 : vector<128x256xf32>
    %11 = arith.truncf %10 : vector<128x256xf32> to vector<128x256xbf16>
    %c0_8 = arith.constant 0 : index
    %c0_9 = arith.constant 0 : index
    %12 = vector.load %arg5[%c0_8, %c0_9] : memref<128x256xbf16, #tpu.memory_space<vmem>>, vector<128x256xbf16>
    tpu.vector_store %arg5[%c0_8, %c0_9], %11 {strides = array<i32>} : memref<128x256xbf16, #tpu.memory_space<vmem>>, vector<128x256xbf16>,
    return
  }
  func.func @transform_0(%arg0: i32) -> (i32, i32) {
    %c0_i32 = arith.constant 0 : i32
    %c0_i32_0 = arith.constant 0 : i32
    return %arg0, %c0_i32 : i32, i32
  }
  func.func @transform_1(%arg0: i32) -> (i32, i32) {
    %c0_i32 = arith.constant 0 : i32
    %c0_i32_0 = arith.constant 0 : i32
    %c0_i32_1 = arith.constant 0 : i32
    return %c0_i32, %c0_i32_0 : i32, i32
  }
  func.func @transform_2(%arg0: i32) -> (i32, i32) {
    %c0_i32 = arith.constant 0 : i32
    %c0_i32_0 = arith.constant 0 : i32
    %c0_i32_1 = arith.constant 0 : i32
    return %c0_i32, %c0_i32_0 : i32, i32
  }
  func.func @transform_3(%arg0: i32) -> (i32, i32) {
    %c0_i32 = arith.constant 0 : i32
    %c0_i32_0 = arith.constant 0 : i32
    %c0_i32_1 = arith.constant 0 : i32
    return %c0_i32, %c0_i32_0 : i32, i32
  }
  func.func @transform_4(%arg0: i32) -> (i32, i32) {
    %c0_i32 = arith.constant 0 : i32
    %c0_i32_0 = arith.constant 0 : i32
    return %arg0, %c0_i32 : i32, i32
  }
}

module attributes {stable_mosaic.version = 11 : i64} {
  func.func @_gemm_epilogue_kernel(%arg0: i32, %arg1: memref<512x1024xbf16, #tpu.memory_space<vmem>>, %arg2: memref<1024x128xbf16, #tpu.memory_space<vmem>>, %arg3: memref<1x128xf32, #tpu.memory_space<vmem>>, %arg4: memref<1x128xf32, #tpu.memory_space<vmem>>, %arg5: memref<512x128xbf16, #tpu.memory_space<vmem>>) attributes {dimension_semantics = [#tpu.dimension_semantics<parallel>], iteration_bounds = array<i64: 1>, scalar_prefetch = 0 : i64, scratch_operands = 0 : i64, tpu.core_type = #tpu.core_type<tc>, window_params = [{transform_indices = @transform_0, window_bounds = array<i64: 512, 1024>}, {pipeline_mode = #tpu.pipeline_mode<synchronous>, transform_indices = @transform_1, window_bounds = array<i64: 1024, 128>}, {pipeline_mode = #tpu.pipeline_mode<synchronous>, transform_indices = @transform_2, window_bounds = array<i64: 1, 128>}, {pipeline_mode = #tpu.pipeline_mode<synchronous>, transform_indices = @transform_3, window_bounds = array<i64: 1, 128>}, {transform_indices = @transform_4, window_bounds = array<i64: 512, 128>}]} {
    %c0 = arith.constant 0 : index
    %c0_0 = arith.constant 0 : index
    %0 = vector.load %arg1[%c0, %c0_0] : memref<512x1024xbf16, #tpu.memory_space<vmem>>, vector<512x1024xbf16>
    %c0_1 = arith.constant 0 : index
    %c0_2 = arith.constant 0 : index
    %1 = vector.load %arg2[%c0_1, %c0_2] : memref<1024x128xbf16, #tpu.memory_space<vmem>>, vector<1024x128xbf16>
    %cst = arith.constant dense<0.000000e+00> : vector<512x128xf32>
    %2 = tpu.matmul %0, %1, %cst {dimension_numbers = #tpu.dot_dimension_numbers<[1], [0], [0], [1], [0, 0, 1, 1], [], []>} : vector<512x1024xbf16>, vector<1024x128xbf16>, vector<512x128xf32> -> vector<512x128xf32>
    %c0_3 = arith.constant 0 : index
    %c0_4 = arith.constant 0 : index
    %3 = vector.load %arg3[%c0_3, %c0_4] : memref<1x128xf32, #tpu.memory_space<vmem>>, vector<1x128xf32>
    %4 = vector.broadcast %3 : vector<1x128xf32> to vector<512x128xf32>
    %5 = arith.mulf %2, %4 : vector<512x128xf32>
    %c0_5 = arith.constant 0 : index
    %c0_6 = arith.constant 0 : index
    %6 = vector.load %arg4[%c0_5, %c0_6] : memref<1x128xf32, #tpu.memory_space<vmem>>, vector<1x128xf32>
    %7 = vector.broadcast %6 : vector<1x128xf32> to vector<512x128xf32>
    %8 = arith.addf %5, %7 : vector<512x128xf32>
    %cst_7 = arith.constant 0.000000e+00 : f32
    %9 = vector.broadcast %cst_7 : f32 to vector<512x128xf32>
    %10 = arith.maximumf %8, %9 : vector<512x128xf32>
    %11 = arith.truncf %10 : vector<512x128xf32> to vector<512x128xbf16>
    %c0_8 = arith.constant 0 : index
    %c0_9 = arith.constant 0 : index
    %12 = vector.load %arg5[%c0_8, %c0_9] : memref<512x128xbf16, #tpu.memory_space<vmem>>, vector<512x128xbf16>
    tpu.vector_store %arg5[%c0_8, %c0_9], %11 {strides = array<i32>} : memref<512x128xbf16, #tpu.memory_space<vmem>>, vector<512x128xbf16>,
    return
  }
  func.func @transform_0(%arg0: i32) -> (i32, i32) {
    %c0_i32 = arith.constant 0 : i32
    %c0_i32_0 = arith.constant 0 : i32
    return %arg0, %c0_i32 : i32, i32
  }
  func.func @transform_1(%arg0: i32) -> (i32, i32) {
    %c0_i32 = arith.constant 0 : i32
    %c0_i32_0 = arith.constant 0 : i32
    %c0_i32_1 = arith.constant 0 : i32
    return %c0_i32, %c0_i32_0 : i32, i32
  }
  func.func @transform_2(%arg0: i32) -> (i32, i32) {
    %c0_i32 = arith.constant 0 : i32
    %c0_i32_0 = arith.constant 0 : i32
    %c0_i32_1 = arith.constant 0 : i32
    return %c0_i32, %c0_i32_0 : i32, i32
  }
  func.func @transform_3(%arg0: i32) -> (i32, i32) {
    %c0_i32 = arith.constant 0 : i32
    %c0_i32_0 = arith.constant 0 : i32
    %c0_i32_1 = arith.constant 0 : i32
    return %c0_i32, %c0_i32_0 : i32, i32
  }
  func.func @transform_4(%arg0: i32) -> (i32, i32) {
    %c0_i32 = arith.constant 0 : i32
    %c0_i32_0 = arith.constant 0 : i32
    return %arg0, %c0_i32 : i32, i32
  }
}

module attributes {stable_mosaic.version = 11 : i64} {
  func.func @_gemm_bn_relu_proj_tanh_kernel(%arg0: i32, %arg1: memref<512x512xbf16, #tpu.memory_space<vmem>>, %arg2: memref<512x128xbf16, #tpu.memory_space<vmem>>, %arg3: memref<1x128xf32, #tpu.memory_space<vmem>>, %arg4: memref<1x128xf32, #tpu.memory_space<vmem>>, %arg5: memref<128x128xbf16, #tpu.memory_space<vmem>>, %arg6: memref<1x128xf32, #tpu.memory_space<vmem>>, %arg7: memref<512x128xf32, #tpu.memory_space<vmem>>) attributes {dimension_semantics = [#tpu.dimension_semantics<parallel>], iteration_bounds = array<i64: 4>, scalar_prefetch = 0 : i64, scratch_operands = 0 : i64, tpu.core_type = #tpu.core_type<tc>, window_params = [{transform_indices = @transform_0, window_bounds = array<i64: 512, 512>}, {pipeline_mode = #tpu.pipeline_mode<synchronous>, transform_indices = @transform_1, window_bounds = array<i64: 512, 128>}, {pipeline_mode = #tpu.pipeline_mode<synchronous>, transform_indices = @transform_2, window_bounds = array<i64: 1, 128>}, {pipeline_mode = #tpu.pipeline_mode<synchronous>, transform_indices = @transform_3, window_bounds = array<i64: 1, 128>}, {pipeline_mode = #tpu.pipeline_mode<synchronous>, transform_indices = @transform_4, window_bounds = array<i64: 128, 128>}, {pipeline_mode = #tpu.pipeline_mode<synchronous>, transform_indices = @transform_5, window_bounds = array<i64: 1, 128>}, {transform_indices = @transform_6, window_bounds = array<i64: 512, 128>}]} {
    %c0 = arith.constant 0 : index
    %c0_0 = arith.constant 0 : index
    %0 = vector.load %arg1[%c0, %c0_0] : memref<512x512xbf16, #tpu.memory_space<vmem>>, vector<512x512xbf16>
    %c0_1 = arith.constant 0 : index
    %c0_2 = arith.constant 0 : index
    %1 = vector.load %arg2[%c0_1, %c0_2] : memref<512x128xbf16, #tpu.memory_space<vmem>>, vector<512x128xbf16>
    %cst = arith.constant dense<0.000000e+00> : vector<512x128xf32>
    %2 = tpu.matmul %0, %1, %cst {dimension_numbers = #tpu.dot_dimension_numbers<[1], [0], [0], [1], [0, 0, 1, 1], [], []>} : vector<512x512xbf16>, vector<512x128xbf16>, vector<512x128xf32> -> vector<512x128xf32>
    %c0_3 = arith.constant 0 : index
    %c0_4 = arith.constant 0 : index
    %3 = vector.load %arg3[%c0_3, %c0_4] : memref<1x128xf32, #tpu.memory_space<vmem>>, vector<1x128xf32>
    %4 = vector.broadcast %3 : vector<1x128xf32> to vector<512x128xf32>
    %5 = arith.mulf %2, %4 : vector<512x128xf32>
    %c0_5 = arith.constant 0 : index
    %c0_6 = arith.constant 0 : index
    %6 = vector.load %arg4[%c0_5, %c0_6] : memref<1x128xf32, #tpu.memory_space<vmem>>, vector<1x128xf32>
    %7 = vector.broadcast %6 : vector<1x128xf32> to vector<512x128xf32>
    %8 = arith.addf %5, %7 : vector<512x128xf32>
    %cst_7 = arith.constant 0.000000e+00 : f32
    %9 = vector.broadcast %cst_7 : f32 to vector<512x128xf32>
    %10 = arith.maximumf %8, %9 : vector<512x128xf32>
    %11 = arith.truncf %10 : vector<512x128xf32> to vector<512x128xbf16>
    %c0_8 = arith.constant 0 : index
    %c0_9 = arith.constant 0 : index
    %12 = vector.load %arg5[%c0_8, %c0_9] : memref<128x128xbf16, #tpu.memory_space<vmem>>, vector<128x128xbf16>
    %cst_10 = arith.constant dense<0.000000e+00> : vector<512x128xf32>
    %13 = tpu.matmul %11, %12, %cst_10 {dimension_numbers = #tpu.dot_dimension_numbers<[1], [0], [0], [1], [0, 0, 1, 1], [], []>} : vector<512x128xbf16>, vector<128x128xbf16>, vector<512x128xf32> -> vector<512x128xf32>
    %c0_11 = arith.constant 0 : index
    %c0_12 = arith.constant 0 : index
    %14 = vector.load %arg6[%c0_11, %c0_12] : memref<1x128xf32, #tpu.memory_space<vmem>>, vector<1x128xf32>
    %15 = vector.broadcast %14 : vector<1x128xf32> to vector<512x128xf32>
    %16 = arith.addf %13, %15 : vector<512x128xf32>
    %17 = math.tanh %16 : vector<512x128xf32>
    %c0_13 = arith.constant 0 : index
    %c0_14 = arith.constant 0 : index
    %18 = vector.load %arg7[%c0_13, %c0_14] : memref<512x128xf32, #tpu.memory_space<vmem>>, vector<512x128xf32>
    tpu.vector_store %arg7[%c0_13, %c0_14], %17 {strides = array<i32>} : memref<512x128xf32, #tpu.memory_space<vmem>>, vector<512x128xf32>,
    return
  }
  func.func @transform_0(%arg0: i32) -> (i32, i32) {
    %c0_i32 = arith.constant 0 : i32
    %c0_i32_0 = arith.constant 0 : i32
    return %arg0, %c0_i32 : i32, i32
  }
  func.func @transform_1(%arg0: i32) -> (i32, i32) {
    %c0_i32 = arith.constant 0 : i32
    %c0_i32_0 = arith.constant 0 : i32
    %c0_i32_1 = arith.constant 0 : i32
    return %c0_i32, %c0_i32_0 : i32, i32
  }
  func.func @transform_2(%arg0: i32) -> (i32, i32) {
    %c0_i32 = arith.constant 0 : i32
    %c0_i32_0 = arith.constant 0 : i32
    %c0_i32_1 = arith.constant 0 : i32
    return %c0_i32, %c0_i32_0 : i32, i32
  }
  func.func @transform_3(%arg0: i32) -> (i32, i32) {
    %c0_i32 = arith.constant 0 : i32
    %c0_i32_0 = arith.constant 0 : i32
    %c0_i32_1 = arith.constant 0 : i32
    return %c0_i32, %c0_i32_0 : i32, i32
  }
  func.func @transform_4(%arg0: i32) -> (i32, i32) {
    %c0_i32 = arith.constant 0 : i32
    %c0_i32_0 = arith.constant 0 : i32
    %c0_i32_1 = arith.constant 0 : i32
    return %c0_i32, %c0_i32_0 : i32, i32
  }
  func.func @transform_5(%arg0: i32) -> (i32, i32) {
    %c0_i32 = arith.constant 0 : i32
    %c0_i32_0 = arith.constant 0 : i32
    %c0_i32_1 = arith.constant 0 : i32
    return %c0_i32, %c0_i32_0 : i32, i32
  }
  func.func @transform_6(%arg0: i32) -> (i32, i32) {
    %c0_i32 = arith.constant 0 : i32
    %c0_i32_0 = arith.constant 0 : i32
    return %arg0, %c0_i32 : i32, i32
  }
}

</mosaic_0001>

<bundles_post_ra>
// kernel: generator_forward.13
= control target key start
LH: loop header
LB: loop body
LE: loop exit
PB: predicated region body
PF: predicated region fallthrough
CT: control target
= control target key end

     0   :  { %9 = vsyncpa [#allocation3], 0  ;;  %s3429_s0 = inlined_call_operand.vmem [shape: bf16[8,128], index: 0, kind: input, shape index: {}]   ;;  %s3430_s1 = inlined_call_operand.hbm [shape: bf16[128,4096], index: 1, kind: input, shape index: {}]   ;;  %s3431_s2 = inlined_call_operand.hbm [shape: f32[1,4096], index: 2, kind: input, shape index: {}]   ;;  %s3432_s3 = inlined_call_operand.hbm [shape: f32[1,4096], index: 3, kind: input, shape index: {}]   ;;  %s3433_s4 = inlined_call_operand.vmem [shape: bf16[8,4096], index: 4, kind: output, shape index: {}]  }
   0x1   :  { %10 = vsyncpa [#allocation5], 0  ;;  %s3189_s15 = smov [#allocation4]   ;;  %s3190_s17 = smov [#allocation2]  }
   0x2   :  { %s31_s16 = sshll.u32 %s3189_s15, 4  ;;  %s18_s18 = sshll.u32 %s3190_s17, 4  ;;  %s32_s16 = int_to_ptr.vmem [resolvable:$true] %s31_s16  ;;  %s19_s18 = int_to_ptr.vmem [resolvable:$true] %s18_s18 }
   0x3   :  { %s3133_s19 = scalar_lea.vmem %s32_s16, 512  ;;  %p3138_p1 = scmp.lt.s32.totalorder %s32_s16, %s32_s16 }
   0x4   :  { %p3134_p0 = scmp.ne.s32.totalorder %s32_s16, %s3133_s19  ;;  %p3139_p2 = scmp.lt.s32.totalorder %s3133_s19, %s3133_s19 }
   0x6   :  { %p3140_p3 = por %p3139_p2, %p3138_p1 }
   0x8   :  { %p3141_p4 = pnand %p3140_p3, %p3134_p0 }
   0xa   :  { %3144 = shalt.err (!%p3141_p4)
}
   0xb   :  { %34 = dma.hbm_to_vmem [thread:$0]  %s3431_s2, 512, %s32_s16, [#allocation5]  }
   0xc   :  { %s3153_s22 = scalar_lea.vmem %s19_s18, 32768  ;;  %p3158_p6 = scmp.lt.s32.totalorder %s19_s18, %s19_s18 }
   0xd   :  { %p3154_p5 = scmp.ne.s32.totalorder %s19_s18, %s3153_s22  ;;  %p3159_p7 = scmp.lt.s32.totalorder %s3153_s22, %s3153_s22 }
   0xf   :  { %p3160_p8 = por %p3159_p7, %p3158_p6 }
  0x11   :  { %p3161_p9 = pnand %p3160_p8, %p3154_p5 }
  0x13   :  { %3164 = shalt.err (!%p3161_p9)
}
  0x14   :  { %s3191_s23 = smov 2048   ;;  %s3192_s24 = smov 128  }
  0x15   :  { %24 = dma.hbm_to_vmem [thread:$0]  %s3430_s1, 32768, %s19_s18, [#allocation3], %s3191_s23, %s3191_s23, %s3192_s24  }
  0x16   :  { %s3193_s27 = smov [#allocation6]  }
  0x17   :  { %s41_s28 = sshll.u32 %s3193_s27, 4  ;;  %s42_s28 = int_to_ptr.vmem [resolvable:$true] %s41_s28 }
  0x18   :  { %s3173_s29 = scalar_lea.vmem %s42_s28, 512  ;;  %p3178_p11 = scmp.lt.s32.totalorder %s42_s28, %s42_s28 }
  0x19   :  { %p3174_p10 = scmp.ne.s32.totalorder %s42_s28, %s3173_s29  ;;  %p3179_p12 = scmp.lt.s32.totalorder %s3173_s29, %s3173_s29 }
  0x1b   :  { %p3180_p13 = por %p3179_p12, %p3178_p11 }
  0x1d   :  { %p3181_p0 = pnand %p3180_p13, %p3174_p10 }
  0x1f   :  { %3184 = shalt.err (!%p3181_p0)
}
  0x20   :  { %44 = dma.hbm_to_vmem [thread:$0]  %s3432_s3, 512, %s42_s28, [#allocation5]  }
  0x21   :  { %3185 = dma.done.wait [#allocation3], 32768  }
  0x22   :  { %3186 = vsyncadd [#allocation3], 4294934528 }
  0x23   :  { %3187 = dma.done.wait [#allocation5], 1024  }
  0x24   :  { %3188 = vsyncadd [#allocation5], 4294966272  ;;  %v3194_v0 = vmov 0   ;;  %v280_v1 = vld [vmem:[#allocation2 + $0x700] sm:$0xff]  ;;  %v281_v3 = vld [vmem:[#allocation2 + $0x708] sm:$0xff] }
  0x25   :  { %1624 = vmatprep.mubr.bf16.mxu0 %v3194_v0  ;;  %1665 = vmatprep.mubr.bf16.mxu1 %v3194_v0  ;;  %v296_v2 = vld [vmem:[#allocation2 + $0x780] sm:$0xff]  ;;  %v297_v5 = vld [vmem:[#allocation2 + $0x788] sm:$0xff]  ;;  %v282_v63 = vld [vmem:[#allocation2 + $0x710] sm:$0xff] }
  0x26   :  { %v3055_v4 = vcombine.high %v280_v1, %v296_v2  ;;  %v3054_v6 = vcombine.low %v280_v1, %v296_v2  ;;  %v248_v7 = vld [vmem:[#allocation2 + $0x600] sm:$0xff]  ;;  %v3057_v9 = vcombine.high %v281_v3, %v297_v5  ;;  %v3056_v10 = vcombine.low %v281_v3, %v297_v5  ;;  %v249_v12 = vld [vmem:[#allocation2 + $0x608] sm:$0xff]  ;;  %v298_v1 = vld [vmem:[#allocation2 + $0x790] sm:$0xff] }
  0x27   :  { %v264_v8 = vld [vmem:[#allocation2 + $0x680] sm:$0xff]  ;;  %v265_v13 = vld [vmem:[#allocation2 + $0x688] sm:$0xff]  ;;  %v283_v2 = vld [vmem:[#allocation2 + $0x718] sm:$0xff] }
  0x28   :  { %v3023_v11 = vcombine.high %v248_v7, %v264_v8  ;;  %v216_v14 = vld [vmem:[#allocation2 + $0x500] sm:$0xff]  ;;  %1592 = vmatprep.subr.bf16.mxu0 %v3055_v4  ;;  %v3025_v15 = vcombine.high %v249_v12, %v265_v13  ;;  %v217_v17 = vld [vmem:[#allocation2 + $0x508] sm:$0xff]  ;;  %1633 = vmatprep.subr.bf16.mxu1 %v3057_v9  ;;  %v3022_v19 = vcombine.low %v248_v7, %v264_v8  ;;  %v299_v3 = vld [vmem:[#allocation2 + $0x798] sm:$0xff] }
  0x29   :  { %v232_v16 = vld [vmem:[#allocation2 + $0x580] sm:$0xff]  ;;  %v233_v18 = vld [vmem:[#allocation2 + $0x588] sm:$0xff]  ;;  %1593 = vmatpush1.bf16.msra.mxu0 %v3054_v6  ;;  %1634 = vmatpush1.bf16.msra.mxu1 %v3056_v10  ;;  %v3024_v20 = vcombine.low %v249_v12, %v265_v13  ;;  %v3059_v6 = vcombine.high %v282_v63, %v298_v1  ;;  %v3061_v7 = vcombine.high %v283_v2, %v299_v3  ;;  %v250_v8 = vld [vmem:[#allocation2 + $0x610] sm:$0xff] }
  0x2a   :  { %1594 = vmatprep.subr.bf16.mxu0 %v3023_v11  ;;  %v2991_v21 = vcombine.high %v216_v14, %v232_v16  ;;  %1635 = vmatprep.subr.bf16.mxu1 %v3025_v15  ;;  %v2993_v22 = vcombine.high %v217_v17, %v233_v18  ;;  %v184_v23 = vld [vmem:[#allocation2 + $0x400] sm:$0xff]  ;;  %v185_v25 = vld [vmem:[#allocation2 + $0x408] sm:$0xff]  ;;  %v2990_v27 = vcombine.low %v216_v14, %v232_v16  ;;  %v266_v9 = vld [vmem:[#allocation2 + $0x690] sm:$0xff] }
  0x2b   :  { %v200_v24 = vld [vmem:[#allocation2 + $0x480] sm:$0xff]  ;;  %v201_v26 = vld [vmem:[#allocation2 + $0x488] sm:$0xff]  ;;  %v2992_v28 = vcombine.low %v217_v17, %v233_v18  ;;  %v251_v10 = vld [vmem:[#allocation2 + $0x618] sm:$0xff]  ;;  %v3058_v13 = vcombine.low %v282_v63, %v298_v1  ;;  %v3060_v14 = vcombine.low %v283_v2, %v299_v3  ;;  %v3027_v15 = vcombine.high %v250_v8, %v266_v9 }
  0x2c   :  { %v2959_v29 = vcombine.high %v184_v23, %v200_v24  ;;  %v2961_v30 = vcombine.high %v185_v25, %v201_v26  ;;  %v152_v31 = vld [vmem:[#allocation2 + $0x300] sm:$0xff]  ;;  %v153_v33 = vld [vmem:[#allocation2 + $0x308] sm:$0xff]  ;;  %v2958_v35 = vcombine.low %v184_v23, %v200_v24  ;;  %v2960_v36 = vcombine.low %v185_v25, %v201_v26  ;;  %v267_v11 = vld [vmem:[#allocation2 + $0x698] sm:$0xff] }
  0x2d   :  { %1595 = vmatpush1.bf16.msra.mxu0 %v3022_v19  ;;  %1636 = vmatpush1.bf16.msra.mxu1 %v3024_v20  ;;  %v168_v32 = vld [vmem:[#allocation2 + $0x380] sm:$0xff]  ;;  %v169_v34 = vld [vmem:[#allocation2 + $0x388] sm:$0xff]  ;;  %v3029_v16 = vcombine.high %v251_v10, %v267_v11  ;;  %v218_v17 = vld [vmem:[#allocation2 + $0x510] sm:$0xff] }
  0x2e   :  { %1596 = vmatprep.subr.bf16.mxu0 %v2991_v21  ;;  %1637 = vmatprep.subr.bf16.mxu1 %v2993_v22  ;;  %v2927_v37 = vcombine.high %v152_v31, %v168_v32  ;;  %v2929_v38 = vcombine.high %v153_v33, %v169_v34  ;;  %v120_v39 = vld [vmem:[#allocation2 + $0x200] sm:$0xff]  ;;  %v121_v41 = vld [vmem:[#allocation2 + $0x208] sm:$0xff]  ;;  %v2926_v43 = vcombine.low %v152_v31, %v168_v32  ;;  %v234_v18 = vld [vmem:[#allocation2 + $0x590] sm:$0xff] }
  0x2f   :  { %v136_v40 = vld [vmem:[#allocation2 + $0x280] sm:$0xff]  ;;  %v137_v42 = vld [vmem:[#allocation2 + $0x288] sm:$0xff]  ;;  %v2928_v44 = vcombine.low %v153_v33, %v169_v34  ;;  %v219_v19 = vld [vmem:[#allocation2 + $0x518] sm:$0xff]  ;;  %v3026_v21 = vcombine.low %v250_v8, %v266_v9  ;;  %v3028_v22 = vcombine.low %v251_v10, %v267_v11  ;;  %v2995_v23 = vcombine.high %v218_v17, %v234_v18 }
  0x30   :  { %v2895_v45 = vcombine.high %v120_v39, %v136_v40  ;;  %v2897_v46 = vcombine.high %v121_v41, %v137_v42  ;;  %v88_v47 = vld [vmem:[#allocation2 + $0x100] sm:$0xff]  ;;  %v89_v49 = vld [vmem:[#allocation2 + $0x108] sm:$0xff]  ;;  %v2894_v51 = vcombine.low %v120_v39, %v136_v40  ;;  %v2896_v52 = vcombine.low %v121_v41, %v137_v42  ;;  %v235_v20 = vld [vmem:[#allocation2 + $0x598] sm:$0xff] }
  0x31   :  { %1597 = vmatpush1.bf16.msra.mxu0 %v2990_v27  ;;  %1638 = vmatpush1.bf16.msra.mxu1 %v2992_v28  ;;  %v104_v48 = vld [vmem:[#allocation2 + $0x180] sm:$0xff]  ;;  %v105_v50 = vld [vmem:[#allocation2 + $0x188] sm:$0xff]  ;;  %v2997_v24 = vcombine.high %v219_v19, %v235_v20  ;;  %v186_v25 = vld [vmem:[#allocation2 + $0x410] sm:$0xff] }
  0x32   :  { %1598 = vmatprep.subr.bf16.mxu0 %v2959_v29  ;;  %1639 = vmatprep.subr.bf16.mxu1 %v2961_v30  ;;  %v2863_v53 = vcombine.high %v88_v47, %v104_v48  ;;  %v2865_v54 = vcombine.high %v89_v49, %v105_v50  ;;  %v56_v55 = vld [vmem:[#allocation2] sm:$0xff]  ;;  %v57_v57 = vld [vmem:[#allocation2 + $0x8] sm:$0xff]  ;;  %v2862_v59 = vcombine.low %v88_v47, %v104_v48  ;;  %v202_v26 = vld [vmem:[#allocation2 + $0x490] sm:$0xff] }
  0x33   :  { %v72_v56 = vld [vmem:[#allocation2 + $0x80] sm:$0xff]  ;;  %v73_v58 = vld [vmem:[#allocation2 + $0x88] sm:$0xff]  ;;  %v2864_v60 = vcombine.low %v89_v49, %v105_v50  ;;  %v187_v27 = vld [vmem:[#allocation2 + $0x418] sm:$0xff]  ;;  %v2994_v29 = vcombine.low %v218_v17, %v234_v18  ;;  %v2996_v30 = vcombine.low %v219_v19, %v235_v20  ;;  %v2963_v31 = vcombine.high %v186_v25, %v202_v26 }
  0x34   :  { %v2831_v61 = vcombine.high %v56_v55, %v72_v56  ;;  %v2833_v62 = vcombine.high %v57_v57, %v73_v58  ;;  %v2830_v4 = vcombine.low %v56_v55, %v72_v56  ;;  %v2832_v5 = vcombine.low %v57_v57, %v73_v58  ;;  %v3234_v12 = vld [vmem:[%s3429_s0] sm:$0xf]  ;;  %v203_v28 = vld [vmem:[#allocation2 + $0x498] sm:$0xff]  ;;  %v154_v33 = vld [vmem:[#allocation2 + $0x310] sm:$0xff] }
  0x35   :  { %1599 = vmatpush1.bf16.msra.mxu0 %v2958_v35  ;;  %1640 = vmatpush1.bf16.msra.mxu1 %v2960_v36  ;;  %v2965_v32 = vcombine.high %v187_v27, %v203_v28  ;;  %v170_v34 = vld [vmem:[#allocation2 + $0x390] sm:$0xff]  ;;  %v155_v35 = vld [vmem:[#allocation2 + $0x318] sm:$0xff]  ;;  %v284_v2 = vld [vmem:[#allocation2 + $0x720] sm:$0xff] }
  0x36   :  { %1600 = vmatprep.subr.bf16.mxu0 %v2927_v37  ;;  %1641 = vmatprep.subr.bf16.mxu1 %v2929_v38  ;;  %v171_v36 = vld [vmem:[#allocation2 + $0x398] sm:$0xff]  ;;  %v2962_v37 = vcombine.low %v186_v25, %v202_v26  ;;  %v2964_v38 = vcombine.low %v187_v27, %v203_v28  ;;  %v2931_v39 = vcombine.high %v154_v33, %v170_v34  ;;  %v122_v41 = vld [vmem:[#allocation2 + $0x210] sm:$0xff]  ;;  %v300_v3 = vld [vmem:[#allocation2 + $0x7a0] sm:$0xff] }
  0x37   :  { %v2933_v40 = vcombine.high %v155_v35, %v171_v36  ;;  %v138_v42 = vld [vmem:[#allocation2 + $0x290] sm:$0xff]  ;;  %v3063_v8 = vcombine.high %v284_v2, %v300_v3  ;;  %v252_v10 = vld [vmem:[#allocation2 + $0x620] sm:$0xff] }
  0x38   :  { %v2899_v47 = vcombine.high %v122_v41, %v138_v42  ;;  %v90_v49 = vld [vmem:[#allocation2 + $0x110] sm:$0xff]  ;;  %v268_v11 = vld [vmem:[#allocation2 + $0x6a0] sm:$0xff] }
  0x39   :  { %1601 = vmatpush1.bf16.msra.mxu0 %v2926_v43  ;;  %1642 = vmatpush1.bf16.msra.mxu1 %v2928_v44  ;;  %v123_v43 = vld [vmem:[#allocation2 + $0x218] sm:$0xff]  ;;  %v106_v50 = vld [vmem:[#allocation2 + $0x190] sm:$0xff]  ;;  %v3031_v17 = vcombine.high %v252_v10, %v268_v11  ;;  %v220_v19 = vld [vmem:[#allocation2 + $0x520] sm:$0xff] }
  0x3a   :  { %1602 = vmatprep.subr.bf16.mxu0 %v2895_v45  ;;  %1643 = vmatprep.subr.bf16.mxu1 %v2897_v46  ;;  %v139_v44 = vld [vmem:[#allocation2 + $0x298] sm:$0xff]  ;;  %v2930_v45 = vcombine.low %v154_v33, %v170_v34  ;;  %v2932_v46 = vcombine.low %v155_v35, %v171_v36  ;;  %v2867_v55 = vcombine.high %v90_v49, %v106_v50  ;;  %v58_v57 = vld [vmem:[#allocation2 + $0x10] sm:$0xff]  ;;  %v236_v20 = vld [vmem:[#allocation2 + $0x5a0] sm:$0xff] }
  0x3b   :  { %v2901_v48 = vcombine.high %v123_v43, %v139_v44  ;;  %v74_v58 = vld [vmem:[#allocation2 + $0x90] sm:$0xff]  ;;  %v2999_v25 = vcombine.high %v220_v19, %v236_v20  ;;  %v188_v27 = vld [vmem:[#allocation2 + $0x420] sm:$0xff] }
  0x3c   :  { %v2835_v63 = vcombine.high %v58_v57, %v74_v58  ;;  %v204_v28 = vld [vmem:[#allocation2 + $0x4a0] sm:$0xff] }
  0x3d   :  { %1603 = vmatpush1.bf16.msra.mxu0 %v2894_v51  ;;  %1644 = vmatpush1.bf16.msra.mxu1 %v2896_v52  ;;  %v91_v51 = vld [vmem:[#allocation2 + $0x118] sm:$0xff]  ;;  %v2967_v33 = vcombine.high %v188_v27, %v204_v28  ;;  %v156_v35 = vld [vmem:[#allocation2 + $0x320] sm:$0xff] }
  0x3e   :  { %1604 = vmatprep.subr.bf16.mxu0 %v2863_v53  ;;  %1645 = vmatprep.subr.bf16.mxu1 %v2865_v54  ;;  %v107_v52 = vld [vmem:[#allocation2 + $0x198] sm:$0xff]  ;;  %v2898_v53 = vcombine.low %v122_v41, %v138_v42  ;;  %v2900_v54 = vcombine.low %v123_v43, %v139_v44  ;;  %v172_v36 = vld [vmem:[#allocation2 + $0x3a0] sm:$0xff] }
  0x3f   :  { %v2869_v56 = vcombine.high %v91_v51, %v107_v52  ;;  %v2935_v41 = vcombine.high %v156_v35, %v172_v36  ;;  %v124_v43 = vld [vmem:[#allocation2 + $0x220] sm:$0xff] }
  0x40   :  { %v140_v44 = vld [vmem:[#allocation2 + $0x2a0] sm:$0xff] }
  0x41   :  { %1605 = vmatpush1.bf16.msra.mxu0 %v2862_v59  ;;  %1646 = vmatpush1.bf16.msra.mxu1 %v2864_v60  ;;  %v59_v59 = vld [vmem:[#allocation2 + $0x18] sm:$0xff] }
  0x42   :  { %1606 = vmatprep.subr.bf16.mxu0 %v2831_v61  ;;  %1647 = vmatprep.subr.bf16.mxu1 %v2833_v62  ;;  %v75_v60 = vld [vmem:[#allocation2 + $0x98] sm:$0xff]  ;;  %v2866_v61 = vcombine.low %v90_v49, %v106_v50  ;;  %v2868_v62 = vcombine.low %v91_v51, %v107_v52  ;;  %v2903_v49 = vcombine.high %v124_v43, %v140_v44  ;;  %v92_v51 = vld [vmem:[#allocation2 + $0x120] sm:$0xff] }
  0x43   :  { %v2837_v1 = vcombine.high %v59_v59, %v75_v60  ;;  %v108_v52 = vld [vmem:[#allocation2 + $0x1a0] sm:$0xff] }
  0x45   :  { %1607 = vmatpush1.bf16.msra.mxu0 %v2830_v4  ;;  %1648 = vmatpush1.bf16.msra.mxu1 %v2832_v5  ;;  %v285_v4 = vld [vmem:[#allocation2 + $0x728] sm:$0xff] }
  0x46   :  { %1674 = vmatprep.subr.bf16.mxu0 %v3059_v6  ;;  %1715 = vmatprep.subr.bf16.mxu1 %v3061_v7  ;;  %v301_v5 = vld [vmem:[#allocation2 + $0x7a8] sm:$0xff]  ;;  %v2834_v6 = vcombine.low %v58_v57, %v74_v58  ;;  %v2836_v7 = vcombine.low %v59_v59, %v75_v60  ;;  %v2871_v57 = vcombine.high %v92_v51, %v108_v52  ;;  %v60_v59 = vld [vmem:[#allocation2 + $0x20] sm:$0xff] }
  0x47   :  { %v3065_v9 = vcombine.high %v285_v4, %v301_v5  ;;  %v76_v60 = vld [vmem:[#allocation2 + $0xa0] sm:$0xff] }
  0x48   :  { %1625 = vmatmul.mubr.bf16.vlgmr.msra.gmra.mxu0 %v3234_v12  ;;  %1666 = vmatmul.mubr.bf16.vlgmr.msra.gmra.mxu1 %v3234_v12 }
  0x49   :  { %1675 = vmatpush1.bf16.msra.mxu0 %v3058_v13  ;;  %1716 = vmatpush1.bf16.msra.mxu1 %v3060_v14  ;;  %v253_v13 = vld [vmem:[#allocation2 + $0x628] sm:$0xff] }
  0x4a   :  { %1676 = vmatprep.subr.bf16.mxu0 %v3027_v15  ;;  %1717 = vmatprep.subr.bf16.mxu1 %v3029_v16  ;;  %v269_v14 = vld [vmem:[#allocation2 + $0x6a8] sm:$0xff]  ;;  %v3062_v15 = vcombine.low %v284_v2, %v300_v3  ;;  %v3064_v16 = vcombine.low %v285_v4, %v301_v5  ;;  %v2839_v2 = vcombine.high %v60_v59, %v76_v60  ;;  %v286_v4 = vld [vmem:[#allocation2 + $0x730] sm:$0xff] }
  0x4b   :  { %1706 = vmatprep.mubr.bf16.mxu0 %v3194_v0  ;;  %1747 = vmatprep.mubr.bf16.mxu1 %v3194_v0  ;;  %v3033_v18 = vcombine.high %v253_v13, %v269_v14  ;;  %v302_v5 = vld [vmem:[#allocation2 + $0x7b0] sm:$0xff] }
  0x4d   :  { %1677 = vmatpush1.bf16.msra.mxu0 %v3026_v21  ;;  %1718 = vmatpush1.bf16.msra.mxu1 %v3028_v22  ;;  %v221_v21 = vld [vmem:[#allocation2 + $0x528] sm:$0xff] }
  0x4e   :  { %1678 = vmatprep.subr.bf16.mxu0 %v2995_v23  ;;  %1719 = vmatprep.subr.bf16.mxu1 %v2997_v24  ;;  %v237_v22 = vld [vmem:[#allocation2 + $0x5a8] sm:$0xff]  ;;  %v3030_v23 = vcombine.low %v252_v10, %v268_v11  ;;  %v3032_v24 = vcombine.low %v253_v13, %v269_v14  ;;  %v3067_v10 = vcombine.high %v286_v4, %v302_v5  ;;  %v254_v13 = vld [vmem:[#allocation2 + $0x630] sm:$0xff] }
  0x4f   :  { %v3001_v26 = vcombine.high %v221_v21, %v237_v22  ;;  %v270_v14 = vld [vmem:[#allocation2 + $0x6b0] sm:$0xff] }
  0x51   :  { %1679 = vmatpush1.bf16.msra.mxu0 %v2994_v29  ;;  %1720 = vmatpush1.bf16.msra.mxu1 %v2996_v30  ;;  %v189_v29 = vld [vmem:[#allocation2 + $0x428] sm:$0xff] }
  0x52   :  { %1680 = vmatprep.subr.bf16.mxu0 %v2963_v31  ;;  %1721 = vmatprep.subr.bf16.mxu1 %v2965_v32  ;;  %v205_v30 = vld [vmem:[#allocation2 + $0x4a8] sm:$0xff]  ;;  %v2998_v31 = vcombine.low %v220_v19, %v236_v20  ;;  %v3000_v32 = vcombine.low %v221_v21, %v237_v22  ;;  %v3035_v19 = vcombine.high %v254_v13, %v270_v14  ;;  %v222_v21 = vld [vmem:[#allocation2 + $0x530] sm:$0xff] }
  0x53   :  { %v2969_v34 = vcombine.high %v189_v29, %v205_v30  ;;  %v238_v22 = vld [vmem:[#allocation2 + $0x5b0] sm:$0xff] }
  0x55   :  { %1681 = vmatpush1.bf16.msra.mxu0 %v2962_v37  ;;  %1722 = vmatpush1.bf16.msra.mxu1 %v2964_v38  ;;  %v157_v37 = vld [vmem:[#allocation2 + $0x328] sm:$0xff] }
  0x56   :  { %1682 = vmatprep.subr.bf16.mxu0 %v2931_v39  ;;  %1723 = vmatprep.subr.bf16.mxu1 %v2933_v40  ;;  %v173_v38 = vld [vmem:[#allocation2 + $0x3a8] sm:$0xff]  ;;  %v2966_v39 = vcombine.low %v188_v27, %v204_v28  ;;  %v2968_v40 = vcombine.low %v189_v29, %v205_v30  ;;  %v3003_v27 = vcombine.high %v222_v21, %v238_v22  ;;  %v190_v29 = vld [vmem:[#allocation2 + $0x430] sm:$0xff] }
  0x57   :  { %v2937_v42 = vcombine.high %v157_v37, %v173_v38  ;;  %v206_v30 = vld [vmem:[#allocation2 + $0x4b0] sm:$0xff] }
  0x59   :  { %1683 = vmatpush1.bf16.msra.mxu0 %v2930_v45  ;;  %1724 = vmatpush1.bf16.msra.mxu1 %v2932_v46  ;;  %v125_v45 = vld [vmem:[#allocation2 + $0x228] sm:$0xff] }
  0x5a   :  { %1684 = vmatprep.subr.bf16.mxu0 %v2899_v47  ;;  %1725 = vmatprep.subr.bf16.mxu1 %v2901_v48  ;;  %v141_v46 = vld [vmem:[#allocation2 + $0x2a8] sm:$0xff]  ;;  %v2934_v47 = vcombine.low %v156_v35, %v172_v36  ;;  %v2936_v48 = vcombine.low %v157_v37, %v173_v38  ;;  %v2971_v35 = vcombine.high %v190_v29, %v206_v30  ;;  %v158_v37 = vld [vmem:[#allocation2 + $0x330] sm:$0xff] }
  0x5b   :  { %v2905_v50 = vcombine.high %v125_v45, %v141_v46  ;;  %v174_v38 = vld [vmem:[#allocation2 + $0x3b0] sm:$0xff] }
  0x5d   :  { %1685 = vmatpush1.bf16.msra.mxu0 %v2898_v53  ;;  %1726 = vmatpush1.bf16.msra.mxu1 %v2900_v54  ;;  %v93_v53 = vld [vmem:[#allocation2 + $0x128] sm:$0xff] }
  0x5e   :  { %1686 = vmatprep.subr.bf16.mxu0 %v2867_v55  ;;  %1727 = vmatprep.subr.bf16.mxu1 %v2869_v56  ;;  %v109_v54 = vld [vmem:[#allocation2 + $0x1a8] sm:$0xff]  ;;  %v2902_v55 = vcombine.low %v124_v43, %v140_v44  ;;  %v2904_v56 = vcombine.low %v125_v45, %v141_v46  ;;  %v2939_v43 = vcombine.high %v158_v37, %v174_v38  ;;  %v126_v45 = vld [vmem:[#allocation2 + $0x230] sm:$0xff] }
  0x5f   :  { %v2873_v58 = vcombine.high %v93_v53, %v109_v54  ;;  %v142_v46 = vld [vmem:[#allocation2 + $0x2b0] sm:$0xff] }
  0x61   :  { %1687 = vmatpush1.bf16.msra.mxu0 %v2866_v61  ;;  %1728 = vmatpush1.bf16.msra.mxu1 %v2868_v62  ;;  %v61_v61 = vld [vmem:[#allocation2 + $0x28] sm:$0xff] }
  0x62   :  { %1688 = vmatprep.subr.bf16.mxu0 %v2835_v63  ;;  %1729 = vmatprep.subr.bf16.mxu1 %v2837_v1  ;;  %v77_v62 = vld [vmem:[#allocation2 + $0xa8] sm:$0xff]  ;;  %v2870_v63 = vcombine.low %v92_v51, %v108_v52  ;;  %v2872_v1 = vcombine.low %v93_v53, %v109_v54  ;;  %v2907_v51 = vcombine.high %v126_v45, %v142_v46  ;;  %v94_v53 = vld [vmem:[#allocation2 + $0x130] sm:$0xff] }
  0x63   :  { %v2841_v3 = vcombine.high %v61_v61, %v77_v62  ;;  %v110_v54 = vld [vmem:[#allocation2 + $0x1b0] sm:$0xff] }
  0x65   :  { %1689 = vmatpush1.bf16.msra.mxu0 %v2834_v6  ;;  %1730 = vmatpush1.bf16.msra.mxu1 %v2836_v7  ;;  %v287_v6 = vld [vmem:[#allocation2 + $0x738] sm:$0xff] }
  0x66   :  { %1756 = vmatprep.subr.bf16.mxu0 %v3063_v8  ;;  %1797 = vmatprep.subr.bf16.mxu1 %v3065_v9  ;;  %v303_v7 = vld [vmem:[#allocation2 + $0x7b8] sm:$0xff]  ;;  %v2838_v8 = vcombine.low %v60_v59, %v76_v60  ;;  %v2840_v9 = vcombine.low %v61_v61, %v77_v62  ;;  %v2875_v59 = vcombine.high %v94_v53, %v110_v54  ;;  %v62_v61 = vld [vmem:[#allocation2 + $0x30] sm:$0xff] }
  0x67   :  { %v3069_v11 = vcombine.high %v287_v6, %v303_v7  ;;  %v78_v62 = vld [vmem:[#allocation2 + $0xb0] sm:$0xff] }
  0x68   :  { %1707 = vmatmul.mubr.bf16.vlgmr.msra.gmra.mxu0 %v3234_v12  ;;  %1748 = vmatmul.mubr.bf16.vlgmr.msra.gmra.mxu1 %v3234_v12 }
  0x69   :  { %1757 = vmatpush1.bf16.msra.mxu0 %v3062_v15  ;;  %1798 = vmatpush1.bf16.msra.mxu1 %v3064_v16  ;;  %v255_v15 = vld [vmem:[#allocation2 + $0x638] sm:$0xff] }
  0x6a   :  { %1758 = vmatprep.subr.bf16.mxu0 %v3031_v17  ;;  %1799 = vmatprep.subr.bf16.mxu1 %v3033_v18  ;;  %v271_v16 = vld [vmem:[#allocation2 + $0x6b8] sm:$0xff]  ;;  %v3066_v17 = vcombine.low %v286_v4, %v302_v5  ;;  %v3068_v18 = vcombine.low %v287_v6, %v303_v7  ;;  %v2843_v4 = vcombine.high %v62_v61, %v78_v62  ;;  %v288_v6 = vld [vmem:[#allocation2 + $0x740] sm:$0xff] }
  0x6b   :  { %1788 = vmatprep.mubr.bf16.mxu0 %v3194_v0  ;;  %1829 = vmatprep.mubr.bf16.mxu1 %v3194_v0  ;;  %v3037_v20 = vcombine.high %v255_v15, %v271_v16  ;;  %v304_v7 = vld [vmem:[#allocation2 + $0x7c0] sm:$0xff] }
  0x6d   :  { %1759 = vmatpush1.bf16.msra.mxu0 %v3030_v23  ;;  %1800 = vmatpush1.bf16.msra.mxu1 %v3032_v24  ;;  %v223_v23 = vld [vmem:[#allocation2 + $0x538] sm:$0xff] }
  0x6e   :  { %1760 = vmatprep.subr.bf16.mxu0 %v2999_v25  ;;  %1801 = vmatprep.subr.bf16.mxu1 %v3001_v26  ;;  %v239_v24 = vld [vmem:[#allocation2 + $0x5b8] sm:$0xff]  ;;  %v3034_v25 = vcombine.low %v254_v13, %v270_v14  ;;  %v3036_v26 = vcombine.low %v255_v15, %v271_v16  ;;  %v3071_v13 = vcombine.high %v288_v6, %v304_v7  ;;  %v256_v15 = vld [vmem:[#allocation2 + $0x640] sm:$0xff] }
  0x6f   :  { %v3005_v28 = vcombine.high %v223_v23, %v239_v24  ;;  %v272_v16 = vld [vmem:[#allocation2 + $0x6c0] sm:$0xff] }
  0x71   :  { %1761 = vmatpush1.bf16.msra.mxu0 %v2998_v31  ;;  %1802 = vmatpush1.bf16.msra.mxu1 %v3000_v32  ;;  %v191_v31 = vld [vmem:[#allocation2 + $0x438] sm:$0xff] }
  0x72   :  { %1762 = vmatprep.subr.bf16.mxu0 %v2967_v33  ;;  %1803 = vmatprep.subr.bf16.mxu1 %v2969_v34  ;;  %v207_v32 = vld [vmem:[#allocation2 + $0x4b8] sm:$0xff]  ;;  %v3002_v33 = vcombine.low %v222_v21, %v238_v22  ;;  %v3004_v34 = vcombine.low %v223_v23, %v239_v24  ;;  %v3039_v21 = vcombine.high %v256_v15, %v272_v16  ;;  %v224_v23 = vld [vmem:[#allocation2 + $0x540] sm:$0xff] }
  0x73   :  { %v2973_v36 = vcombine.high %v191_v31, %v207_v32  ;;  %v240_v24 = vld [vmem:[#allocation2 + $0x5c0] sm:$0xff] }
  0x75   :  { %1763 = vmatpush1.bf16.msra.mxu0 %v2966_v39  ;;  %1804 = vmatpush1.bf16.msra.mxu1 %v2968_v40  ;;  %v159_v39 = vld [vmem:[#allocation2 + $0x338] sm:$0xff] }
  0x76   :  { %1764 = vmatprep.subr.bf16.mxu0 %v2935_v41  ;;  %1805 = vmatprep.subr.bf16.mxu1 %v2937_v42  ;;  %v175_v40 = vld [vmem:[#allocation2 + $0x3b8] sm:$0xff]  ;;  %v2970_v41 = vcombine.low %v190_v29, %v206_v30  ;;  %v2972_v42 = vcombine.low %v191_v31, %v207_v32  ;;  %v3007_v29 = vcombine.high %v224_v23, %v240_v24  ;;  %v192_v31 = vld [vmem:[#allocation2 + $0x440] sm:$0xff] }
  0x77   :  { %v2941_v44 = vcombine.high %v159_v39, %v175_v40  ;;  %v208_v32 = vld [vmem:[#allocation2 + $0x4c0] sm:$0xff] }
  0x79   :  { %1765 = vmatpush1.bf16.msra.mxu0 %v2934_v47  ;;  %1806 = vmatpush1.bf16.msra.mxu1 %v2936_v48  ;;  %v127_v47 = vld [vmem:[#allocation2 + $0x238] sm:$0xff] }
  0x7a   :  { %1766 = vmatprep.subr.bf16.mxu0 %v2903_v49  ;;  %1807 = vmatprep.subr.bf16.mxu1 %v2905_v50  ;;  %v143_v48 = vld [vmem:[#allocation2 + $0x2b8] sm:$0xff]  ;;  %v2938_v49 = vcombine.low %v158_v37, %v174_v38  ;;  %v2940_v50 = vcombine.low %v159_v39, %v175_v40  ;;  %v2975_v37 = vcombine.high %v192_v31, %v208_v32  ;;  %v160_v39 = vld [vmem:[#allocation2 + $0x340] sm:$0xff] }
  0x7b   :  { %v2909_v52 = vcombine.high %v127_v47, %v143_v48  ;;  %v176_v40 = vld [vmem:[#allocation2 + $0x3c0] sm:$0xff] }
  0x7d   :  { %1767 = vmatpush1.bf16.msra.mxu0 %v2902_v55  ;;  %1808 = vmatpush1.bf16.msra.mxu1 %v2904_v56  ;;  %v95_v55 = vld [vmem:[#allocation2 + $0x138] sm:$0xff] }
  0x7e   :  { %1768 = vmatprep.subr.bf16.mxu0 %v2871_v57  ;;  %1809 = vmatprep.subr.bf16.mxu1 %v2873_v58  ;;  %v111_v56 = vld [vmem:[#allocation2 + $0x1b8] sm:$0xff]  ;;  %v2906_v57 = vcombine.low %v126_v45, %v142_v46  ;;  %v2908_v58 = vcombine.low %v127_v47, %v143_v48  ;;  %v2943_v45 = vcombine.high %v160_v39, %v176_v40  ;;  %v128_v47 = vld [vmem:[#allocation2 + $0x240] sm:$0xff] }
  0x7f   :  { %v2877_v60 = vcombine.high %v95_v55, %v111_v56  ;;  %v144_v48 = vld [vmem:[#allocation2 + $0x2c0] sm:$0xff] }
  0x81   :  { %1769 = vmatpush1.bf16.msra.mxu0 %v2870_v63  ;;  %1810 = vmatpush1.bf16.msra.mxu1 %v2872_v1  ;;  %v63_v63 = vld [vmem:[#allocation2 + $0x38] sm:$0xff] }
  0x82   :  { %1770 = vmatprep.subr.bf16.mxu0 %v2839_v2  ;;  %1811 = vmatprep.subr.bf16.mxu1 %v2841_v3  ;;  %v79_v1 = vld [vmem:[#allocation2 + $0xb8] sm:$0xff]  ;;  %v2874_v2 = vcombine.low %v94_v53, %v110_v54  ;;  %v2876_v3 = vcombine.low %v95_v55, %v111_v56  ;;  %v2911_v53 = vcombine.high %v128_v47, %v144_v48  ;;  %v96_v55 = vld [vmem:[#allocation2 + $0x140] sm:$0xff] }
  0x83   :  { %v2845_v5 = vcombine.high %v63_v63, %v79_v1  ;;  %v112_v56 = vld [vmem:[#allocation2 + $0x1c0] sm:$0xff] }
  0x85   :  { %1771 = vmatpush1.bf16.msra.mxu0 %v2838_v8  ;;  %1812 = vmatpush1.bf16.msra.mxu1 %v2840_v9  ;;  %v289_v8 = vld [vmem:[#allocation2 + $0x748] sm:$0xff] }
  0x86   :  { %1838 = vmatprep.subr.bf16.mxu0 %v3067_v10  ;;  %1879 = vmatprep.subr.bf16.mxu1 %v3069_v11  ;;  %v305_v9 = vld [vmem:[#allocation2 + $0x7c8] sm:$0xff]  ;;  %v2842_v10 = vcombine.low %v62_v61, %v78_v62  ;;  %v2844_v11 = vcombine.low %v63_v63, %v79_v1  ;;  %v2879_v61 = vcombine.high %v96_v55, %v112_v56  ;;  %v64_v63 = vld [vmem:[#allocation2 + $0x40] sm:$0xff] }
  0x87   :  { %v3073_v14 = vcombine.high %v289_v8, %v305_v9  ;;  %v80_v1 = vld [vmem:[#allocation2 + $0xc0] sm:$0xff] }
  0x88   :  { %1789 = vmatmul.mubr.bf16.vlgmr.msra.gmra.mxu0 %v3234_v12  ;;  %1830 = vmatmul.mubr.bf16.vlgmr.msra.gmra.mxu1 %v3234_v12 }
  0x89   :  { %1839 = vmatpush1.bf16.msra.mxu0 %v3066_v17  ;;  %1880 = vmatpush1.bf16.msra.mxu1 %v3068_v18  ;;  %v257_v17 = vld [vmem:[#allocation2 + $0x648] sm:$0xff] }
  0x8a   :  { %1840 = vmatprep.subr.bf16.mxu0 %v3035_v19  ;;  %1881 = vmatprep.subr.bf16.mxu1 %v3037_v20  ;;  %v273_v18 = vld [vmem:[#allocation2 + $0x6c8] sm:$0xff]  ;;  %v3070_v19 = vcombine.low %v288_v6, %v304_v7  ;;  %v3072_v20 = vcombine.low %v289_v8, %v305_v9  ;;  %v2847_v6 = vcombine.high %v64_v63, %v80_v1  ;;  %v290_v8 = vld [vmem:[#allocation2 + $0x750] sm:$0xff] }
  0x8b   :  { %1870 = vmatprep.mubr.bf16.mxu0 %v3194_v0  ;;  %1911 = vmatprep.mubr.bf16.mxu1 %v3194_v0  ;;  %v3041_v22 = vcombine.high %v257_v17, %v273_v18  ;;  %v306_v9 = vld [vmem:[#allocation2 + $0x7d0] sm:$0xff] }
  0x8d   :  { %1841 = vmatpush1.bf16.msra.mxu0 %v3034_v25  ;;  %1882 = vmatpush1.bf16.msra.mxu1 %v3036_v26  ;;  %v225_v25 = vld [vmem:[#allocation2 + $0x548] sm:$0xff] }
  0x8e   :  { %1842 = vmatprep.subr.bf16.mxu0 %v3003_v27  ;;  %1883 = vmatprep.subr.bf16.mxu1 %v3005_v28  ;;  %v241_v26 = vld [vmem:[#allocation2 + $0x5c8] sm:$0xff]  ;;  %v3038_v27 = vcombine.low %v256_v15, %v272_v16  ;;  %v3040_v28 = vcombine.low %v257_v17, %v273_v18  ;;  %v3075_v15 = vcombine.high %v290_v8, %v306_v9  ;;  %v258_v17 = vld [vmem:[#allocation2 + $0x650] sm:$0xff] }
  0x8f   :  { %v3009_v30 = vcombine.high %v225_v25, %v241_v26  ;;  %v274_v18 = vld [vmem:[#allocation2 + $0x6d0] sm:$0xff] }
  0x91   :  { %1843 = vmatpush1.bf16.msra.mxu0 %v3002_v33  ;;  %1884 = vmatpush1.bf16.msra.mxu1 %v3004_v34  ;;  %v193_v33 = vld [vmem:[#allocation2 + $0x448] sm:$0xff] }
  0x92   :  { %1844 = vmatprep.subr.bf16.mxu0 %v2971_v35  ;;  %1885 = vmatprep.subr.bf16.mxu1 %v2973_v36  ;;  %v209_v34 = vld [vmem:[#allocation2 + $0x4c8] sm:$0xff]  ;;  %v3006_v35 = vcombine.low %v224_v23, %v240_v24  ;;  %v3008_v36 = vcombine.low %v225_v25, %v241_v26  ;;  %v3043_v23 = vcombine.high %v258_v17, %v274_v18  ;;  %v226_v25 = vld [vmem:[#allocation2 + $0x550] sm:$0xff] }
  0x93   :  { %v2977_v38 = vcombine.high %v193_v33, %v209_v34  ;;  %v242_v26 = vld [vmem:[#allocation2 + $0x5d0] sm:$0xff] }
  0x95   :  { %1845 = vmatpush1.bf16.msra.mxu0 %v2970_v41  ;;  %1886 = vmatpush1.bf16.msra.mxu1 %v2972_v42  ;;  %v161_v41 = vld [vmem:[#allocation2 + $0x348] sm:$0xff] }
  0x96   :  { %1846 = vmatprep.subr.bf16.mxu0 %v2939_v43  ;;  %1887 = vmatprep.subr.bf16.mxu1 %v2941_v44  ;;  %v177_v42 = vld [vmem:[#allocation2 + $0x3c8] sm:$0xff]  ;;  %v2974_v43 = vcombine.low %v192_v31, %v208_v32  ;;  %v2976_v44 = vcombine.low %v193_v33, %v209_v34  ;;  %v3011_v31 = vcombine.high %v226_v25, %v242_v26  ;;  %v194_v33 = vld [vmem:[#allocation2 + $0x450] sm:$0xff] }
  0x97   :  { %v2945_v46 = vcombine.high %v161_v41, %v177_v42  ;;  %v210_v34 = vld [vmem:[#allocation2 + $0x4d0] sm:$0xff] }
  0x99   :  { %1847 = vmatpush1.bf16.msra.mxu0 %v2938_v49  ;;  %1888 = vmatpush1.bf16.msra.mxu1 %v2940_v50  ;;  %v129_v49 = vld [vmem:[#allocation2 + $0x248] sm:$0xff] }
  0x9a   :  { %1848 = vmatprep.subr.bf16.mxu0 %v2907_v51  ;;  %1889 = vmatprep.subr.bf16.mxu1 %v2909_v52  ;;  %v145_v50 = vld [vmem:[#allocation2 + $0x2c8] sm:$0xff]  ;;  %v2942_v51 = vcombine.low %v160_v39, %v176_v40  ;;  %v2944_v52 = vcombine.low %v161_v41, %v177_v42  ;;  %v2979_v39 = vcombine.high %v194_v33, %v210_v34  ;;  %v162_v41 = vld [vmem:[#allocation2 + $0x350] sm:$0xff] }
  0x9b   :  { %v2913_v54 = vcombine.high %v129_v49, %v145_v50  ;;  %v178_v42 = vld [vmem:[#allocation2 + $0x3d0] sm:$0xff] }
  0x9d   :  { %1849 = vmatpush1.bf16.msra.mxu0 %v2906_v57  ;;  %1890 = vmatpush1.bf16.msra.mxu1 %v2908_v58  ;;  %v97_v57 = vld [vmem:[#allocation2 + $0x148] sm:$0xff] }
  0x9e   :  { %1850 = vmatprep.subr.bf16.mxu0 %v2875_v59  ;;  %1891 = vmatprep.subr.bf16.mxu1 %v2877_v60  ;;  %v113_v58 = vld [vmem:[#allocation2 + $0x1c8] sm:$0xff]  ;;  %v2910_v59 = vcombine.low %v128_v47, %v144_v48  ;;  %v2912_v60 = vcombine.low %v129_v49, %v145_v50  ;;  %v2947_v47 = vcombine.high %v162_v41, %v178_v42  ;;  %v130_v49 = vld [vmem:[#allocation2 + $0x250] sm:$0xff] }
  0x9f   :  { %v2881_v62 = vcombine.high %v97_v57, %v113_v58  ;;  %v146_v50 = vld [vmem:[#allocation2 + $0x2d0] sm:$0xff] }
  0xa1   :  { %1851 = vmatpush1.bf16.msra.mxu0 %v2874_v2  ;;  %1892 = vmatpush1.bf16.msra.mxu1 %v2876_v3  ;;  %v65_v2 = vld [vmem:[#allocation2 + $0x48] sm:$0xff] }
  0xa2   :  { %1852 = vmatprep.subr.bf16.mxu0 %v2843_v4  ;;  %1893 = vmatprep.subr.bf16.mxu1 %v2845_v5  ;;  %v81_v3 = vld [vmem:[#allocation2 + $0xc8] sm:$0xff]  ;;  %v2878_v4 = vcombine.low %v96_v55, %v112_v56  ;;  %v2880_v5 = vcombine.low %v97_v57, %v113_v58  ;;  %v2915_v55 = vcombine.high %v130_v49, %v146_v50  ;;  %v98_v57 = vld [vmem:[#allocation2 + $0x150] sm:$0xff] }
  0xa3   :  { %v2849_v7 = vcombine.high %v65_v2, %v81_v3  ;;  %v114_v58 = vld [vmem:[#allocation2 + $0x1d0] sm:$0xff] }
  0xa5   :  { %1853 = vmatpush1.bf16.msra.mxu0 %v2842_v10  ;;  %1894 = vmatpush1.bf16.msra.mxu1 %v2844_v11  ;;  %v291_v10 = vld [vmem:[#allocation2 + $0x758] sm:$0xff] }
  0xa6   :  { %1920 = vmatprep.subr.bf16.mxu0 %v3071_v13  ;;  %1961 = vmatprep.subr.bf16.mxu1 %v3073_v14  ;;  %v307_v11 = vld [vmem:[#allocation2 + $0x7d8] sm:$0xff]  ;;  %v2846_v13 = vcombine.low %v64_v63, %v80_v1  ;;  %v2848_v14 = vcombine.low %v65_v2, %v81_v3  ;;  %v2883_v63 = vcombine.high %v98_v57, %v114_v58  ;;  %v66_v2 = vld [vmem:[#allocation2 + $0x50] sm:$0xff] }
  0xa7   :  { %v3077_v16 = vcombine.high %v291_v10, %v307_v11  ;;  %v82_v3 = vld [vmem:[#allocation2 + $0xd0] sm:$0xff] }
  0xa8   :  { %1871 = vmatmul.mubr.bf16.vlgmr.msra.gmra.mxu0 %v3234_v12  ;;  %1912 = vmatmul.mubr.bf16.vlgmr.msra.gmra.mxu1 %v3234_v12 }
  0xa9   :  { %1921 = vmatpush1.bf16.msra.mxu0 %v3070_v19  ;;  %1962 = vmatpush1.bf16.msra.mxu1 %v3072_v20  ;;  %v259_v19 = vld [vmem:[#allocation2 + $0x658] sm:$0xff] }
  0xaa   :  { %1922 = vmatprep.subr.bf16.mxu0 %v3039_v21  ;;  %1963 = vmatprep.subr.bf16.mxu1 %v3041_v22  ;;  %v275_v20 = vld [vmem:[#allocation2 + $0x6d8] sm:$0xff]  ;;  %v3074_v21 = vcombine.low %v290_v8, %v306_v9  ;;  %v3076_v22 = vcombine.low %v291_v10, %v307_v11  ;;  %v2851_v8 = vcombine.high %v66_v2, %v82_v3  ;;  %v292_v10 = vld [vmem:[#allocation2 + $0x760] sm:$0xff] }
  0xab   :  { %1952 = vmatprep.mubr.bf16.mxu0 %v3194_v0  ;;  %1993 = vmatprep.mubr.bf16.mxu1 %v3194_v0  ;;  %v3045_v24 = vcombine.high %v259_v19, %v275_v20  ;;  %v308_v11 = vld [vmem:[#allocation2 + $0x7e0] sm:$0xff] }
  0xad   :  { %1923 = vmatpush1.bf16.msra.mxu0 %v3038_v27  ;;  %1964 = vmatpush1.bf16.msra.mxu1 %v3040_v28  ;;  %v227_v27 = vld [vmem:[#allocation2 + $0x558] sm:$0xff] }
  0xae   :  { %1924 = vmatprep.subr.bf16.mxu0 %v3007_v29  ;;  %1965 = vmatprep.subr.bf16.mxu1 %v3009_v30  ;;  %v243_v28 = vld [vmem:[#allocation2 + $0x5d8] sm:$0xff]  ;;  %v3042_v29 = vcombine.low %v258_v17, %v274_v18  ;;  %v3044_v30 = vcombine.low %v259_v19, %v275_v20  ;;  %v3079_v17 = vcombine.high %v292_v10, %v308_v11  ;;  %v260_v19 = vld [vmem:[#allocation2 + $0x660] sm:$0xff] }
  0xaf   :  { %v3013_v32 = vcombine.high %v227_v27, %v243_v28  ;;  %v276_v20 = vld [vmem:[#allocation2 + $0x6e0] sm:$0xff] }
  0xb1   :  { %1925 = vmatpush1.bf16.msra.mxu0 %v3006_v35  ;;  %1966 = vmatpush1.bf16.msra.mxu1 %v3008_v36  ;;  %v195_v35 = vld [vmem:[#allocation2 + $0x458] sm:$0xff] }
  0xb2   :  { %1926 = vmatprep.subr.bf16.mxu0 %v2975_v37  ;;  %1967 = vmatprep.subr.bf16.mxu1 %v2977_v38  ;;  %v211_v36 = vld [vmem:[#allocation2 + $0x4d8] sm:$0xff]  ;;  %v3010_v37 = vcombine.low %v226_v25, %v242_v26  ;;  %v3012_v38 = vcombine.low %v227_v27, %v243_v28  ;;  %v3047_v25 = vcombine.high %v260_v19, %v276_v20  ;;  %v228_v27 = vld [vmem:[#allocation2 + $0x560] sm:$0xff] }
  0xb3   :  { %v2981_v40 = vcombine.high %v195_v35, %v211_v36  ;;  %v244_v28 = vld [vmem:[#allocation2 + $0x5e0] sm:$0xff] }
  0xb5   :  { %1927 = vmatpush1.bf16.msra.mxu0 %v2974_v43  ;;  %1968 = vmatpush1.bf16.msra.mxu1 %v2976_v44  ;;  %v163_v43 = vld [vmem:[#allocation2 + $0x358] sm:$0xff] }
  0xb6   :  { %1928 = vmatprep.subr.bf16.mxu0 %v2943_v45  ;;  %1969 = vmatprep.subr.bf16.mxu1 %v2945_v46  ;;  %v179_v44 = vld [vmem:[#allocation2 + $0x3d8] sm:$0xff]  ;;  %v2978_v45 = vcombine.low %v194_v33, %v210_v34  ;;  %v2980_v46 = vcombine.low %v195_v35, %v211_v36  ;;  %v3015_v34 = vcombine.high %v228_v27, %v244_v28  ;;  %v196_v36 = vld [vmem:[#allocation2 + $0x460] sm:$0xff] }
  0xb7   :  { %v2949_v48 = vcombine.high %v163_v43, %v179_v44 }
  0xb9   :  { %1929 = vmatpush1.bf16.msra.mxu0 %v2942_v51  ;;  %1970 = vmatpush1.bf16.msra.mxu1 %v2944_v52  ;;  %v131_v51 = vld [vmem:[#allocation2 + $0x258] sm:$0xff] }
  0xba   :  { %1930 = vmatprep.subr.bf16.mxu0 %v2911_v53  ;;  %1971 = vmatprep.subr.bf16.mxu1 %v2913_v54  ;;  %v147_v52 = vld [vmem:[#allocation2 + $0x2d8] sm:$0xff]  ;;  %v2946_v53 = vcombine.low %v162_v41, %v178_v42  ;;  %v2948_v54 = vcombine.low %v163_v43, %v179_v44  ;;  %v164_v43 = vld [vmem:[#allocation2 + $0x360] sm:$0xff] }
  0xbb   :  { %v2917_v56 = vcombine.high %v131_v51, %v147_v52  ;;  %v180_v44 = vld [vmem:[#allocation2 + $0x3e0] sm:$0xff] }
  0xbd   :  { %1931 = vmatpush1.bf16.msra.mxu0 %v2910_v59  ;;  %1972 = vmatpush1.bf16.msra.mxu1 %v2912_v60  ;;  %v99_v59 = vld [vmem:[#allocation2 + $0x158] sm:$0xff] }
  0xbe   :  { %1932 = vmatprep.subr.bf16.mxu0 %v2879_v61  ;;  %1973 = vmatprep.subr.bf16.mxu1 %v2881_v62  ;;  %v115_v60 = vld [vmem:[#allocation2 + $0x1d8] sm:$0xff]  ;;  %v2914_v61 = vcombine.low %v130_v49, %v146_v50  ;;  %v2916_v62 = vcombine.low %v131_v51, %v147_v52  ;;  %v2951_v49 = vcombine.high %v164_v43, %v180_v44  ;;  %v132_v51 = vld [vmem:[#allocation2 + $0x260] sm:$0xff] }
  0xbf   :  { %v2885_v1 = vcombine.high %v99_v59, %v115_v60  ;;  %v148_v52 = vld [vmem:[#allocation2 + $0x2e0] sm:$0xff] }
  0xc1   :  { %1933 = vmatpush1.bf16.msra.mxu0 %v2878_v4  ;;  %1974 = vmatpush1.bf16.msra.mxu1 %v2880_v5  ;;  %v67_v4 = vld [vmem:[#allocation2 + $0x58] sm:$0xff] }
  0xc2   :  { %1934 = vmatprep.subr.bf16.mxu0 %v2847_v6  ;;  %1975 = vmatprep.subr.bf16.mxu1 %v2849_v7  ;;  %v83_v5 = vld [vmem:[#allocation2 + $0xd8] sm:$0xff]  ;;  %v2882_v6 = vcombine.low %v98_v57, %v114_v58  ;;  %v2884_v7 = vcombine.low %v99_v59, %v115_v60  ;;  %v2919_v57 = vcombine.high %v132_v51, %v148_v52  ;;  %v100_v59 = vld [vmem:[#allocation2 + $0x160] sm:$0xff] }
  0xc3   :  { %v2853_v9 = vcombine.high %v67_v4, %v83_v5  ;;  %v116_v60 = vld [vmem:[#allocation2 + $0x1e0] sm:$0xff] }
  0xc5   :  { %1935 = vmatpush1.bf16.msra.mxu0 %v2846_v13  ;;  %1976 = vmatpush1.bf16.msra.mxu1 %v2848_v14  ;;  %v293_v13 = vld [vmem:[#allocation2 + $0x768] sm:$0xff] }
  0xc6   :  { %2002 = vmatprep.subr.bf16.mxu0 %v3075_v15  ;;  %2043 = vmatprep.subr.bf16.mxu1 %v3077_v16  ;;  %v309_v14 = vld [vmem:[#allocation2 + $0x7e8] sm:$0xff]  ;;  %v2850_v15 = vcombine.low %v66_v2, %v82_v3  ;;  %v2852_v16 = vcombine.low %v67_v4, %v83_v5  ;;  %v2887_v3 = vcombine.high %v100_v59, %v116_v60  ;;  %v68_v5 = vld [vmem:[#allocation2 + $0x60] sm:$0xff] }
  0xc7   :  { %v3081_v18 = vcombine.high %v293_v13, %v309_v14 }
  0xc8   :  { %1953 = vmatmul.mubr.bf16.vlgmr.msra.gmra.mxu0 %v3234_v12  ;;  %1994 = vmatmul.mubr.bf16.vlgmr.msra.gmra.mxu1 %v3234_v12 }
  0xc9   :  { %2003 = vmatpush1.bf16.msra.mxu0 %v3074_v21  ;;  %2044 = vmatpush1.bf16.msra.mxu1 %v3076_v22  ;;  %v261_v21 = vld [vmem:[#allocation2 + $0x668] sm:$0xff] }
  0xca   :  { %2004 = vmatprep.subr.bf16.mxu0 %v3043_v23  ;;  %2045 = vmatprep.subr.bf16.mxu1 %v3045_v24  ;;  %v277_v22 = vld [vmem:[#allocation2 + $0x6e8] sm:$0xff]  ;;  %v3078_v23 = vcombine.low %v292_v10, %v308_v11  ;;  %v3080_v24 = vcombine.low %v293_v13, %v309_v14 }
  0xcb   :  { %2034 = vmatprep.mubr.bf16.mxu0 %v3194_v0  ;;  %2075 = vmatprep.mubr.bf16.mxu1 %v3194_v0  ;;  %v3049_v26 = vcombine.high %v261_v21, %v277_v22  ;;  %v3048_v33 = vcombine.low %v261_v21, %v277_v22  ;;  %v3270_v22 = vld [vmem:[#allocation4] sm:$0xff] }
  0xcd   :  { %2005 = vmatpush1.bf16.msra.mxu0 %v3042_v29  ;;  %2046 = vmatpush1.bf16.msra.mxu1 %v3044_v30  ;;  %v229_v29 = vld [vmem:[#allocation2 + $0x568] sm:$0xff] }
  0xce   :  { %2006 = vmatprep.subr.bf16.mxu0 %v3011_v31  ;;  %2047 = vmatprep.subr.bf16.mxu1 %v3013_v32  ;;  %v245_v30 = vld [vmem:[#allocation2 + $0x5e8] sm:$0xff]  ;;  %v3260_v31 = vld [vmem:[%s3429_s0] sm:$0xf]  ;;  %v3046_v32 = vcombine.low %v260_v19, %v276_v20 }
  0xcf   :  { %v3017_v35 = vcombine.high %v229_v29, %v245_v30 }
  0xd1   :  { %2007 = vmatpush1.bf16.msra.mxu0 %v3010_v37  ;;  %2048 = vmatpush1.bf16.msra.mxu1 %v3012_v38  ;;  %v212_v37 = vld [vmem:[#allocation2 + $0x4e0] sm:$0xff]  ;;  %v213_v38 = vld [vmem:[#allocation2 + $0x4e8] sm:$0xff] }
  0xd2   :  { %2008 = vmatprep.subr.bf16.mxu0 %v2979_v39  ;;  %2049 = vmatprep.subr.bf16.mxu1 %v2981_v40  ;;  %v3014_v39 = vcombine.low %v228_v27, %v244_v28  ;;  %v3016_v40 = vcombine.low %v229_v29, %v245_v30  ;;  %v2983_v41 = vcombine.high %v196_v36, %v212_v37  ;;  %v262_v27 = vld [vmem:[#allocation2 + $0x670] sm:$0xff]  ;;  %v3278_v29 = vld [vmem:[#allocation6] sm:$0xff] }
  0xd3   :  { %v278_v28 = vld [vmem:[#allocation2 + $0x6f0] sm:$0xff] }
  0xd5   :  { %2009 = vmatpush1.bf16.msra.mxu0 %v2978_v45  ;;  %2050 = vmatpush1.bf16.msra.mxu1 %v2980_v46  ;;  %v165_v45 = vld [vmem:[#allocation2 + $0x368] sm:$0xff] }
  0xd6   :  { %2010 = vmatprep.subr.bf16.mxu0 %v2947_v47  ;;  %2051 = vmatprep.subr.bf16.mxu1 %v2949_v48  ;;  %v181_v46 = vld [vmem:[#allocation2 + $0x3e8] sm:$0xff]  ;;  %v2982_v47 = vcombine.low %v196_v36, %v212_v37 }
  0xd7   :  { %v2953_v50 = vcombine.high %v165_v45, %v181_v46 }
  0xd9   :  { %2011 = vmatpush1.bf16.msra.mxu0 %v2946_v53  ;;  %2052 = vmatpush1.bf16.msra.mxu1 %v2948_v54  ;;  %v133_v53 = vld [vmem:[#allocation2 + $0x268] sm:$0xff] }
  0xda   :  { %2012 = vmatprep.subr.bf16.mxu0 %v2915_v55  ;;  %2053 = vmatprep.subr.bf16.mxu1 %v2917_v56  ;;  %v149_v54 = vld [vmem:[#allocation2 + $0x2e8] sm:$0xff]  ;;  %v2950_v55 = vcombine.low %v164_v43, %v180_v44  ;;  %v2952_v56 = vcombine.low %v165_v45, %v181_v46 }
  0xdb   :  { %v2921_v58 = vcombine.high %v133_v53, %v149_v54  ;;  %v2920_v2 = vcombine.low %v133_v53, %v149_v54 }
  0xdd   :  { %2013 = vmatpush1.bf16.msra.mxu0 %v2914_v61  ;;  %2054 = vmatpush1.bf16.msra.mxu1 %v2916_v62  ;;  %v101_v61 = vld [vmem:[#allocation2 + $0x168] sm:$0xff] }
  0xde   :  { %2014 = vmatprep.subr.bf16.mxu0 %v2883_v63  ;;  %2055 = vmatprep.subr.bf16.mxu1 %v2885_v1  ;;  %v117_v62 = vld [vmem:[#allocation2 + $0x1e8] sm:$0xff]  ;;  %v2918_v63 = vcombine.low %v132_v51, %v148_v52  ;;  %v2256_v1 = vlaneseq  ;;  %v3050_v52 = vcombine.low %v262_v27, %v278_v28 }
  0xdf   :  { %v2889_v4 = vcombine.high %v101_v61, %v117_v62  ;;  %v2888_v11 = vcombine.low %v101_v61, %v117_v62  ;;  %v198_v61 = vld [vmem:[#allocation2 + $0x470] sm:$0xff] }
  0xe0   :  { %v3265_v10 = vshrl.u32 %v2256_v1, 7  ;;  %v214_v62 = vld [vmem:[#allocation2 + $0x4f0] sm:$0xff] }
  0xe1   :  { %2015 = vmatpush1.bf16.msra.mxu0 %v2882_v6  ;;  %2056 = vmatpush1.bf16.msra.mxu1 %v2884_v7  ;;  %v84_v6 = vld [vmem:[#allocation2 + $0xe0] sm:$0xff]  ;;  %v69_v7 = vld [vmem:[#allocation2 + $0x68] sm:$0xff] }
  0xe2   :  { %2016 = vmatprep.subr.bf16.mxu0 %v2851_v8  ;;  %2057 = vmatprep.subr.bf16.mxu1 %v2853_v9  ;;  %v85_v8 = vld [vmem:[#allocation2 + $0xe8] sm:$0xff]  ;;  %v2886_v9 = vcombine.low %v100_v59, %v116_v60  ;;  %v2855_v13 = vcombine.high %v68_v5, %v84_v6  ;;  %v2854_v19 = vcombine.low %v68_v5, %v84_v6  ;;  %v3268_v20 = vsub.s32 0, %v3265_v10 }
  0xe3   :  { %v2857_v14 = vcombine.high %v69_v7, %v85_v8  ;;  %v2856_v21 = vcombine.low %v69_v7, %v85_v8  ;;  %v3281_v30 = vsub.s32 3, %v3265_v10 }
  0xe5   :  { %2017 = vmatpush1.bf16.msra.mxu0 %v2850_v15  ;;  %2058 = vmatpush1.bf16.msra.mxu1 %v2852_v16  ;;  %v294_v15 = vld [vmem:[#allocation2 + $0x770] sm:$0xff]  ;;  %v2271_v46 = vrot.slane %v3270_v22, %v3281_v30  ;;  %v2471_v51 = vrot.slane %v3278_v29, %v3281_v30 }
  0xe6   :  { %2084 = vmatprep.subr.bf16.mxu0 %v3079_v17  ;;  %2125 = vmatprep.subr.bf16.mxu1 %v3081_v18  ;;  %v310_v16 = vld [vmem:[#allocation2 + $0x7f0] sm:$0xff]  ;;  %v295_v17 = vld [vmem:[#allocation2 + $0x778] sm:$0xff] }
  0xe7   :  { %v311_v18 = vld [vmem:[#allocation2 + $0x7f8] sm:$0xff] }
  0xe8   :  { %2035 = vmatmul.mubr.bf16.vlgmr.msra.gmra.mxu0 %v3234_v12  ;;  %2076 = vmatmul.mubr.bf16.vlgmr.msra.gmra.mxu1 %v3260_v31  ;;  %v197_v12 = vld [vmem:[#allocation2 + $0x468] sm:$0xff]  ;;  %v3084_v37 = vcombine.low %v295_v17, %v311_v18 }
  0xe9   :  { %2085 = vmatpush1.bf16.msra.mxu0 %v3078_v23  ;;  %2126 = vmatpush1.bf16.msra.mxu1 %v3080_v24  ;;  %v2985_v42 = vcombine.high %v197_v12, %v213_v38  ;;  %v2984_v48 = vcombine.low %v197_v12, %v213_v38  ;;  %v3273_v23 = vsub.s32 2, %v3265_v10  ;;  %v3083_v24 = vcombine.high %v294_v15, %v310_v16 }
  0xea   :  { %2086 = vmatprep.subr.bf16.mxu0 %v3047_v25  ;;  %2127 = vmatprep.subr.bf16.mxu1 %v3049_v26  ;;  %v3085_v25 = vcombine.high %v295_v17, %v311_v18  ;;  %v3276_v26 = vsub.s32 1, %v3265_v10  ;;  %v3051_v12 = vcombine.high %v262_v27, %v278_v28  ;;  %v2459_v38 = vrot.slane %v3278_v29, %v3268_v20 }
  0xeb   :  { %2116 = vmatprep.mubr.bf16.mxu0 %v3194_v0  ;;  %2157 = vmatprep.mubr.bf16.mxu1 %v3194_v0  ;;  %v2267_v36 = vrot.slane %v3270_v22, %v3273_v23  ;;  %v2467_v44 = vrot.slane %v3278_v29, %v3273_v23  ;;  %v2986_v28 = vcombine.low %v198_v61, %v214_v62 }
  0xec   :  { %v2463_v45 = vrot.slane %v3278_v29, %v3276_v26 }
  0xed   :  { %2087 = vmatpush1.bf16.msra.mxu0 %v3046_v32  ;;  %2128 = vmatpush1.bf16.msra.mxu1 %v3048_v33  ;;  %v263_v32 = vld [vmem:[#allocation2 + $0x678] sm:$0xff] }
  0xee   :  { %2088 = vmatprep.subr.bf16.mxu0 %v3015_v34  ;;  %2129 = vmatprep.subr.bf16.mxu1 %v3017_v35  ;;  %v279_v33 = vld [vmem:[#allocation2 + $0x6f8] sm:$0xff]  ;;  %v2259_v34 = vrot.slane %v3270_v22, %v3268_v20  ;;  %v3082_v35 = vcombine.low %v294_v15, %v310_v16  ;;  %v2987_v15 = vcombine.high %v198_v61, %v214_v62  ;;  %v3313_v62 = vsub.s32 6, %v3265_v10 }
  0xf1   :  { %2089 = vmatpush1.bf16.msra.mxu0 %v3014_v39  ;;  %2130 = vmatpush1.bf16.msra.mxu1 %v3016_v40  ;;  %v2263_v39 = vrot.slane %v3270_v22, %v3276_v26  ;;  %v3053_v40 = vcombine.high %v263_v32, %v279_v33 }
  0xf2   :  { %2090 = vmatprep.subr.bf16.mxu0 %v2983_v41  ;;  %2131 = vmatprep.subr.bf16.mxu1 %v2985_v42  ;;  %v230_v41 = vld [vmem:[#allocation2 + $0x570] sm:$0xff] }
  0xf3   :  { %v246_v42 = vld [vmem:[#allocation2 + $0x5f0] sm:$0xff] }
  0xf4   :  { %v3018_v8 = vcombine.low %v230_v41, %v246_v42 }
  0xf5   :  { %2091 = vmatpush1.bf16.msra.mxu0 %v2982_v47  ;;  %2132 = vmatpush1.bf16.msra.mxu1 %v2984_v48  ;;  %v231_v47 = vld [vmem:[#allocation2 + $0x578] sm:$0xff] }
  0xf6   :  { %2092 = vmatprep.subr.bf16.mxu0 %v2951_v49  ;;  %2133 = vmatprep.subr.bf16.mxu1 %v2953_v50  ;;  %v247_v48 = vld [vmem:[#allocation2 + $0x5f8] sm:$0xff] }
  0xf7   :  { %v3021_v60 = vcombine.high %v231_v47, %v247_v48 }
  0xf9   :  { %2093 = vmatpush1.bf16.msra.mxu0 %v2950_v55  ;;  %2134 = vmatpush1.bf16.msra.mxu1 %v2952_v56  ;;  %v3052_v55 = vcombine.low %v263_v32, %v279_v33  ;;  %v3019_v56 = vcombine.high %v230_v41, %v246_v42 }
  0xfa   :  { %2094 = vmatprep.subr.bf16.mxu0 %v2919_v57  ;;  %2135 = vmatprep.subr.bf16.mxu1 %v2921_v58 }
  0xfd   :  { %2095 = vmatpush1.bf16.msra.mxu0 %v2918_v63  ;;  %2136 = vmatpush1.bf16.msra.mxu1 %v2920_v2 }
  0xfe   :  { %2096 = vmatprep.subr.bf16.mxu0 %v2887_v3  ;;  %2137 = vmatprep.subr.bf16.mxu1 %v2889_v4  ;;  %v199_v3 = vld [vmem:[#allocation2 + $0x478] sm:$0xff] }
  0xff   :  { %v215_v4 = vld [vmem:[#allocation2 + $0x4f8] sm:$0xff] }
 0x100   :  { %v2989_v18 = vcombine.high %v199_v3, %v215_v4  ;;  %v2988_v33 = vcombine.low %v199_v3, %v215_v4  ;;  %v2283_v3 = vrot.slane %v3270_v22, %v3313_v62 }
 0x101   :  { %2097 = vmatpush1.bf16.msra.mxu0 %v2886_v9  ;;  %2138 = vmatpush1.bf16.msra.mxu1 %v2888_v11 }
 0x102   :  { %2098 = vmatprep.subr.bf16.mxu0 %v2855_v13  ;;  %2139 = vmatprep.subr.bf16.mxu1 %v2857_v14  ;;  %v3020_v14 = vcombine.low %v231_v47, %v247_v48 }
 0x105   :  { %2099 = vmatpush1.bf16.msra.mxu0 %v2854_v19  ;;  %2140 = vmatpush1.bf16.msra.mxu1 %v2856_v21  ;;  %v166_v19 = vld [vmem:[#allocation2 + $0x370] sm:$0xff] }
 0x106   :  { %2166 = vmatprep.subr.bf16.mxu0 %v3083_v24  ;;  %2207 = vmatprep.subr.bf16.mxu1 %v3085_v25  ;;  %v182_v21 = vld [vmem:[#allocation2 + $0x3f0] sm:$0xff]  ;;  %v183_v25 = vld [vmem:[#allocation2 + $0x3f8] sm:$0xff] }
 0x108   :  { %v1626_v43 = vpop.f32.mrf.mxu0  ;;  %2117 = vmatmul.mubr.bf16.vlgmr.msra.gmra.mxu0 %v3260_v31  ;;  %v1667_v50 = vpop.f32.mrf.mxu1  ;;  %2158 = vmatmul.mubr.bf16.vlgmr.msra.gmra.mxu1 %v3260_v31 }
 0x109   :  { %v2416_v49 = vmul.f32 %v2259_v34, %v1626_v43  ;;  %2167 = vmatpush1.bf16.msra.mxu0 %v3082_v35  ;;  %v2418_v53 = vmul.f32 %v2267_v36, %v1667_v50  ;;  %2208 = vmatpush1.bf16.msra.mxu1 %v3084_v37  ;;  %v2955_v34 = vcombine.high %v166_v19, %v182_v21  ;;  %v134_v36 = vld [vmem:[#allocation2 + $0x270] sm:$0xff] }
 0x10a   :  { %v1628_v54 = vpop.f32.mrf.mxu0  ;;  %2168 = vmatprep.subr.bf16.mxu0 %v3051_v12  ;;  %v1669_v59 = vpop.f32.mrf.mxu1  ;;  %2209 = vmatprep.subr.bf16.mxu1 %v3053_v40  ;;  %v150_v37 = vld [vmem:[#allocation2 + $0x2f0] sm:$0xff]  ;;  %v135_v12 = vld [vmem:[#allocation2 + $0x278] sm:$0xff] }
 0x10b   :  { %v2616_v57 = vadd.f32 %v2459_v38, %v2416_v49  ;;  %v2417_v58 = vmul.f32 %v2263_v39, %v1628_v54  ;;  %2198 = vmatprep.mubr.bf16.mxu0 %v3194_v0  ;;  %v2618_v63 = vadd.f32 %v2467_v44, %v2418_v53  ;;  %v2419_v1 = vmul.f32 %v2271_v46, %v1669_v59  ;;  %v151_v38 = vld [vmem:[#allocation2 + $0x2f8] sm:$0xff]  ;;  %v102_v43 = vld [vmem:[#allocation2 + $0x170] sm:$0xff] }
 0x10c   :  { %v1630_v2 = vpop.f32.mrf.mxu0  ;;  %2239 = vmatprep.mubr.bf16.mxu1 %v3194_v0  ;;  %v1671_v7 = vpop.f32.mrf.mxu1  ;;  %v167_v0 = vld [vmem:[#allocation2 + $0x378] sm:$0xff]  ;;  %v2954_v39 = vcombine.low %v166_v19, %v182_v21  ;;  %v2923_v41 = vcombine.high %v134_v36, %v150_v37  ;;  %v2925_v42 = vcombine.high %v135_v12, %v151_v38  ;;  %v118_v44 = vld [vmem:[#allocation2 + $0x1f0] sm:$0xff]  ;;  %v2922_v47 = vcombine.low %v134_v36, %v150_v37  ;;  %v2449_v37 = vld [vmem:[#allocation6 + $0x8] sm:$0xff] }
 0x10d   :  { %v2648_v5 = vmax.f32 %v2616_v57, 0.0  ;;  %v2617_v6 = vadd.f32 %v2463_v45, %v2417_v58  ;;  %2169 = vmatpush1.bf16.msra.mxu0 %v3050_v52  ;;  %v2650_v9 = vmax.f32 %v2618_v63, 0.0  ;;  %v2619_v11 = vadd.f32 %v2471_v51, %v2419_v1  ;;  %2210 = vmatpush1.bf16.msra.mxu1 %v3052_v55  ;;  %v103_v45 = vld [vmem:[#allocation2 + $0x178] sm:$0xff]  ;;  %v70_v51 = vld [vmem:[#allocation2 + $0x70] sm:$0xff] }
 0x10e   :  { %v1631_v13 = vpop.f32.mrf.mxu0  ;;  %2170 = vmatprep.subr.bf16.mxu0 %v3019_v56  ;;  %v1672_v17 = vpop.f32.mrf.mxu1  ;;  %2211 = vmatprep.subr.bf16.mxu1 %v3021_v60  ;;  %v2957_v35 = vcombine.high %v167_v0, %v183_v25  ;;  %v2956_v40 = vcombine.low %v167_v0, %v183_v25  ;;  %v119_v46 = vld [vmem:[#allocation2 + $0x1f8] sm:$0xff]  ;;  %v2924_v48 = vcombine.low %v135_v12, %v151_v38  ;;  %v86_v52 = vld [vmem:[#allocation2 + $0xf0] sm:$0xff]  ;;  %v3310_v60 = vsub.s32 4, %v3265_v10 }
 0x10f   :  { %v2649_v16 = vmax.f32 %v2617_v6, 0.0  ;;  %v2651_v24 = vmax.f32 %v2619_v11, 0.0  ;;  %v2891_v49 = vcombine.high %v102_v43, %v118_v44  ;;  %v2893_v50 = vcombine.high %v103_v45, %v119_v46  ;;  %v71_v53 = vld [vmem:[#allocation2 + $0x78] sm:$0xff] }
 0x110   :  { %v87_v54 = vld [vmem:[#allocation2 + $0xf8] sm:$0xff]  ;;  %v2890_v55 = vcombine.low %v102_v43, %v118_v44  ;;  %v2892_v56 = vcombine.low %v103_v45, %v119_v46  ;;  %v2859_v57 = vcombine.high %v70_v51, %v86_v52  ;;  %v2858_v59 = vcombine.low %v70_v51, %v86_v52 }
 0x111   :  { %v3102_v27 = vpack.c.bf16 %v2649_v16, %v2648_v5  ;;  %2171 = vmatpush1.bf16.msra.mxu0 %v3018_v8  ;;  %v3103_v32 = vpack.c.bf16 %v2651_v24, %v2650_v9  ;;  %2212 = vmatpush1.bf16.msra.mxu1 %v3020_v14  ;;  %v2861_v58 = vcombine.high %v71_v53, %v87_v54  ;;  %v3316_v63 = vsub.s32 5, %v3265_v10 }
 0x112   :  { %2172 = vmatprep.subr.bf16.mxu0 %v2987_v15  ;;  %2213 = vmatprep.subr.bf16.mxu1 %v2989_v18  ;;  %v2860_v61 = vcombine.low %v71_v53, %v87_v54  ;;  %v3319_v1 = vsub.s32 7, %v3265_v10  ;;  %v2275_v2 = vrot.slane %v3270_v22, %v3310_v60  ;;  %v2475_v4 = vrot.slane %v3278_v29, %v3310_v60 }
 0x113   :  { %2808 = vst [vmem:[%s3433_s4] sm:$0xff] %v3102_v27  ;;  %2809 = vst [vmem:[%s3433_s4 + $0x8] sm:$0xff] %v3103_v32  ;;  %v2279_v5 = vrot.slane %v3270_v22, %v3316_v63  ;;  %v2483_v7 = vrot.slane %v3278_v29, %v3313_v62  ;;  %v2479_v11 = vrot.slane %v3278_v29, %v3316_v63 }
 0x114   :  { %v2287_v10 = vrot.slane %v3270_v22, %v3319_v1  ;;  %v2487_v15 = vrot.slane %v3278_v29, %v3319_v1  ;;  %v2249_v29 = vld [vmem:[#allocation4 + $0x8] sm:$0xff]  ;;  %v2495_v46 = vrot.slane %v2449_v37, %v3276_v26 }
 0x115   :  { %2173 = vmatpush1.bf16.msra.mxu0 %v2986_v28  ;;  %2214 = vmatpush1.bf16.msra.mxu1 %v2988_v33  ;;  %v2291_v12 = vrot.slane %v2249_v29, %v3268_v20  ;;  %v2299_v38 = vrot.slane %v2249_v29, %v3273_v23  ;;  %v2303_v43 = vrot.slane %v2249_v29, %v3281_v30 }
 0x116   :  { %2174 = vmatprep.subr.bf16.mxu0 %v2955_v34  ;;  %2215 = vmatprep.subr.bf16.mxu1 %v2957_v35 }
 0x119   :  { %2175 = vmatpush1.bf16.msra.mxu0 %v2954_v39  ;;  %2216 = vmatpush1.bf16.msra.mxu1 %v2956_v40  ;;  %v2491_v39 = vrot.slane %v2449_v37, %v3268_v20  ;;  %v2295_v40 = vrot.slane %v2249_v29, %v3276_v26 }
 0x11a   :  { %2176 = vmatprep.subr.bf16.mxu0 %v2923_v41  ;;  %2217 = vmatprep.subr.bf16.mxu1 %v2925_v42  ;;  %v2499_v42 = vrot.slane %v2449_v37, %v3273_v23 }
 0x11d   :  { %2177 = vmatpush1.bf16.msra.mxu0 %v2922_v47  ;;  %2218 = vmatpush1.bf16.msra.mxu1 %v2924_v48 }
 0x11e   :  { %2178 = vmatprep.subr.bf16.mxu0 %v2891_v49  ;;  %2219 = vmatprep.subr.bf16.mxu1 %v2893_v50  ;;  %v2503_v49 = vrot.slane %v2449_v37, %v3281_v30 }
 0x121   :  { %2179 = vmatpush1.bf16.msra.mxu0 %v2890_v55  ;;  %2220 = vmatpush1.bf16.msra.mxu1 %v2892_v56 }
 0x122   :  { %2180 = vmatprep.subr.bf16.mxu0 %v2859_v57  ;;  %2221 = vmatprep.subr.bf16.mxu1 %v2861_v58 }
 0x125   :  { %2181 = vmatpush1.bf16.msra.mxu0 %v2858_v59  ;;  %2222 = vmatpush1.bf16.msra.mxu1 %v2860_v61 }
 0x128   :  { %v1708_v6 = vpop.f32.mrf.mxu0  ;;  %2199 = vmatmul.mubr.bf16.vlgmr.msra.gmra.mxu0 %v3260_v31  ;;  %v1749_v9 = vpop.f32.mrf.mxu1  ;;  %2240 = vmatmul.mubr.bf16.vlgmr.msra.gmra.mxu1 %v3260_v31 }
 0x129   :  { %v2420_v8 = vmul.f32 %v2275_v2, %v1708_v6  ;;  %v2422_v13 = vmul.f32 %v2283_v3, %v1749_v9  ;;  %v2507_v9 = vrot.slane %v2449_v37, %v3310_v60 }
 0x12a   :  { %v1710_v14 = vpop.f32.mrf.mxu0  ;;  %v1751_v18 = vpop.f32.mrf.mxu1 }
 0x12b   :  { %v2620_v16 = vadd.f32 %v2475_v4, %v2420_v8  ;;  %v2421_v17 = vmul.f32 %v2279_v5, %v1710_v14  ;;  %v2622_v19 = vadd.f32 %v2483_v7, %v2422_v13  ;;  %v2423_v21 = vmul.f32 %v2287_v10, %v1751_v18 }
 0x12c   :  { %v1712_v24 = vpop.f32.mrf.mxu0  ;;  %v1753_v25 = vpop.f32.mrf.mxu1  ;;  %v2307_v10 = vrot.slane %v2249_v29, %v3310_v60  ;;  %v2315_v8 = vrot.slane %v2249_v29, %v3313_v62  ;;  %v2515_v14 = vrot.slane %v2449_v37, %v3313_v62  ;;  %v2511_v18 = vrot.slane %v2449_v37, %v3316_v63 }
 0x12d   :  { %v2652_v0 = vmax.f32 %v2620_v16, 0.0  ;;  %v2621_v22 = vadd.f32 %v2479_v11, %v2421_v17  ;;  %v2654_v27 = vmax.f32 %v2622_v19, 0.0  ;;  %v2623_v28 = vadd.f32 %v2487_v15, %v2423_v21 }
 0x12e   :  { %v1713_v31 = vpop.f32.mrf.mxu0  ;;  %v1754_v33 = vpop.f32.mrf.mxu1  ;;  %v2311_v11 = vrot.slane %v2249_v29, %v3316_v63  ;;  %v2319_v15 = vrot.slane %v2249_v29, %v3319_v1  ;;  %v2519_v24 = vrot.slane %v2449_v37, %v3319_v1  ;;  %v2250_v37 = vld [vmem:[#allocation4 + $0x10] sm:$0xff] }
 0x12f   :  { %v2653_v32 = vmax.f32 %v2621_v22, 0.0  ;;  %v2655_v34 = vmax.f32 %v2623_v28, 0.0 }
 0x131   :  { %v3104_v35 = vpack.c.bf16 %v2653_v32, %v2652_v0  ;;  %v3105_v36 = vpack.c.bf16 %v2655_v34, %v2654_v27 }
 0x133   :  { %2810 = vst [vmem:[%s3433_s4 + $0x10] sm:$0xff] %v3104_v35  ;;  %2811 = vst [vmem:[%s3433_s4 + $0x18] sm:$0xff] %v3105_v36 }
 0x148   :  { %v1790_v41 = vpop.f32.mrf.mxu0  ;;  %v1831_v45 = vpop.f32.mrf.mxu1 }
 0x149   :  { %v2424_v44 = vmul.f32 %v2291_v12, %v1790_v41  ;;  %v2426_v47 = vmul.f32 %v2299_v38, %v1831_v45 }
 0x14a   :  { %v1792_v48 = vpop.f32.mrf.mxu0  ;;  %v1833_v52 = vpop.f32.mrf.mxu1 }
 0x14b   :  { %v2624_v50 = vadd.f32 %v2491_v39, %v2424_v44  ;;  %v2425_v51 = vmul.f32 %v2295_v40, %v1792_v48  ;;  %v2626_v53 = vadd.f32 %v2499_v42, %v2426_v47  ;;  %v2427_v54 = vmul.f32 %v2303_v43, %v1833_v52  ;;  %v2450_v42 = vld [vmem:[#allocation6 + $0x10] sm:$0xff] }
 0x14c   :  { %v1794_v55 = vpop.f32.mrf.mxu0  ;;  %v1835_v58 = vpop.f32.mrf.mxu1  ;;  %v2323_v43 = vrot.slane %v2250_v37, %v3268_v20  ;;  %v2331_v44 = vrot.slane %v2250_v37, %v3273_v23  ;;  %v2523_v45 = vrot.slane %v2450_v42, %v3268_v20  ;;  %v2531_v48 = vrot.slane %v2450_v42, %v3273_v23 }
 0x14d   :  { %v2656_v56 = vmax.f32 %v2624_v50, 0.0  ;;  %v2625_v57 = vadd.f32 %v2495_v46, %v2425_v51  ;;  %v2658_v59 = vmax.f32 %v2626_v53, 0.0  ;;  %v2627_v61 = vadd.f32 %v2503_v49, %v2427_v54 }
 0x14e   :  { %v1795_v2 = vpop.f32.mrf.mxu0  ;;  %v1836_v4 = vpop.f32.mrf.mxu1  ;;  %v2327_v46 = vrot.slane %v2250_v37, %v3276_v26  ;;  %v2335_v49 = vrot.slane %v2250_v37, %v3281_v30  ;;  %v2527_v52 = vrot.slane %v2450_v42, %v3276_v26  ;;  %v2535_v55 = vrot.slane %v2450_v42, %v3281_v30 }
 0x14f   :  { %v2657_v3 = vmax.f32 %v2625_v57, 0.0  ;;  %v2659_v5 = vmax.f32 %v2627_v61, 0.0 }
 0x151   :  { %v3106_v6 = vpack.c.bf16 %v2657_v3, %v2656_v56  ;;  %v3107_v7 = vpack.c.bf16 %v2659_v5, %v2658_v59 }
 0x153   :  { %2812 = vst [vmem:[%s3433_s4 + $0x20] sm:$0xff] %v3106_v6  ;;  %2813 = vst [vmem:[%s3433_s4 + $0x28] sm:$0xff] %v3107_v7 }
 0x168   :  { %v1872_v13 = vpop.f32.mrf.mxu0  ;;  %v1913_v17 = vpop.f32.mrf.mxu1 }
 0x169   :  { %v2428_v16 = vmul.f32 %v2307_v10, %v1872_v13  ;;  %v2430_v19 = vmul.f32 %v2315_v8, %v1913_v17  ;;  %v2539_v17 = vrot.slane %v2450_v42, %v3310_v60 }
 0x16a   :  { %v1874_v21 = vpop.f32.mrf.mxu0  ;;  %v1915_v25 = vpop.f32.mrf.mxu1 }
 0x16b   :  { %v2628_v0 = vadd.f32 %v2507_v9, %v2428_v16  ;;  %v2429_v22 = vmul.f32 %v2311_v11, %v1874_v21  ;;  %v2630_v27 = vadd.f32 %v2515_v14, %v2430_v19  ;;  %v2431_v28 = vmul.f32 %v2319_v15, %v1915_v25 }
 0x16c   :  { %v1876_v31 = vpop.f32.mrf.mxu0  ;;  %v1917_v34 = vpop.f32.mrf.mxu1  ;;  %v2339_v15 = vrot.slane %v2250_v37, %v3310_v60  ;;  %v2347_v16 = vrot.slane %v2250_v37, %v3313_v62  ;;  %v2547_v21 = vrot.slane %v2450_v42, %v3313_v62  ;;  %v2543_v25 = vrot.slane %v2450_v42, %v3316_v63 }
 0x16d   :  { %v2660_v32 = vmax.f32 %v2628_v0, 0.0  ;;  %v2629_v33 = vadd.f32 %v2511_v18, %v2429_v22  ;;  %v2662_v35 = vmax.f32 %v2630_v27, 0.0  ;;  %v2631_v36 = vadd.f32 %v2519_v24, %v2431_v28 }
 0x16e   :  { %v1877_v29 = vpop.f32.mrf.mxu0  ;;  %v1918_v38 = vpop.f32.mrf.mxu1  ;;  %v2343_v18 = vrot.slane %v2250_v37, %v3316_v63  ;;  %v2351_v24 = vrot.slane %v2250_v37, %v3319_v1  ;;  %v2551_v31 = vrot.slane %v2450_v42, %v3319_v1  ;;  %v2251_v42 = vld [vmem:[#allocation4 + $0x18] sm:$0xff] }
 0x16f   :  { %v2661_v12 = vmax.f32 %v2629_v33, 0.0  ;;  %v2663_v39 = vmax.f32 %v2631_v36, 0.0 }
 0x171   :  { %v3108_v40 = vpack.c.bf16 %v2661_v12, %v2660_v32  ;;  %v3109_v41 = vpack.c.bf16 %v2663_v39, %v2662_v35 }
 0x173   :  { %2814 = vst [vmem:[%s3433_s4 + $0x30] sm:$0xff] %v3108_v40  ;;  %2815 = vst [vmem:[%s3433_s4 + $0x38] sm:$0xff] %v3109_v41 }
 0x188   :  { %v1954_v47 = vpop.f32.mrf.mxu0  ;;  %v1995_v51 = vpop.f32.mrf.mxu1 }
 0x189   :  { %v2432_v50 = vmul.f32 %v2323_v43, %v1954_v47  ;;  %v2434_v53 = vmul.f32 %v2331_v44, %v1995_v51 }
 0x18a   :  { %v1956_v54 = vpop.f32.mrf.mxu0  ;;  %v1997_v58 = vpop.f32.mrf.mxu1 }
 0x18b   :  { %v2632_v56 = vadd.f32 %v2523_v45, %v2432_v50  ;;  %v2433_v57 = vmul.f32 %v2327_v46, %v1956_v54  ;;  %v2634_v59 = vadd.f32 %v2531_v48, %v2434_v53  ;;  %v2435_v61 = vmul.f32 %v2335_v49, %v1997_v58  ;;  %v2451_v48 = vld [vmem:[#allocation6 + $0x18] sm:$0xff] }
 0x18c   :  { %v1958_v2 = vpop.f32.mrf.mxu0  ;;  %v1999_v5 = vpop.f32.mrf.mxu1  ;;  %v2355_v49 = vrot.slane %v2251_v42, %v3268_v20  ;;  %v2363_v50 = vrot.slane %v2251_v42, %v3273_v23  ;;  %v2555_v51 = vrot.slane %v2451_v48, %v3268_v20  ;;  %v2563_v54 = vrot.slane %v2451_v48, %v3273_v23 }
 0x18d   :  { %v2664_v3 = vmax.f32 %v2632_v56, 0.0  ;;  %v2633_v4 = vadd.f32 %v2527_v52, %v2433_v57  ;;  %v2666_v6 = vmax.f32 %v2634_v59, 0.0  ;;  %v2635_v7 = vadd.f32 %v2535_v55, %v2435_v61 }
 0x18e   :  { %v1959_v10 = vpop.f32.mrf.mxu0  ;;  %v2000_v9 = vpop.f32.mrf.mxu1  ;;  %v2359_v52 = vrot.slane %v2251_v42, %v3276_v26  ;;  %v2367_v55 = vrot.slane %v2251_v42, %v3281_v30  ;;  %v2559_v58 = vrot.slane %v2451_v48, %v3276_v26  ;;  %v2567_v2 = vrot.slane %v2451_v48, %v3281_v30 }
 0x18f   :  { %v2665_v8 = vmax.f32 %v2633_v4, 0.0  ;;  %v2667_v11 = vmax.f32 %v2635_v7, 0.0  ;;  %v2371_v30 = vrot.slane %v2251_v42, %v3310_v60 }
 0x191   :  { %v3110_v13 = vpack.c.bf16 %v2665_v8, %v2664_v3  ;;  %v3111_v14 = vpack.c.bf16 %v2667_v11, %v2666_v6 }
 0x193   :  { %2816 = vst [vmem:[%s3433_s4 + $0x40] sm:$0xff] %v3110_v13  ;;  %2817 = vst [vmem:[%s3433_s4 + $0x48] sm:$0xff] %v3111_v14 }
 0x1a8   :  { %v2036_v19 = vpop.f32.mrf.mxu0  ;;  %v2077_v22 = vpop.f32.mrf.mxu1 }
 0x1a9   :  { %v2436_v0 = vmul.f32 %v2339_v15, %v2036_v19  ;;  %v2438_v27 = vmul.f32 %v2347_v16, %v2077_v22  ;;  %v2571_v19 = vrot.slane %v2451_v48, %v3310_v60  ;;  %v2383_v22 = vrot.slane %v2251_v42, %v3319_v1 }
 0x1aa   :  { %v2038_v28 = vpop.f32.mrf.mxu0  ;;  %v2079_v34 = vpop.f32.mrf.mxu1 }
 0x1ab   :  { %v2636_v32 = vadd.f32 %v2539_v17, %v2436_v0  ;;  %v2437_v33 = vmul.f32 %v2343_v18, %v2038_v28  ;;  %v2638_v35 = vadd.f32 %v2547_v21, %v2438_v27  ;;  %v2439_v36 = vmul.f32 %v2351_v24, %v2079_v34 }
 0x1ac   :  { %v2040_v29 = vpop.f32.mrf.mxu0  ;;  %v2081_v39 = vpop.f32.mrf.mxu1  ;;  %v2379_v18 = vrot.slane %v2251_v42, %v3313_v62  ;;  %v2375_v21 = vrot.slane %v2251_v42, %v3316_v63  ;;  %v2579_v0 = vrot.slane %v2451_v48, %v3313_v62  ;;  %v2575_v28 = vrot.slane %v2451_v48, %v3316_v63 }
 0x1ad   :  { %v2668_v12 = vmax.f32 %v2636_v32, 0.0  ;;  %v2637_v38 = vadd.f32 %v2543_v25, %v2437_v33  ;;  %v2670_v40 = vmax.f32 %v2638_v35, 0.0  ;;  %v2639_v41 = vadd.f32 %v2551_v31, %v2439_v36 }
 0x1ae   :  { %v2041_v37 = vpop.f32.mrf.mxu0  ;;  %v2082_v44 = vpop.f32.mrf.mxu1  ;;  %v2583_v33 = vrot.slane %v2451_v48, %v3319_v1 }
 0x1af   :  { %v2669_v43 = vmax.f32 %v2637_v38, 0.0  ;;  %v2671_v45 = vmax.f32 %v2639_v41, 0.0 }
 0x1b1   :  { %v3112_v46 = vpack.c.bf16 %v2669_v43, %v2668_v12  ;;  %v3113_v47 = vpack.c.bf16 %v2671_v45, %v2670_v40 }
 0x1b3   :  { %2818 = vst [vmem:[%s3433_s4 + $0x50] sm:$0xff] %v3112_v46  ;;  %2819 = vst [vmem:[%s3433_s4 + $0x58] sm:$0xff] %v3113_v47 }
 0x1c8   :  { %v2118_v53 = vpop.f32.mrf.mxu0  ;;  %v2159_v57 = vpop.f32.mrf.mxu1 }
 0x1c9   :  { %v2440_v56 = vmul.f32 %v2355_v49, %v2118_v53  ;;  %v2442_v59 = vmul.f32 %v2363_v50, %v2159_v57 }
 0x1ca   :  { %v2120_v61 = vpop.f32.mrf.mxu0  ;;  %v2161_v5 = vpop.f32.mrf.mxu1 }
 0x1cb   :  { %v2640_v3 = vadd.f32 %v2555_v51, %v2440_v56  ;;  %v2441_v4 = vmul.f32 %v2359_v52, %v2120_v61  ;;  %v2642_v6 = vadd.f32 %v2563_v54, %v2442_v59  ;;  %v2443_v20 = vmul.f32 %v2367_v55, %v2161_v5 }
 0x1cc   :  { %v2122_v7 = vpop.f32.mrf.mxu0  ;;  %v2163_v9 = vpop.f32.mrf.mxu1 }
 0x1cd   :  { %v2672_v10 = vmax.f32 %v2640_v3, 0.0  ;;  %v2641_v8 = vadd.f32 %v2559_v58, %v2441_v4  ;;  %v2674_v23 = vmax.f32 %v2642_v6, 0.0  ;;  %v2643_v11 = vadd.f32 %v2567_v2, %v2443_v20 }
 0x1ce   :  { %v2123_v13 = vpop.f32.mrf.mxu0  ;;  %v2164_v15 = vpop.f32.mrf.mxu1 }
 0x1cf   :  { %v2673_v14 = vmax.f32 %v2641_v8, 0.0  ;;  %v2675_v16 = vmax.f32 %v2643_v11, 0.0 }
 0x1d1   :  { %v3114_v26 = vpack.c.bf16 %v2673_v14, %v2672_v10  ;;  %v3115_v17 = vpack.c.bf16 %v2675_v16, %v2674_v23 }
 0x1d3   :  { %2820 = vst [vmem:[%s3433_s4 + $0x60] sm:$0xff] %v3114_v26  ;;  %2821 = vst [vmem:[%s3433_s4 + $0x68] sm:$0xff] %v3115_v17 }
 0x1e8   :  { %v2200_v24 = vpop.f32.mrf.mxu0  ;;  %v2241_v27 = vpop.f32.mrf.mxu1 }
 0x1e9   :  { %v2444_v25 = vmul.f32 %v2371_v30, %v2200_v24  ;;  %v2446_v31 = vmul.f32 %v2379_v18, %v2241_v27 }
 0x1ea   :  { %v2202_v32 = vpop.f32.mrf.mxu0  ;;  %v2243_v36 = vpop.f32.mrf.mxu1 }
 0x1eb   :  { %v2644_v34 = vadd.f32 %v2571_v19, %v2444_v25  ;;  %v2445_v35 = vmul.f32 %v2375_v21, %v2202_v32  ;;  %v2646_v29 = vadd.f32 %v2579_v0, %v2446_v31  ;;  %v2447_v60 = vmul.f32 %v2383_v22, %v2243_v36 }
 0x1ec   :  { %v2204_v12 = vpop.f32.mrf.mxu0  ;;  %v2245_v39 = vpop.f32.mrf.mxu1 }
 0x1ed   :  { %v2645_v38 = vadd.f32 %v2575_v28, %v2445_v35  ;;  %v2647_v40 = vadd.f32 %v2583_v33, %v2447_v60  ;;  %v2676_v41 = vmax.f32 %v2644_v34, 0.0  ;;  %v2678_v44 = vmax.f32 %v2646_v29, 0.0 }
 0x1ee   :  { %v2205_v62 = vpop.f32.mrf.mxu0  ;;  %v2246_v43 = vpop.f32.mrf.mxu1 }
 0x1ef   :  { %v2677_v37 = vmax.f32 %v2645_v38, 0.0  ;;  %v2679_v45 = vmax.f32 %v2647_v40, 0.0 }
 0x1f1   :  { %v3116_v63 = vpack.c.bf16 %v2677_v37, %v2676_v41  ;;  %v3117_v46 = vpack.c.bf16 %v2679_v45, %v2678_v44 }
 0x1f3   :  { %2822 = vst [vmem:[%s3433_s4 + $0x70] sm:$0xff] %v3116_v63  ;;  %2823 = vst [vmem:[%s3433_s4 + $0x78] sm:$0xff] %v3117_v46 }
 0x1f4   :  { %2828 = vsyncpa [#allocation3], 1 }
 0x1f5   :  { %2829 = vsyncpa [#allocation5], 1 }

// kernel: generator_forward.14
= control target key start
LH: loop header
LB: loop body
LE: loop exit
PB: predicated region body
PF: predicated region fallthrough
CT: control target
= control target key end

     0   :  { %v1137_v1 = vmov 0   ;;  %s1552_s1 = inlined_call_operand.vmem [shape: bf16[384,256], index: 1, kind: input, shape index: {}]   ;;  %s1553_s0 = inlined_call_operand.vmem [shape: bf16[128,384], index: 0, kind: input, shape index: {}]   ;;  %s1554_s2 = inlined_call_operand.vmem [shape: f32[1,256], index: 2, kind: input, shape index: {}]   ;;  %s1555_s3 = inlined_call_operand.vmem [shape: f32[1,256], index: 3, kind: input, shape index: {}]   ;;  %s1556_s4 = inlined_call_operand.vmem [shape: bf16[128,256], index: 4, kind: output, shape index: {}]  }
   0x1   :  { %v1033_v0 = vld [vmem:[%s1552_s1 + $0x74] ss:$8 sps:$4 sm:$0xff]   ;;  %611 = vmatprep.mubr.bf16.mxu1 %v1137_v1  ;;  %v1035_v2 = vld [vmem:[%s1552_s1 + $0x70] ss:$8 sps:$4 sm:$0xff]   ;;  %v1036_v3 = vld [vmem:[%s1552_s1 + $0x64] ss:$8 sps:$4 sm:$0xff]  }
   0x2   :  { %466 = vmatprep.subr.bf16.mxu0 %v1033_v0  ;;  %v1038_v4 = vld [vmem:[%s1552_s1 + $0x60] ss:$8 sps:$4 sm:$0xff]   ;;  %v1039_v5 = vld [vmem:[%s1552_s1 + $0x54] ss:$8 sps:$4 sm:$0xff]   ;;  %v1041_v6 = vld [vmem:[%s1552_s1 + $0x50] ss:$8 sps:$4 sm:$0xff]  }
   0x3   :  { %467 = vmatpush1.bf16.msra.mxu0 %v1035_v2  ;;  %v1042_v7 = vld [vmem:[%s1552_s1 + $0x44] ss:$8 sps:$4 sm:$0xff]   ;;  %v1054_v8 = vld [vmem:[%s1552_s1 + $0x174] ss:$8 sps:$4 sm:$0xff]   ;;  %v1056_v9 = vld [vmem:[%s1552_s1 + $0x170] ss:$8 sps:$4 sm:$0xff]  }
   0x4   :  { %468 = vmatprep.subr.bf16.mxu0 %v1036_v3  ;;  %v1044_v10 = vld [vmem:[%s1552_s1 + $0x40] ss:$8 sps:$4 sm:$0xff]   ;;  %v1045_v11 = vld [vmem:[%s1552_s1 + $0x34] ss:$8 sps:$4 sm:$0xff]   ;;  %579 = vmatprep.subr.bf16.mxu1 %v1054_v8  ;;  %v1060_v12 = vld [vmem:[%s1552_s1 + $0x164] ss:$8 sps:$4 sm:$0xff]  }
   0x5   :  { %580 = vmatpush1.bf16.msra.mxu1 %v1056_v9  ;;  %v1062_v13 = vld [vmem:[%s1552_s1 + $0x160] ss:$8 sps:$4 sm:$0xff]   ;;  %v1047_v14 = vld [vmem:[%s1552_s1 + $0x30] ss:$8 sps:$4 sm:$0xff]   ;;  %v1066_v15 = vld [vmem:[%s1552_s1 + $0x154] ss:$8 sps:$4 sm:$0xff]  }
   0x6   :  { %581 = vmatprep.subr.bf16.mxu1 %v1060_v12  ;;  %v1048_v16 = vld [vmem:[%s1552_s1 + $0x24] ss:$8 sps:$4 sm:$0xff]   ;;  %v1068_v17 = vld [vmem:[%s1552_s1 + $0x150] ss:$8 sps:$4 sm:$0xff]   ;;  %v1050_v19 = vld [vmem:[%s1552_s1 + $0x20] ss:$8 sps:$4 sm:$0xff]  }
   0x7   :  { %469 = vmatpush1.bf16.msra.mxu0 %v1038_v4  ;;  %v1072_v18 = vld [vmem:[%s1552_s1 + $0x144] ss:$8 sps:$4 sm:$0xff]   ;;  %v1051_v20 = vld [vmem:[%s1552_s1 + $0x14] ss:$8 sps:$4 sm:$0xff]   ;;  %v1074_v21 = vld [vmem:[%s1552_s1 + $0x140] ss:$8 sps:$4 sm:$0xff]  }
   0x8   :  { %470 = vmatprep.subr.bf16.mxu0 %v1039_v5  ;;  %v1078_v22 = vld [vmem:[%s1552_s1 + $0x134] ss:$8 sps:$4 sm:$0xff]   ;;  %v1053_v23 = vld [vmem:[%s1552_s1 + $0x10] ss:$8 sps:$4 sm:$0xff]   ;;  %v1057_v24 = vld [vmem:[%s1552_s1 + $0x4] ss:$8 sps:$4 sm:$0xff]  }
   0x9   :  { %582 = vmatpush1.bf16.msra.mxu1 %v1062_v13  ;;  %v1080_v25 = vld [vmem:[%s1552_s1 + $0x130] ss:$8 sps:$4 sm:$0xff]   ;;  %v1084_v26 = vld [vmem:[%s1552_s1 + $0x124] ss:$8 sps:$4 sm:$0xff]   ;;  %v1059_v27 = vld [vmem:[%s1552_s1] ss:$8 sps:$4 sm:$0xff]  }
   0xa   :  { %583 = vmatprep.subr.bf16.mxu1 %v1066_v15  ;;  %v1063_v28 = vld [vmem:[%s1552_s1 + $0xf4] ss:$8 sps:$4 sm:$0xff]   ;;  %v1086_v29 = vld [vmem:[%s1552_s1 + $0x120] ss:$8 sps:$4 sm:$0xff]   ;;  %v1065_v31 = vld [vmem:[%s1552_s1 + $0xf0] ss:$8 sps:$4 sm:$0xff]  }
   0xb   :  { %471 = vmatpush1.bf16.msra.mxu0 %v1041_v6  ;;  %v1090_v30 = vld [vmem:[%s1552_s1 + $0x114] ss:$8 sps:$4 sm:$0xff]   ;;  %v1069_v32 = vld [vmem:[%s1552_s1 + $0xe4] ss:$8 sps:$4 sm:$0xff]   ;;  %v1092_v33 = vld [vmem:[%s1552_s1 + $0x110] ss:$8 sps:$4 sm:$0xff]  }
   0xc   :  { %472 = vmatprep.subr.bf16.mxu0 %v1042_v7  ;;  %v1096_v34 = vld [vmem:[%s1552_s1 + $0x104] ss:$8 sps:$4 sm:$0xff]   ;;  %v1071_v36 = vld [vmem:[%s1552_s1 + $0xe0] ss:$8 sps:$4 sm:$0xff]   ;;  %v1075_v37 = vld [vmem:[%s1552_s1 + $0xd4] ss:$8 sps:$4 sm:$0xff]  }
   0xd   :  { %584 = vmatpush1.bf16.msra.mxu1 %v1068_v17  ;;  %v1108_v35 = vld [vmem:[%s1553_s0 + $0x4] ss:$12 sps:$4 sm:$0xff]   ;;  %v1098_v38 = vld [vmem:[%s1552_s1 + $0x100] ss:$8 sps:$4 sm:$0xff]   ;;  %v1087_v43 = vld [vmem:[%s1552_s1 + $0xb4] ss:$8 sps:$4 sm:$0xff]  }
   0xe   :  { %585 = vmatprep.subr.bf16.mxu1 %v1072_v18  ;;  %498 = vmatprep.mubr.bf16.mxu0 %v1108_v35  ;;  %v1077_v39 = vld [vmem:[%s1552_s1 + $0xd0] ss:$8 sps:$4 sm:$0xff]   ;;  %v1081_v40 = vld [vmem:[%s1552_s1 + $0xc4] ss:$8 sps:$4 sm:$0xff]   ;;  %v1102_v41 = vld [vmem:[%s1553_s0 + $0x8] ss:$12 sps:$4 sm:$0xff]  }
   0xf   :  { %473 = vmatpush1.bf16.msra.mxu0 %v1044_v10  ;;  %v1083_v42 = vld [vmem:[%s1552_s1 + $0xc0] ss:$8 sps:$4 sm:$0xff]   ;;  %v1089_v44 = vld [vmem:[%s1552_s1 + $0xb0] ss:$8 sps:$4 sm:$0xff]   ;;  %v1093_v45 = vld [vmem:[%s1552_s1 + $0xa4] ss:$8 sps:$4 sm:$0xff]  }
  0x10   :  { %474 = vmatprep.subr.bf16.mxu0 %v1045_v11  ;;  %v1109_v46 = vld [vmem:[%s1553_s0 + $0x20] ss:$12 sps:$4 sm:$0xff]   ;;  %v1099_v48 = vld [vmem:[%s1552_s1 + $0x94] ss:$8 sps:$4 sm:$0xff]   ;;  %v1101_v49 = vld [vmem:[%s1552_s1 + $0x90] ss:$8 sps:$4 sm:$0xff]  }
  0x11   :  { %586 = vmatpush1.bf16.msra.mxu1 %v1074_v21  ;;  %v1095_v47 = vld [vmem:[%s1552_s1 + $0xa0] ss:$8 sps:$4 sm:$0xff]   ;;  %v1103_v50 = vld [vmem:[%s1552_s1 + $0x84] ss:$8 sps:$4 sm:$0xff]   ;;  %v1117_v55 = vld [vmem:[%s1553_s0 + $0x50] ss:$12 sps:$4 sm:$0xff]  }
  0x12   :  { %587 = vmatprep.subr.bf16.mxu1 %v1078_v22  ;;  %v1113_v51 = vld [vmem:[%s1553_s0 + $0x38] ss:$12 sps:$4 sm:$0xff]   ;;  %v1105_v52 = vld [vmem:[%s1552_s1 + $0x80] ss:$8 sps:$4 sm:$0xff]   ;;  %v1116_v59 = vld [vmem:[%s1553_s0 + $0x30] ss:$12 sps:$4 sm:$0xff]  }
  0x13   :  { %475 = vmatpush1.bf16.msra.mxu0 %v1047_v14  ;;  %v1106_v53 = vld [vmem:[%s1553_s0] ss:$12 sps:$4 sm:$0xff]   ;;  %v1110_v54 = vld [vmem:[%s1553_s0 + $0x1c] ss:$12 sps:$4 sm:$0xff]   ;;  %v1112_v56 = vld [vmem:[%s1553_s0 + $0x18] ss:$12 sps:$4 sm:$0xff]   ;;  %v694_v14 = vlaneseq }
  0x14   :  { %476 = vmatprep.subr.bf16.mxu0 %v1048_v16  ;;  %v1114_v57 = vld [vmem:[%s1553_s0 + $0x34] ss:$12 sps:$4 sm:$0xff]   ;;  %v1118_v60 = vld [vmem:[%s1553_s0 + $0x4c] ss:$12 sps:$4 sm:$0xff]   ;;  %v1122_v63 = vld [vmem:[%s1553_s0 + $0x64] ss:$12 sps:$4 sm:$0xff]  }
  0x15   :  { %588 = vmatpush1.bf16.msra.mxu1 %v1080_v25  ;;  %v1121_v58 = vld [vmem:[%s1553_s0 + $0x68] ss:$12 sps:$4 sm:$0xff]   ;;  %v1125_v61 = vld [vmem:[%s1553_s0 + $0x80] ss:$12 sps:$4 sm:$0xff]   ;;  %v1129_v0 = vld [vmem:[%s1553_s0 + $0x98] ss:$12 sps:$4 sm:$0xff]  }
  0x16   :  { %589 = vmatprep.subr.bf16.mxu1 %v1084_v26  ;;  %v1120_v62 = vld [vmem:[%s1553_s0 + $0x48] ss:$12 sps:$4 sm:$0xff]   ;;  %v1124_v2 = vld [vmem:[%s1553_s0 + $0x60] ss:$12 sps:$4 sm:$0xff]   ;;  %v1133_v4 = vld [vmem:[%s1553_s0 + $0xb0] ss:$12 sps:$4 sm:$0xff]  }
  0x17   :  { %477 = vmatpush1.bf16.msra.mxu0 %v1050_v19  ;;  %v1126_v3 = vld [vmem:[%s1553_s0 + $0x7c] ss:$12 sps:$4 sm:$0xff]   ;;  %v1128_v5 = vld [vmem:[%s1553_s0 + $0x78] ss:$12 sps:$4 sm:$0xff]   ;;  %v695_v17 = vshrl.u32 %v694_v14, 7 }
  0x18   :  { %478 = vmatprep.subr.bf16.mxu0 %v1051_v20  ;;  %v1132_v6 = vld [vmem:[%s1553_s0 + $0x90] ss:$12 sps:$4 sm:$0xff]   ;;  %v1134_v7 = vld [vmem:[%s1553_s0 + $0xac] ss:$12 sps:$4 sm:$0xff]   ;;  %v1136_v8 = vld [vmem:[%s1553_s0 + $0xa8] ss:$12 sps:$4 sm:$0xff]  }
  0x19   :  { %590 = vmatpush1.bf16.msra.mxu1 %v1086_v29  ;;  %v696_v20 = vsub.s32 0, %v695_v17  ;;  %v692_v21 = vld [vmem:[%s1554_s2] sm:$0x3] }
  0x1a   :  { %591 = vmatprep.subr.bf16.mxu1 %v1090_v30 }
  0x1b   :  { %479 = vmatpush1.bf16.msra.mxu0 %v1053_v23  ;;  %v700_v23 = vsub.s32 1, %v695_v17  ;;  %v1397_v26 = vrot.slane %v692_v21, %v696_v20 }
  0x1c   :  { %480 = vmatprep.subr.bf16.mxu0 %v1057_v24  ;;  %v736_v24 = vld [vmem:[%s1555_s3] sm:$0x3] }
  0x1d   :  { %592 = vmatpush1.bf16.msra.mxu1 %v1092_v33  ;;  %v1401_v30 = vrot.slane %v736_v24, %v696_v20 }
  0x1e   :  { %593 = vmatprep.subr.bf16.mxu1 %v1096_v34 }
  0x1f   :  { %481 = vmatpush1.bf16.msra.mxu0 %v1059_v27 }
  0x20   :  { %482 = vmatprep.subr.bf16.mxu0 %v1063_v28 }
  0x21   :  { %594 = vmatpush1.bf16.msra.mxu1 %v1098_v38 }
  0x23   :  { %483 = vmatpush2.bf16.msra.mxu0 %v1065_v31  ;;  %v1403_v31 = vrot.slane %v692_v21, %v700_v23 }
  0x24   :  { %484 = vmatprep.subr.bf16.mxu0 %v1069_v32  ;;  %612 = vmatmul.mubr.bf16.vlgmr.msra.gmra.mxu1 %v1102_v41 }
  0x25   :  { %621 = vmatprep.mubr.bf16.mxu1 %v1137_v1 }
  0x27   :  { %485 = vmatpush2.bf16.msra.mxu0 %v1071_v36  ;;  %v1408_v36 = vrot.slane %v736_v24, %v700_v23 }
  0x28   :  { %486 = vmatprep.subr.bf16.mxu0 %v1075_v37 }
  0x2b   :  { %487 = vmatpush2.bf16.msra.mxu0 %v1077_v39 }
  0x2c   :  { %488 = vmatprep.subr.bf16.mxu0 %v1081_v40  ;;  %622 = vmatmul.mubr.bf16.gmra.mxu1 %v1109_v46 }
  0x2d   :  { %631 = vmatprep.mubr.bf16.mxu1 %v1137_v1 }
  0x2f   :  { %489 = vmatpush2.bf16.msra.mxu0 %v1083_v42 }
  0x30   :  { %490 = vmatprep.subr.bf16.mxu0 %v1087_v43 }
  0x33   :  { %491 = vmatpush2.bf16.msra.mxu0 %v1089_v44 }
  0x34   :  { %492 = vmatprep.subr.bf16.mxu0 %v1093_v45  ;;  %632 = vmatmul.mubr.bf16.gmra.mxu1 %v1113_v51 }
  0x35   :  { %641 = vmatprep.mubr.bf16.mxu1 %v1137_v1 }
  0x37   :  { %493 = vmatpush2.bf16.msra.mxu0 %v1095_v47 }
  0x38   :  { %494 = vmatprep.subr.bf16.mxu0 %v1099_v48 }
  0x3b   :  { %495 = vmatpush2.bf16.msra.mxu0 %v1101_v49 }
  0x3c   :  { %496 = vmatprep.subr.bf16.mxu0 %v1103_v50  ;;  %642 = vmatmul.mubr.bf16.gmra.mxu1 %v1117_v55 }
  0x3d   :  { %651 = vmatprep.mubr.bf16.mxu1 %v1137_v1 }
  0x3f   :  { %497 = vmatpush2.bf16.msra.mxu0 %v1105_v52 }
  0x42   :  { %499 = vmatmul.mubr.bf16.vlgmr.msra.gmra.mxu0 %v1106_v53 }
  0x43   :  { %508 = vmatprep.mubr.bf16.mxu0 %v1110_v54 }
  0x44   :  { %652 = vmatmul.mubr.bf16.gmra.mxu1 %v1121_v58 }
  0x45   :  { %661 = vmatprep.mubr.bf16.mxu1 %v1137_v1 }
  0x4a   :  { %509 = vmatmul.mubr.bf16.gmra.mxu0 %v1112_v56 }
  0x4b   :  { %518 = vmatprep.mubr.bf16.mxu0 %v1114_v57 }
  0x4c   :  { %662 = vmatmul.mubr.bf16.gmra.mxu1 %v1125_v61 }
  0x4d   :  { %671 = vmatprep.mubr.bf16.mxu1 %v1137_v1 }
  0x52   :  { %519 = vmatmul.mubr.bf16.gmra.mxu0 %v1116_v59 }
  0x53   :  { %528 = vmatprep.mubr.bf16.mxu0 %v1118_v60 }
  0x54   :  { %672 = vmatmul.mubr.bf16.gmra.mxu1 %v1129_v0 }
  0x55   :  { %681 = vmatprep.mubr.bf16.mxu1 %v1137_v1  ;;  %v1130_v1 = vld [vmem:[%s1553_s0 + $0x94] ss:$12 sps:$4 sm:$0xff]  }
  0x5a   :  { %529 = vmatmul.mubr.bf16.gmra.mxu0 %v1120_v62 }
  0x5b   :  { %538 = vmatprep.mubr.bf16.mxu0 %v1122_v63 }
  0x5c   :  { %682 = vmatmul.mubr.bf16.gmra.mxu1 %v1133_v4 }
  0x62   :  { %539 = vmatmul.mubr.bf16.gmra.mxu0 %v1124_v2 }
  0x63   :  { %548 = vmatprep.mubr.bf16.mxu0 %v1126_v3 }
  0x6a   :  { %549 = vmatmul.mubr.bf16.gmra.mxu0 %v1128_v5 }
  0x6b   :  { %558 = vmatprep.mubr.bf16.mxu0 %v1130_v1 }
  0x72   :  { %559 = vmatmul.mubr.bf16.gmra.mxu0 %v1132_v6 }
  0x73   :  { %568 = vmatprep.mubr.bf16.mxu0 %v1134_v7 }
  0x7a   :  { %569 = vmatmul.mubr.bf16.gmra.mxu0 %v1136_v8 }
  0xe4   :  { %v613_v9 = vpop.f32.mrf.mxu1 }
  0xe6   :  { %v615_v10 = vpop.f32.mrf.mxu1 }
  0xe8   :  { %v617_v11 = vpop.f32.mrf.mxu1 }
  0xea   :  { %v619_v12 = vpop.f32.mrf.mxu1 }
  0xec   :  { %v623_v13 = vpop.f32.mrf.mxu1 }
  0xee   :  { %v625_v15 = vpop.f32.mrf.mxu1 }
  0xf0   :  { %v627_v16 = vpop.f32.mrf.mxu1 }
  0xf2   :  { %v629_v18 = vpop.f32.mrf.mxu1 }
  0xf4   :  { %v633_v19 = vpop.f32.mrf.mxu1 }
  0xf6   :  { %v1390_v22 = vpop.f32.mrf.mxu1 }
  0xf8   :  { %v1395_v25 = vpop.f32.mrf.mxu1 }
  0xfa   :  { %v1399_v28 = vpop.f32.mrf.mxu1 }
  0xfc   :  { %v1405_v33 = vpop.f32.mrf.mxu1 }
  0xfe   :  { %v1410_v38 = vpop.f32.mrf.mxu1 }
 0x100   :  { %v1414_v43 = vpop.f32.mrf.mxu1 }
 0x102   :  { %v500_v27 = vpop.f32.mrf.mxu0  ;;  %v1418_v49 = vpop.f32.mrf.mxu1 }
 0x103   :  { %v614_v29 = vadd.f32 %v613_v9, %v500_v27 }
 0x104   :  { %v502_v32 = vpop.f32.mrf.mxu0  ;;  %v1422_v55 = vpop.f32.mrf.mxu1 }
 0x105   :  { %v704_v34 = vmul.f32 %v1397_v26, %v614_v29  ;;  %v616_v35 = vadd.f32 %v615_v10, %v502_v32 }
 0x106   :  { %v504_v37 = vpop.f32.mrf.mxu0  ;;  %v1426_v61 = vpop.f32.mrf.mxu1 }
 0x107   :  { %v748_v39 = vadd.f32 %v1401_v30, %v704_v34  ;;  %v705_v40 = vmul.f32 %v1403_v31, %v616_v35  ;;  %v618_v41 = vadd.f32 %v617_v11, %v504_v37 }
 0x108   :  { %v506_v42 = vpop.f32.mrf.mxu0  ;;  %v1433_v5 = vpop.f32.mrf.mxu1 }
 0x109   :  { %v749_v44 = vadd.f32 %v1408_v36, %v705_v40  ;;  %v706_v45 = vmul.f32 %v1397_v26, %v618_v41  ;;  %v620_v46 = vadd.f32 %v619_v12, %v506_v42  ;;  %v780_v47 = vmax.f32 %v748_v39, 0.0 }
 0x10a   :  { %v510_v48 = vpop.f32.mrf.mxu0  ;;  %v1437_v10 = vpop.f32.mrf.mxu1 }
 0x10b   :  { %v781_v50 = vmax.f32 %v749_v44, 0.0  ;;  %v750_v51 = vadd.f32 %v1401_v30, %v706_v45  ;;  %v707_v52 = vmul.f32 %v1403_v31, %v620_v46  ;;  %v624_v53 = vadd.f32 %v623_v13, %v510_v48 }
 0x10c   :  { %v512_v54 = vpop.f32.mrf.mxu0  ;;  %v1444_v17 = vpop.f32.mrf.mxu1 }
 0x10d   :  { %v1016_v56 = vpack.c.bf16 %v781_v50, %v780_v47  ;;  %v751_v57 = vadd.f32 %v1408_v36, %v707_v52  ;;  %v708_v58 = vmul.f32 %v1397_v26, %v624_v53  ;;  %v626_v59 = vadd.f32 %v625_v15, %v512_v54 }
 0x10e   :  { %v514_v60 = vpop.f32.mrf.mxu0  ;;  %v782_v62 = vmax.f32 %v750_v51, 0.0  ;;  %v1455_v37 = vpop.f32.mrf.mxu1 }
 0x10f   :  { %908 = vst [vmem:[%s1556_s4] sm:$0xff] %v1016_v56  ;;  %v783_v63 = vmax.f32 %v751_v57, 0.0  ;;  %v628_v0 = vadd.f32 %v627_v16, %v514_v60  ;;  %v752_v2 = vadd.f32 %v1401_v30, %v708_v58  ;;  %v709_v3 = vmul.f32 %v1403_v31, %v626_v59 }
 0x110   :  { %v516_v4 = vpop.f32.mrf.mxu0  ;;  %v667_v50 = vpop.f32.mrf.mxu1 }
 0x111   :  { %v1017_v1 = vpack.c.bf16 %v783_v63, %v782_v62  ;;  %v710_v6 = vmul.f32 %v1397_v26, %v628_v0  ;;  %v630_v7 = vadd.f32 %v629_v18, %v516_v4  ;;  %v753_v8 = vadd.f32 %v1408_v36, %v709_v3 }
 0x112   :  { %v520_v9 = vpop.f32.mrf.mxu0  ;;  %v784_v14 = vmax.f32 %v752_v2, 0.0  ;;  %v669_v62 = vpop.f32.mrf.mxu1 }
 0x113   :  { %909 = vst [vmem:[%s1556_s4 + $0x8] sm:$0xff] %v1017_v1  ;;  %v754_v11 = vadd.f32 %v1401_v30, %v710_v6  ;;  %v711_v12 = vmul.f32 %v1403_v31, %v630_v7  ;;  %v634_v13 = vadd.f32 %v633_v19, %v520_v9  ;;  %v785_v15 = vmax.f32 %v753_v8, 0.0 }
 0x114   :  { %v522_v16 = vpop.f32.mrf.mxu0  ;;  %v673_v9 = vpop.f32.mrf.mxu1 }
 0x115   :  { %v755_v18 = vadd.f32 %v1408_v36, %v711_v12  ;;  %v712_v20 = vmul.f32 %v1397_v26, %v634_v13  ;;  %v636_v21 = vadd.f32 %v1390_v22, %v522_v16  ;;  %v1018_v23 = vpack.c.bf16 %v785_v15, %v784_v14 }
 0x116   :  { %v786_v24 = vmax.f32 %v754_v11, 0.0  ;;  %v524_v27 = vpop.f32.mrf.mxu0 }
 0x117   :  { %v787_v29 = vmax.f32 %v755_v18, 0.0  ;;  %v756_v32 = vadd.f32 %v1401_v30, %v712_v20  ;;  %v713_v34 = vmul.f32 %v1403_v31, %v636_v21  ;;  %v638_v19 = vadd.f32 %v1395_v25, %v524_v27  ;;  %910 = vst [vmem:[%s1556_s4 + $0x10] sm:$0xff] %v1018_v23  ;;  %v675_v23 = vpop.f32.mrf.mxu1 }
 0x118   :  { %v526_v35 = vpop.f32.mrf.mxu0 }
 0x119   :  { %v1019_v39 = vpack.c.bf16 %v787_v29, %v786_v24  ;;  %v757_v22 = vadd.f32 %v1408_v36, %v713_v34  ;;  %v714_v40 = vmul.f32 %v1397_v26, %v638_v19  ;;  %v640_v41 = vadd.f32 %v1399_v28, %v526_v35 }
 0x11a   :  { %v530_v42 = vpop.f32.mrf.mxu0  ;;  %v788_v25 = vmax.f32 %v756_v32, 0.0 }
 0x11b   :  { %911 = vst [vmem:[%s1556_s4 + $0x18] sm:$0xff] %v1019_v39  ;;  %v789_v44 = vmax.f32 %v757_v22, 0.0  ;;  %v644_v45 = vadd.f32 %v1405_v33, %v530_v42  ;;  %v758_v46 = vadd.f32 %v1401_v30, %v714_v40  ;;  %v715_v47 = vmul.f32 %v1403_v31, %v640_v41  ;;  %v677_v40 = vpop.f32.mrf.mxu1 }
 0x11c   :  { %v532_v48 = vpop.f32.mrf.mxu0 }
 0x11d   :  { %v1020_v51 = vpack.c.bf16 %v789_v44, %v788_v25  ;;  %v716_v52 = vmul.f32 %v1397_v26, %v644_v45  ;;  %v646_v28 = vadd.f32 %v1410_v38, %v532_v48  ;;  %v759_v53 = vadd.f32 %v1408_v36, %v715_v47 }
 0x11e   :  { %v534_v54 = vpop.f32.mrf.mxu0  ;;  %v790_v58 = vmax.f32 %v758_v46, 0.0 }
 0x11f   :  { %912 = vst [vmem:[%s1556_s4 + $0x20] sm:$0xff] %v1020_v51  ;;  %v760_v33 = vadd.f32 %v1401_v30, %v716_v52  ;;  %v717_v56 = vmul.f32 %v1403_v31, %v646_v28  ;;  %v648_v57 = vadd.f32 %v1414_v43, %v534_v54  ;;  %v791_v59 = vmax.f32 %v759_v53, 0.0  ;;  %v679_v52 = vpop.f32.mrf.mxu1 }
 0x120   :  { %v536_v60 = vpop.f32.mrf.mxu0 }
 0x121   :  { %v761_v63 = vadd.f32 %v1408_v36, %v717_v56  ;;  %v718_v38 = vmul.f32 %v1397_v26, %v648_v57  ;;  %v650_v0 = vadd.f32 %v1418_v49, %v536_v60  ;;  %v1021_v2 = vpack.c.bf16 %v791_v59, %v790_v58 }
 0x122   :  { %v792_v3 = vmax.f32 %v760_v33, 0.0  ;;  %v540_v4 = vpop.f32.mrf.mxu0 }
 0x123   :  { %v793_v1 = vmax.f32 %v761_v63, 0.0  ;;  %v762_v6 = vadd.f32 %v1401_v30, %v718_v38  ;;  %v719_v7 = vmul.f32 %v1403_v31, %v650_v0  ;;  %v654_v43 = vadd.f32 %v1422_v55, %v540_v4  ;;  %913 = vst [vmem:[%s1556_s4 + $0x28] sm:$0xff] %v1021_v2  ;;  %v683_v63 = vpop.f32.mrf.mxu1 }
 0x124   :  { %v542_v8 = vpop.f32.mrf.mxu0 }
 0x125   :  { %v1022_v11 = vpack.c.bf16 %v793_v1, %v792_v3  ;;  %v763_v12 = vadd.f32 %v1408_v36, %v719_v7  ;;  %v720_v49 = vmul.f32 %v1397_v26, %v654_v43  ;;  %v656_v13 = vadd.f32 %v1426_v61, %v542_v8  ;;  %v685_v8 = vpop.f32.mrf.mxu1 }
 0x126   :  { %v544_v14 = vpop.f32.mrf.mxu0  ;;  %v794_v15 = vmax.f32 %v762_v6, 0.0 }
 0x127   :  { %914 = vst [vmem:[%s1556_s4 + $0x30] sm:$0xff] %v1022_v11  ;;  %v795_v55 = vmax.f32 %v763_v12, 0.0  ;;  %v658_v16 = vadd.f32 %v1433_v5, %v544_v14  ;;  %v764_v18 = vadd.f32 %v1401_v30, %v720_v49  ;;  %v721_v20 = vmul.f32 %v1403_v31, %v656_v13 }
 0x128   :  { %v546_v21 = vpop.f32.mrf.mxu0 }
 0x129   :  { %v1023_v24 = vpack.c.bf16 %v795_v55, %v794_v15  ;;  %v722_v27 = vmul.f32 %v1397_v26, %v658_v16  ;;  %v660_v61 = vadd.f32 %v1437_v10, %v546_v21  ;;  %v765_v29 = vadd.f32 %v1408_v36, %v721_v20  ;;  %v687_v21 = vpop.f32.mrf.mxu1 }
 0x12a   :  { %v550_v32 = vpop.f32.mrf.mxu0  ;;  %v796_v35 = vmax.f32 %v764_v18, 0.0 }
 0x12b   :  { %915 = vst [vmem:[%s1556_s4 + $0x38] sm:$0xff] %v1023_v24  ;;  %v766_v5 = vadd.f32 %v1401_v30, %v722_v27  ;;  %v723_v34 = vmul.f32 %v1403_v31, %v660_v61  ;;  %v664_v19 = vadd.f32 %v1444_v17, %v550_v32  ;;  %v797_v39 = vmax.f32 %v765_v29, 0.0 }
 0x12c   :  { %v552_v22 = vpop.f32.mrf.mxu0 }
 0x12d   :  { %v767_v41 = vadd.f32 %v1408_v36, %v723_v34  ;;  %v724_v10 = vmul.f32 %v1397_v26, %v664_v19  ;;  %v666_v42 = vadd.f32 %v1455_v37, %v552_v22  ;;  %v1024_v25 = vpack.c.bf16 %v797_v39, %v796_v35  ;;  %v689_v39 = vpop.f32.mrf.mxu1 }
 0x12e   :  { %v798_v44 = vmax.f32 %v766_v5, 0.0  ;;  %v554_v45 = vpop.f32.mrf.mxu0 }
 0x12f   :  { %v799_v46 = vmax.f32 %v767_v41, 0.0  ;;  %v768_v47 = vadd.f32 %v1401_v30, %v724_v10  ;;  %v725_v48 = vmul.f32 %v1403_v31, %v666_v42  ;;  %v668_v51 = vadd.f32 %v667_v50, %v554_v45  ;;  %916 = vst [vmem:[%s1556_s4 + $0x40] sm:$0xff] %v1024_v25 }
 0x130   :  { %v556_v17 = vpop.f32.mrf.mxu0 }
 0x131   :  { %v1025_v28 = vpack.c.bf16 %v799_v46, %v798_v44  ;;  %v769_v53 = vadd.f32 %v1408_v36, %v725_v48  ;;  %v726_v37 = vmul.f32 %v1397_v26, %v668_v51  ;;  %v670_v54 = vadd.f32 %v669_v62, %v556_v17 }
 0x132   :  { %v560_v33 = vpop.f32.mrf.mxu0  ;;  %v800_v56 = vmax.f32 %v768_v47, 0.0 }
 0x133   :  { %917 = vst [vmem:[%s1556_s4 + $0x48] sm:$0xff] %v1025_v28  ;;  %v801_v57 = vmax.f32 %v769_v53, 0.0  ;;  %v674_v50 = vadd.f32 %v673_v9, %v560_v33  ;;  %v770_v58 = vadd.f32 %v1401_v30, %v726_v37  ;;  %v727_v59 = vmul.f32 %v1403_v31, %v670_v54 }
 0x134   :  { %v562_v60 = vpop.f32.mrf.mxu0 }
 0x135   :  { %v1026_v38 = vpack.c.bf16 %v801_v57, %v800_v56  ;;  %v728_v0 = vmul.f32 %v1397_v26, %v674_v50  ;;  %v676_v2 = vadd.f32 %v675_v23, %v562_v60  ;;  %v771_v62 = vadd.f32 %v1408_v36, %v727_v59 }
 0x136   :  { %v564_v3 = vpop.f32.mrf.mxu0  ;;  %v802_v7 = vmax.f32 %v770_v58, 0.0 }
 0x137   :  { %918 = vst [vmem:[%s1556_s4 + $0x50] sm:$0xff] %v1026_v38  ;;  %v772_v4 = vadd.f32 %v1401_v30, %v728_v0  ;;  %v729_v1 = vmul.f32 %v1403_v31, %v676_v2  ;;  %v678_v6 = vadd.f32 %v677_v40, %v564_v3  ;;  %v803_v43 = vmax.f32 %v771_v62, 0.0 }
 0x138   :  { %v566_v9 = vpop.f32.mrf.mxu0 }
 0x139   :  { %v773_v11 = vadd.f32 %v1408_v36, %v729_v1  ;;  %v730_v12 = vmul.f32 %v1397_v26, %v678_v6  ;;  %v680_v49 = vadd.f32 %v679_v52, %v566_v9  ;;  %v1027_v13 = vpack.c.bf16 %v803_v43, %v802_v7 }
 0x13a   :  { %v804_v14 = vmax.f32 %v772_v4, 0.0  ;;  %v570_v15 = vpop.f32.mrf.mxu0 }
 0x13b   :  { %v805_v55 = vmax.f32 %v773_v11, 0.0  ;;  %v774_v16 = vadd.f32 %v1401_v30, %v730_v12  ;;  %v731_v18 = vmul.f32 %v1403_v31, %v680_v49  ;;  %v684_v20 = vadd.f32 %v683_v63, %v570_v15  ;;  %919 = vst [vmem:[%s1556_s4 + $0x58] sm:$0xff] %v1027_v13 }
 0x13c   :  { %v572_v23 = vpop.f32.mrf.mxu0 }
 0x13d   :  { %v1028_v24 = vpack.c.bf16 %v805_v55, %v804_v14  ;;  %v775_v27 = vadd.f32 %v1408_v36, %v731_v18  ;;  %v732_v61 = vmul.f32 %v1397_v26, %v684_v20  ;;  %v686_v29 = vadd.f32 %v685_v8, %v572_v23 }
 0x13e   :  { %v574_v32 = vpop.f32.mrf.mxu0  ;;  %v806_v5 = vmax.f32 %v774_v16, 0.0 }
 0x13f   :  { %920 = vst [vmem:[%s1556_s4 + $0x60] sm:$0xff] %v1028_v24  ;;  %v807_v34 = vmax.f32 %v775_v27, 0.0  ;;  %v688_v19 = vadd.f32 %v687_v21, %v574_v32  ;;  %v776_v35 = vadd.f32 %v1401_v30, %v732_v61  ;;  %v733_v22 = vmul.f32 %v1403_v31, %v686_v29 }
 0x140   :  { %v576_v40 = vpop.f32.mrf.mxu0 }
 0x141   :  { %v1029_v41 = vpack.c.bf16 %v807_v34, %v806_v5  ;;  %v734_v10 = vmul.f32 %v1397_v26, %v688_v19  ;;  %v690_v42 = vadd.f32 %v689_v39, %v576_v40  ;;  %v777_v25 = vadd.f32 %v1408_v36, %v733_v22 }
 0x142   :  { %v808_v46 = vmax.f32 %v776_v35, 0.0 }
 0x143   :  { %921 = vst [vmem:[%s1556_s4 + $0x68] sm:$0xff] %v1029_v41  ;;  %v778_v44 = vadd.f32 %v1401_v30, %v734_v10  ;;  %v735_v45 = vmul.f32 %v1403_v31, %v690_v42  ;;  %v809_v47 = vmax.f32 %v777_v25, 0.0 }
 0x145   :  { %v779_v48 = vadd.f32 %v1408_v36, %v735_v45  ;;  %v1030_v51 = vpack.c.bf16 %v809_v47, %v808_v46  ;;  %v810_v17 = vmax.f32 %v778_v44, 0.0 }
 0x147   :  { %v811_v52 = vmax.f32 %v779_v48, 0.0  ;;  %922 = vst [vmem:[%s1556_s4 + $0x70] sm:$0xff] %v1030_v51 }
 0x149   :  { %v1031_v26 = vpack.c.bf16 %v811_v52, %v810_v17 }
 0x14b   :  { %923 = vst [vmem:[%s1556_s4 + $0x78] sm:$0xff] %v1031_v26 }

// kernel: generator_forward.18
= control target key start
LH: loop header
LB: loop body
LE: loop exit
PB: predicated region body
PF: predicated region fallthrough
CT: control target
= control target key end

     0   :  { %v4460_v0 = vmov 0   ;;  %s5962_s1 = inlined_call_operand.vmem [shape: bf16[1024,128], index: 1, kind: input, shape index: {}]   ;;  %s5963_s0 = inlined_call_operand.vmem [shape: bf16[512,1024], index: 0, kind: input, shape index: {}]   ;;  %s5964_s2 = inlined_call_operand.vmem [shape: f32[1,128], index: 2, kind: input, shape index: {}]   ;;  %s5965_s3 = inlined_call_operand.vmem [shape: f32[1,128], index: 3, kind: input, shape index: {}]   ;;  %s5966_s4 = inlined_call_operand.vmem [shape: bf16[512,128], index: 4, kind: output, shape index: {}]  }
   0x1   :  { %2066 = vmatprep.subr.bf16.mxu0 %v4460_v0  ;;  %2355 = vmatprep.subr.bf16.mxu1 %v4460_v0  ;;  %v4394_v1 = vld [vmem:[%s5962_s1 + $0x38] sm:$0xff]   ;;  %v4396_v3 = vld [vmem:[%s5962_s1 + $0x30] sm:$0xff]   ;;  %v4398_v5 = vld [vmem:[%s5962_s1 + $0x28] sm:$0xff]  }
   0x2   :  { %v4395_v2 = vld [vmem:[%s5962_s1 + $0xb8] sm:$0xff]   ;;  %2067 = vmatpush1.bf16.msra.mxu0 %v4394_v1  ;;  %v4397_v4 = vld [vmem:[%s5962_s1 + $0xb0] sm:$0xff]   ;;  %v4399_v6 = vld [vmem:[%s5962_s1 + $0xa8] sm:$0xff]  }
   0x3   :  { %2356 = vmatpush1.bf16.msra.mxu1 %v4395_v2  ;;  %2068 = vmatprep.subr.bf16.mxu0 %v4460_v0  ;;  %v4400_v7 = vld [vmem:[%s5962_s1 + $0x20] sm:$0xff]   ;;  %v4402_v9 = vld [vmem:[%s5962_s1 + $0x18] sm:$0xff]   ;;  %v4404_v11 = vld [vmem:[%s5962_s1 + $0x10] sm:$0xff]  }
   0x4   :  { %2357 = vmatprep.subr.bf16.mxu1 %v4460_v0  ;;  %v4401_v8 = vld [vmem:[%s5962_s1 + $0xa0] sm:$0xff]   ;;  %v4403_v10 = vld [vmem:[%s5962_s1 + $0x98] sm:$0xff]   ;;  %v4405_v12 = vld [vmem:[%s5962_s1 + $0x90] sm:$0xff]  }
   0x5   :  { %v4406_v13 = vld [vmem:[%s5962_s1 + $0x8] sm:$0xff]   ;;  %v4408_v15 = vld [vmem:[%s5962_s1] sm:$0xff]   ;;  %v4410_v17 = vld [vmem:[%s5962_s1 + $0x78] sm:$0xff]  }
   0x6   :  { %2069 = vmatpush1.bf16.msra.mxu0 %v4396_v3  ;;  %v4407_v14 = vld [vmem:[%s5962_s1 + $0x88] sm:$0xff]   ;;  %v4409_v16 = vld [vmem:[%s5962_s1 + $0x80] sm:$0xff]   ;;  %v4411_v18 = vld [vmem:[%s5962_s1 + $0xf8] sm:$0xff]  }
   0x7   :  { %2358 = vmatpush1.bf16.msra.mxu1 %v4397_v4  ;;  %2070 = vmatprep.subr.bf16.mxu0 %v4460_v0  ;;  %v4561_v19 = vld [vmem:[%s5963_s0] sm:$0xff]  ;;  %v4571_v21 = vld [vmem:[%s5963_s0 + $0x8] sm:$0xff]  ;;  %v4412_v24 = vld [vmem:[%s5962_s1 + $0x70] sm:$0xff]  }
   0x8   :  { %2359 = vmatprep.subr.bf16.mxu1 %v4460_v0  ;;  %v4566_v20 = vld [vmem:[%s5963_s0 + $0x20] sm:$0xff]  ;;  %v4578_v23 = vld [vmem:[%s5963_s0 + $0x28] sm:$0xff]  ;;  %v4413_v26 = vld [vmem:[%s5962_s1 + $0xf0] sm:$0xff]  }
   0x9   :  { %v3753_v22 = vcombine.high %v4561_v19, %v4566_v20  ;;  %v3755_v25 = vcombine.high %v4571_v21, %v4578_v23  ;;  %v4414_v27 = vld [vmem:[%s5962_s1 + $0x68] sm:$0xff]   ;;  %v4416_v29 = vld [vmem:[%s5962_s1 + $0x60] sm:$0xff]   ;;  %v4418_v31 = vld [vmem:[%s5962_s1 + $0x58] sm:$0xff]   ;;  %v3752_v42 = vcombine.low %v4561_v19, %v4566_v20  ;;  %v3754_v44 = vcombine.low %v4571_v21, %v4578_v23 }
   0xa   :  { %2071 = vmatpush1.bf16.msra.mxu0 %v4398_v5  ;;  %v4415_v28 = vld [vmem:[%s5962_s1 + $0xe8] sm:$0xff]   ;;  %v4417_v30 = vld [vmem:[%s5962_s1 + $0xe0] sm:$0xff]   ;;  %v4419_v32 = vld [vmem:[%s5962_s1 + $0xd8] sm:$0xff]  }
   0xb   :  { %2360 = vmatpush1.bf16.msra.mxu1 %v4399_v6  ;;  %2072 = vmatprep.subr.bf16.mxu0 %v4460_v0  ;;  %v4420_v33 = vld [vmem:[%s5962_s1 + $0x50] sm:$0xff]   ;;  %v4422_v35 = vld [vmem:[%s5962_s1 + $0x48] sm:$0xff]   ;;  %v4424_v37 = vld [vmem:[%s5962_s1 + $0x40] sm:$0xff]  }
   0xc   :  { %2361 = vmatprep.subr.bf16.mxu1 %v4460_v0  ;;  %2098 = vmatprep.mubr.bf16.mxu0 %v3753_v22  ;;  %v4421_v34 = vld [vmem:[%s5962_s1 + $0xd0] sm:$0xff]   ;;  %v4423_v36 = vld [vmem:[%s5962_s1 + $0xc8] sm:$0xff]   ;;  %v4425_v38 = vld [vmem:[%s5962_s1 + $0xc0] sm:$0xff]  }
   0xd   :  { %2387 = vmatprep.mubr.bf16.mxu1 %v3755_v25  ;;  %v26_v39 = vld [vmem:[%s5963_s0 + $0x40] sm:$0xff]  ;;  %v27_v41 = vld [vmem:[%s5963_s0 + $0x48] sm:$0xff]  ;;  %v4426_v45 = vld [vmem:[%s5962_s1 + $0x138] sm:$0xff]  }
   0xe   :  { %2073 = vmatpush1.bf16.msra.mxu0 %v4400_v7  ;;  %v30_v40 = vld [vmem:[%s5963_s0 + $0x60] sm:$0xff]  ;;  %v31_v43 = vld [vmem:[%s5963_s0 + $0x68] sm:$0xff]  ;;  %v4427_v46 = vld [vmem:[%s5962_s1 + $0x1b8] sm:$0xff]  }
   0xf   :  { %2362 = vmatpush1.bf16.msra.mxu1 %v4401_v8  ;;  %2074 = vmatprep.subr.bf16.mxu0 %v4460_v0  ;;  %v3761_v47 = vcombine.high %v26_v39, %v30_v40  ;;  %v3763_v48 = vcombine.high %v27_v41, %v31_v43  ;;  %v34_v49 = vld [vmem:[%s5963_s0 + $0x80] sm:$0xff]  ;;  %v4428_v51 = vld [vmem:[%s5962_s1 + $0x130] sm:$0xff]   ;;  %v35_v53 = vld [vmem:[%s5963_s0 + $0x88] sm:$0xff]  ;;  %v3760_v55 = vcombine.low %v26_v39, %v30_v40 }
  0x10   :  { %2363 = vmatprep.subr.bf16.mxu1 %v4460_v0  ;;  %v38_v50 = vld [vmem:[%s5963_s0 + $0xa0] sm:$0xff]  ;;  %v4429_v52 = vld [vmem:[%s5962_s1 + $0x1b0] sm:$0xff]   ;;  %v39_v54 = vld [vmem:[%s5963_s0 + $0xa8] sm:$0xff]  ;;  %v3762_v56 = vcombine.low %v27_v41, %v31_v43 }
  0x11   :  { %v3769_v57 = vcombine.high %v34_v49, %v38_v50  ;;  %v3771_v58 = vcombine.high %v35_v53, %v39_v54  ;;  %v4430_v59 = vld [vmem:[%s5962_s1 + $0x128] sm:$0xff]   ;;  %v42_v61 = vld [vmem:[%s5963_s0 + $0xc0] sm:$0xff]  ;;  %v3768_v4 = vcombine.low %v34_v49, %v38_v50  ;;  %v4434_v5 = vld [vmem:[%s5962_s1 + $0x118] sm:$0xff]   ;;  %v3770_v6 = vcombine.low %v35_v53, %v39_v54 }
  0x12   :  { %2075 = vmatpush1.bf16.msra.mxu0 %v4402_v9  ;;  %v4431_v60 = vld [vmem:[%s5962_s1 + $0x1a8] sm:$0xff]   ;;  %v46_v62 = vld [vmem:[%s5963_s0 + $0xe0] sm:$0xff]  ;;  %v4435_v8 = vld [vmem:[%s5962_s1 + $0x198] sm:$0xff]  }
  0x13   :  { %2364 = vmatpush1.bf16.msra.mxu1 %v4403_v10  ;;  %2076 = vmatprep.subr.bf16.mxu0 %v4460_v0  ;;  %v43_v63 = vld [vmem:[%s5963_s0 + $0xc8] sm:$0xff]  ;;  %v4432_v2 = vld [vmem:[%s5962_s1 + $0x120] sm:$0xff]   ;;  %v3777_v7 = vcombine.high %v42_v61, %v46_v62  ;;  %v4445_v39 = vld [vmem:[%s5962_s1 + $0x1f0] sm:$0xff]  }
  0x14   :  { %2365 = vmatprep.subr.bf16.mxu1 %v4460_v0  ;;  %v47_v1 = vld [vmem:[%s5963_s0 + $0xe8] sm:$0xff]  ;;  %v4433_v3 = vld [vmem:[%s5962_s1 + $0x1a0] sm:$0xff]  }
  0x15   :  { %v3779_v9 = vcombine.high %v43_v63, %v47_v1  ;;  %v50_v10 = vld [vmem:[%s5963_s0 + $0x100] sm:$0xff]  ;;  %v4438_v20 = vld [vmem:[%s5962_s1 + $0x108] sm:$0xff]  }
  0x16   :  { %2077 = vmatpush1.bf16.msra.mxu0 %v4404_v11  ;;  %v54_v11 = vld [vmem:[%s5963_s0 + $0x120] sm:$0xff]  ;;  %v4439_v21 = vld [vmem:[%s5962_s1 + $0x188] sm:$0xff]  }
  0x17   :  { %2366 = vmatpush1.bf16.msra.mxu1 %v4405_v12  ;;  %2078 = vmatprep.subr.bf16.mxu0 %v4460_v0  ;;  %v51_v12 = vld [vmem:[%s5963_s0 + $0x108] sm:$0xff]  ;;  %v58_v22 = vld [vmem:[%s5963_s0 + $0x140] sm:$0xff] }
  0x18   :  { %2367 = vmatprep.subr.bf16.mxu1 %v4460_v0  ;;  %v62_v23 = vld [vmem:[%s5963_s0 + $0x160] sm:$0xff]  ;;  %v59_v25 = vld [vmem:[%s5963_s0 + $0x148] sm:$0xff] }
  0x19   :  { %v3792_v40 = vcombine.low %v58_v22, %v62_v23  ;;  %v79_v49 = vld [vmem:[%s5963_s0 + $0x1e8] sm:$0xff]  ;;  %v4448_v54 = vld [vmem:[%s5962_s1 + $0x160] sm:$0xff]  }
  0x1a   :  { %2079 = vmatpush1.bf16.msra.mxu0 %v4406_v13  ;;  %v55_v13 = vld [vmem:[%s5963_s0 + $0x128] sm:$0xff] }
  0x1b   :  { %2368 = vmatpush1.bf16.msra.mxu1 %v4407_v14  ;;  %2080 = vmatprep.subr.bf16.mxu0 %v4460_v0  ;;  %v4436_v14 = vld [vmem:[%s5962_s1 + $0x110] sm:$0xff]   ;;  %v3787_v19 = vcombine.high %v51_v12, %v55_v13 }
  0x1c   :  { %2369 = vmatprep.subr.bf16.mxu1 %v4460_v0 }
  0x1e   :  { %2081 = vmatpush1.bf16.msra.mxu0 %v4408_v15  ;;  %v4437_v15 = vld [vmem:[%s5962_s1 + $0x190] sm:$0xff]  }
  0x1f   :  { %2370 = vmatpush1.bf16.msra.mxu1 %v4409_v16  ;;  %2082 = vmatprep.subr.bf16.mxu0 %v4460_v0  ;;  %v3776_v16 = vcombine.low %v42_v61, %v46_v62 }
  0x20   :  { %2371 = vmatprep.subr.bf16.mxu1 %v4460_v0 }
  0x22   :  { %2083 = vmatpush2.bf16.msra.mxu0 %v4410_v17  ;;  %v3778_v17 = vcombine.low %v43_v63, %v47_v1  ;;  %v90_v1 = vld [vmem:[%s5963_s0 + $0x240] sm:$0xff] }
  0x23   :  { %2372 = vmatpush2.bf16.msra.mxu1 %v4411_v18  ;;  %2084 = vmatprep.subr.bf16.mxu0 %v4460_v0  ;;  %v3785_v18 = vcombine.high %v50_v10, %v54_v11 }
  0x24   :  { %2373 = vmatprep.subr.bf16.mxu1 %v4460_v0 }
  0x26   :  { %2085 = vmatpush2.bf16.msra.mxu0 %v4412_v24  ;;  %v4440_v24 = vld [vmem:[%s5962_s1 + $0x100] sm:$0xff]  }
  0x27   :  { %2374 = vmatpush2.bf16.msra.mxu1 %v4413_v26  ;;  %2086 = vmatprep.subr.bf16.mxu0 %v4460_v0  ;;  %v63_v26 = vld [vmem:[%s5963_s0 + $0x168] sm:$0xff] }
  0x28   :  { %2375 = vmatprep.subr.bf16.mxu1 %v4460_v0  ;;  %v3794_v41 = vcombine.low %v59_v25, %v63_v26 }
  0x2a   :  { %2087 = vmatpush2.bf16.msra.mxu0 %v4414_v27  ;;  %v4441_v27 = vld [vmem:[%s5962_s1 + $0x180] sm:$0xff]  }
  0x2b   :  { %2376 = vmatpush2.bf16.msra.mxu1 %v4415_v28  ;;  %2088 = vmatprep.subr.bf16.mxu0 %v4460_v0  ;;  %v3784_v28 = vcombine.low %v50_v10, %v54_v11  ;;  %v102_v10 = vld [vmem:[%s5963_s0 + $0x2a0] sm:$0xff]  ;;  %v4450_v11 = vld [vmem:[%s5962_s1 + $0x158] sm:$0xff]  }
  0x2c   :  { %2377 = vmatprep.subr.bf16.mxu1 %v4460_v0 }
  0x2e   :  { %2089 = vmatpush2.bf16.msra.mxu0 %v4416_v29  ;;  %v3786_v29 = vcombine.low %v51_v12, %v55_v13  ;;  %v99_v12 = vld [vmem:[%s5963_s0 + $0x288] sm:$0xff] }
  0x2f   :  { %2378 = vmatpush2.bf16.msra.mxu1 %v4417_v30  ;;  %2090 = vmatprep.subr.bf16.mxu0 %v4460_v0  ;;  %v3793_v30 = vcombine.high %v58_v22, %v62_v23  ;;  %v103_v13 = vld [vmem:[%s5963_s0 + $0x2a8] sm:$0xff] }
  0x30   :  { %2379 = vmatprep.subr.bf16.mxu1 %v4460_v0  ;;  %v111_v22 = vld [vmem:[%s5963_s0 + $0x2e8] sm:$0xff] }
  0x32   :  { %2091 = vmatpush2.bf16.msra.mxu0 %v4418_v31  ;;  %v3795_v31 = vcombine.high %v59_v25, %v63_v26 }
  0x33   :  { %2380 = vmatpush2.bf16.msra.mxu1 %v4419_v32  ;;  %2092 = vmatprep.subr.bf16.mxu0 %v4460_v0  ;;  %v4442_v32 = vld [vmem:[%s5962_s1 + $0x178] sm:$0xff]  }
  0x34   :  { %2381 = vmatprep.subr.bf16.mxu1 %v4460_v0 }
  0x36   :  { %2093 = vmatpush2.bf16.msra.mxu0 %v4420_v33  ;;  %v4443_v33 = vld [vmem:[%s5962_s1 + $0x1f8] sm:$0xff]  }
  0x37   :  { %2382 = vmatpush2.bf16.msra.mxu1 %v4421_v34  ;;  %2094 = vmatprep.subr.bf16.mxu0 %v4460_v0  ;;  %v66_v34 = vld [vmem:[%s5963_s0 + $0x180] sm:$0xff] }
  0x38   :  { %2383 = vmatprep.subr.bf16.mxu1 %v4460_v0 }
  0x3a   :  { %2095 = vmatpush2.bf16.msra.mxu0 %v4422_v35  ;;  %v70_v35 = vld [vmem:[%s5963_s0 + $0x1a0] sm:$0xff] }
  0x3b   :  { %2384 = vmatpush2.bf16.msra.mxu1 %v4423_v36  ;;  %2096 = vmatprep.subr.bf16.mxu0 %v4460_v0  ;;  %v4444_v36 = vld [vmem:[%s5962_s1 + $0x170] sm:$0xff]   ;;  %v3800_v50 = vcombine.low %v66_v34, %v70_v35 }
  0x3c   :  { %2385 = vmatprep.subr.bf16.mxu1 %v4460_v0 }
  0x3e   :  { %2097 = vmatpush2.bf16.msra.mxu0 %v4424_v37  ;;  %v67_v37 = vld [vmem:[%s5963_s0 + $0x188] sm:$0xff] }
  0x3f   :  { %2386 = vmatpush2.bf16.msra.mxu1 %v4425_v38  ;;  %2644 = vmatprep.subr.bf16.mxu0 %v4460_v0  ;;  %v71_v38 = vld [vmem:[%s5963_s0 + $0x1a8] sm:$0xff] }
  0x40   :  { %2933 = vmatprep.subr.bf16.mxu1 %v4460_v0  ;;  %v3803_v43 = vcombine.high %v67_v37, %v71_v38 }
  0x41   :  { %2099 = vmatmul.mubr.bf16.vlgmr.msra.gmra.mxu0 %v3752_v42  ;;  %v3801_v42 = vcombine.high %v66_v34, %v70_v35 }
  0x42   :  { %2388 = vmatmul.mubr.bf16.vlgmr.msra.gmra.mxu1 %v3754_v44  ;;  %2645 = vmatpush1.bf16.msra.mxu0 %v4426_v45  ;;  %v4446_v44 = vld [vmem:[%s5962_s1 + $0x168] sm:$0xff]  }
  0x43   :  { %2934 = vmatpush1.bf16.msra.mxu1 %v4427_v46  ;;  %2106 = vmatprep.mubr.bf16.mxu0 %v3761_v47  ;;  %v4447_v45 = vld [vmem:[%s5962_s1 + $0x1e8] sm:$0xff]   ;;  %v74_v46 = vld [vmem:[%s5963_s0 + $0x1c0] sm:$0xff] }
  0x44   :  { %2395 = vmatprep.mubr.bf16.mxu1 %v3763_v48  ;;  %2646 = vmatprep.subr.bf16.mxu0 %v4460_v0  ;;  %v78_v47 = vld [vmem:[%s5963_s0 + $0x1e0] sm:$0xff]  ;;  %v75_v48 = vld [vmem:[%s5963_s0 + $0x1c8] sm:$0xff] }
  0x45   :  { %2935 = vmatprep.subr.bf16.mxu1 %v4460_v0  ;;  %v3811_v53 = vcombine.high %v75_v48, %v79_v49  ;;  %v3810_v61 = vcombine.low %v75_v48, %v79_v49  ;;  %v131_v48 = vld [vmem:[%s5963_s0 + $0x388] sm:$0xff] }
  0x46   :  { %2647 = vmatpush1.bf16.msra.mxu0 %v4428_v51  ;;  %v3802_v51 = vcombine.low %v67_v37, %v71_v38  ;;  %v122_v37 = vld [vmem:[%s5963_s0 + $0x340] sm:$0xff]  ;;  %v135_v49 = vld [vmem:[%s5963_s0 + $0x3a8] sm:$0xff] }
  0x47   :  { %2936 = vmatpush1.bf16.msra.mxu1 %v4429_v52  ;;  %2648 = vmatprep.subr.bf16.mxu0 %v4460_v0  ;;  %v3809_v52 = vcombine.high %v74_v46, %v78_v47  ;;  %v126_v38 = vld [vmem:[%s5963_s0 + $0x360] sm:$0xff] }
  0x48   :  { %2937 = vmatprep.subr.bf16.mxu1 %v4460_v0 }
  0x49   :  { %2107 = vmatmul.mubr.bf16.gmra.mxu0 %v3760_v55  ;;  %v4449_v55 = vld [vmem:[%s5962_s1 + $0x1e0] sm:$0xff]  }
  0x4a   :  { %2396 = vmatmul.mubr.bf16.gmra.mxu1 %v3762_v56  ;;  %2114 = vmatprep.mubr.bf16.mxu0 %v3769_v57  ;;  %v82_v56 = vld [vmem:[%s5963_s0 + $0x200] sm:$0xff] }
  0x4b   :  { %2403 = vmatprep.mubr.bf16.mxu1 %v3771_v58  ;;  %2649 = vmatpush1.bf16.msra.mxu0 %v4430_v59  ;;  %v86_v57 = vld [vmem:[%s5963_s0 + $0x220] sm:$0xff]  ;;  %v83_v58 = vld [vmem:[%s5963_s0 + $0x208] sm:$0xff] }
  0x4c   :  { %2938 = vmatpush1.bf16.msra.mxu1 %v4431_v60  ;;  %2650 = vmatprep.subr.bf16.mxu0 %v4460_v0  ;;  %v87_v59 = vld [vmem:[%s5963_s0 + $0x228] sm:$0xff]  ;;  %v3808_v60 = vcombine.low %v74_v46, %v78_v47  ;;  %v3817_v62 = vcombine.high %v82_v56, %v86_v57  ;;  %v134_v46 = vld [vmem:[%s5963_s0 + $0x3a0] sm:$0xff] }
  0x4d   :  { %2939 = vmatprep.subr.bf16.mxu1 %v4460_v0  ;;  %v3819_v63 = vcombine.high %v83_v58, %v87_v59  ;;  %v4454_v47 = vld [vmem:[%s5962_s1 + $0x148] sm:$0xff]  }
  0x4f   :  { %2651 = vmatpush1.bf16.msra.mxu0 %v4432_v2  ;;  %v94_v2 = vld [vmem:[%s5963_s0 + $0x260] sm:$0xff] }
  0x50   :  { %2940 = vmatpush1.bf16.msra.mxu1 %v4433_v3  ;;  %2652 = vmatprep.subr.bf16.mxu0 %v4460_v0  ;;  %v91_v3 = vld [vmem:[%s5963_s0 + $0x248] sm:$0xff] }
  0x51   :  { %2115 = vmatmul.mubr.bf16.gmra.mxu0 %v3768_v4  ;;  %2941 = vmatprep.subr.bf16.mxu1 %v4460_v0  ;;  %v95_v4 = vld [vmem:[%s5963_s0 + $0x268] sm:$0xff] }
  0x52   :  { %2404 = vmatmul.mubr.bf16.gmra.mxu1 %v3770_v6  ;;  %2122 = vmatprep.mubr.bf16.mxu0 %v3777_v7  ;;  %v3818_v6 = vcombine.low %v83_v58, %v87_v59  ;;  %v3825_v7 = vcombine.high %v90_v1, %v94_v2  ;;  %v3866_v59 = vcombine.low %v131_v48, %v135_v49 }
  0x53   :  { %2411 = vmatprep.mubr.bf16.mxu1 %v3779_v9  ;;  %2653 = vmatpush1.bf16.msra.mxu0 %v4434_v5  ;;  %v3816_v5 = vcombine.low %v82_v56, %v86_v57  ;;  %v98_v9 = vld [vmem:[%s5963_s0 + $0x280] sm:$0xff]  ;;  %v139_v57 = vld [vmem:[%s5963_s0 + $0x3c8] sm:$0xff] }
  0x54   :  { %2942 = vmatpush1.bf16.msra.mxu1 %v4435_v8  ;;  %2654 = vmatprep.subr.bf16.mxu0 %v4460_v0  ;;  %v3827_v8 = vcombine.high %v91_v3, %v95_v4  ;;  %v3832_v23 = vcombine.low %v98_v9, %v102_v10  ;;  %v142_v56 = vld [vmem:[%s5963_s0 + $0x3e0] sm:$0xff] }
  0x55   :  { %2943 = vmatprep.subr.bf16.mxu1 %v4460_v0 }
  0x57   :  { %2655 = vmatpush1.bf16.msra.mxu0 %v4436_v14  ;;  %v4451_v14 = vld [vmem:[%s5962_s1 + $0x1d8] sm:$0xff]  }
  0x58   :  { %2944 = vmatpush1.bf16.msra.mxu1 %v4437_v15  ;;  %2656 = vmatprep.subr.bf16.mxu0 %v4460_v0  ;;  %v3824_v15 = vcombine.low %v90_v1, %v94_v2  ;;  %v4456_v1 = vld [vmem:[%s5962_s1 + $0x140] sm:$0xff]   ;;  %v147_v2 = vld [vmem:[%s5963_s0 + $0x408] sm:$0xff] }
  0x59   :  { %2123 = vmatmul.mubr.bf16.gmra.mxu0 %v3776_v16  ;;  %2945 = vmatprep.subr.bf16.mxu1 %v4460_v0  ;;  %v3826_v16 = vcombine.low %v91_v3, %v95_v4  ;;  %v151_v3 = vld [vmem:[%s5963_s0 + $0x428] sm:$0xff]  ;;  %v4457_v4 = vld [vmem:[%s5962_s1 + $0x1c0] sm:$0xff]  }
  0x5a   :  { %2412 = vmatmul.mubr.bf16.gmra.mxu1 %v3778_v17  ;;  %2130 = vmatprep.mubr.bf16.mxu0 %v3785_v18  ;;  %v3833_v17 = vcombine.high %v98_v9, %v102_v10  ;;  %v3835_v18 = vcombine.high %v99_v12, %v103_v13  ;;  %v154_v9 = vld [vmem:[%s5963_s0 + $0x440] sm:$0xff] }
  0x5b   :  { %2419 = vmatprep.mubr.bf16.mxu1 %v3787_v19  ;;  %2657 = vmatpush1.bf16.msra.mxu0 %v4438_v20  ;;  %v106_v19 = vld [vmem:[%s5963_s0 + $0x2c0] sm:$0xff] }
  0x5c   :  { %2946 = vmatpush1.bf16.msra.mxu1 %v4439_v21  ;;  %2658 = vmatprep.subr.bf16.mxu0 %v4460_v0  ;;  %v110_v20 = vld [vmem:[%s5963_s0 + $0x2e0] sm:$0xff]  ;;  %v107_v21 = vld [vmem:[%s5963_s0 + $0x2c8] sm:$0xff] }
  0x5d   :  { %2947 = vmatprep.subr.bf16.mxu1 %v4460_v0  ;;  %v3841_v25 = vcombine.high %v106_v19, %v110_v20  ;;  %v3843_v26 = vcombine.high %v107_v21, %v111_v22  ;;  %v3842_v34 = vcombine.low %v107_v21, %v111_v22  ;;  %v158_v10 = vld [vmem:[%s5963_s0 + $0x460] sm:$0xff] }
  0x5e   :  { %v3888_v21 = vcombine.low %v154_v9, %v158_v10 }
  0x5f   :  { %2659 = vmatpush1.bf16.msra.mxu0 %v4440_v24  ;;  %v3834_v24 = vcombine.low %v99_v12, %v103_v13  ;;  %v159_v12 = vld [vmem:[%s5963_s0 + $0x468] sm:$0xff] }
  0x60   :  { %2948 = vmatpush1.bf16.msra.mxu1 %v4441_v27  ;;  %2660 = vmatprep.subr.bf16.mxu0 %v4460_v0  ;;  %v114_v27 = vld [vmem:[%s5963_s0 + $0x300] sm:$0xff] }
  0x61   :  { %2131 = vmatmul.mubr.bf16.gmra.mxu0 %v3784_v28  ;;  %2949 = vmatprep.subr.bf16.mxu1 %v4460_v0  ;;  %v118_v28 = vld [vmem:[%s5963_s0 + $0x320] sm:$0xff] }
  0x62   :  { %2420 = vmatmul.mubr.bf16.gmra.mxu1 %v3786_v29  ;;  %2138 = vmatprep.mubr.bf16.mxu0 %v3793_v30  ;;  %v4452_v29 = vld [vmem:[%s5962_s1 + $0x150] sm:$0xff]   ;;  %v115_v30 = vld [vmem:[%s5963_s0 + $0x308] sm:$0xff]  ;;  %v3849_v35 = vcombine.high %v114_v27, %v118_v28 }
  0x63   :  { %2427 = vmatprep.mubr.bf16.mxu1 %v3795_v31  ;;  %2661 = vmatpush2.bf16.msra.mxu0 %v4442_v32  ;;  %v119_v31 = vld [vmem:[%s5963_s0 + $0x328] sm:$0xff]  ;;  %v4453_v32 = vld [vmem:[%s5962_s1 + $0x1d0] sm:$0xff]  }
  0x64   :  { %2950 = vmatpush2.bf16.msra.mxu1 %v4443_v33  ;;  %2662 = vmatprep.subr.bf16.mxu0 %v4460_v0  ;;  %v3840_v33 = vcombine.low %v106_v19, %v110_v20  ;;  %v163_v19 = vld [vmem:[%s5963_s0 + $0x488] sm:$0xff] }
  0x65   :  { %2951 = vmatprep.subr.bf16.mxu1 %v4460_v0  ;;  %v167_v20 = vld [vmem:[%s5963_s0 + $0x4a8] sm:$0xff] }
  0x67   :  { %2663 = vmatpush2.bf16.msra.mxu0 %v4444_v36  ;;  %v3851_v36 = vcombine.high %v115_v30, %v119_v31 }
  0x68   :  { %2952 = vmatpush2.bf16.msra.mxu1 %v4445_v39  ;;  %2664 = vmatprep.subr.bf16.mxu0 %v4460_v0  ;;  %v123_v39 = vld [vmem:[%s5963_s0 + $0x348] sm:$0xff] }
  0x69   :  { %2139 = vmatmul.mubr.bf16.gmra.mxu0 %v3792_v40  ;;  %2953 = vmatprep.subr.bf16.mxu1 %v4460_v0  ;;  %v127_v40 = vld [vmem:[%s5963_s0 + $0x368] sm:$0xff] }
  0x6a   :  { %2428 = vmatmul.mubr.bf16.gmra.mxu1 %v3794_v41  ;;  %2146 = vmatprep.mubr.bf16.mxu0 %v3801_v42  ;;  %v3848_v41 = vcombine.low %v114_v27, %v118_v28  ;;  %v3850_v42 = vcombine.low %v115_v30, %v119_v31  ;;  %v171_v27 = vld [vmem:[%s5963_s0 + $0x4c8] sm:$0xff]  ;;  %v3898_v30 = vcombine.low %v163_v19, %v167_v20 }
  0x6b   :  { %2435 = vmatprep.mubr.bf16.mxu1 %v3803_v43  ;;  %2665 = vmatpush2.bf16.msra.mxu0 %v4446_v44  ;;  %v3857_v43 = vcombine.high %v122_v37, %v126_v38  ;;  %v3859_v44 = vcombine.high %v123_v39, %v127_v40  ;;  %v175_v28 = vld [vmem:[%s5963_s0 + $0x4e8] sm:$0xff] }
  0x6c   :  { %2954 = vmatpush2.bf16.msra.mxu1 %v4447_v45  ;;  %2666 = vmatprep.subr.bf16.mxu0 %v4460_v0  ;;  %v130_v45 = vld [vmem:[%s5963_s0 + $0x380] sm:$0xff] }
  0x6d   :  { %2955 = vmatprep.subr.bf16.mxu1 %v4460_v0  ;;  %v3864_v58 = vcombine.low %v130_v45, %v134_v46 }
  0x6f   :  { %2667 = vmatpush2.bf16.msra.mxu0 %v4448_v54  ;;  %v3867_v54 = vcombine.high %v131_v48, %v135_v49  ;;  %v194_v49 = vld [vmem:[%s5963_s0 + $0x580] sm:$0xff] }
  0x70   :  { %2956 = vmatpush2.bf16.msra.mxu1 %v4449_v55  ;;  %2668 = vmatprep.subr.bf16.mxu0 %v4460_v0  ;;  %v138_v55 = vld [vmem:[%s5963_s0 + $0x3c0] sm:$0xff] }
  0x71   :  { %2147 = vmatmul.mubr.bf16.gmra.mxu0 %v3800_v50  ;;  %2957 = vmatprep.subr.bf16.mxu1 %v4460_v0  ;;  %v4455_v50 = vld [vmem:[%s5962_s1 + $0x1c8] sm:$0xff]  }
  0x72   :  { %2436 = vmatmul.mubr.bf16.gmra.mxu1 %v3802_v51  ;;  %2154 = vmatprep.mubr.bf16.mxu0 %v3809_v52  ;;  %v3856_v51 = vcombine.low %v122_v37, %v126_v38  ;;  %v3858_v52 = vcombine.low %v123_v39, %v127_v40  ;;  %v3906_v38 = vcombine.low %v171_v27, %v175_v28 }
  0x73   :  { %2443 = vmatprep.mubr.bf16.mxu1 %v3811_v53  ;;  %2669 = vmatpush2.bf16.msra.mxu0 %v4450_v11  ;;  %v3865_v53 = vcombine.high %v130_v45, %v134_v46  ;;  %v155_v11 = vld [vmem:[%s5963_s0 + $0x448] sm:$0xff] }
  0x74   :  { %2958 = vmatpush2.bf16.msra.mxu1 %v4451_v14  ;;  %2670 = vmatprep.subr.bf16.mxu0 %v4460_v0  ;;  %v3882_v14 = vcombine.low %v147_v2, %v151_v3  ;;  %v3890_v22 = vcombine.low %v155_v11, %v159_v12 }
  0x75   :  { %2959 = vmatprep.subr.bf16.mxu1 %v4460_v0 }
  0x77   :  { %2671 = vmatpush2.bf16.msra.mxu0 %v4452_v29 }
  0x78   :  { %2960 = vmatpush2.bf16.msra.mxu1 %v4453_v32  ;;  %2672 = vmatprep.subr.bf16.mxu0 %v4460_v0  ;;  %v3907_v32 = vcombine.high %v171_v27, %v175_v28 }
  0x79   :  { %2155 = vmatmul.mubr.bf16.gmra.mxu0 %v3808_v60  ;;  %2961 = vmatprep.subr.bf16.mxu1 %v4460_v0  ;;  %v3873_v60 = vcombine.high %v138_v55, %v142_v56 }
  0x7a   :  { %2444 = vmatmul.mubr.bf16.gmra.mxu1 %v3810_v61  ;;  %2162 = vmatprep.mubr.bf16.mxu0 %v3817_v62  ;;  %v146_v62 = vld [vmem:[%s5963_s0 + $0x400] sm:$0xff] }
  0x7b   :  { %2451 = vmatprep.mubr.bf16.mxu1 %v3819_v63  ;;  %2673 = vmatpush2.bf16.msra.mxu0 %v4454_v47  ;;  %v150_v63 = vld [vmem:[%s5963_s0 + $0x420] sm:$0xff] }
  0x7c   :  { %2962 = vmatpush2.bf16.msra.mxu1 %v4455_v50  ;;  %2674 = vmatprep.subr.bf16.mxu0 %v4460_v0  ;;  %v3880_v13 = vcombine.low %v146_v62, %v150_v63  ;;  %v198_v50 = vld [vmem:[%s5963_s0 + $0x5a0] sm:$0xff] }
  0x7d   :  { %2963 = vmatprep.subr.bf16.mxu1 %v4460_v0  ;;  %v143_v0 = vld [vmem:[%s5963_s0 + $0x3e8] sm:$0xff] }
  0x7e   :  { %v3875_v61 = vcombine.high %v139_v57, %v143_v0 }
  0x7f   :  { %2675 = vmatpush2.bf16.msra.mxu0 %v4456_v1  ;;  %v210_v1 = vld [vmem:[%s5963_s0 + $0x600] sm:$0xff] }
  0x80   :  { %2964 = vmatpush2.bf16.msra.mxu1 %v4457_v4  ;;  %v215_v4 = vld [vmem:[%s5963_s0 + $0x628] sm:$0xff] }
  0x81   :  { %2163 = vmatmul.mubr.bf16.gmra.mxu0 %v3816_v5  ;;  %v3872_v5 = vcombine.low %v138_v55, %v142_v56  ;;  %v3929_v55 = vcombine.high %v194_v49, %v198_v50 }
  0x82   :  { %2452 = vmatmul.mubr.bf16.gmra.mxu1 %v3818_v6  ;;  %2170 = vmatprep.mubr.bf16.mxu0 %v3825_v7  ;;  %v3874_v6 = vcombine.low %v139_v57, %v143_v0  ;;  %v3881_v7 = vcombine.high %v146_v62, %v150_v63  ;;  %v202_v57 = vld [vmem:[%s5963_s0 + $0x5c0] sm:$0xff] }
  0x83   :  { %2459 = vmatprep.mubr.bf16.mxu1 %v3827_v8  ;;  %v3883_v8 = vcombine.high %v147_v2, %v151_v3  ;;  %v206_v0 = vld [vmem:[%s5963_s0 + $0x5e0] sm:$0xff]  ;;  %v211_v3 = vld [vmem:[%s5963_s0 + $0x608] sm:$0xff] }
  0x84   :  { %v3937_v62 = vcombine.high %v202_v57, %v206_v0  ;;  %v214_v2 = vld [vmem:[%s5963_s0 + $0x620] sm:$0xff] }
  0x89   :  { %2171 = vmatmul.mubr.bf16.gmra.mxu0 %v3824_v15  ;;  %v3889_v15 = vcombine.high %v154_v9, %v158_v10  ;;  %v218_v9 = vld [vmem:[%s5963_s0 + $0x640] sm:$0xff] }
  0x8a   :  { %2460 = vmatmul.mubr.bf16.gmra.mxu1 %v3826_v16  ;;  %2178 = vmatprep.mubr.bf16.mxu0 %v3833_v17  ;;  %v3891_v16 = vcombine.high %v155_v11, %v159_v12  ;;  %v162_v17 = vld [vmem:[%s5963_s0 + $0x480] sm:$0xff]  ;;  %v219_v11 = vld [vmem:[%s5963_s0 + $0x648] sm:$0xff] }
  0x8b   :  { %2467 = vmatprep.mubr.bf16.mxu1 %v3835_v18  ;;  %v166_v18 = vld [vmem:[%s5963_s0 + $0x4a0] sm:$0xff]  ;;  %v223_v12 = vld [vmem:[%s5963_s0 + $0x668] sm:$0xff] }
  0x8c   :  { %v3896_v29 = vcombine.low %v162_v17, %v166_v18  ;;  %v222_v10 = vld [vmem:[%s5963_s0 + $0x660] sm:$0xff] }
  0x8d   :  { %v3952_v27 = vcombine.low %v218_v9, %v222_v10 }
  0x91   :  { %2179 = vmatmul.mubr.bf16.gmra.mxu0 %v3832_v23  ;;  %v3897_v23 = vcombine.high %v162_v17, %v166_v18 }
  0x92   :  { %2468 = vmatmul.mubr.bf16.gmra.mxu1 %v3834_v24  ;;  %2186 = vmatprep.mubr.bf16.mxu0 %v3841_v25  ;;  %v3899_v24 = vcombine.high %v163_v19, %v167_v20  ;;  %v170_v25 = vld [vmem:[%s5963_s0 + $0x4c0] sm:$0xff] }
  0x93   :  { %2475 = vmatprep.mubr.bf16.mxu1 %v3843_v26  ;;  %v174_v26 = vld [vmem:[%s5963_s0 + $0x4e0] sm:$0xff] }
  0x94   :  { %v3905_v31 = vcombine.high %v170_v25, %v174_v26  ;;  %v3904_v37 = vcombine.low %v170_v25, %v174_v26  ;;  %v231_v25 = vld [vmem:[%s5963_s0 + $0x6a8] sm:$0xff] }
  0x99   :  { %2187 = vmatmul.mubr.bf16.gmra.mxu0 %v3840_v33  ;;  %v178_v33 = vld [vmem:[%s5963_s0 + $0x500] sm:$0xff] }
  0x9a   :  { %2476 = vmatmul.mubr.bf16.gmra.mxu1 %v3842_v34  ;;  %2194 = vmatprep.mubr.bf16.mxu0 %v3849_v35  ;;  %v182_v34 = vld [vmem:[%s5963_s0 + $0x520] sm:$0xff]  ;;  %v179_v35 = vld [vmem:[%s5963_s0 + $0x508] sm:$0xff] }
  0x9b   :  { %2483 = vmatprep.mubr.bf16.mxu1 %v3851_v36  ;;  %v183_v36 = vld [vmem:[%s5963_s0 + $0x528] sm:$0xff]  ;;  %v3913_v39 = vcombine.high %v178_v33, %v182_v34  ;;  %v3912_v45 = vcombine.low %v178_v33, %v182_v34 }
  0x9c   :  { %v3915_v40 = vcombine.high %v179_v35, %v183_v36  ;;  %v3914_v46 = vcombine.low %v179_v35, %v183_v36 }
  0xa1   :  { %2195 = vmatmul.mubr.bf16.gmra.mxu0 %v3848_v41  ;;  %v186_v41 = vld [vmem:[%s5963_s0 + $0x540] sm:$0xff] }
  0xa2   :  { %2484 = vmatmul.mubr.bf16.gmra.mxu1 %v3850_v42  ;;  %2202 = vmatprep.mubr.bf16.mxu0 %v3857_v43  ;;  %v190_v42 = vld [vmem:[%s5963_s0 + $0x560] sm:$0xff]  ;;  %v187_v43 = vld [vmem:[%s5963_s0 + $0x548] sm:$0xff] }
  0xa3   :  { %2491 = vmatprep.mubr.bf16.mxu1 %v3859_v44  ;;  %v191_v44 = vld [vmem:[%s5963_s0 + $0x568] sm:$0xff]  ;;  %v3921_v47 = vcombine.high %v186_v41, %v190_v42 }
  0xa4   :  { %v3923_v48 = vcombine.high %v187_v43, %v191_v44 }
  0xa9   :  { %2203 = vmatmul.mubr.bf16.gmra.mxu0 %v3856_v51  ;;  %v195_v51 = vld [vmem:[%s5963_s0 + $0x588] sm:$0xff] }
  0xaa   :  { %2492 = vmatmul.mubr.bf16.gmra.mxu1 %v3858_v52  ;;  %2210 = vmatprep.mubr.bf16.mxu0 %v3865_v53  ;;  %v199_v52 = vld [vmem:[%s5963_s0 + $0x5a8] sm:$0xff]  ;;  %v3920_v53 = vcombine.low %v186_v41, %v190_v42 }
  0xab   :  { %2499 = vmatprep.mubr.bf16.mxu1 %v3867_v54  ;;  %v3922_v54 = vcombine.low %v187_v43, %v191_v44  ;;  %v3931_v56 = vcombine.high %v195_v51, %v199_v52  ;;  %v235_v42 = vld [vmem:[%s5963_s0 + $0x6c8] sm:$0xff] }
  0xac   :  { %v239_v43 = vld [vmem:[%s5963_s0 + $0x6e8] sm:$0xff] }
  0xb1   :  { %2211 = vmatmul.mubr.bf16.gmra.mxu0 %v3864_v58  ;;  %v203_v58 = vld [vmem:[%s5963_s0 + $0x5c8] sm:$0xff] }
  0xb2   :  { %2500 = vmatmul.mubr.bf16.gmra.mxu1 %v3866_v59  ;;  %2218 = vmatprep.mubr.bf16.mxu0 %v3873_v60  ;;  %v207_v59 = vld [vmem:[%s5963_s0 + $0x5e8] sm:$0xff]  ;;  %v3928_v60 = vcombine.low %v194_v49, %v198_v50 }
  0xb3   :  { %2507 = vmatprep.mubr.bf16.mxu1 %v3875_v61  ;;  %v3930_v61 = vcombine.low %v195_v51, %v199_v52  ;;  %v3939_v63 = vcombine.high %v203_v58, %v207_v59  ;;  %v3971_v51 = vcombine.high %v235_v42, %v239_v43 }
  0xb9   :  { %2219 = vmatmul.mubr.bf16.gmra.mxu0 %v3872_v5  ;;  %v3936_v5 = vcombine.low %v202_v57, %v206_v0  ;;  %v242_v57 = vld [vmem:[%s5963_s0 + $0x700] sm:$0xff] }
  0xba   :  { %2508 = vmatmul.mubr.bf16.gmra.mxu1 %v3874_v6  ;;  %2226 = vmatprep.mubr.bf16.mxu0 %v3881_v7  ;;  %v3938_v6 = vcombine.low %v203_v58, %v207_v59  ;;  %v3945_v7 = vcombine.high %v210_v1, %v214_v2  ;;  %v246_v0 = vld [vmem:[%s5963_s0 + $0x720] sm:$0xff]  ;;  %v243_v59 = vld [vmem:[%s5963_s0 + $0x708] sm:$0xff] }
  0xbb   :  { %2515 = vmatprep.mubr.bf16.mxu1 %v3883_v8  ;;  %v3947_v8 = vcombine.high %v211_v3, %v215_v4 }
  0xc1   :  { %2227 = vmatmul.mubr.bf16.gmra.mxu0 %v3880_v13  ;;  %v3944_v13 = vcombine.low %v210_v1, %v214_v2  ;;  %v3970_v1 = vcombine.low %v235_v42, %v239_v43  ;;  %v3977_v2 = vcombine.high %v242_v57, %v246_v0 }
  0xc2   :  { %2516 = vmatmul.mubr.bf16.gmra.mxu1 %v3882_v14  ;;  %2234 = vmatprep.mubr.bf16.mxu0 %v3889_v15  ;;  %v3946_v14 = vcombine.low %v211_v3, %v215_v4  ;;  %v3953_v15 = vcombine.high %v218_v9, %v222_v10 }
  0xc3   :  { %2523 = vmatprep.mubr.bf16.mxu1 %v3891_v16  ;;  %v3955_v16 = vcombine.high %v219_v11, %v223_v12 }
  0xc9   :  { %2235 = vmatmul.mubr.bf16.gmra.mxu0 %v3888_v21  ;;  %v226_v21 = vld [vmem:[%s5963_s0 + $0x680] sm:$0xff] }
  0xca   :  { %2524 = vmatmul.mubr.bf16.gmra.mxu1 %v3890_v22  ;;  %2242 = vmatprep.mubr.bf16.mxu0 %v3897_v23  ;;  %v230_v22 = vld [vmem:[%s5963_s0 + $0x6a0] sm:$0xff] }
  0xcb   :  { %2531 = vmatprep.mubr.bf16.mxu1 %v3899_v24  ;;  %v227_v24 = vld [vmem:[%s5963_s0 + $0x688] sm:$0xff] }
  0xcc   :  { %v3963_v33 = vcombine.high %v227_v24, %v231_v25 }
  0xd1   :  { %2243 = vmatmul.mubr.bf16.gmra.mxu0 %v3896_v29  ;;  %v3954_v29 = vcombine.low %v219_v11, %v223_v12  ;;  %v250_v11 = vld [vmem:[%s5963_s0 + $0x740] sm:$0xff] }
  0xd2   :  { %2532 = vmatmul.mubr.bf16.gmra.mxu1 %v3898_v30  ;;  %2250 = vmatprep.mubr.bf16.mxu0 %v3905_v31  ;;  %v3961_v30 = vcombine.high %v226_v21, %v230_v22  ;;  %v254_v12 = vld [vmem:[%s5963_s0 + $0x760] sm:$0xff] }
  0xd3   :  { %2539 = vmatprep.mubr.bf16.mxu1 %v3907_v32 }
  0xd9   :  { %2251 = vmatmul.mubr.bf16.gmra.mxu0 %v3904_v37 }
  0xda   :  { %2540 = vmatmul.mubr.bf16.gmra.mxu1 %v3906_v38  ;;  %2258 = vmatprep.mubr.bf16.mxu0 %v3913_v39  ;;  %v234_v39 = vld [vmem:[%s5963_s0 + $0x6c0] sm:$0xff] }
  0xdb   :  { %2547 = vmatprep.mubr.bf16.mxu1 %v3915_v40  ;;  %v238_v40 = vld [vmem:[%s5963_s0 + $0x6e0] sm:$0xff] }
  0xe1   :  { %2259 = vmatmul.mubr.bf16.gmra.mxu0 %v3912_v45  ;;  %v3960_v45 = vcombine.low %v226_v21, %v230_v22  ;;  %v3985_v21 = vcombine.high %v250_v11, %v254_v12 }
  0xe2   :  { %2548 = vmatmul.mubr.bf16.gmra.mxu1 %v3914_v46  ;;  %2266 = vmatprep.mubr.bf16.mxu0 %v3921_v47  ;;  %v3962_v47 = vcombine.low %v227_v24, %v231_v25 }
  0xe3   :  { %2555 = vmatprep.mubr.bf16.mxu1 %v3923_v48  ;;  %v3969_v48 = vcombine.high %v234_v39, %v238_v40 }
  0xe9   :  { %2267 = vmatmul.mubr.bf16.gmra.mxu0 %v3920_v53 }
  0xea   :  { %2556 = vmatmul.mubr.bf16.gmra.mxu1 %v3922_v54  ;;  %2274 = vmatprep.mubr.bf16.mxu0 %v3929_v55 }
  0xeb   :  { %2563 = vmatprep.mubr.bf16.mxu1 %v3931_v56 }
  0xf1   :  { %2275 = vmatmul.mubr.bf16.gmra.mxu0 %v3928_v60  ;;  %v247_v60 = vld [vmem:[%s5963_s0 + $0x728] sm:$0xff] }
  0xf2   :  { %2564 = vmatmul.mubr.bf16.gmra.mxu1 %v3930_v61  ;;  %2282 = vmatprep.mubr.bf16.mxu0 %v3937_v62  ;;  %v3968_v62 = vcombine.low %v234_v39, %v238_v40 }
  0xf3   :  { %2571 = vmatprep.mubr.bf16.mxu1 %v3939_v63 }
  0xf9   :  { %2283 = vmatmul.mubr.bf16.gmra.mxu0 %v3936_v5  ;;  %v3979_v5 = vcombine.high %v243_v59, %v247_v60 }
  0xfa   :  { %2572 = vmatmul.mubr.bf16.gmra.mxu1 %v3938_v6  ;;  %2290 = vmatprep.mubr.bf16.mxu0 %v3945_v7 }
  0xfb   :  { %2579 = vmatprep.mubr.bf16.mxu1 %v3947_v8 }
 0x101   :  { %v2100_v17 = vpop.f32.mrf.mxu0  ;;  %2291 = vmatmul.mubr.bf16.gmra.mxu0 %v3944_v13 }
 0x102   :  { %v2389_v18 = vpop.f32.mrf.mxu1  ;;  %2580 = vmatmul.mubr.bf16.gmra.mxu1 %v3946_v14  ;;  %2298 = vmatprep.mubr.bf16.mxu0 %v3953_v15  ;;  %v251_v14 = vld [vmem:[%s5963_s0 + $0x748] sm:$0xff] }
 0x103   :  { %v5070_v19 = vadd.f32 %v2389_v18, %v2100_v17  ;;  %v2102_v20 = vpop.f32.mrf.mxu0  ;;  %2587 = vmatprep.mubr.bf16.mxu1 %v3955_v16  ;;  %v255_v15 = vld [vmem:[%s5963_s0 + $0x768] sm:$0xff]  ;;  %v3976_v17 = vcombine.low %v242_v57, %v246_v0 }
 0x104   :  { %v2391_v23 = vpop.f32.mrf.mxu1  ;;  %v3978_v20 = vcombine.low %v243_v59, %v247_v60  ;;  %v3987_v24 = vcombine.high %v251_v14, %v255_v15  ;;  %v3986_v40 = vcombine.low %v251_v14, %v255_v15 }
 0x105   :  { %v2103_v26 = vpop.f32.mrf.mxu0 }
 0x106   :  { %v2392_v28 = vpop.f32.mrf.mxu1 }
 0x107   :  { %v5084_v31 = vadd.f32 %v2392_v28, %v2103_v26  ;;  %v2105_v32 = vpop.f32.mrf.mxu0 }
 0x108   :  { %v2394_v34 = vpop.f32.mrf.mxu1  ;;  %v262_v32 = vld [vmem:[%s5963_s0 + $0x7a0] sm:$0xff] }
 0x109   :  { %v2108_v35 = vpop.f32.mrf.mxu0  ;;  %2299 = vmatmul.mubr.bf16.gmra.mxu0 %v3952_v27  ;;  %v259_v34 = vld [vmem:[%s5963_s0 + $0x788] sm:$0xff] }
 0x10a   :  { %v2397_v36 = vpop.f32.mrf.mxu1  ;;  %2588 = vmatmul.mubr.bf16.gmra.mxu1 %v3954_v29  ;;  %2306 = vmatprep.mubr.bf16.mxu0 %v3961_v30  ;;  %v258_v30 = vld [vmem:[%s5963_s0 + $0x780] sm:$0xff] }
 0x10b   :  { %v5086_v37 = vadd.f32 %v2397_v36, %v2108_v35  ;;  %v2110_v38 = vpop.f32.mrf.mxu0  ;;  %2595 = vmatprep.mubr.bf16.mxu1 %v3963_v33  ;;  %v263_v35 = vld [vmem:[%s5963_s0 + $0x7a8] sm:$0xff]  ;;  %v3992_v0 = vcombine.low %v258_v30, %v262_v32 }
 0x10c   :  { %v2399_v41 = vpop.f32.mrf.mxu1  ;;  %v3984_v38 = vcombine.low %v250_v11, %v254_v12  ;;  %v3994_v59 = vcombine.low %v259_v34, %v263_v35  ;;  %v21_v11 = vld [vmem:[%s5963_s0 + $0x18] sm:$0xff] }
 0x10d   :  { %v2111_v44 = vpop.f32.mrf.mxu0  ;;  %v3993_v41 = vcombine.high %v258_v30, %v262_v32  ;;  %v25_v12 = vld [vmem:[%s5963_s0 + $0x38] sm:$0xff]  ;;  %v32_v30 = vld [vmem:[%s5963_s0 + $0x70] sm:$0xff] }
 0x10e   :  { %v2400_v46 = vpop.f32.mrf.mxu1 }
 0x10f   :  { %v5100_v49 = vadd.f32 %v2400_v46, %v2111_v44  ;;  %v2113_v50 = vpop.f32.mrf.mxu0  ;;  %v3995_v44 = vcombine.high %v259_v34, %v263_v35  ;;  %v33_v34 = vld [vmem:[%s5963_s0 + $0x78] sm:$0xff] }
 0x110   :  { %v2402_v52 = vpop.f32.mrf.mxu1 }
 0x111   :  { %v2116_v53 = vpop.f32.mrf.mxu0  ;;  %2307 = vmatmul.mubr.bf16.gmra.mxu0 %v3960_v45  ;;  %v270_v52 = vld [vmem:[%s5963_s0 + $0x7e0] sm:$0xff] }
 0x112   :  { %v2405_v54 = vpop.f32.mrf.mxu1  ;;  %2596 = vmatmul.mubr.bf16.gmra.mxu1 %v3962_v47  ;;  %2314 = vmatprep.mubr.bf16.mxu0 %v3969_v48 }
 0x113   :  { %v5102_v55 = vadd.f32 %v2405_v54, %v2116_v53  ;;  %v2118_v56 = vpop.f32.mrf.mxu0  ;;  %2603 = vmatprep.mubr.bf16.mxu1 %v3971_v51  ;;  %v266_v51 = vld [vmem:[%s5963_s0 + $0x7c0] sm:$0xff]  ;;  %v267_v54 = vld [vmem:[%s5963_s0 + $0x7c8] sm:$0xff] }
 0x114   :  { %v2407_v58 = vpop.f32.mrf.mxu1  ;;  %v271_v56 = vld [vmem:[%s5963_s0 + $0x7e8] sm:$0xff]  ;;  %v4001_v60 = vcombine.high %v266_v51, %v270_v52  ;;  %v4000_v14 = vcombine.low %v266_v51, %v270_v52  ;;  %v36_v52 = vld [vmem:[%s5963_s0 + $0x90] sm:$0xff] }
 0x115   :  { %v2119_v61 = vpop.f32.mrf.mxu0 }
 0x116   :  { %v2408_v63 = vpop.f32.mrf.mxu1 }
 0x117   :  { %v5116_v3 = vadd.f32 %v2408_v63, %v2119_v61  ;;  %v2121_v4 = vpop.f32.mrf.mxu0  ;;  %v4003_v63 = vcombine.high %v267_v54, %v271_v56 }
 0x118   :  { %v2410_v6 = vpop.f32.mrf.mxu1 }
 0x119   :  { %v2124_v7 = vpop.f32.mrf.mxu0  ;;  %2315 = vmatmul.mubr.bf16.gmra.mxu0 %v3968_v62 }
 0x11a   :  { %v2413_v8 = vpop.f32.mrf.mxu1  ;;  %2604 = vmatmul.mubr.bf16.gmra.mxu1 %v3970_v1  ;;  %2322 = vmatprep.mubr.bf16.mxu0 %v3977_v2 }
 0x11b   :  { %v5118_v9 = vadd.f32 %v2413_v8, %v2124_v7  ;;  %v2126_v10 = vpop.f32.mrf.mxu0  ;;  %2611 = vmatprep.mubr.bf16.mxu1 %v3979_v5  ;;  %v20_v7 = vld [vmem:[%s5963_s0 + $0x10] sm:$0xff] }
 0x11c   :  { %v2415_v13 = vpop.f32.mrf.mxu1  ;;  %v24_v8 = vld [vmem:[%s5963_s0 + $0x30] sm:$0xff] }
 0x11d   :  { %v2127_v16 = vpop.f32.mrf.mxu0 }
 0x11e   :  { %v2416_v18 = vpop.f32.mrf.mxu1 }
 0x11f   :  { %v5132_v22 = vadd.f32 %v2416_v18, %v2127_v16  ;;  %v2129_v23 = vpop.f32.mrf.mxu0  ;;  %v4002_v16 = vcombine.low %v267_v54, %v271_v56  ;;  %v37_v56 = vld [vmem:[%s5963_s0 + $0x98] sm:$0xff] }
 0x120   :  { %v2418_v25 = vpop.f32.mrf.mxu1 }
 0x121   :  { %v2132_v26 = vpop.f32.mrf.mxu0  ;;  %2323 = vmatmul.mubr.bf16.gmra.mxu0 %v3976_v17  ;;  %v3757_v17 = vcombine.high %v20_v7, %v24_v8 }
 0x122   :  { %v2421_v27 = vpop.f32.mrf.mxu1  ;;  %2612 = vmatmul.mubr.bf16.gmra.mxu1 %v3978_v20  ;;  %2330 = vmatprep.mubr.bf16.mxu0 %v3985_v21  ;;  %v3759_v21 = vcombine.high %v21_v11, %v25_v12 }
 0x123   :  { %v5134_v28 = vadd.f32 %v2421_v27, %v2132_v26  ;;  %v2134_v29 = vpop.f32.mrf.mxu0  ;;  %2619 = vmatprep.mubr.bf16.mxu1 %v3987_v24 }
 0x124   :  { %v2423_v33 = vpop.f32.mrf.mxu1  ;;  %v28_v29 = vld [vmem:[%s5963_s0 + $0x50] sm:$0xff] }
 0x125   :  { %v2135_v36 = vpop.f32.mrf.mxu0  ;;  %v29_v33 = vld [vmem:[%s5963_s0 + $0x58] sm:$0xff] }
 0x126   :  { %v2424_v39 = vpop.f32.mrf.mxu1 }
 0x127   :  { %v5148_v42 = vadd.f32 %v2424_v39, %v2135_v36  ;;  %v2137_v43 = vpop.f32.mrf.mxu0  ;;  %v3756_v36 = vcombine.low %v20_v7, %v24_v8  ;;  %v3758_v39 = vcombine.low %v21_v11, %v25_v12  ;;  %v44_v11 = vld [vmem:[%s5963_s0 + $0xd0] sm:$0xff] }
 0x128   :  { %v2426_v45 = vpop.f32.mrf.mxu1  ;;  %v48_v12 = vld [vmem:[%s5963_s0 + $0xf0] sm:$0xff] }
 0x129   :  { %v2140_v46 = vpop.f32.mrf.mxu0  ;;  %2331 = vmatmul.mubr.bf16.gmra.mxu0 %v3984_v38 }
 0x12a   :  { %v2429_v47 = vpop.f32.mrf.mxu1  ;;  %2620 = vmatmul.mubr.bf16.gmra.mxu1 %v3986_v40  ;;  %2338 = vmatprep.mubr.bf16.mxu0 %v3993_v41  ;;  %v3765_v40 = vcombine.high %v28_v29, %v32_v30 }
 0x12b   :  { %v5150_v48 = vadd.f32 %v2429_v47, %v2140_v46  ;;  %v2142_v50 = vpop.f32.mrf.mxu0  ;;  %2627 = vmatprep.mubr.bf16.mxu1 %v3995_v44  ;;  %v3767_v44 = vcombine.high %v29_v33, %v33_v34 }
 0x12c   :  { %v2431_v53 = vpop.f32.mrf.mxu1 }
 0x12d   :  { %v2143_v57 = vpop.f32.mrf.mxu0  ;;  %v40_v53 = vld [vmem:[%s5963_s0 + $0xb0] sm:$0xff] }
 0x12e   :  { %v2432_v58 = vpop.f32.mrf.mxu1 }
 0x12f   :  { %v5164_v61 = vadd.f32 %v2432_v58, %v2143_v57  ;;  %v2145_v62 = vpop.f32.mrf.mxu0  ;;  %v41_v57 = vld [vmem:[%s5963_s0 + $0xb8] sm:$0xff]  ;;  %v3764_v58 = vcombine.low %v28_v29, %v32_v30 }
 0x130   :  { %v2434_v1 = vpop.f32.mrf.mxu1  ;;  %v3773_v62 = vcombine.high %v36_v52, %v40_v53 }
 0x131   :  { %v2148_v2 = vpop.f32.mrf.mxu0  ;;  %2339 = vmatmul.mubr.bf16.gmra.mxu0 %v3992_v0 }
 0x132   :  { %v2437_v4 = vpop.f32.mrf.mxu1  ;;  %2628 = vmatmul.mubr.bf16.gmra.mxu1 %v3994_v59  ;;  %2346 = vmatprep.mubr.bf16.mxu0 %v4001_v60  ;;  %v3766_v60 = vcombine.low %v29_v33, %v33_v34 }
 0x133   :  { %v5166_v5 = vadd.f32 %v2437_v4, %v2148_v2  ;;  %v2150_v6 = vpop.f32.mrf.mxu0  ;;  %2635 = vmatprep.mubr.bf16.mxu1 %v4003_v63  ;;  %v3775_v2 = vcombine.high %v37_v56, %v41_v57 }
 0x134   :  { %v2439_v10 = vpop.f32.mrf.mxu1 }
 0x135   :  { %v2151_v13 = vpop.f32.mrf.mxu0 }
 0x136   :  { %v2440_v15 = vpop.f32.mrf.mxu1 }
 0x137   :  { %v5180_v18 = vadd.f32 %v2440_v15, %v2151_v13  ;;  %v2153_v20 = vpop.f32.mrf.mxu0  ;;  %v49_v15 = vld [vmem:[%s5963_s0 + $0xf8] sm:$0xff] }
 0x138   :  { %v2442_v23 = vpop.f32.mrf.mxu1 }
 0x139   :  { %v2156_v24 = vpop.f32.mrf.mxu0  ;;  %2347 = vmatmul.mubr.bf16.gmra.mxu0 %v4000_v14  ;;  %v45_v14 = vld [vmem:[%s5963_s0 + $0xd8] sm:$0xff]  ;;  %v3781_v23 = vcombine.high %v44_v11, %v48_v12 }
 0x13a   :  { %v2445_v25 = vpop.f32.mrf.mxu1  ;;  %2636 = vmatmul.mubr.bf16.gmra.mxu1 %v4002_v16  ;;  %2676 = vmatprep.mubr.bf16.mxu0 %v3757_v17  ;;  %v3772_v17 = vcombine.low %v36_v52, %v40_v53 }
 0x13b   :  { %v5182_v26 = vadd.f32 %v2445_v25, %v2156_v24  ;;  %v2158_v27 = vpop.f32.mrf.mxu0  ;;  %2965 = vmatprep.mubr.bf16.mxu1 %v3759_v21  ;;  %v3774_v21 = vcombine.low %v37_v56, %v41_v57 }
 0x13c   :  { %v2447_v32 = vpop.f32.mrf.mxu1  ;;  %v3783_v27 = vcombine.high %v45_v14, %v49_v15 }
 0x13d   :  { %v2159_v35 = vpop.f32.mrf.mxu0 }
 0x13e   :  { %v2448_v38 = vpop.f32.mrf.mxu1 }
 0x13f   :  { %v5196_v41 = vadd.f32 %v2448_v38, %v2159_v35  ;;  %v2161_v43 = vpop.f32.mrf.mxu0  ;;  %v52_v35 = vld [vmem:[%s5963_s0 + $0x110] sm:$0xff] }
 0x140   :  { %v2450_v45 = vpop.f32.mrf.mxu1 }
 0x141   :  { %v2164_v46 = vpop.f32.mrf.mxu0  ;;  %2677 = vmatmul.mubr.bf16.vlgmr.msra.gmra.mxu0 %v3756_v36  ;;  %v56_v36 = vld [vmem:[%s5963_s0 + $0x130] sm:$0xff] }
 0x142   :  { %v2453_v47 = vpop.f32.mrf.mxu1  ;;  %2966 = vmatmul.mubr.bf16.vlgmr.msra.gmra.mxu1 %v3758_v39  ;;  %2684 = vmatprep.mubr.bf16.mxu0 %v3765_v40  ;;  %v53_v39 = vld [vmem:[%s5963_s0 + $0x118] sm:$0xff] }
 0x143   :  { %v5198_v50 = vadd.f32 %v2453_v47, %v2164_v46  ;;  %v2166_v51 = vpop.f32.mrf.mxu0  ;;  %2973 = vmatprep.mubr.bf16.mxu1 %v3767_v44  ;;  %v57_v40 = vld [vmem:[%s5963_s0 + $0x138] sm:$0xff]  ;;  %v3780_v44 = vcombine.low %v44_v11, %v48_v12  ;;  %v3782_v46 = vcombine.low %v45_v14, %v49_v15  ;;  %v3789_v47 = vcombine.high %v52_v35, %v56_v36 }
 0x144   :  { %v2455_v54 = vpop.f32.mrf.mxu1  ;;  %v3791_v53 = vcombine.high %v53_v39, %v57_v40 }
 0x145   :  { %v2167_v0 = vpop.f32.mrf.mxu0 }
 0x146   :  { %v2456_v59 = vpop.f32.mrf.mxu1 }
 0x147   :  { %v5212_v63 = vadd.f32 %v2456_v59, %v2167_v0  ;;  %v2169_v1 = vpop.f32.mrf.mxu0  ;;  %v60_v59 = vld [vmem:[%s5963_s0 + $0x150] sm:$0xff] }
 0x148   :  { %v2458_v4 = vpop.f32.mrf.mxu1  ;;  %v61_v1 = vld [vmem:[%s5963_s0 + $0x158] sm:$0xff] }
 0x149   :  { %v2172_v6 = vpop.f32.mrf.mxu0  ;;  %2685 = vmatmul.mubr.bf16.gmra.mxu0 %v3764_v58 }
 0x14a   :  { %v2461_v7 = vpop.f32.mrf.mxu1  ;;  %2974 = vmatmul.mubr.bf16.gmra.mxu1 %v3766_v60  ;;  %2692 = vmatprep.mubr.bf16.mxu0 %v3773_v62  ;;  %v64_v60 = vld [vmem:[%s5963_s0 + $0x170] sm:$0xff] }
 0x14b   :  { %v5214_v8 = vadd.f32 %v2461_v7, %v2172_v6  ;;  %v2174_v10 = vpop.f32.mrf.mxu0  ;;  %2981 = vmatprep.mubr.bf16.mxu1 %v3775_v2  ;;  %v65_v2 = vld [vmem:[%s5963_s0 + $0x178] sm:$0xff]  ;;  %v3788_v6 = vcombine.low %v52_v35, %v56_v36  ;;  %v3797_v11 = vcombine.high %v60_v59, %v64_v60 }
 0x14c   :  { %v2463_v13 = vpop.f32.mrf.mxu1  ;;  %v3790_v10 = vcombine.low %v53_v39, %v57_v40  ;;  %v3799_v14 = vcombine.high %v61_v1, %v65_v2  ;;  %v3798_v36 = vcombine.low %v61_v1, %v65_v2 }
 0x14d   :  { %v2175_v16 = vpop.f32.mrf.mxu0 }
 0x14e   :  { %v2464_v20 = vpop.f32.mrf.mxu1 }
 0x14f   :  { %v5228_v24 = vadd.f32 %v2464_v20, %v2175_v16  ;;  %v2177_v25 = vpop.f32.mrf.mxu0 }
 0x150   :  { %v2466_v29 = vpop.f32.mrf.mxu1  ;;  %v72_v25 = vld [vmem:[%s5963_s0 + $0x1b0] sm:$0xff] }
 0x151   :  { %v2180_v30 = vpop.f32.mrf.mxu0  ;;  %2693 = vmatmul.mubr.bf16.gmra.mxu0 %v3772_v17  ;;  %v69_v29 = vld [vmem:[%s5963_s0 + $0x198] sm:$0xff] }
 0x152   :  { %v2469_v32 = vpop.f32.mrf.mxu1  ;;  %2982 = vmatmul.mubr.bf16.gmra.mxu1 %v3774_v21  ;;  %2700 = vmatprep.mubr.bf16.mxu0 %v3781_v23  ;;  %v68_v23 = vld [vmem:[%s5963_s0 + $0x190] sm:$0xff] }
 0x153   :  { %v5230_v33 = vadd.f32 %v2469_v32, %v2180_v30  ;;  %v2182_v34 = vpop.f32.mrf.mxu0  ;;  %2989 = vmatprep.mubr.bf16.mxu1 %v3783_v27  ;;  %v73_v30 = vld [vmem:[%s5963_s0 + $0x1b8] sm:$0xff] }
 0x154   :  { %v2471_v38 = vpop.f32.mrf.mxu1  ;;  %v3796_v34 = vcombine.low %v60_v59, %v64_v60  ;;  %v3804_v60 = vcombine.low %v68_v23, %v72_v25  ;;  %v3806_v1 = vcombine.low %v69_v29, %v73_v30 }
 0x155   :  { %v2183_v43 = vpop.f32.mrf.mxu0  ;;  %v3805_v38 = vcombine.high %v68_v23, %v72_v25  ;;  %v85_v23 = vld [vmem:[%s5963_s0 + $0x218] sm:$0xff] }
 0x156   :  { %v2472_v45 = vpop.f32.mrf.mxu1  ;;  %v89_v25 = vld [vmem:[%s5963_s0 + $0x238] sm:$0xff] }
 0x157   :  { %v5244_v51 = vadd.f32 %v2472_v45, %v2183_v43  ;;  %v2185_v52 = vpop.f32.mrf.mxu0  ;;  %v3807_v43 = vcombine.high %v69_v29, %v73_v30 }
 0x158   :  { %v2474_v54 = vpop.f32.mrf.mxu1 }
 0x159   :  { %v2188_v56 = vpop.f32.mrf.mxu0  ;;  %2701 = vmatmul.mubr.bf16.gmra.mxu0 %v3780_v44  ;;  %v80_v54 = vld [vmem:[%s5963_s0 + $0x1f0] sm:$0xff] }
 0x15a   :  { %v2477_v57 = vpop.f32.mrf.mxu1  ;;  %2990 = vmatmul.mubr.bf16.gmra.mxu1 %v3782_v46  ;;  %2708 = vmatprep.mubr.bf16.mxu0 %v3789_v47 }
 0x15b   :  { %v5246_v0 = vadd.f32 %v2477_v57, %v2188_v56  ;;  %v2190_v58 = vpop.f32.mrf.mxu0  ;;  %2997 = vmatprep.mubr.bf16.mxu1 %v3791_v53  ;;  %v76_v53 = vld [vmem:[%s5963_s0 + $0x1d0] sm:$0xff]  ;;  %v77_v57 = vld [vmem:[%s5963_s0 + $0x1d8] sm:$0xff] }
 0x15c   :  { %v2479_v62 = vpop.f32.mrf.mxu1  ;;  %v81_v58 = vld [vmem:[%s5963_s0 + $0x1f8] sm:$0xff]  ;;  %v3813_v2 = vcombine.high %v76_v53, %v80_v54  ;;  %v3812_v29 = vcombine.low %v76_v53, %v80_v54  ;;  %v96_v53 = vld [vmem:[%s5963_s0 + $0x270] sm:$0xff] }
 0x15d   :  { %v2191_v4 = vpop.f32.mrf.mxu0 }
 0x15e   :  { %v2480_v7 = vpop.f32.mrf.mxu1 }
 0x15f   :  { %v5260_v12 = vadd.f32 %v2480_v7, %v2191_v4  ;;  %v2193_v13 = vpop.f32.mrf.mxu0  ;;  %v3815_v7 = vcombine.high %v77_v57, %v81_v58 }
 0x160   :  { %v2482_v15 = vpop.f32.mrf.mxu1 }
 0x161   :  { %v2196_v16 = vpop.f32.mrf.mxu0  ;;  %2709 = vmatmul.mubr.bf16.gmra.mxu0 %v3788_v6 }
 0x162   :  { %v2485_v17 = vpop.f32.mrf.mxu1  ;;  %2998 = vmatmul.mubr.bf16.gmra.mxu1 %v3790_v10  ;;  %2716 = vmatprep.mubr.bf16.mxu0 %v3797_v11 }
 0x163   :  { %v5262_v20 = vadd.f32 %v2485_v17, %v2196_v16  ;;  %v2198_v21 = vpop.f32.mrf.mxu0  ;;  %3005 = vmatprep.mubr.bf16.mxu1 %v3799_v14  ;;  %v84_v16 = vld [vmem:[%s5963_s0 + $0x210] sm:$0xff] }
 0x164   :  { %v2487_v27 = vpop.f32.mrf.mxu1  ;;  %v88_v17 = vld [vmem:[%s5963_s0 + $0x230] sm:$0xff] }
 0x165   :  { %v2199_v32 = vpop.f32.mrf.mxu0 }
 0x166   :  { %v2488_v35 = vpop.f32.mrf.mxu1 }
 0x167   :  { %v5276_v39 = vadd.f32 %v2488_v35, %v2199_v32  ;;  %v2201_v40 = vpop.f32.mrf.mxu0  ;;  %v3814_v32 = vcombine.low %v77_v57, %v81_v58  ;;  %v97_v57 = vld [vmem:[%s5963_s0 + $0x278] sm:$0xff] }
 0x168   :  { %v2490_v44 = vpop.f32.mrf.mxu1 }
 0x169   :  { %v2204_v45 = vpop.f32.mrf.mxu0  ;;  %2717 = vmatmul.mubr.bf16.gmra.mxu0 %v3796_v34  ;;  %v3821_v34 = vcombine.high %v84_v16, %v88_v17 }
 0x16a   :  { %v2493_v46 = vpop.f32.mrf.mxu1  ;;  %3006 = vmatmul.mubr.bf16.gmra.mxu1 %v3798_v36  ;;  %2724 = vmatprep.mubr.bf16.mxu0 %v3805_v38  ;;  %v3823_v38 = vcombine.high %v85_v23, %v89_v25 }
 0x16b   :  { %v5278_v47 = vadd.f32 %v2493_v46, %v2204_v45  ;;  %v2206_v52 = vpop.f32.mrf.mxu0  ;;  %3013 = vmatprep.mubr.bf16.mxu1 %v3807_v43 }
 0x16c   :  { %v2495_v56 = vpop.f32.mrf.mxu1  ;;  %v92_v52 = vld [vmem:[%s5963_s0 + $0x250] sm:$0xff] }
 0x16d   :  { %v2207_v59 = vpop.f32.mrf.mxu0  ;;  %v93_v56 = vld [vmem:[%s5963_s0 + $0x258] sm:$0xff] }
 0x16e   :  { %v2496_v62 = vpop.f32.mrf.mxu1 }
 0x16f   :  { %v5292_v4 = vadd.f32 %v2496_v62, %v2207_v59  ;;  %v2209_v6 = vpop.f32.mrf.mxu0  ;;  %v3820_v59 = vcombine.low %v84_v16, %v88_v17  ;;  %v3822_v62 = vcombine.low %v85_v23, %v89_v25  ;;  %v100_v16 = vld [vmem:[%s5963_s0 + $0x290] sm:$0xff]  ;;  %v101_v25 = vld [vmem:[%s5963_s0 + $0x298] sm:$0xff] }
 0x170   :  { %v2498_v10 = vpop.f32.mrf.mxu1  ;;  %v104_v17 = vld [vmem:[%s5963_s0 + $0x2b0] sm:$0xff] }
 0x171   :  { %v2212_v11 = vpop.f32.mrf.mxu0  ;;  %2725 = vmatmul.mubr.bf16.gmra.mxu0 %v3804_v60 }
 0x172   :  { %v2501_v13 = vpop.f32.mrf.mxu1  ;;  %3014 = vmatmul.mubr.bf16.gmra.mxu1 %v3806_v1  ;;  %2732 = vmatprep.mubr.bf16.mxu0 %v3813_v2  ;;  %v3829_v1 = vcombine.high %v92_v52, %v96_v53 }
 0x173   :  { %v5294_v14 = vadd.f32 %v2501_v13, %v2212_v11  ;;  %v2214_v15 = vpop.f32.mrf.mxu0  ;;  %3021 = vmatprep.mubr.bf16.mxu1 %v3815_v7  ;;  %v3831_v7 = vcombine.high %v93_v56, %v97_v57 }
 0x174   :  { %v2503_v21 = vpop.f32.mrf.mxu1 }
 0x175   :  { %v2215_v27 = vpop.f32.mrf.mxu0 }
 0x176   :  { %v2504_v30 = vpop.f32.mrf.mxu1 }
 0x177   :  { %v5308_v35 = vadd.f32 %v2504_v30, %v2215_v27  ;;  %v2217_v36 = vpop.f32.mrf.mxu0  ;;  %v105_v27 = vld [vmem:[%s5963_s0 + $0x2b8] sm:$0xff]  ;;  %v3828_v30 = vcombine.low %v92_v52, %v96_v53  ;;  %v108_v52 = vld [vmem:[%s5963_s0 + $0x2d0] sm:$0xff] }
 0x178   :  { %v2506_v40 = vpop.f32.mrf.mxu1  ;;  %v3837_v36 = vcombine.high %v100_v16, %v104_v17  ;;  %v112_v53 = vld [vmem:[%s5963_s0 + $0x2f0] sm:$0xff] }
 0x179   :  { %v2220_v43 = vpop.f32.mrf.mxu0  ;;  %2733 = vmatmul.mubr.bf16.gmra.mxu0 %v3812_v29 }
 0x17a   :  { %v2509_v44 = vpop.f32.mrf.mxu1  ;;  %3022 = vmatmul.mubr.bf16.gmra.mxu1 %v3814_v32  ;;  %2740 = vmatprep.mubr.bf16.mxu0 %v3821_v34  ;;  %v3830_v34 = vcombine.low %v93_v56, %v97_v57  ;;  %v109_v57 = vld [vmem:[%s5963_s0 + $0x2d8] sm:$0xff] }
 0x17b   :  { %v5310_v45 = vadd.f32 %v2509_v44, %v2220_v43  ;;  %v2222_v46 = vpop.f32.mrf.mxu0  ;;  %3029 = vmatprep.mubr.bf16.mxu1 %v3823_v38  ;;  %v3839_v43 = vcombine.high %v101_v25, %v105_v27 }
 0x17c   :  { %v2511_v54 = vpop.f32.mrf.mxu1 }
 0x17d   :  { %v2223_v58 = vpop.f32.mrf.mxu0 }
 0x17e   :  { %v2512_v60 = vpop.f32.mrf.mxu1 }
 0x17f   :  { %v5324_v2 = vadd.f32 %v2512_v60, %v2223_v58  ;;  %v2225_v6 = vpop.f32.mrf.mxu0  ;;  %v113_v60 = vld [vmem:[%s5963_s0 + $0x2f8] sm:$0xff] }
 0x180   :  { %v2514_v10 = vpop.f32.mrf.mxu1 }
 0x181   :  { %v2228_v11 = vpop.f32.mrf.mxu0  ;;  %2741 = vmatmul.mubr.bf16.gmra.mxu0 %v3820_v59  ;;  %v3845_v10 = vcombine.high %v108_v52, %v112_v53 }
 0x182   :  { %v2517_v13 = vpop.f32.mrf.mxu1  ;;  %3030 = vmatmul.mubr.bf16.gmra.mxu1 %v3822_v62  ;;  %2748 = vmatprep.mubr.bf16.mxu0 %v3829_v1  ;;  %v3836_v1 = vcombine.low %v100_v16, %v104_v17  ;;  %v116_v16 = vld [vmem:[%s5963_s0 + $0x310] sm:$0xff] }
 0x183   :  { %v5326_v15 = vadd.f32 %v2517_v13, %v2228_v11  ;;  %v2230_v21 = vpop.f32.mrf.mxu0  ;;  %3037 = vmatprep.mubr.bf16.mxu1 %v3831_v7  ;;  %v3838_v7 = vcombine.low %v101_v25, %v105_v27  ;;  %v120_v17 = vld [vmem:[%s5963_s0 + $0x330] sm:$0xff]  ;;  %v117_v27 = vld [vmem:[%s5963_s0 + $0x318] sm:$0xff] }
 0x184   :  { %v2519_v23 = vpop.f32.mrf.mxu1  ;;  %v3847_v21 = vcombine.high %v109_v57, %v113_v60 }
 0x185   :  { %v2231_v29 = vpop.f32.mrf.mxu0 }
 0x186   :  { %v2520_v32 = vpop.f32.mrf.mxu1 }
 0x187   :  { %v5340_v38 = vadd.f32 %v2520_v32, %v2231_v29  ;;  %v2233_v40 = vpop.f32.mrf.mxu0 }
 0x188   :  { %v2522_v44 = vpop.f32.mrf.mxu1 }
 0x189   :  { %v2236_v46 = vpop.f32.mrf.mxu0  ;;  %2749 = vmatmul.mubr.bf16.gmra.mxu0 %v3828_v30 }
 0x18a   :  { %v2525_v54 = vpop.f32.mrf.mxu1  ;;  %3038 = vmatmul.mubr.bf16.gmra.mxu1 %v3830_v34  ;;  %2756 = vmatprep.mubr.bf16.mxu0 %v3837_v36  ;;  %v121_v36 = vld [vmem:[%s5963_s0 + $0x338] sm:$0xff] }
 0x18b   :  { %v5342_v58 = vadd.f32 %v2525_v54, %v2236_v46  ;;  %v2238_v59 = vpop.f32.mrf.mxu0  ;;  %3045 = vmatprep.mubr.bf16.mxu1 %v3839_v43  ;;  %v3844_v43 = vcombine.low %v108_v52, %v112_v53  ;;  %v3846_v46 = vcombine.low %v109_v57, %v113_v60  ;;  %v3853_v54 = vcombine.high %v116_v16, %v120_v17  ;;  %v124_v52 = vld [vmem:[%s5963_s0 + $0x350] sm:$0xff]  ;;  %v125_v60 = vld [vmem:[%s5963_s0 + $0x358] sm:$0xff] }
 0x18c   :  { %v2527_v56 = vpop.f32.mrf.mxu1  ;;  %v128_v53 = vld [vmem:[%s5963_s0 + $0x370] sm:$0xff] }
 0x18d   :  { %v2239_v62 = vpop.f32.mrf.mxu0 }
 0x18e   :  { %v2528_v6 = vpop.f32.mrf.mxu1 }
 0x18f   :  { %v5356_v11 = vadd.f32 %v2528_v6, %v2239_v62  ;;  %v2241_v13 = vpop.f32.mrf.mxu0  ;;  %v3855_v62 = vcombine.high %v117_v27, %v121_v36 }
 0x190   :  { %v2530_v23 = vpop.f32.mrf.mxu1 }
 0x191   :  { %v2244_v29 = vpop.f32.mrf.mxu0  ;;  %2757 = vmatmul.mubr.bf16.gmra.mxu0 %v3836_v1 }
 0x192   :  { %v2533_v30 = vpop.f32.mrf.mxu1  ;;  %3046 = vmatmul.mubr.bf16.gmra.mxu1 %v3838_v7  ;;  %2764 = vmatprep.mubr.bf16.mxu0 %v3845_v10 }
 0x193   :  { %v5358_v32 = vadd.f32 %v2533_v30, %v2244_v29  ;;  %v2246_v34 = vpop.f32.mrf.mxu0  ;;  %3053 = vmatprep.mubr.bf16.mxu1 %v3847_v21  ;;  %v129_v21 = vld [vmem:[%s5963_s0 + $0x378] sm:$0xff]  ;;  %v3852_v29 = vcombine.low %v116_v16, %v120_v17  ;;  %v132_v16 = vld [vmem:[%s5963_s0 + $0x390] sm:$0xff] }
 0x194   :  { %v2535_v25 = vpop.f32.mrf.mxu1  ;;  %v3854_v34 = vcombine.low %v117_v27, %v121_v36  ;;  %v136_v17 = vld [vmem:[%s5963_s0 + $0x3b0] sm:$0xff]  ;;  %v133_v36 = vld [vmem:[%s5963_s0 + $0x398] sm:$0xff] }
 0x195   :  { %v2247_v40 = vpop.f32.mrf.mxu0  ;;  %v3861_v25 = vcombine.high %v124_v52, %v128_v53 }
 0x196   :  { %v2536_v44 = vpop.f32.mrf.mxu1 }
 0x197   :  { %v5372_v59 = vadd.f32 %v2536_v44, %v2247_v40  ;;  %v2249_v56 = vpop.f32.mrf.mxu0  ;;  %v3863_v44 = vcombine.high %v125_v60, %v129_v21 }
 0x198   :  { %v2538_v1 = vpop.f32.mrf.mxu1 }
 0x199   :  { %v2252_v6 = vpop.f32.mrf.mxu0  ;;  %2765 = vmatmul.mubr.bf16.gmra.mxu0 %v3844_v43 }
 0x19a   :  { %v2541_v7 = vpop.f32.mrf.mxu1  ;;  %3054 = vmatmul.mubr.bf16.gmra.mxu1 %v3846_v46  ;;  %2772 = vmatprep.mubr.bf16.mxu0 %v3853_v54 }
 0x19b   :  { %v5374_v10 = vadd.f32 %v2541_v7, %v2252_v6  ;;  %v2254_v13 = vpop.f32.mrf.mxu0  ;;  %3061 = vmatprep.mubr.bf16.mxu1 %v3855_v62  ;;  %v137_v6 = vld [vmem:[%s5963_s0 + $0x3b8] sm:$0xff] }
 0x19c   :  { %v2543_v57 = vpop.f32.mrf.mxu1  ;;  %v3860_v13 = vcombine.low %v124_v52, %v128_v53  ;;  %v140_v52 = vld [vmem:[%s5963_s0 + $0x3d0] sm:$0xff] }
 0x19d   :  { %v2255_v23 = vpop.f32.mrf.mxu0  ;;  %v144_v53 = vld [vmem:[%s5963_s0 + $0x3f0] sm:$0xff] }
 0x19e   :  { %v2544_v30 = vpop.f32.mrf.mxu1 }
 0x19f   :  { %v5388_v40 = vadd.f32 %v2544_v30, %v2255_v23  ;;  %v2257_v43 = vpop.f32.mrf.mxu0  ;;  %v3862_v23 = vcombine.low %v125_v60, %v129_v21  ;;  %v141_v21 = vld [vmem:[%s5963_s0 + $0x3d8] sm:$0xff] }
 0x1a0   :  { %v2546_v46 = vpop.f32.mrf.mxu1 }
 0x1a1   :  { %5967 = vst [vmem:[#allocation2_spill] sm:$0xff] %v5388_v40  ;;  %v2260_v54 = vpop.f32.mrf.mxu0  ;;  %2773 = vmatmul.mubr.bf16.gmra.mxu0 %v3852_v29  ;;  %v3869_v29 = vcombine.high %v132_v16, %v136_v17 }
 0x1a2   :  { %v2549_v56 = vpop.f32.mrf.mxu1  ;;  %3062 = vmatmul.mubr.bf16.gmra.mxu1 %v3854_v34  ;;  %2780 = vmatprep.mubr.bf16.mxu0 %v3861_v25  ;;  %v3871_v25 = vcombine.high %v133_v36, %v137_v6 }
 0x1a3   :  { %v5390_v62 = vadd.f32 %v2549_v56, %v2260_v54  ;;  %v2262_v1 = vpop.f32.mrf.mxu0  ;;  %3069 = vmatprep.mubr.bf16.mxu1 %v3863_v44 }
 0x1a4   :  { %v2551_v27 = vpop.f32.mrf.mxu1  ;;  %v145_v1 = vld [vmem:[%s5963_s0 + $0x3f8] sm:$0xff] }
 0x1a5   :  { %5968 = vst [vmem:[#allocation3_spill] sm:$0xff] %v5390_v62  ;;  %v2263_v7 = vpop.f32.mrf.mxu0 }
 0x1a6   :  { %v2552_v57 = vpop.f32.mrf.mxu1 }
 0x1a7   :  { %v5404_v30 = vadd.f32 %v2552_v57, %v2263_v7  ;;  %v2265_v34 = vpop.f32.mrf.mxu0  ;;  %v3868_v7 = vcombine.low %v132_v16, %v136_v17  ;;  %v3870_v57 = vcombine.low %v133_v36, %v137_v6  ;;  %v148_v16 = vld [vmem:[%s5963_s0 + $0x410] sm:$0xff]  ;;  %v149_v6 = vld [vmem:[%s5963_s0 + $0x418] sm:$0xff] }
 0x1a8   :  { %v2554_v43 = vpop.f32.mrf.mxu1  ;;  %v152_v17 = vld [vmem:[%s5963_s0 + $0x430] sm:$0xff] }
 0x1a9   :  { %5969 = vst [vmem:[#allocation4_spill] sm:$0xff] %v5404_v30  ;;  %v2268_v44 = vpop.f32.mrf.mxu0  ;;  %2781 = vmatmul.mubr.bf16.gmra.mxu0 %v3860_v13 }
 0x1aa   :  { %v2557_v46 = vpop.f32.mrf.mxu1  ;;  %3070 = vmatmul.mubr.bf16.gmra.mxu1 %v3862_v23  ;;  %2788 = vmatprep.mubr.bf16.mxu0 %v3869_v29  ;;  %v3877_v23 = vcombine.high %v140_v52, %v144_v53 }
 0x1ab   :  { %v5406_v54 = vadd.f32 %v2557_v46, %v2268_v44  ;;  %v2270_v56 = vpop.f32.mrf.mxu0  ;;  %3077 = vmatprep.mubr.bf16.mxu1 %v3871_v25  ;;  %v3879_v25 = vcombine.high %v141_v21, %v145_v1 }
 0x1ac   :  { %v2559_v60 = vpop.f32.mrf.mxu1 }
 0x1ad   :  { %5970 = vst [vmem:[#allocation5_spill] sm:$0xff] %v5406_v54  ;;  %v2271_v27 = vpop.f32.mrf.mxu0 }
 0x1ae   :  { %v2560_v13 = vpop.f32.mrf.mxu1 }
 0x1af   :  { %v5420_v29 = vadd.f32 %v2560_v13, %v2271_v27  ;;  %v2273_v34 = vpop.f32.mrf.mxu0  ;;  %v153_v27 = vld [vmem:[%s5963_s0 + $0x438] sm:$0xff]  ;;  %v3876_v13 = vcombine.low %v140_v52, %v144_v53  ;;  %v156_v52 = vld [vmem:[%s5963_s0 + $0x450] sm:$0xff] }
 0x1b0   :  { %v2562_v43 = vpop.f32.mrf.mxu1  ;;  %v3885_v34 = vcombine.high %v148_v16, %v152_v17  ;;  %v160_v53 = vld [vmem:[%s5963_s0 + $0x470] sm:$0xff] }
 0x1b1   :  { %5971 = vst [vmem:[#allocation6_spill] sm:$0xff] %v5420_v29  ;;  %v2276_v44 = vpop.f32.mrf.mxu0  ;;  %2789 = vmatmul.mubr.bf16.gmra.mxu0 %v3868_v7 }
 0x1b2   :  { %v2565_v46 = vpop.f32.mrf.mxu1  ;;  %3078 = vmatmul.mubr.bf16.gmra.mxu1 %v3870_v57  ;;  %2796 = vmatprep.mubr.bf16.mxu0 %v3877_v23  ;;  %v3878_v23 = vcombine.low %v141_v21, %v145_v1  ;;  %v157_v1 = vld [vmem:[%s5963_s0 + $0x458] sm:$0xff] }
 0x1b3   :  { %v5422_v56 = vadd.f32 %v2565_v46, %v2276_v44  ;;  %v2278_v60 = vpop.f32.mrf.mxu0  ;;  %3085 = vmatprep.mubr.bf16.mxu1 %v3879_v25  ;;  %v3887_v44 = vcombine.high %v149_v6, %v153_v27 }
 0x1b4   :  { %v2567_v36 = vpop.f32.mrf.mxu1 }
 0x1b5   :  { %5972 = vst [vmem:[#allocation7_spill] sm:$0xff] %v5422_v56  ;;  %v2279_v7 = vpop.f32.mrf.mxu0 }
 0x1b6   :  { %v2568_v57 = vpop.f32.mrf.mxu1 }
 0x1b7   :  { %v5436_v25 = vadd.f32 %v2568_v57, %v2279_v7  ;;  %v2281_v43 = vpop.f32.mrf.mxu0  ;;  %v161_v7 = vld [vmem:[%s5963_s0 + $0x478] sm:$0xff] }
 0x1b8   :  { %v2570_v46 = vpop.f32.mrf.mxu1 }
 0x1b9   :  { %5973 = vst [vmem:[#allocation8_spill] sm:$0xff] %v5436_v25  ;;  %v2284_v60 = vpop.f32.mrf.mxu0  ;;  %2797 = vmatmul.mubr.bf16.gmra.mxu0 %v3876_v13  ;;  %v3895_v46 = vcombine.high %v157_v1, %v161_v7 }
 0x1ba   :  { %v2573_v36 = vpop.f32.mrf.mxu1  ;;  %3086 = vmatmul.mubr.bf16.gmra.mxu1 %v3878_v23  ;;  %2804 = vmatprep.mubr.bf16.mxu0 %v3885_v34  ;;  %v3886_v23 = vcombine.low %v149_v6, %v153_v27  ;;  %v3893_v34 = vcombine.high %v156_v52, %v160_v53  ;;  %v165_v27 = vld [vmem:[%s5963_s0 + $0x498] sm:$0xff] }
 0x1bb   :  { %v5438_v56 = vadd.f32 %v2573_v36, %v2284_v60  ;;  %v2286_v29 = vpop.f32.mrf.mxu0  ;;  %3093 = vmatprep.mubr.bf16.mxu1 %v3887_v44 }
 0x1bc   :  { %v2575_v21 = vpop.f32.mrf.mxu1  ;;  %v3884_v29 = vcombine.low %v148_v16, %v152_v17  ;;  %v164_v16 = vld [vmem:[%s5963_s0 + $0x490] sm:$0xff] }
 0x1bd   :  { %5974 = vst [vmem:[#allocation9_spill] sm:$0xff] %v5438_v56  ;;  %v2287_v13 = vpop.f32.mrf.mxu0  ;;  %v168_v17 = vld [vmem:[%s5963_s0 + $0x4b0] sm:$0xff] }
 0x1be   :  { %v2576_v57 = vpop.f32.mrf.mxu1 }
 0x1bf   :  { %v5452_v43 = vadd.f32 %v2576_v57, %v2287_v13  ;;  %v2289_v44 = vpop.f32.mrf.mxu0  ;;  %v169_v13 = vld [vmem:[%s5963_s0 + $0x4b8] sm:$0xff] }
 0x1c0   :  { %v2578_v60 = vpop.f32.mrf.mxu1 }
 0x1c1   :  { %5975 = vst [vmem:[#allocation10_spill] sm:$0xff] %v5452_v43  ;;  %v2292_v36 = vpop.f32.mrf.mxu0  ;;  %2805 = vmatmul.mubr.bf16.gmra.mxu0 %v3884_v29  ;;  %v3903_v60 = vcombine.high %v165_v27, %v169_v13 }
 0x1c2   :  { %v2581_v21 = vpop.f32.mrf.mxu1  ;;  %3094 = vmatmul.mubr.bf16.gmra.mxu1 %v3886_v23  ;;  %2812 = vmatprep.mubr.bf16.mxu0 %v3893_v34  ;;  %v3894_v23 = vcombine.low %v157_v1, %v161_v7  ;;  %v3901_v34 = vcombine.high %v164_v16, %v168_v17  ;;  %v173_v7 = vld [vmem:[%s5963_s0 + $0x4d8] sm:$0xff] }
 0x1c3   :  { %v5454_v56 = vadd.f32 %v2581_v21, %v2292_v36  ;;  %v2294_v25 = vpop.f32.mrf.mxu0  ;;  %3101 = vmatprep.mubr.bf16.mxu1 %v3895_v46 }
 0x1c4   :  { %v2583_v6 = vpop.f32.mrf.mxu1  ;;  %v3892_v25 = vcombine.low %v156_v52, %v160_v53  ;;  %v172_v52 = vld [vmem:[%s5963_s0 + $0x4d0] sm:$0xff] }
 0x1c5   :  { %5976 = vst [vmem:[#allocation11_spill] sm:$0xff] %v5454_v56  ;;  %v2295_v29 = vpop.f32.mrf.mxu0  ;;  %v176_v53 = vld [vmem:[%s5963_s0 + $0x4f0] sm:$0xff] }
 0x1c6   :  { %v2584_v57 = vpop.f32.mrf.mxu1 }
 0x1c7   :  { %v5468_v44 = vadd.f32 %v2584_v57, %v2295_v29  ;;  %v2297_v46 = vpop.f32.mrf.mxu0  ;;  %v177_v29 = vld [vmem:[%s5963_s0 + $0x4f8] sm:$0xff] }
 0x1c8   :  { %v2586_v36 = vpop.f32.mrf.mxu1 }
 0x1c9   :  { %5977 = vst [vmem:[#allocation12_spill] sm:$0xff] %v5468_v44  ;;  %v2300_v21 = vpop.f32.mrf.mxu0  ;;  %2813 = vmatmul.mubr.bf16.gmra.mxu0 %v3892_v25  ;;  %v3911_v36 = vcombine.high %v173_v7, %v177_v29 }
 0x1ca   :  { %v2589_v6 = vpop.f32.mrf.mxu1  ;;  %3102 = vmatmul.mubr.bf16.gmra.mxu1 %v3894_v23  ;;  %2820 = vmatprep.mubr.bf16.mxu0 %v3901_v34  ;;  %v3902_v23 = vcombine.low %v165_v27, %v169_v13  ;;  %v3909_v34 = vcombine.high %v172_v52, %v176_v53  ;;  %v181_v13 = vld [vmem:[%s5963_s0 + $0x518] sm:$0xff] }
 0x1cb   :  { %v5470_v56 = vadd.f32 %v2589_v6, %v2300_v21  ;;  %v2302_v43 = vpop.f32.mrf.mxu0  ;;  %3109 = vmatprep.mubr.bf16.mxu1 %v3903_v60 }
 0x1cc   :  { %v2591_v1 = vpop.f32.mrf.mxu1  ;;  %v3900_v43 = vcombine.low %v164_v16, %v168_v17  ;;  %v180_v16 = vld [vmem:[%s5963_s0 + $0x510] sm:$0xff] }
 0x1cd   :  { %5978 = vst [vmem:[#allocation13_spill] sm:$0xff] %v5470_v56  ;;  %v2303_v25 = vpop.f32.mrf.mxu0  ;;  %v184_v17 = vld [vmem:[%s5963_s0 + $0x530] sm:$0xff] }
 0x1ce   :  { %v2592_v57 = vpop.f32.mrf.mxu1 }
 0x1cf   :  { %v5484_v46 = vadd.f32 %v2592_v57, %v2303_v25  ;;  %v2305_v60 = vpop.f32.mrf.mxu0  ;;  %v185_v25 = vld [vmem:[%s5963_s0 + $0x538] sm:$0xff] }
 0x1d0   :  { %v2594_v21 = vpop.f32.mrf.mxu1 }
 0x1d1   :  { %5979 = vst [vmem:[#allocation14_spill] sm:$0xff] %v5484_v46  ;;  %v2308_v6 = vpop.f32.mrf.mxu0  ;;  %2821 = vmatmul.mubr.bf16.gmra.mxu0 %v3900_v43  ;;  %v3919_v21 = vcombine.high %v181_v13, %v185_v25 }
 0x1d2   :  { %v2597_v1 = vpop.f32.mrf.mxu1  ;;  %3110 = vmatmul.mubr.bf16.gmra.mxu1 %v3902_v23  ;;  %2828 = vmatprep.mubr.bf16.mxu0 %v3909_v34  ;;  %v3910_v23 = vcombine.low %v173_v7, %v177_v29  ;;  %v3917_v34 = vcombine.high %v180_v16, %v184_v17  ;;  %v189_v29 = vld [vmem:[%s5963_s0 + $0x558] sm:$0xff] }
 0x1d3   :  { %v5486_v56 = vadd.f32 %v2597_v1, %v2308_v6  ;;  %v2310_v44 = vpop.f32.mrf.mxu0  ;;  %3117 = vmatprep.mubr.bf16.mxu1 %v3911_v36 }
 0x1d4   :  { %v2599_v27 = vpop.f32.mrf.mxu1  ;;  %v3908_v44 = vcombine.low %v172_v52, %v176_v53  ;;  %v188_v52 = vld [vmem:[%s5963_s0 + $0x550] sm:$0xff] }
 0x1d5   :  { %5980 = vst [vmem:[#allocation15_spill] sm:$0xff] %v5486_v56  ;;  %v2311_v43 = vpop.f32.mrf.mxu0  ;;  %v192_v53 = vld [vmem:[%s5963_s0 + $0x570] sm:$0xff] }
 0x1d6   :  { %v2600_v57 = vpop.f32.mrf.mxu1 }
 0x1d7   :  { %v5500_v60 = vadd.f32 %v2600_v57, %v2311_v43  ;;  %v2313_v36 = vpop.f32.mrf.mxu0  ;;  %v193_v43 = vld [vmem:[%s5963_s0 + $0x578] sm:$0xff] }
 0x1d8   :  { %v2602_v6 = vpop.f32.mrf.mxu1 }
 0x1d9   :  { %5981 = vst [vmem:[#allocation16_spill] sm:$0xff] %v5500_v60  ;;  %v2316_v1 = vpop.f32.mrf.mxu0  ;;  %2829 = vmatmul.mubr.bf16.gmra.mxu0 %v3908_v44  ;;  %v3927_v6 = vcombine.high %v189_v29, %v193_v43 }
 0x1da   :  { %v2605_v27 = vpop.f32.mrf.mxu1  ;;  %3118 = vmatmul.mubr.bf16.gmra.mxu1 %v3910_v23  ;;  %2836 = vmatprep.mubr.bf16.mxu0 %v3917_v34  ;;  %v3918_v23 = vcombine.low %v181_v13, %v185_v25  ;;  %v3925_v34 = vcombine.high %v188_v52, %v192_v53  ;;  %v197_v25 = vld [vmem:[%s5963_s0 + $0x598] sm:$0xff] }
 0x1db   :  { %v5502_v56 = vadd.f32 %v2605_v27, %v2316_v1  ;;  %v2318_v46 = vpop.f32.mrf.mxu0  ;;  %3125 = vmatprep.mubr.bf16.mxu1 %v3919_v21 }
 0x1dc   :  { %v2607_v7 = vpop.f32.mrf.mxu1  ;;  %v3916_v46 = vcombine.low %v180_v16, %v184_v17  ;;  %v196_v16 = vld [vmem:[%s5963_s0 + $0x590] sm:$0xff] }
 0x1dd   :  { %5982 = vst [vmem:[#allocation17_spill] sm:$0xff] %v5502_v56  ;;  %v2319_v44 = vpop.f32.mrf.mxu0  ;;  %v200_v17 = vld [vmem:[%s5963_s0 + $0x5b0] sm:$0xff] }
 0x1de   :  { %v2608_v57 = vpop.f32.mrf.mxu1 }
 0x1df   :  { %v5516_v36 = vadd.f32 %v2608_v57, %v2319_v44  ;;  %v2321_v21 = vpop.f32.mrf.mxu0  ;;  %v201_v44 = vld [vmem:[%s5963_s0 + $0x5b8] sm:$0xff] }
 0x1e0   :  { %v2610_v1 = vpop.f32.mrf.mxu1 }
 0x1e1   :  { %5983 = vst [vmem:[#allocation18_spill] sm:$0xff] %v5516_v36  ;;  %v2324_v27 = vpop.f32.mrf.mxu0  ;;  %2837 = vmatmul.mubr.bf16.gmra.mxu0 %v3916_v46  ;;  %v3935_v1 = vcombine.high %v197_v25, %v201_v44 }
 0x1e2   :  { %v2613_v7 = vpop.f32.mrf.mxu1  ;;  %3126 = vmatmul.mubr.bf16.gmra.mxu1 %v3918_v23  ;;  %2844 = vmatprep.mubr.bf16.mxu0 %v3925_v34  ;;  %v3926_v23 = vcombine.low %v189_v29, %v193_v43  ;;  %v3933_v34 = vcombine.high %v196_v16, %v200_v17  ;;  %v205_v43 = vld [vmem:[%s5963_s0 + $0x5d8] sm:$0xff] }
 0x1e3   :  { %v5518_v56 = vadd.f32 %v2613_v7, %v2324_v27  ;;  %v2326_v60 = vpop.f32.mrf.mxu0  ;;  %3133 = vmatprep.mubr.bf16.mxu1 %v3927_v6 }
 0x1e4   :  { %v2615_v13 = vpop.f32.mrf.mxu1  ;;  %v3924_v60 = vcombine.low %v188_v52, %v192_v53  ;;  %v204_v52 = vld [vmem:[%s5963_s0 + $0x5d0] sm:$0xff] }
 0x1e5   :  { %5984 = vst [vmem:[#allocation19_spill] sm:$0xff] %v5518_v56  ;;  %v2327_v46 = vpop.f32.mrf.mxu0  ;;  %v208_v53 = vld [vmem:[%s5963_s0 + $0x5f0] sm:$0xff] }
 0x1e6   :  { %v2616_v57 = vpop.f32.mrf.mxu1 }
 0x1e7   :  { %v5532_v21 = vadd.f32 %v2616_v57, %v2327_v46  ;;  %v2329_v6 = vpop.f32.mrf.mxu0  ;;  %v209_v46 = vld [vmem:[%s5963_s0 + $0x5f8] sm:$0xff] }
 0x1e8   :  { %v2618_v27 = vpop.f32.mrf.mxu1 }
 0x1e9   :  { %5985 = vst [vmem:[#allocation20_spill] sm:$0xff] %v5532_v21  ;;  %v2332_v7 = vpop.f32.mrf.mxu0  ;;  %2845 = vmatmul.mubr.bf16.gmra.mxu0 %v3924_v60  ;;  %v3943_v27 = vcombine.high %v205_v43, %v209_v46 }
 0x1ea   :  { %v2621_v13 = vpop.f32.mrf.mxu1  ;;  %3134 = vmatmul.mubr.bf16.gmra.mxu1 %v3926_v23  ;;  %2852 = vmatprep.mubr.bf16.mxu0 %v3933_v34  ;;  %v3934_v23 = vcombine.low %v197_v25, %v201_v44  ;;  %v3941_v34 = vcombine.high %v204_v52, %v208_v53  ;;  %v213_v44 = vld [vmem:[%s5963_s0 + $0x618] sm:$0xff] }
 0x1eb   :  { %v5534_v56 = vadd.f32 %v2621_v13, %v2332_v7  ;;  %v2334_v36 = vpop.f32.mrf.mxu0  ;;  %3141 = vmatprep.mubr.bf16.mxu1 %v3935_v1 }
 0x1ec   :  { %v2623_v29 = vpop.f32.mrf.mxu1  ;;  %v3932_v36 = vcombine.low %v196_v16, %v200_v17  ;;  %v212_v16 = vld [vmem:[%s5963_s0 + $0x610] sm:$0xff] }
 0x1ed   :  { %5986 = vst [vmem:[#allocation21_spill] sm:$0xff] %v5534_v56  ;;  %v2335_v60 = vpop.f32.mrf.mxu0  ;;  %v216_v17 = vld [vmem:[%s5963_s0 + $0x630] sm:$0xff] }
 0x1ee   :  { %v2624_v57 = vpop.f32.mrf.mxu1 }
 0x1ef   :  { %v5548_v6 = vadd.f32 %v2624_v57, %v2335_v60  ;;  %v2337_v1 = vpop.f32.mrf.mxu0  ;;  %v217_v60 = vld [vmem:[%s5963_s0 + $0x638] sm:$0xff] }
 0x1f0   :  { %v2626_v7 = vpop.f32.mrf.mxu1 }
 0x1f1   :  { %5987 = vst [vmem:[#allocation22_spill] sm:$0xff] %v5548_v6  ;;  %v2340_v13 = vpop.f32.mrf.mxu0  ;;  %2853 = vmatmul.mubr.bf16.gmra.mxu0 %v3932_v36  ;;  %v3951_v7 = vcombine.high %v213_v44, %v217_v60 }
 0x1f2   :  { %v2629_v29 = vpop.f32.mrf.mxu1  ;;  %3142 = vmatmul.mubr.bf16.gmra.mxu1 %v3934_v23  ;;  %2860 = vmatprep.mubr.bf16.mxu0 %v3941_v34  ;;  %v3942_v23 = vcombine.low %v205_v43, %v209_v46  ;;  %v3949_v34 = vcombine.high %v212_v16, %v216_v17  ;;  %v221_v46 = vld [vmem:[%s5963_s0 + $0x658] sm:$0xff] }
 0x1f3   :  { %v5550_v56 = vadd.f32 %v2629_v29, %v2340_v13  ;;  %v2342_v21 = vpop.f32.mrf.mxu0  ;;  %3149 = vmatprep.mubr.bf16.mxu1 %v3943_v27 }
 0x1f4   :  { %v2631_v25 = vpop.f32.mrf.mxu1  ;;  %v3940_v21 = vcombine.low %v204_v52, %v208_v53  ;;  %v220_v52 = vld [vmem:[%s5963_s0 + $0x650] sm:$0xff] }
 0x1f5   :  { %5988 = vst [vmem:[#allocation23_spill] sm:$0xff] %v5550_v56  ;;  %v2343_v36 = vpop.f32.mrf.mxu0  ;;  %v224_v53 = vld [vmem:[%s5963_s0 + $0x670] sm:$0xff] }
 0x1f6   :  { %v2632_v57 = vpop.f32.mrf.mxu1 }
 0x1f7   :  { %v5564_v1 = vadd.f32 %v2632_v57, %v2343_v36  ;;  %v2345_v27 = vpop.f32.mrf.mxu0  ;;  %v225_v36 = vld [vmem:[%s5963_s0 + $0x678] sm:$0xff] }
 0x1f8   :  { %v2634_v13 = vpop.f32.mrf.mxu1 }
 0x1f9   :  { %5989 = vst [vmem:[#allocation24_spill] sm:$0xff] %v5564_v1  ;;  %v2348_v29 = vpop.f32.mrf.mxu0  ;;  %2861 = vmatmul.mubr.bf16.gmra.mxu0 %v3940_v21  ;;  %v3959_v13 = vcombine.high %v221_v46, %v225_v36  ;;  %v5586_v1 = vld [vmem:[%s5964_s2] ss:$0 sm:$0xff] }
 0x1fa   :  { %v2637_v25 = vpop.f32.mrf.mxu1  ;;  %3150 = vmatmul.mubr.bf16.gmra.mxu1 %v3942_v23  ;;  %2868 = vmatprep.mubr.bf16.mxu0 %v3949_v34  ;;  %v3950_v23 = vcombine.low %v213_v44, %v217_v60  ;;  %v3957_v34 = vcombine.high %v220_v52, %v224_v53  ;;  %v232_v44 = vld [vmem:[%s5963_s0 + $0x6b0] sm:$0xff] }
 0x1fb   :  { %v5566_v56 = vadd.f32 %v2637_v25, %v2348_v29  ;;  %v2350_v6 = vpop.f32.mrf.mxu0  ;;  %3157 = vmatprep.mubr.bf16.mxu1 %v3951_v7 }
 0x1fc   :  { %v2639_v43 = vpop.f32.mrf.mxu1  ;;  %v3948_v6 = vcombine.low %v212_v16, %v216_v17  ;;  %v228_v17 = vld [vmem:[%s5963_s0 + $0x690] sm:$0xff] }
 0x1fd   :  { %5990 = vst [vmem:[#allocation25_spill] sm:$0xff] %v5566_v56  ;;  %v2351_v21 = vpop.f32.mrf.mxu0 }
 0x1fe   :  { %v2640_v57 = vpop.f32.mrf.mxu1 }
 0x1ff   :  { %v5580_v27 = vadd.f32 %v2640_v57, %v2351_v21  ;;  %v2353_v7 = vpop.f32.mrf.mxu0  ;;  %v229_v21 = vld [vmem:[%s5963_s0 + $0x698] sm:$0xff] }
 0x200   :  { %v2642_v29 = vpop.f32.mrf.mxu1 }
 0x201   :  { %5991 = vst [vmem:[#allocation26_spill] sm:$0xff] %v5580_v27  ;;  %v2678_v25 = vpop.f32.mrf.mxu0  ;;  %2869 = vmatmul.mubr.bf16.gmra.mxu0 %v3948_v6  ;;  %v233_v6 = vld [vmem:[%s5963_s0 + $0x6b8] sm:$0xff]  ;;  %v3958_v29 = vcombine.low %v221_v46, %v225_v36  ;;  %v236_v46 = vld [vmem:[%s5963_s0 + $0x6d0] sm:$0xff] }
 0x202   :  { %v2679_v43 = vadd.f32 %v2678_v25, %v5070_v19  ;;  %v2967_v56 = vpop.f32.mrf.mxu1  ;;  %3158 = vmatmul.mubr.bf16.gmra.mxu1 %v3950_v23  ;;  %2876 = vmatprep.mubr.bf16.mxu0 %v3957_v34  ;;  %v3956_v23 = vcombine.low %v220_v52, %v224_v53  ;;  %v3965_v25 = vcombine.high %v228_v17, %v232_v44  ;;  %v240_v36 = vld [vmem:[%s5963_s0 + $0x6f0] sm:$0xff] }
 0x203   :  { %v2680_v16 = vpop.f32.mrf.mxu0  ;;  %3165 = vmatprep.mubr.bf16.mxu1 %v3959_v13 }
 0x204   :  { %v2968_v60 = vadd.f32 %v2967_v56, %v2679_v43  ;;  %v2969_v19 = vpop.f32.mrf.mxu1  ;;  %v5605_v56 = vld [vmem:[%s5965_s3] ss:$0 sm:$0xff]  ;;  %v3967_v16 = vcombine.high %v229_v21, %v233_v6 }
 0x205   :  { %v2681_v57 = vpop.f32.mrf.mxu0 }
 0x206   :  { %v3229_v34 = vmul.f32 %v5586_v1, %v2968_v60  ;;  %v2682_v7 = vadd.f32 %v2681_v57, %v5084_v31  ;;  %v2970_v13 = vpop.f32.mrf.mxu1 }
 0x207   :  { %v2683_v43 = vpop.f32.mrf.mxu0 }
 0x208   :  { %v2971_v19 = vadd.f32 %v2970_v13, %v2682_v7  ;;  %v2972_v27 = vpop.f32.mrf.mxu1  ;;  %v3300_v52 = vadd.f32 %v5605_v56, %v3229_v34  ;;  %v3964_v13 = vcombine.low %v228_v17, %v232_v44 }
 0x209   :  { %v2686_v54 = vpop.f32.mrf.mxu0  ;;  %2877 = vmatmul.mubr.bf16.gmra.mxu0 %v3956_v23 }
 0x20a   :  { %v3230_v53 = vmul.f32 %v5586_v1, %v2971_v19  ;;  %v2687_v31 = vadd.f32 %v2686_v54, %v5086_v37  ;;  %v2975_v60 = vpop.f32.mrf.mxu1  ;;  %3166 = vmatmul.mubr.bf16.gmra.mxu1 %v3958_v29  ;;  %2884 = vmatprep.mubr.bf16.mxu0 %v3965_v25  ;;  %v237_v37 = vld [vmem:[%s5963_s0 + $0x6d8] sm:$0xff]  ;;  %v3966_v29 = vcombine.low %v229_v21, %v233_v6  ;;  %v3364_v43 = vmax.f32 %v3300_v52, 0.0 }
 0x20b   :  { %v2688_v27 = vpop.f32.mrf.mxu0  ;;  %3173 = vmatprep.mubr.bf16.mxu1 %v3967_v16  ;;  %v241_v54 = vld [vmem:[%s5963_s0 + $0x6f8] sm:$0xff]  ;;  %v3973_v25 = vcombine.high %v236_v46, %v240_v36 }
 0x20c   :  { %v3301_v57 = vadd.f32 %v5605_v56, %v3230_v53  ;;  %v2976_v23 = vadd.f32 %v2975_v60, %v2687_v31  ;;  %v2977_v34 = vpop.f32.mrf.mxu1  ;;  %v3975_v27 = vcombine.high %v237_v37, %v241_v54 }
 0x20d   :  { %v2689_v7 = vpop.f32.mrf.mxu0 }
 0x20e   :  { %v3365_v19 = vmax.f32 %v3301_v57, 0.0  ;;  %v3231_v16 = vmul.f32 %v5586_v1, %v2976_v23  ;;  %v2690_v53 = vadd.f32 %v2689_v7, %v5100_v49  ;;  %v2978_v31 = vpop.f32.mrf.mxu1  ;;  %v244_v49 = vld [vmem:[%s5963_s0 + $0x710] sm:$0xff] }
 0x20f   :  { %v2691_v60 = vpop.f32.mrf.mxu0 }
 0x210   :  { %v4205_v34 = vpack.c.bf16 %v3365_v19, %v3364_v43  ;;  %v2979_v30 = vadd.f32 %v2978_v31, %v2690_v53  ;;  %v2980_v62 = vpop.f32.mrf.mxu1  ;;  %v3302_v17 = vadd.f32 %v5605_v56, %v3231_v16 }
 0x211   :  { %v2694_v40 = vpop.f32.mrf.mxu0  ;;  %2885 = vmatmul.mubr.bf16.gmra.mxu0 %v3964_v13  ;;  %v248_v62 = vld [vmem:[%s5963_s0 + $0x730] sm:$0xff]  ;;  %v3972_v13 = vcombine.low %v236_v46, %v240_v36 }
 0x212   :  { %4206 = vst [vmem:[%s5966_s4] sm:$0xff] %v4205_v34   ;;  %v3232_v44 = vmul.f32 %v5586_v1, %v2979_v30  ;;  %v2695_v21 = vadd.f32 %v2694_v40, %v5102_v55  ;;  %v2983_v6 = vpop.f32.mrf.mxu1  ;;  %3174 = vmatmul.mubr.bf16.gmra.mxu1 %v3966_v29  ;;  %2892 = vmatprep.mubr.bf16.mxu0 %v3973_v25  ;;  %v245_v55 = vld [vmem:[%s5963_s0 + $0x718] sm:$0xff]  ;;  %v3366_v43 = vmax.f32 %v3302_v17, 0.0  ;;  %v256_v17 = vld [vmem:[%s5963_s0 + $0x770] sm:$0xff] }
 0x213   :  { %v2696_v52 = vpop.f32.mrf.mxu0  ;;  %3181 = vmatprep.mubr.bf16.mxu1 %v3975_v27  ;;  %v249_v40 = vld [vmem:[%s5963_s0 + $0x738] sm:$0xff]  ;;  %v3974_v29 = vcombine.low %v237_v37, %v241_v54  ;;  %v3981_v25 = vcombine.high %v244_v49, %v248_v62 }
 0x214   :  { %v3303_v57 = vadd.f32 %v5605_v56, %v3232_v44  ;;  %v2984_v23 = vadd.f32 %v2983_v6, %v2695_v21  ;;  %v2985_v7 = vpop.f32.mrf.mxu1  ;;  %v3983_v27 = vcombine.high %v245_v55, %v249_v40 }
 0x215   :  { %v2697_v30 = vpop.f32.mrf.mxu0 }
 0x216   :  { %v3367_v19 = vmax.f32 %v3303_v57, 0.0  ;;  %v3233_v16 = vmul.f32 %v5586_v1, %v2984_v23  ;;  %v2698_v53 = vadd.f32 %v2697_v30, %v5116_v3  ;;  %v2986_v31 = vpop.f32.mrf.mxu1  ;;  %v252_v3 = vld [vmem:[%s5963_s0 + $0x750] sm:$0xff]  ;;  %v257_v30 = vld [vmem:[%s5963_s0 + $0x778] sm:$0xff] }
 0x217   :  { %v2699_v60 = vpop.f32.mrf.mxu0 }
 0x218   :  { %v4210_v34 = vpack.c.bf16 %v3367_v19, %v3366_v43  ;;  %v2987_v44 = vadd.f32 %v2986_v31, %v2698_v53  ;;  %v2988_v21 = vpop.f32.mrf.mxu1  ;;  %v3304_v46 = vadd.f32 %v5605_v56, %v3233_v16  ;;  %v3989_v43 = vcombine.high %v252_v3, %v256_v17 }
 0x219   :  { %v2702_v6 = vpop.f32.mrf.mxu0  ;;  %2893 = vmatmul.mubr.bf16.gmra.mxu0 %v3972_v13 }
 0x21a   :  { %4362 = vst [vmem:[%s5966_s4 + $0x8] sm:$0xff] %v4210_v34   ;;  %v3234_v36 = vmul.f32 %v5586_v1, %v2987_v44  ;;  %v2703_v37 = vadd.f32 %v2702_v6, %v5118_v9  ;;  %v2991_v54 = vpop.f32.mrf.mxu1  ;;  %3182 = vmatmul.mubr.bf16.gmra.mxu1 %v3974_v29  ;;  %2900 = vmatprep.mubr.bf16.mxu0 %v3981_v25  ;;  %v253_v9 = vld [vmem:[%s5963_s0 + $0x758] sm:$0xff]  ;;  %v3368_v19 = vmax.f32 %v3304_v46, 0.0  ;;  %v264_v46 = vld [vmem:[%s5963_s0 + $0x7b0] sm:$0xff] }
 0x21b   :  { %v2704_v52 = vpop.f32.mrf.mxu0  ;;  %3189 = vmatprep.mubr.bf16.mxu1 %v3983_v27  ;;  %v3980_v29 = vcombine.low %v244_v49, %v248_v62  ;;  %v3982_v25 = vcombine.low %v245_v55, %v249_v40  ;;  %v3991_v34 = vcombine.high %v253_v9, %v257_v30 }
 0x21c   :  { %v3305_v57 = vadd.f32 %v5605_v56, %v3234_v36  ;;  %v2992_v23 = vadd.f32 %v2991_v54, %v2703_v37  ;;  %v2993_v7 = vpop.f32.mrf.mxu1 }
 0x21d   :  { %v2705_v13 = vpop.f32.mrf.mxu0 }
 0x21e   :  { %v3369_v16 = vmax.f32 %v3305_v57, 0.0  ;;  %v3235_v53 = vmul.f32 %v5586_v1, %v2992_v23  ;;  %v2706_v31 = vadd.f32 %v2705_v13, %v5132_v22  ;;  %v2994_v60 = vpop.f32.mrf.mxu1  ;;  %v260_v22 = vld [vmem:[%s5963_s0 + $0x790] sm:$0xff]  ;;  %v265_v23 = vld [vmem:[%s5963_s0 + $0x7b8] sm:$0xff]  ;;  %v3988_v13 = vcombine.low %v252_v3, %v256_v17 }
 0x21f   :  { %v2707_v27 = vpop.f32.mrf.mxu0 }
 0x220   :  { %v4215_v44 = vpack.c.bf16 %v3369_v16, %v3368_v19  ;;  %v2995_v21 = vadd.f32 %v2994_v60, %v2706_v31  ;;  %v2996_v6 = vpop.f32.mrf.mxu1  ;;  %v3306_v49 = vadd.f32 %v5605_v56, %v3235_v53 }
 0x221   :  { %v2710_v36 = vpop.f32.mrf.mxu0  ;;  %2901 = vmatmul.mubr.bf16.gmra.mxu0 %v3980_v29  ;;  %v3990_v29 = vcombine.low %v253_v9, %v257_v30 }
 0x222   :  { %4363 = vst [vmem:[%s5966_s4 + $0x10] sm:$0xff] %v4215_v44   ;;  %v3236_v62 = vmul.f32 %v5586_v1, %v2995_v21  ;;  %v2711_v55 = vadd.f32 %v2710_v36, %v5134_v28  ;;  %v2999_v40 = vpop.f32.mrf.mxu1  ;;  %3190 = vmatmul.mubr.bf16.gmra.mxu1 %v3982_v25  ;;  %2908 = vmatprep.mubr.bf16.mxu0 %v3989_v43  ;;  %v261_v28 = vld [vmem:[%s5963_s0 + $0x798] sm:$0xff]  ;;  %v3370_v43 = vmax.f32 %v3306_v49, 0.0  ;;  %v272_v36 = vld [vmem:[%s5963_s0 + $0x7f0] sm:$0xff] }
 0x223   :  { %v2712_v37 = vpop.f32.mrf.mxu0  ;;  %3197 = vmatprep.mubr.bf16.mxu1 %v3991_v34  ;;  %v3997_v25 = vcombine.high %v260_v22, %v264_v46  ;;  %v3999_v27 = vcombine.high %v261_v28, %v265_v23 }
 0x224   :  { %v3307_v54 = vadd.f32 %v5605_v56, %v3236_v62  ;;  %v3000_v52 = vadd.f32 %v2999_v40, %v2711_v55  ;;  %v3001_v57 = vpop.f32.mrf.mxu1  ;;  %v273_v37 = vld [vmem:[%s5963_s0 + $0x7f8] sm:$0xff] }
 0x225   :  { %v2713_v7 = vpop.f32.mrf.mxu0  ;;  %v3998_v57 = vcombine.low %v261_v28, %v265_v23 }
 0x226   :  { %v3371_v19 = vmax.f32 %v3307_v54, 0.0  ;;  %v3237_v16 = vmul.f32 %v5586_v1, %v3000_v52  ;;  %v2714_v53 = vadd.f32 %v2713_v7, %v5148_v42  ;;  %v3002_v31 = vpop.f32.mrf.mxu1  ;;  %v268_v42 = vld [vmem:[%s5963_s0 + $0x7d0] sm:$0xff]  ;;  %v3996_v52 = vcombine.low %v260_v22, %v264_v46 }
 0x227   :  { %v2715_v60 = vpop.f32.mrf.mxu0  ;;  %v4005_v7 = vcombine.high %v268_v42, %v272_v36 }
 0x228   :  { %v4220_v34 = vpack.c.bf16 %v3371_v19, %v3370_v43  ;;  %v3003_v44 = vadd.f32 %v3002_v31, %v2714_v53  ;;  %v3004_v21 = vpop.f32.mrf.mxu1  ;;  %v3308_v3 = vadd.f32 %v5605_v56, %v3237_v16 }
 0x229   :  { %v2718_v6 = vpop.f32.mrf.mxu0  ;;  %2909 = vmatmul.mubr.bf16.gmra.mxu0 %v3988_v13 }
 0x22a   :  { %4364 = vst [vmem:[%s5966_s4 + $0x18] sm:$0xff] %v4220_v34   ;;  %v3238_v17 = vmul.f32 %v5586_v1, %v3003_v44  ;;  %v2719_v9 = vadd.f32 %v2718_v6, %v5150_v48  ;;  %v3007_v30 = vpop.f32.mrf.mxu1  ;;  %3198 = vmatmul.mubr.bf16.gmra.mxu1 %v3990_v29  ;;  %2916 = vmatprep.mubr.bf16.mxu0 %v3997_v25  ;;  %v269_v48 = vld [vmem:[%s5963_s0 + $0x7d8] sm:$0xff]  ;;  %v3372_v13 = vmax.f32 %v3308_v3, 0.0 }
 0x22b   :  { %v2720_v49 = vpop.f32.mrf.mxu0  ;;  %3205 = vmatprep.mubr.bf16.mxu1 %v3999_v27  ;;  %v4007_v53 = vcombine.high %v269_v48, %v273_v37 }
 0x22c   :  { %v3309_v62 = vadd.f32 %v5605_v56, %v3238_v17  ;;  %v3008_v55 = vadd.f32 %v3007_v30, %v2719_v9  ;;  %v3009_v40 = vpop.f32.mrf.mxu1  ;;  %v4004_v17 = vcombine.low %v268_v42, %v272_v36  ;;  %v4006_v9 = vcombine.low %v269_v48, %v273_v37 }
 0x22d   :  { %v2721_v54 = vpop.f32.mrf.mxu0 }
 0x22e   :  { %v3373_v29 = vmax.f32 %v3309_v62, 0.0  ;;  %v3239_v25 = vmul.f32 %v5586_v1, %v3008_v55  ;;  %v2722_v43 = vadd.f32 %v2721_v54, %v5164_v61  ;;  %v3010_v19 = vpop.f32.mrf.mxu1 }
 0x22f   :  { %v2723_v16 = vpop.f32.mrf.mxu0 }
 0x230   :  { %v4225_v31 = vpack.c.bf16 %v3373_v29, %v3372_v13  ;;  %v3011_v60 = vadd.f32 %v3010_v19, %v2722_v43  ;;  %v3012_v27 = vpop.f32.mrf.mxu1  ;;  %v3310_v22 = vadd.f32 %v5605_v56, %v3239_v25 }
 0x231   :  { %v2726_v34 = vpop.f32.mrf.mxu0  ;;  %2917 = vmatmul.mubr.bf16.gmra.mxu0 %v3996_v52 }
 0x232   :  { %4365 = vst [vmem:[%s5966_s4 + $0x20] sm:$0xff] %v4225_v31   ;;  %v3240_v46 = vmul.f32 %v5586_v1, %v3011_v60  ;;  %v2727_v28 = vadd.f32 %v2726_v34, %v5166_v5  ;;  %v3015_v23 = vpop.f32.mrf.mxu1  ;;  %3206 = vmatmul.mubr.bf16.gmra.mxu1 %v3998_v57  ;;  %2924 = vmatprep.mubr.bf16.mxu0 %v4005_v7  ;;  %v3374_v30 = vmax.f32 %v3310_v22, 0.0 }
 0x233   :  { %v2728_v61 = vpop.f32.mrf.mxu0  ;;  %3213 = vmatprep.mubr.bf16.mxu1 %v4007_v53 }
 0x234   :  { %v3311_v44 = vadd.f32 %v5605_v56, %v3240_v46  ;;  %v3016_v21 = vadd.f32 %v3015_v23, %v2727_v28  ;;  %v3017_v6 = vpop.f32.mrf.mxu1 }
 0x235   :  { %v2729_v3 = vpop.f32.mrf.mxu0 }
 0x236   :  { %v3375_v49 = vmax.f32 %v3311_v44, 0.0  ;;  %v3241_v62 = vmul.f32 %v5586_v1, %v3016_v21  ;;  %v2730_v55 = vadd.f32 %v2729_v3, %v5180_v18  ;;  %v3018_v40 = vpop.f32.mrf.mxu1 }
 0x237   :  { %v2731_v5 = vpop.f32.mrf.mxu0 }
 0x238   :  { %v4230_v54 = vpack.c.bf16 %v3375_v49, %v3374_v30  ;;  %v3019_v52 = vadd.f32 %v3018_v40, %v2730_v55  ;;  %v3020_v57 = vpop.f32.mrf.mxu1  ;;  %v3312_v42 = vadd.f32 %v5605_v56, %v3241_v62 }
 0x239   :  { %v2734_v7 = vpop.f32.mrf.mxu0  ;;  %2925 = vmatmul.mubr.bf16.gmra.mxu0 %v4004_v17 }
 0x23a   :  { %4366 = vst [vmem:[%s5966_s4 + $0x28] sm:$0xff] %v4230_v54   ;;  %v3242_v36 = vmul.f32 %v5586_v1, %v3019_v52  ;;  %v2735_v48 = vadd.f32 %v2734_v7, %v5182_v26  ;;  %v3023_v37 = vpop.f32.mrf.mxu1  ;;  %3214 = vmatmul.mubr.bf16.gmra.mxu1 %v4006_v9  ;;  %v3376_v19 = vmax.f32 %v3312_v42, 0.0 }
 0x23b   :  { %v2736_v18 = vpop.f32.mrf.mxu0 }
 0x23c   :  { %v3313_v13 = vadd.f32 %v5605_v56, %v3242_v36  ;;  %v3024_v29 = vadd.f32 %v3023_v37, %v2735_v48  ;;  %v3025_v25 = vpop.f32.mrf.mxu1 }
 0x23d   :  { %v2737_v43 = vpop.f32.mrf.mxu0 }
 0x23e   :  { %v3377_v16 = vmax.f32 %v3313_v13, 0.0  ;;  %v3243_v53 = vmul.f32 %v5586_v1, %v3024_v29  ;;  %v2738_v31 = vadd.f32 %v2737_v43, %v5196_v41  ;;  %v3026_v60 = vpop.f32.mrf.mxu1 }
 0x23f   :  { %v2739_v27 = vpop.f32.mrf.mxu0 }
 0x240   :  { %v4235_v34 = vpack.c.bf16 %v3377_v16, %v3376_v19  ;;  %v3027_v22 = vadd.f32 %v3026_v60, %v2738_v31  ;;  %v3028_v46 = vpop.f32.mrf.mxu1  ;;  %v3314_v28 = vadd.f32 %v5605_v56, %v3243_v53 }
 0x241   :  { %v2742_v26 = vpop.f32.mrf.mxu0 }
 0x242   :  { %4367 = vst [vmem:[%s5966_s4 + $0x30] sm:$0xff] %v4235_v34   ;;  %v3244_v23 = vmul.f32 %v5586_v1, %v3027_v22  ;;  %v2743_v61 = vadd.f32 %v2742_v26, %v5198_v50  ;;  %v3031_v44 = vpop.f32.mrf.mxu1  ;;  %v3378_v9 = vmax.f32 %v3314_v28, 0.0 }
 0x243   :  { %v2744_v21 = vpop.f32.mrf.mxu0 }
 0x244   :  { %v3315_v41 = vadd.f32 %v5605_v56, %v3244_v23  ;;  %v3032_v6 = vadd.f32 %v3031_v44, %v2743_v61  ;;  %v3033_v3 = vpop.f32.mrf.mxu1 }
 0x245   :  { %v2745_v17 = vpop.f32.mrf.mxu0 }
 0x246   :  { %v3379_v30 = vmax.f32 %v3315_v41, 0.0  ;;  %v3245_v49 = vmul.f32 %v5586_v1, %v3032_v6  ;;  %v2746_v62 = vadd.f32 %v2745_v17, %v5212_v63  ;;  %v3034_v55 = vpop.f32.mrf.mxu1 }
 0x247   :  { %v2747_v40 = vpop.f32.mrf.mxu0 }
 0x248   :  { %v4240_v5 = vpack.c.bf16 %v3379_v30, %v3378_v9  ;;  %v3035_v54 = vadd.f32 %v3034_v55, %v2746_v62  ;;  %v3036_v52 = vpop.f32.mrf.mxu1  ;;  %v3316_v50 = vadd.f32 %v5605_v56, %v3245_v49 }
 0x249   :  { %v2750_v57 = vpop.f32.mrf.mxu0 }
 0x24a   :  { %4368 = vst [vmem:[%s5966_s4 + $0x38] sm:$0xff] %v4240_v5   ;;  %v3246_v7 = vmul.f32 %v5586_v1, %v3035_v54  ;;  %v2751_v42 = vadd.f32 %v2750_v57, %v5214_v8  ;;  %v3039_v36 = vpop.f32.mrf.mxu1  ;;  %v3380_v29 = vmax.f32 %v3316_v50, 0.0 }
 0x24b   :  { %v2752_v48 = vpop.f32.mrf.mxu0 }
 0x24c   :  { %v3317_v63 = vadd.f32 %v5605_v56, %v3246_v7  ;;  %v3040_v37 = vadd.f32 %v3039_v36, %v2751_v42  ;;  %v3041_v18 = vpop.f32.mrf.mxu1 }
 0x24d   :  { %v2753_v13 = vpop.f32.mrf.mxu0 }
 0x24e   :  { %v3381_v25 = vmax.f32 %v3317_v63, 0.0  ;;  %v3247_v43 = vmul.f32 %v5586_v1, %v3040_v37  ;;  %v2754_v19 = vadd.f32 %v2753_v13, %v5228_v24  ;;  %v3042_v16 = vpop.f32.mrf.mxu1 }
 0x24f   :  { %v2755_v53 = vpop.f32.mrf.mxu0 }
 0x250   :  { %v4245_v31 = vpack.c.bf16 %v3381_v25, %v3380_v29  ;;  %v3043_v60 = vadd.f32 %v3042_v16, %v2754_v19  ;;  %v3044_v27 = vpop.f32.mrf.mxu1  ;;  %v3318_v8 = vadd.f32 %v5605_v56, %v3247_v43 }
 0x251   :  { %v2758_v34 = vpop.f32.mrf.mxu0 }
 0x252   :  { %4369 = vst [vmem:[%s5966_s4 + $0x40] sm:$0xff] %v4245_v31   ;;  %v3248_v22 = vmul.f32 %v5586_v1, %v3043_v60  ;;  %v2759_v46 = vadd.f32 %v2758_v34, %v5230_v33  ;;  %v3047_v26 = vpop.f32.mrf.mxu1  ;;  %v3382_v21 = vmax.f32 %v3318_v8, 0.0 }
 0x253   :  { %v2760_v28 = vpop.f32.mrf.mxu0 }
 0x254   :  { %v3319_v24 = vadd.f32 %v5605_v56, %v3248_v22  ;;  %v3048_v23 = vadd.f32 %v3047_v26, %v2759_v46  ;;  %v3049_v61 = vpop.f32.mrf.mxu1 }
 0x255   :  { %v2761_v44 = vpop.f32.mrf.mxu0 }
 0x256   :  { %v3383_v41 = vmax.f32 %v3319_v24, 0.0  ;;  %v3249_v6 = vmul.f32 %v5586_v1, %v3048_v23  ;;  %v2762_v3 = vadd.f32 %v2761_v44, %v5244_v51  ;;  %v3050_v17 = vpop.f32.mrf.mxu1 }
 0x257   :  { %v2763_v9 = vpop.f32.mrf.mxu0 }
 0x258   :  { %v4250_v30 = vpack.c.bf16 %v3383_v41, %v3382_v21  ;;  %v3051_v49 = vadd.f32 %v3050_v17, %v2762_v3  ;;  %v3052_v62 = vpop.f32.mrf.mxu1  ;;  %v3320_v33 = vadd.f32 %v5605_v56, %v3249_v6 }
 0x259   :  { %v2766_v55 = vpop.f32.mrf.mxu0 }
 0x25a   :  { %4370 = vst [vmem:[%s5966_s4 + $0x48] sm:$0xff] %v4250_v30   ;;  %v3250_v40 = vmul.f32 %v5586_v1, %v3051_v49  ;;  %v2767_v5 = vadd.f32 %v2766_v55, %v5246_v0  ;;  %v3055_v54 = vpop.f32.mrf.mxu1  ;;  %v3384_v42 = vmax.f32 %v3320_v33, 0.0 }
 0x25b   :  { %v2768_v52 = vpop.f32.mrf.mxu0 }
 0x25c   :  { %v3321_v51 = vadd.f32 %v5605_v56, %v3250_v40  ;;  %v3056_v57 = vadd.f32 %v3055_v54, %v2767_v5  ;;  %v3057_v50 = vpop.f32.mrf.mxu1 }
 0x25d   :  { %v2769_v7 = vpop.f32.mrf.mxu0 }
 0x25e   :  { %v3385_v36 = vmax.f32 %v3321_v51, 0.0  ;;  %v3251_v48 = vmul.f32 %v5586_v1, %v3056_v57  ;;  %v2770_v63 = vadd.f32 %v2769_v7, %v5260_v12  ;;  %v3058_v37 = vpop.f32.mrf.mxu1 }
 0x25f   :  { %v2771_v18 = vpop.f32.mrf.mxu0 }
 0x260   :  { %v4255_v13 = vpack.c.bf16 %v3385_v36, %v3384_v42  ;;  %v3059_v29 = vadd.f32 %v3058_v37, %v2770_v63  ;;  %v3060_v25 = vpop.f32.mrf.mxu1  ;;  %v3322_v0 = vadd.f32 %v5605_v56, %v3251_v48 }
 0x261   :  { %v2774_v43 = vpop.f32.mrf.mxu0 }
 0x262   :  { %4371 = vst [vmem:[%s5966_s4 + $0x50] sm:$0xff] %v4255_v13   ;;  %v3252_v19 = vmul.f32 %v5586_v1, %v3059_v29  ;;  %v2775_v16 = vadd.f32 %v2774_v43, %v5262_v20  ;;  %v3063_v53 = vpop.f32.mrf.mxu1  ;;  %v3386_v8 = vmax.f32 %v3322_v0, 0.0 }
 0x263   :  { %v2776_v31 = vpop.f32.mrf.mxu0 }
 0x264   :  { %v3323_v12 = vadd.f32 %v5605_v56, %v3252_v19  ;;  %v3064_v60 = vadd.f32 %v3063_v53, %v2775_v16  ;;  %v3065_v27 = vpop.f32.mrf.mxu1 }
 0x265   :  { %v2777_v34 = vpop.f32.mrf.mxu0 }
 0x266   :  { %v3387_v22 = vmax.f32 %v3323_v12, 0.0  ;;  %v3253_v46 = vmul.f32 %v5586_v1, %v3064_v60  ;;  %v2778_v26 = vadd.f32 %v2777_v34, %v5276_v39  ;;  %v3066_v28 = vpop.f32.mrf.mxu1 }
 0x267   :  { %v2779_v24 = vpop.f32.mrf.mxu0 }
 0x268   :  { %v4260_v23 = vpack.c.bf16 %v3387_v22, %v3386_v8  ;;  %v3067_v61 = vadd.f32 %v3066_v28, %v2778_v26  ;;  %v3068_v44 = vpop.f32.mrf.mxu1  ;;  %v3324_v20 = vadd.f32 %v5605_v56, %v3253_v46 }
 0x269   :  { %v2782_v21 = vpop.f32.mrf.mxu0 }
 0x26a   :  { %4372 = vst [vmem:[%s5966_s4 + $0x58] sm:$0xff] %v4260_v23   ;;  %v3254_v41 = vmul.f32 %v5586_v1, %v3067_v61  ;;  %v2783_v6 = vadd.f32 %v2782_v21, %v5278_v47  ;;  %v3071_v3 = vpop.f32.mrf.mxu1  ;;  %v3388_v62 = vmax.f32 %v3324_v20, 0.0 }
 0x26b   :  { %v2784_v17 = vpop.f32.mrf.mxu0 }
 0x26c   :  { %v3325_v39 = vadd.f32 %v5605_v56, %v3254_v41  ;;  %v3072_v9 = vadd.f32 %v3071_v3, %v2783_v6  ;;  %v3073_v30 = vpop.f32.mrf.mxu1 }
 0x26d   :  { %v2785_v49 = vpop.f32.mrf.mxu0 }
 0x26e   :  { %v3389_v55 = vmax.f32 %v3325_v39, 0.0  ;;  %v3255_v33 = vmul.f32 %v5586_v1, %v3072_v9  ;;  %v2786_v40 = vadd.f32 %v2785_v49, %v5292_v4  ;;  %v3074_v5 = vpop.f32.mrf.mxu1 }
 0x26f   :  { %v2787_v54 = vpop.f32.mrf.mxu0 }
 0x270   :  { %v4265_v52 = vpack.c.bf16 %v3389_v55, %v3388_v62  ;;  %v3075_v51 = vadd.f32 %v3074_v5, %v2786_v40  ;;  %v3076_v57 = vpop.f32.mrf.mxu1  ;;  %v3326_v47 = vadd.f32 %v5605_v56, %v3255_v33 }
 0x271   :  { %v2790_v50 = vpop.f32.mrf.mxu0 }
 0x272   :  { %4373 = vst [vmem:[%s5966_s4 + $0x60] sm:$0xff] %v4265_v52   ;;  %v3256_v7 = vmul.f32 %v5586_v1, %v3075_v51  ;;  %v2791_v42 = vadd.f32 %v2790_v50, %v5294_v14  ;;  %v3079_v36 = vpop.f32.mrf.mxu1  ;;  %v3390_v13 = vmax.f32 %v3326_v47, 0.0 }
 0x273   :  { %v2792_v48 = vpop.f32.mrf.mxu0 }
 0x274   :  { %v3327_v4 = vadd.f32 %v5605_v56, %v3256_v7  ;;  %v3080_v63 = vadd.f32 %v3079_v36, %v2791_v42  ;;  %v3081_v37 = vpop.f32.mrf.mxu1 }
 0x275   :  { %v2793_v18 = vpop.f32.mrf.mxu0 }
 0x276   :  { %v3391_v29 = vmax.f32 %v3327_v4, 0.0  ;;  %v3257_v25 = vmul.f32 %v5586_v1, %v3080_v63  ;;  %v2794_v43 = vadd.f32 %v2793_v18, %v5308_v35  ;;  %v3082_v0 = vpop.f32.mrf.mxu1 }
 0x277   :  { %v2795_v19 = vpop.f32.mrf.mxu0 }
 0x278   :  { %v4270_v16 = vpack.c.bf16 %v3391_v29, %v3390_v13  ;;  %v3083_v53 = vadd.f32 %v3082_v0, %v2794_v43  ;;  %v3084_v31 = vpop.f32.mrf.mxu1  ;;  %v3328_v14 = vadd.f32 %v5605_v56, %v3257_v25 }
 0x279   :  { %v2798_v12 = vpop.f32.mrf.mxu0 }
 0x27a   :  { %4374 = vst [vmem:[%s5966_s4 + $0x68] sm:$0xff] %v4270_v16   ;;  %v3258_v60 = vmul.f32 %v5586_v1, %v3083_v53  ;;  %v2799_v27 = vadd.f32 %v2798_v12, %v5310_v45  ;;  %v3087_v34 = vpop.f32.mrf.mxu1  ;;  %v3392_v28 = vmax.f32 %v3328_v14, 0.0 }
 0x27b   :  { %v2800_v8 = vpop.f32.mrf.mxu0 }
 0x27c   :  { %v3329_v35 = vadd.f32 %v5605_v56, %v3258_v60  ;;  %v3088_v22 = vadd.f32 %v3087_v34, %v2799_v27  ;;  %v3089_v46 = vpop.f32.mrf.mxu1 }
 0x27d   :  { %v2801_v26 = vpop.f32.mrf.mxu0 }
 0x27e   :  { %v3393_v24 = vmax.f32 %v3329_v35, 0.0  ;;  %v3259_v23 = vmul.f32 %v5586_v1, %v3088_v22  ;;  %v2802_v61 = vadd.f32 %v2801_v26, %v5324_v2  ;;  %v3090_v44 = vpop.f32.mrf.mxu1 }
 0x27f   :  { %v2803_v21 = vpop.f32.mrf.mxu0 }
 0x280   :  { %v4275_v20 = vpack.c.bf16 %v3393_v24, %v3392_v28  ;;  %v3091_v41 = vadd.f32 %v3090_v44, %v2802_v61  ;;  %v3092_v6 = vpop.f32.mrf.mxu1  ;;  %v3330_v45 = vadd.f32 %v5605_v56, %v3259_v23 }
 0x281   :  { %v2806_v3 = vpop.f32.mrf.mxu0 }
 0x282   :  { %4375 = vst [vmem:[%s5966_s4 + $0x70] sm:$0xff] %v4275_v20   ;;  %v3260_v17 = vmul.f32 %v5586_v1, %v3091_v41  ;;  %v2807_v39 = vadd.f32 %v2806_v3, %v5326_v15  ;;  %v3095_v9 = vpop.f32.mrf.mxu1  ;;  %v3394_v33 = vmax.f32 %v3330_v45, 0.0 }
 0x283   :  { %v2808_v30 = vpop.f32.mrf.mxu0 }
 0x284   :  { %v3331_v2 = vadd.f32 %v5605_v56, %v3260_v17  ;;  %v3096_v49 = vadd.f32 %v3095_v9, %v2807_v39  ;;  %v3097_v62 = vpop.f32.mrf.mxu1 }
 0x285   :  { %v2809_v55 = vpop.f32.mrf.mxu0 }
 0x286   :  { %v3395_v40 = vmax.f32 %v3331_v2, 0.0  ;;  %v3261_v5 = vmul.f32 %v5586_v1, %v3096_v49  ;;  %v2810_v54 = vadd.f32 %v2809_v55, %v5340_v38  ;;  %v3098_v52 = vpop.f32.mrf.mxu1  ;;  %v5992_v55 = vld [vmem:[#allocation2_spill] sm:$0xff] }
 0x287   :  { %v2811_v51 = vpop.f32.mrf.mxu0 }
 0x288   :  { %v4280_v57 = vpack.c.bf16 %v3395_v40, %v3394_v33  ;;  %v3099_v50 = vadd.f32 %v3098_v52, %v2810_v54  ;;  %v3100_v47 = vpop.f32.mrf.mxu1  ;;  %v3332_v15 = vadd.f32 %v5605_v56, %v3261_v5 }
 0x289   :  { %v2814_v7 = vpop.f32.mrf.mxu0  ;;  %v5993_v47 = vld [vmem:[#allocation3_spill] sm:$0xff] }
 0x28a   :  { %4376 = vst [vmem:[%s5966_s4 + $0x78] sm:$0xff] %v4280_v57   ;;  %v3262_v42 = vmul.f32 %v5586_v1, %v3099_v50  ;;  %v2815_v36 = vadd.f32 %v2814_v7, %v5342_v58  ;;  %v3103_v48 = vpop.f32.mrf.mxu1  ;;  %v3396_v13 = vmax.f32 %v3332_v15, 0.0 }
 0x28b   :  { %v2816_v4 = vpop.f32.mrf.mxu0 }
 0x28c   :  { %v3333_v38 = vadd.f32 %v5605_v56, %v3262_v42  ;;  %v3104_v63 = vadd.f32 %v3103_v48, %v2815_v36  ;;  %v3105_v37 = vpop.f32.mrf.mxu1 }
 0x28d   :  { %v2817_v18 = vpop.f32.mrf.mxu0 }
 0x28e   :  { %v3397_v29 = vmax.f32 %v3333_v38, 0.0  ;;  %v3263_v25 = vmul.f32 %v5586_v1, %v3104_v63  ;;  %v2818_v43 = vadd.f32 %v2817_v18, %v5356_v11  ;;  %v3106_v0 = vpop.f32.mrf.mxu1 }
 0x28f   :  { %v2819_v19 = vpop.f32.mrf.mxu0 }
 0x290   :  { %v4285_v16 = vpack.c.bf16 %v3397_v29, %v3396_v13  ;;  %v3107_v53 = vadd.f32 %v3106_v0, %v2818_v43  ;;  %v3108_v31 = vpop.f32.mrf.mxu1  ;;  %v3334_v58 = vadd.f32 %v5605_v56, %v3263_v25  ;;  %v5994_v13 = vld [vmem:[#allocation4_spill] sm:$0xff] }
 0x291   :  { %v2822_v12 = vpop.f32.mrf.mxu0 }
 0x292   :  { %4377 = vst [vmem:[%s5966_s4 + $0x80] sm:$0xff] %v4285_v16   ;;  %v3264_v14 = vmul.f32 %v5586_v1, %v3107_v53  ;;  %v2823_v60 = vadd.f32 %v2822_v12, %v5358_v32  ;;  %v3111_v27 = vpop.f32.mrf.mxu1  ;;  %v3398_v46 = vmax.f32 %v3334_v58, 0.0  ;;  %v5995_v58 = vld [vmem:[#allocation5_spill] sm:$0xff] }
 0x293   :  { %v2824_v34 = vpop.f32.mrf.mxu0 }
 0x294   :  { %v3335_v11 = vadd.f32 %v5605_v56, %v3264_v14  ;;  %v3112_v8 = vadd.f32 %v3111_v27, %v2823_v60  ;;  %v3113_v35 = vpop.f32.mrf.mxu1 }
 0x295   :  { %v2825_v22 = vpop.f32.mrf.mxu0 }
 0x296   :  { %v3399_v26 = vmax.f32 %v3335_v11, 0.0  ;;  %v3265_v28 = vmul.f32 %v5586_v1, %v3112_v8  ;;  %v2826_v24 = vadd.f32 %v2825_v22, %v5372_v59  ;;  %v3114_v23 = vpop.f32.mrf.mxu1 }
 0x297   :  { %v2827_v61 = vpop.f32.mrf.mxu0 }
 0x298   :  { %v4290_v44 = vpack.c.bf16 %v3399_v26, %v3398_v46  ;;  %v3115_v21 = vadd.f32 %v3114_v23, %v2826_v24  ;;  %v3116_v20 = vpop.f32.mrf.mxu1  ;;  %v3336_v32 = vadd.f32 %v5605_v56, %v3265_v28  ;;  %v5996_v28 = vld [vmem:[#allocation6_spill] sm:$0xff] }
 0x299   :  { %v2830_v41 = vpop.f32.mrf.mxu0 }
 0x29a   :  { %4378 = vst [vmem:[%s5966_s4 + $0x88] sm:$0xff] %v4290_v44   ;;  %v3266_v6 = vmul.f32 %v5586_v1, %v3115_v21  ;;  %v2831_v3 = vadd.f32 %v2830_v41, %v5374_v10  ;;  %v3119_v45 = vpop.f32.mrf.mxu1  ;;  %v3400_v2 = vmax.f32 %v3336_v32, 0.0 }
 0x29b   :  { %v2832_v17 = vpop.f32.mrf.mxu0 }
 0x29c   :  { %v3337_v59 = vadd.f32 %v5605_v56, %v3266_v6  ;;  %v3120_v39 = vadd.f32 %v3119_v45, %v2831_v3  ;;  %v3121_v9 = vpop.f32.mrf.mxu1  ;;  %v5860_v6 = vld [vmem:[%s5964_s2] ss:$0 sm:$0xff]  ;;  %v5997_v3 = vld [vmem:[#allocation7_spill] sm:$0xff] }
 0x29d   :  { %v2833_v30 = vpop.f32.mrf.mxu0 }
 0x29e   :  { %v3401_v49 = vmax.f32 %v3337_v59, 0.0  ;;  %v3267_v62 = vmul.f32 %v5586_v1, %v3120_v39  ;;  %v2834_v33 = vadd.f32 %v2833_v30, %v5992_v55  ;;  %v3122_v40 = vpop.f32.mrf.mxu1 }
 0x29f   :  { %v2835_v5 = vpop.f32.mrf.mxu0 }
 0x2a0   :  { %v4295_v54 = vpack.c.bf16 %v3401_v49, %v3400_v2  ;;  %v3123_v52 = vadd.f32 %v3122_v40, %v2834_v33  ;;  %v3124_v51 = vpop.f32.mrf.mxu1  ;;  %v3338_v10 = vadd.f32 %v5605_v56, %v3267_v62  ;;  %v5998_v33 = vld [vmem:[#allocation8_spill] sm:$0xff] }
 0x2a1   :  { %v2838_v57 = vpop.f32.mrf.mxu0 }
 0x2a2   :  { %4379 = vst [vmem:[%s5966_s4 + $0x90] sm:$0xff] %v4295_v54   ;;  %v3268_v50 = vmul.f32 %v5586_v1, %v3123_v52  ;;  %v2839_v7 = vadd.f32 %v2838_v57, %v5993_v47  ;;  %v3127_v15 = vpop.f32.mrf.mxu1  ;;  %v3402_v63 = vmax.f32 %v3338_v10, 0.0 }
 0x2a3   :  { %v2840_v42 = vpop.f32.mrf.mxu0 }
 0x2a4   :  { %v3339_v36 = vadd.f32 %v5605_v56, %v3268_v50  ;;  %v3128_v48 = vadd.f32 %v3127_v15, %v2839_v7  ;;  %v3129_v4 = vpop.f32.mrf.mxu1  ;;  %v5999_v7 = vld [vmem:[#allocation9_spill] sm:$0xff] }
 0x2a5   :  { %v2841_v38 = vpop.f32.mrf.mxu0 }
 0x2a6   :  { %v3403_v37 = vmax.f32 %v3339_v36, 0.0  ;;  %v3269_v18 = vmul.f32 %v5586_v1, %v3128_v48  ;;  %v2842_v29 = vadd.f32 %v2841_v38, %v5994_v13  ;;  %v3130_v25 = vpop.f32.mrf.mxu1 }
 0x2a7   :  { %v2843_v43 = vpop.f32.mrf.mxu0 }
 0x2a8   :  { %v4300_v0 = vpack.c.bf16 %v3403_v37, %v3402_v63  ;;  %v3131_v19 = vadd.f32 %v3130_v25, %v2842_v29  ;;  %v3132_v16 = vpop.f32.mrf.mxu1  ;;  %v3340_v31 = vadd.f32 %v5605_v56, %v3269_v18  ;;  %v6000_v29 = vld [vmem:[#allocation10_spill] sm:$0xff] }
 0x2a9   :  { %v2846_v53 = vpop.f32.mrf.mxu0 }
 0x2aa   :  { %4380 = vst [vmem:[%s5966_s4 + $0x98] sm:$0xff] %v4300_v0   ;;  %v3270_v12 = vmul.f32 %v5586_v1, %v3131_v19  ;;  %v2847_v14 = vadd.f32 %v2846_v53, %v5995_v58  ;;  %v3135_v60 = vpop.f32.mrf.mxu1  ;;  %v3404_v22 = vmax.f32 %v3340_v31, 0.0 }
 0x2ab   :  { %v2848_v27 = vpop.f32.mrf.mxu0 }
 0x2ac   :  { %v3341_v34 = vadd.f32 %v5605_v56, %v3270_v12  ;;  %v3136_v11 = vadd.f32 %v3135_v60, %v2847_v14  ;;  %v3137_v8 = vpop.f32.mrf.mxu1  ;;  %v6001_v14 = vld [vmem:[#allocation11_spill] sm:$0xff] }
 0x2ad   :  { %v2849_v35 = vpop.f32.mrf.mxu0 }
 0x2ae   :  { %v3405_v46 = vmax.f32 %v3341_v34, 0.0  ;;  %v3271_v26 = vmul.f32 %v5586_v1, %v3136_v11  ;;  %v2850_v24 = vadd.f32 %v2849_v35, %v5996_v28  ;;  %v3138_v23 = vpop.f32.mrf.mxu1 }
 0x2af   :  { %v2851_v61 = vpop.f32.mrf.mxu0 }
 0x2b0   :  { %v4305_v44 = vpack.c.bf16 %v3405_v46, %v3404_v22  ;;  %v3139_v21 = vadd.f32 %v3138_v23, %v2850_v24  ;;  %v3140_v20 = vpop.f32.mrf.mxu1  ;;  %v3342_v32 = vadd.f32 %v5605_v56, %v3271_v26  ;;  %v6002_v24 = vld [vmem:[#allocation12_spill] sm:$0xff] }
 0x2b1   :  { %v2854_v41 = vpop.f32.mrf.mxu0 }
 0x2b2   :  { %4381 = vst [vmem:[%s5966_s4 + $0xa0] sm:$0xff] %v4305_v44   ;;  %v3272_v1 = vmul.f32 %v5860_v6, %v3139_v21  ;;  %v2855_v45 = vadd.f32 %v2854_v41, %v5997_v3  ;;  %v3143_v17 = vpop.f32.mrf.mxu1  ;;  %v3406_v49 = vmax.f32 %v3342_v32, 0.0 }
 0x2b3   :  { %v2856_v59 = vpop.f32.mrf.mxu0 }
 0x2b4   :  { %v3343_v39 = vadd.f32 %v5605_v56, %v3272_v1  ;;  %v3144_v9 = vadd.f32 %v3143_v17, %v2855_v45  ;;  %v3145_v30 = vpop.f32.mrf.mxu1  ;;  %v5873_v56 = vld [vmem:[%s5965_s3] ss:$0 sm:$0xff]  ;;  %v6003_v45 = vld [vmem:[#allocation13_spill] sm:$0xff] }
 0x2b5   :  { %v2857_v2 = vpop.f32.mrf.mxu0 }
 0x2b6   :  { %v3407_v62 = vmax.f32 %v3343_v39, 0.0  ;;  %v3273_v55 = vmul.f32 %v5860_v6, %v3144_v9  ;;  %v2858_v40 = vadd.f32 %v2857_v2, %v5998_v33  ;;  %v3146_v5 = vpop.f32.mrf.mxu1 }
 0x2b7   :  { %v2859_v54 = vpop.f32.mrf.mxu0 }
 0x2b8   :  { %v4310_v52 = vpack.c.bf16 %v3407_v62, %v3406_v49  ;;  %v3147_v51 = vadd.f32 %v3146_v5, %v2858_v40  ;;  %v3148_v57 = vpop.f32.mrf.mxu1  ;;  %v3344_v50 = vadd.f32 %v5873_v56, %v3273_v55  ;;  %v6004_v40 = vld [vmem:[#allocation14_spill] sm:$0xff] }
 0x2b9   :  { %v2862_v10 = vpop.f32.mrf.mxu0 }
 0x2ba   :  { %4382 = vst [vmem:[%s5966_s4 + $0xa8] sm:$0xff] %v4310_v52   ;;  %v3274_v47 = vmul.f32 %v5860_v6, %v3147_v51  ;;  %v2863_v15 = vadd.f32 %v2862_v10, %v5999_v7  ;;  %v3151_v42 = vpop.f32.mrf.mxu1  ;;  %v3408_v37 = vmax.f32 %v3344_v50, 0.0 }
 0x2bb   :  { %v2864_v36 = vpop.f32.mrf.mxu0 }
 0x2bc   :  { %v3345_v48 = vadd.f32 %v5873_v56, %v3274_v47  ;;  %v3152_v4 = vadd.f32 %v3151_v42, %v2863_v15  ;;  %v3153_v38 = vpop.f32.mrf.mxu1  ;;  %v6005_v15 = vld [vmem:[#allocation15_spill] sm:$0xff] }
 0x2bd   :  { %v2865_v63 = vpop.f32.mrf.mxu0 }
 0x2be   :  { %v3409_v18 = vmax.f32 %v3345_v48, 0.0  ;;  %v3275_v13 = vmul.f32 %v5860_v6, %v3152_v4  ;;  %v2866_v25 = vadd.f32 %v2865_v63, %v6000_v29  ;;  %v3154_v43 = vpop.f32.mrf.mxu1 }
 0x2bf   :  { %v2867_v0 = vpop.f32.mrf.mxu0 }
 0x2c0   :  { %v4315_v19 = vpack.c.bf16 %v3409_v18, %v3408_v37  ;;  %v3155_v16 = vadd.f32 %v3154_v43, %v2866_v25  ;;  %v3156_v53 = vpop.f32.mrf.mxu1  ;;  %v3346_v12 = vadd.f32 %v5873_v56, %v3275_v13  ;;  %v6006_v25 = vld [vmem:[#allocation16_spill] sm:$0xff] }
 0x2c1   :  { %v2870_v31 = vpop.f32.mrf.mxu0 }
 0x2c2   :  { %4383 = vst [vmem:[%s5966_s4 + $0xb0] sm:$0xff] %v4315_v19   ;;  %v3276_v58 = vmul.f32 %v5860_v6, %v3155_v16  ;;  %v2871_v60 = vadd.f32 %v2870_v31, %v6001_v14  ;;  %v3159_v27 = vpop.f32.mrf.mxu1  ;;  %v3410_v46 = vmax.f32 %v3346_v12, 0.0 }
 0x2c3   :  { %v2872_v34 = vpop.f32.mrf.mxu0 }
 0x2c4   :  { %v3347_v11 = vadd.f32 %v5873_v56, %v3276_v58  ;;  %v3160_v8 = vadd.f32 %v3159_v27, %v2871_v60  ;;  %v3161_v35 = vpop.f32.mrf.mxu1  ;;  %v6007_v60 = vld [vmem:[#allocation17_spill] sm:$0xff] }
 0x2c5   :  { %v2873_v22 = vpop.f32.mrf.mxu0 }
 0x2c6   :  { %v3411_v26 = vmax.f32 %v3347_v11, 0.0  ;;  %v3277_v28 = vmul.f32 %v5860_v6, %v3160_v8  ;;  %v2874_v23 = vadd.f32 %v2873_v22, %v6002_v24  ;;  %v3162_v61 = vpop.f32.mrf.mxu1 }
 0x2c7   :  { %v2875_v44 = vpop.f32.mrf.mxu0 }
 0x2c8   :  { %v4320_v21 = vpack.c.bf16 %v3411_v26, %v3410_v46  ;;  %v3163_v20 = vadd.f32 %v3162_v61, %v2874_v23  ;;  %v3164_v41 = vpop.f32.mrf.mxu1  ;;  %v3348_v1 = vadd.f32 %v5873_v56, %v3277_v28  ;;  %v6008_v23 = vld [vmem:[#allocation18_spill] sm:$0xff] }
 0x2c9   :  { %v2878_v32 = vpop.f32.mrf.mxu0 }
 0x2ca   :  { %4384 = vst [vmem:[%s5966_s4 + $0xb8] sm:$0xff] %v4320_v21   ;;  %v3278_v3 = vmul.f32 %v5860_v6, %v3163_v20  ;;  %v2879_v17 = vadd.f32 %v2878_v32, %v6003_v45  ;;  %v3167_v59 = vpop.f32.mrf.mxu1  ;;  %v3412_v62 = vmax.f32 %v3348_v1, 0.0 }
 0x2cb   :  { %v2880_v39 = vpop.f32.mrf.mxu0 }
 0x2cc   :  { %v3349_v9 = vadd.f32 %v5873_v56, %v3278_v3  ;;  %v3168_v30 = vadd.f32 %v3167_v59, %v2879_v17  ;;  %v3169_v2 = vpop.f32.mrf.mxu1  ;;  %v6009_v17 = vld [vmem:[#allocation19_spill] sm:$0xff] }
 0x2cd   :  { %v2881_v49 = vpop.f32.mrf.mxu0 }
 0x2ce   :  { %v3413_v55 = vmax.f32 %v3349_v9, 0.0  ;;  %v3279_v33 = vmul.f32 %v5860_v6, %v3168_v30  ;;  %v2882_v5 = vadd.f32 %v2881_v49, %v6004_v40  ;;  %v3170_v54 = vpop.f32.mrf.mxu1 }
 0x2cf   :  { %v2883_v52 = vpop.f32.mrf.mxu0 }
 0x2d0   :  { %v4325_v51 = vpack.c.bf16 %v3413_v55, %v3412_v62  ;;  %v3171_v57 = vadd.f32 %v3170_v54, %v2882_v5  ;;  %v3172_v10 = vpop.f32.mrf.mxu1  ;;  %v3350_v47 = vadd.f32 %v5873_v56, %v3279_v33  ;;  %v6010_v5 = vld [vmem:[#allocation20_spill] sm:$0xff] }
 0x2d1   :  { %v2886_v50 = vpop.f32.mrf.mxu0 }
 0x2d2   :  { %4385 = vst [vmem:[%s5966_s4 + $0xc0] sm:$0xff] %v4325_v51   ;;  %v3280_v7 = vmul.f32 %v5860_v6, %v3171_v57  ;;  %v2887_v42 = vadd.f32 %v2886_v50, %v6005_v15  ;;  %v3175_v36 = vpop.f32.mrf.mxu1  ;;  %v3414_v18 = vmax.f32 %v3350_v47, 0.0 }
 0x2d3   :  { %v2888_v48 = vpop.f32.mrf.mxu0 }
 0x2d4   :  { %v3351_v4 = vadd.f32 %v5873_v56, %v3280_v7  ;;  %v3176_v38 = vadd.f32 %v3175_v36, %v2887_v42  ;;  %v3177_v63 = vpop.f32.mrf.mxu1  ;;  %v6011_v42 = vld [vmem:[#allocation21_spill] sm:$0xff] }
 0x2d5   :  { %v2889_v37 = vpop.f32.mrf.mxu0 }
 0x2d6   :  { %v3415_v13 = vmax.f32 %v3351_v4, 0.0  ;;  %v3281_v29 = vmul.f32 %v5860_v6, %v3176_v38  ;;  %v2890_v43 = vadd.f32 %v2889_v37, %v6006_v25  ;;  %v3178_v0 = vpop.f32.mrf.mxu1 }
 0x2d7   :  { %v2891_v19 = vpop.f32.mrf.mxu0 }
 0x2d8   :  { %v4330_v16 = vpack.c.bf16 %v3415_v13, %v3414_v18  ;;  %v3179_v53 = vadd.f32 %v3178_v0, %v2890_v43  ;;  %v3180_v31 = vpop.f32.mrf.mxu1  ;;  %v3352_v58 = vadd.f32 %v5873_v56, %v3281_v29  ;;  %v6012_v43 = vld [vmem:[#allocation22_spill] sm:$0xff] }
 0x2d9   :  { %v2894_v12 = vpop.f32.mrf.mxu0 }
 0x2da   :  { %4386 = vst [vmem:[%s5966_s4 + $0xc8] sm:$0xff] %v4330_v16   ;;  %v3282_v14 = vmul.f32 %v5860_v6, %v3179_v53  ;;  %v2895_v27 = vadd.f32 %v2894_v12, %v6007_v60  ;;  %v3183_v34 = vpop.f32.mrf.mxu1  ;;  %v3416_v26 = vmax.f32 %v3352_v58, 0.0 }
 0x2db   :  { %v2896_v11 = vpop.f32.mrf.mxu0 }
 0x2dc   :  { %v3353_v8 = vadd.f32 %v5873_v56, %v3282_v14  ;;  %v3184_v35 = vadd.f32 %v3183_v34, %v2895_v27  ;;  %v3185_v22 = vpop.f32.mrf.mxu1  ;;  %v6013_v27 = vld [vmem:[#allocation23_spill] sm:$0xff] }
 0x2dd   :  { %v2897_v46 = vpop.f32.mrf.mxu0 }
 0x2de   :  { %v3417_v28 = vmax.f32 %v3353_v8, 0.0  ;;  %v3283_v24 = vmul.f32 %v5860_v6, %v3184_v35  ;;  %v2898_v61 = vadd.f32 %v2897_v46, %v6008_v23  ;;  %v3186_v44 = vpop.f32.mrf.mxu1 }
 0x2df   :  { %v2899_v21 = vpop.f32.mrf.mxu0 }
 0x2e0   :  { %v4335_v20 = vpack.c.bf16 %v3417_v28, %v3416_v26  ;;  %v3187_v41 = vadd.f32 %v3186_v44, %v2898_v61  ;;  %v3188_v32 = vpop.f32.mrf.mxu1  ;;  %v3354_v3 = vadd.f32 %v5873_v56, %v3283_v24  ;;  %v6014_v61 = vld [vmem:[#allocation24_spill] sm:$0xff] }
 0x2e1   :  { %v2902_v1 = vpop.f32.mrf.mxu0 }
 0x2e2   :  { %4387 = vst [vmem:[%s5966_s4 + $0xd0] sm:$0xff] %v4335_v20   ;;  %v3284_v45 = vmul.f32 %v5860_v6, %v3187_v41  ;;  %v2903_v59 = vadd.f32 %v2902_v1, %v6009_v17  ;;  %v3191_v39 = vpop.f32.mrf.mxu1  ;;  %v3418_v55 = vmax.f32 %v3354_v3, 0.0 }
 0x2e3   :  { %v2904_v9 = vpop.f32.mrf.mxu0 }
 0x2e4   :  { %v3355_v30 = vadd.f32 %v5873_v56, %v3284_v45  ;;  %v3192_v2 = vadd.f32 %v3191_v39, %v2903_v59  ;;  %v3193_v49 = vpop.f32.mrf.mxu1  ;;  %v6015_v59 = vld [vmem:[#allocation25_spill] sm:$0xff] }
 0x2e5   :  { %v2905_v62 = vpop.f32.mrf.mxu0 }
 0x2e6   :  { %v3419_v33 = vmax.f32 %v3355_v30, 0.0  ;;  %v3285_v40 = vmul.f32 %v5860_v6, %v3192_v2  ;;  %v2906_v54 = vadd.f32 %v2905_v62, %v6010_v5  ;;  %v3194_v52 = vpop.f32.mrf.mxu1 }
 0x2e7   :  { %v2907_v51 = vpop.f32.mrf.mxu0 }
 0x2e8   :  { %v4340_v57 = vpack.c.bf16 %v3419_v33, %v3418_v55  ;;  %v3195_v10 = vadd.f32 %v3194_v52, %v2906_v54  ;;  %v3196_v50 = vpop.f32.mrf.mxu1  ;;  %v3356_v7 = vadd.f32 %v5873_v56, %v3285_v40  ;;  %v6016_v54 = vld [vmem:[#allocation26_spill] sm:$0xff] }
 0x2e9   :  { %v2910_v47 = vpop.f32.mrf.mxu0 }
 0x2ea   :  { %4388 = vst [vmem:[%s5966_s4 + $0xd8] sm:$0xff] %v4340_v57   ;;  %v3286_v15 = vmul.f32 %v5860_v6, %v3195_v10  ;;  %v2911_v36 = vadd.f32 %v2910_v47, %v6011_v42  ;;  %v3199_v48 = vpop.f32.mrf.mxu1  ;;  %v3420_v13 = vmax.f32 %v3356_v7, 0.0 }
 0x2eb   :  { %v2912_v4 = vpop.f32.mrf.mxu0 }
 0x2ec   :  { %v3357_v38 = vadd.f32 %v5873_v56, %v3286_v15  ;;  %v3200_v63 = vadd.f32 %v3199_v48, %v2911_v36  ;;  %v3201_v37 = vpop.f32.mrf.mxu1 }
 0x2ed   :  { %v2913_v18 = vpop.f32.mrf.mxu0 }
 0x2ee   :  { %v3421_v29 = vmax.f32 %v3357_v38, 0.0  ;;  %v3287_v25 = vmul.f32 %v5860_v6, %v3200_v63  ;;  %v2914_v0 = vadd.f32 %v2913_v18, %v6012_v43  ;;  %v3202_v19 = vpop.f32.mrf.mxu1 }
 0x2ef   :  { %v2915_v16 = vpop.f32.mrf.mxu0 }
 0x2f0   :  { %v4345_v53 = vpack.c.bf16 %v3421_v29, %v3420_v13  ;;  %v3203_v31 = vadd.f32 %v3202_v19, %v2914_v0  ;;  %v3204_v12 = vpop.f32.mrf.mxu1  ;;  %v3358_v14 = vadd.f32 %v5873_v56, %v3287_v25 }
 0x2f1   :  { %v2918_v58 = vpop.f32.mrf.mxu0 }
 0x2f2   :  { %4389 = vst [vmem:[%s5966_s4 + $0xe0] sm:$0xff] %v4345_v53   ;;  %v3288_v60 = vmul.f32 %v5860_v6, %v3203_v31  ;;  %v2919_v34 = vadd.f32 %v2918_v58, %v6013_v27  ;;  %v3207_v11 = vpop.f32.mrf.mxu1  ;;  %v3422_v28 = vmax.f32 %v3358_v14, 0.0 }
 0x2f3   :  { %v2920_v8 = vpop.f32.mrf.mxu0 }
 0x2f4   :  { %v3359_v35 = vadd.f32 %v5873_v56, %v3288_v60  ;;  %v3208_v22 = vadd.f32 %v3207_v11, %v2919_v34  ;;  %v3209_v46 = vpop.f32.mrf.mxu1 }
 0x2f5   :  { %v2921_v26 = vpop.f32.mrf.mxu0 }
 0x2f6   :  { %v3423_v24 = vmax.f32 %v3359_v35, 0.0  ;;  %v3289_v23 = vmul.f32 %v5860_v6, %v3208_v22  ;;  %v2922_v44 = vadd.f32 %v2921_v26, %v6014_v61  ;;  %v3210_v21 = vpop.f32.mrf.mxu1 }
 0x2f7   :  { %v2923_v20 = vpop.f32.mrf.mxu0 }
 0x2f8   :  { %v4350_v41 = vpack.c.bf16 %v3423_v24, %v3422_v28  ;;  %v3211_v32 = vadd.f32 %v3210_v21, %v2922_v44  ;;  %v3212_v1 = vpop.f32.mrf.mxu1  ;;  %v3360_v45 = vadd.f32 %v5873_v56, %v3289_v23 }
 0x2f9   :  { %v2926_v3 = vpop.f32.mrf.mxu0 }
 0x2fa   :  { %4390 = vst [vmem:[%s5966_s4 + $0xe8] sm:$0xff] %v4350_v41   ;;  %v3290_v17 = vmul.f32 %v5860_v6, %v3211_v32  ;;  %v2927_v39 = vadd.f32 %v2926_v3, %v6015_v59  ;;  %v3215_v9 = vpop.f32.mrf.mxu1  ;;  %v3424_v33 = vmax.f32 %v3360_v45, 0.0 }
 0x2fb   :  { %v2928_v30 = vpop.f32.mrf.mxu0 }
 0x2fc   :  { %v3361_v2 = vadd.f32 %v5873_v56, %v3290_v17  ;;  %v3216_v49 = vadd.f32 %v3215_v9, %v2927_v39  ;;  %v3217_v62 = vpop.f32.mrf.mxu1 }
 0x2fd   :  { %v2929_v55 = vpop.f32.mrf.mxu0 }
 0x2fe   :  { %v3425_v40 = vmax.f32 %v3361_v2, 0.0  ;;  %v3291_v5 = vmul.f32 %v5860_v6, %v3216_v49  ;;  %v2930_v52 = vadd.f32 %v2929_v55, %v6016_v54  ;;  %v3218_v51 = vpop.f32.mrf.mxu1 }
 0x2ff   :  { %v2931_v57 = vpop.f32.mrf.mxu0 }
 0x300   :  { %v4355_v10 = vpack.c.bf16 %v3425_v40, %v3424_v33  ;;  %v3219_v50 = vadd.f32 %v3218_v51, %v2930_v52  ;;  %v3220_v47 = vpop.f32.mrf.mxu1  ;;  %v3362_v7 = vadd.f32 %v5873_v56, %v3291_v5 }
 0x302   :  { %4391 = vst [vmem:[%s5966_s4 + $0xf0] sm:$0xff] %v4355_v10   ;;  %v3292_v15 = vmul.f32 %v5860_v6, %v3219_v50  ;;  %v3426_v36 = vmax.f32 %v3362_v7, 0.0 }
 0x304   :  { %v3363_v42 = vadd.f32 %v5873_v56, %v3292_v15 }
 0x306   :  { %v3427_v48 = vmax.f32 %v3363_v42, 0.0 }
 0x308   :  { %v4360_v4 = vpack.c.bf16 %v3427_v48, %v3426_v36 }
 0x30a   :  { %4392 = vst [vmem:[%s5966_s4 + $0xf8] sm:$0xff] %v4360_v4  }

// kernel: generator_forward.22
= control target key start
LH: loop header
LB: loop body
LE: loop exit
PB: predicated region body
PF: predicated region fallthrough
CT: control target
= control target key end

     0   :  { %s3394_s21 = smov 0   ;;  %s4180_s0 = inlined_call_operand.vmem [shape: bf16[2048,512], index: 0, kind: input, shape index: {}]   ;;  %s4181_s1 = inlined_call_operand.vmem [shape: bf16[512,128], index: 1, kind: input, shape index: {}]   ;;  %s4182_s2 = inlined_call_operand.vmem [shape: f32[1,128], index: 2, kind: input, shape index: {}]   ;;  %s4183_s3 = inlined_call_operand.vmem [shape: f32[1,128], index: 3, kind: input, shape index: {}]   ;;  %s4184_s4 = inlined_call_operand.vmem [shape: bf16[128,128], index: 4, kind: input, shape index: {}]   ;;  %s4185_s5 = inlined_call_operand.vmem [shape: f32[1,128], index: 5, kind: input, shape index: {}]   ;;  %s4186_s6 = inlined_call_operand.vmem [shape: f32[2048,128], index: 6, kind: output, shape index: {}]  }
   0x1 LB: > { %s2643_s22 = sadd.s32 4294967295, %s3356_s21   ;;  %p2647_p0 = scmp.ge.s32.totalorder %s3356_s21, 1  ;;  %s3356_s21 = sphi %s3394_s21, %s16_s21  }
   0x2   : > { %p214_p1 = scmp.lt.s32.totalorder %s3356_s21, 5 }
   0x4   : > { %p215_p2 = pnand %p2647_p0, %p214_p1 }
   0x5   : > { %s2648_s25 = sshll.u32 (!%p215_p2), %s2643_s22, 6 }
   0x6   : > { %218 = sbr.rel (%p215_p2) target bundleno = 811 (0x32b), region = 44  ;;  %p246_p3 = scmp.lt.s32.totalorder (!%p215_p2), %s2648_s25, 255 }
   0xb   : > { %v2988_v0 = vld [vmem:[%s4181_s1 + $0x38] sm:$0xff]   ;;  %v3358_v1 = vmov 0   ;;  %v2989_v2 = vld [vmem:[%s4181_s1 + $0x30] sm:$0xff]   ;;  %v2990_v3 = vld [vmem:[%s4181_s1 + $0x28] sm:$0xff]   ;;  %s4188_s25 = smov (!%p246_p3, %s2648_s25), 255 }
   0xc   : > { %2947 = vmatprep.subr.bf16.mxu1 %v3358_v1  ;;  %1283 = vmatprep.subr.bf16.mxu0 %v3358_v1  ;;  %v2991_v4 = vld [vmem:[%s4181_s1 + $0x20] sm:$0xff]   ;;  %s2826_s8 = sshll.u32 %s4188_s25, 4  ;;  %v2992_v5 = vld [vmem:[%s4181_s1 + $0x18] sm:$0xff]   ;;  %v2993_v7 = vld [vmem:[%s4181_s1 + $0x10] sm:$0xff]   ;;  %s2652_s28 = sshll.u32 %s4188_s25, 3 }
   0xd   : > { %2963 = vmatpush1.bf16.msra.mxu1 %v2988_v0  ;;  %1284 = vmatpush1.bf16.msra.mxu0 %v2988_v0  ;;  %s3431_s13 = scalar_lea.vmem %s4180_s0, %s2826_s8  ;;  %v2994_v8 = vld [vmem:[%s4181_s1 + $0x8] sm:$0xff]   ;;  %v2995_v9 = vld [vmem:[%s4181_s1] sm:$0xff]   ;;  %v2996_v10 = vld [vmem:[%s4181_s1 + $0x78] sm:$0xff]   ;;  %s4027_s7 = scalar_lea.vmem %s4186_s6, %s2652_s28 }
   0xe   : > { %2948 = vmatprep.subr.bf16.mxu1 %v3358_v1  ;;  %1285 = vmatprep.subr.bf16.mxu0 %v3358_v1  ;;  %v3006_v6 = vld [vmem:[%s3431_s13 + $0x304] ss:$16 sps:$4 sm:$0xff]   ;;  %v2998_v12 = vld [vmem:[%s4181_s1 + $0x68] sm:$0xff]   ;;  %v3000_v15 = vld [vmem:[%s4181_s1 + $0x58] sm:$0xff]  }
   0xf   : > { %1507 = vmatprep.mubr.bf16.mxu1 %v3006_v6  ;;  %v2997_v11 = vld [vmem:[%s4181_s1 + $0x70] sm:$0xff]   ;;  %v2999_v13 = vld [vmem:[%s4181_s1 + $0x60] sm:$0xff]   ;;  %v3002_v17 = vld [vmem:[%s4181_s1 + $0x48] sm:$0xff]  }
  0x10   : > { %v3046_v14 = vld [vmem:[%s3431_s13 + $0x4] ss:$16 sps:$4 sm:$0xff]   ;;  %v3004_v19 = vld [vmem:[%s3431_s13 + $0x300] ss:$16 sps:$4 sm:$0xff]   ;;  %v3007_v20 = vld [vmem:[%s4181_s1 + $0xb8] sm:$0xff]  }
  0x11   : > { %2964 = vmatpush1.bf16.msra.mxu1 %v2989_v2  ;;  %1286 = vmatpush1.bf16.msra.mxu0 %v2989_v2  ;;  %v3001_v16 = vld [vmem:[%s4181_s1 + $0x50] sm:$0xff]   ;;  %v3003_v18 = vld [vmem:[%s4181_s1 + $0x40] sm:$0xff]   ;;  %v3012_v26 = vld [vmem:[%s4181_s1 + $0xa8] sm:$0xff]  }
  0x12   : > { %2949 = vmatprep.subr.bf16.mxu1 %v3358_v1  ;;  %1287 = vmatprep.subr.bf16.mxu0 %v3358_v1  ;;  %v3044_v21 = vld [vmem:[%s3431_s13] ss:$16 sps:$4 sm:$0xff]   ;;  %v3009_v22 = vld [vmem:[%s3431_s13 + $0x324] ss:$16 sps:$4 sm:$0xff]   ;;  %v3017_v33 = vld [vmem:[%s4181_s1 + $0x98] sm:$0xff]  }
  0x13   : > { %1315 = vmatprep.mubr.bf16.mxu0 %v3046_v14  ;;  %v3050_v23 = vld [vmem:[%s3431_s13 + $0x24] ss:$16 sps:$4 sm:$0xff]   ;;  %v3011_v25 = vld [vmem:[%s3431_s13 + $0x320] ss:$16 sps:$4 sm:$0xff]   ;;  %v3022_v39 = vld [vmem:[%s4181_s1 + $0x88] sm:$0xff]  }
  0x14   : > { %v3008_v24 = vld [vmem:[%s4181_s1 + $0xb0] sm:$0xff]   ;;  %v3013_v30 = vld [vmem:[%s4181_s1 + $0xa0] sm:$0xff]   ;;  %v3027_v45 = vld [vmem:[%s4181_s1 + $0xf8] sm:$0xff]  }
  0x15   : > { %2965 = vmatpush1.bf16.msra.mxu1 %v2990_v3  ;;  %1288 = vmatpush1.bf16.msra.mxu0 %v2990_v3  ;;  %v3014_v27 = vld [vmem:[%s3431_s13 + $0x344] ss:$16 sps:$4 sm:$0xff]   ;;  %v3054_v28 = vld [vmem:[%s3431_s13 + $0x20] ss:$16 sps:$4 sm:$0xff]   ;;  %v3032_v51 = vld [vmem:[%s4181_s1 + $0xe8] sm:$0xff]  }
  0x16   : > { %2950 = vmatprep.subr.bf16.mxu1 %v3358_v1  ;;  %1289 = vmatprep.subr.bf16.mxu0 %v3358_v1  ;;  %v3056_v29 = vld [vmem:[%s3431_s13 + $0x44] ss:$16 sps:$4 sm:$0xff]   ;;  %v3016_v31 = vld [vmem:[%s3431_s13 + $0x340] ss:$16 sps:$4 sm:$0xff]   ;;  %v3037_v57 = vld [vmem:[%s4181_s1 + $0xd8] sm:$0xff]  }
  0x17   : > { %v3060_v32 = vld [vmem:[%s3431_s13 + $0x40] ss:$16 sps:$4 sm:$0xff]   ;;  %v3019_v34 = vld [vmem:[%s3431_s13 + $0x364] ss:$16 sps:$4 sm:$0xff]   ;;  %v3042_v63 = vld [vmem:[%s4181_s1 + $0xc8] sm:$0xff]  }
  0x18   : > { %v3062_v35 = vld [vmem:[%s3431_s13 + $0x64] ss:$16 sps:$4 sm:$0xff]   ;;  %v3021_v37 = vld [vmem:[%s3431_s13 + $0x360] ss:$16 sps:$4 sm:$0xff]   ;;  %v3049_v0 = vld [vmem:[%s3431_s13 + $0xc] ss:$16 sps:$4 sm:$0xff]  }
  0x19   : > { %2966 = vmatpush1.bf16.msra.mxu1 %v2991_v4  ;;  %1290 = vmatpush1.bf16.msra.mxu0 %v2991_v4  ;;  %v3018_v36 = vld [vmem:[%s4181_s1 + $0x90] sm:$0xff]   ;;  %v3023_v42 = vld [vmem:[%s4181_s1 + $0x80] sm:$0xff]   ;;  %v3047_v4 = vld [vmem:[%s3431_s13 + $0x8] ss:$16 sps:$4 sm:$0xff]  }
  0x1a   : > { %2951 = vmatprep.subr.bf16.mxu1 %v3358_v1  ;;  %1291 = vmatprep.subr.bf16.mxu0 %v3358_v1  ;;  %v3066_v38 = vld [vmem:[%s3431_s13 + $0x60] ss:$16 sps:$4 sm:$0xff]   ;;  %v3024_v40 = vld [vmem:[%s3431_s13 + $0x384] ss:$16 sps:$4 sm:$0xff]   ;;  %v3052_v6 = vld [vmem:[%s3431_s13 + $0x2c] ss:$16 sps:$4 sm:$0xff]  }
  0x1b   : > { %v3068_v41 = vld [vmem:[%s3431_s13 + $0x84] ss:$16 sps:$4 sm:$0xff]   ;;  %v3026_v43 = vld [vmem:[%s3431_s13 + $0x380] ss:$16 sps:$4 sm:$0xff]  }
  0x1c   : > { %v3072_v44 = vld [vmem:[%s3431_s13 + $0x80] ss:$16 sps:$4 sm:$0xff]   ;;  %v3029_v46 = vld [vmem:[%s3431_s13 + $0x3a4] ss:$16 sps:$4 sm:$0xff]  }
  0x1d   : > { %2967 = vmatpush1.bf16.msra.mxu1 %v2992_v5  ;;  %1292 = vmatpush1.bf16.msra.mxu0 %v2992_v5  ;;  %v3074_v47 = vld [vmem:[%s3431_s13 + $0xa4] ss:$16 sps:$4 sm:$0xff]   ;;  %v3031_v49 = vld [vmem:[%s3431_s13 + $0x3a0] ss:$16 sps:$4 sm:$0xff]  }
  0x1e   : > { %2952 = vmatprep.subr.bf16.mxu1 %v3358_v1  ;;  %1293 = vmatprep.subr.bf16.mxu0 %v3358_v1  ;;  %v3028_v48 = vld [vmem:[%s4181_s1 + $0xf0] sm:$0xff]   ;;  %v3033_v54 = vld [vmem:[%s4181_s1 + $0xe0] sm:$0xff]  }
  0x1f   : > { %v3078_v50 = vld [vmem:[%s3431_s13 + $0xa0] ss:$16 sps:$4 sm:$0xff]   ;;  %v3034_v52 = vld [vmem:[%s3431_s13 + $0x3c4] ss:$16 sps:$4 sm:$0xff]  }
  0x20   : > { %v3080_v53 = vld [vmem:[%s3431_s13 + $0xc4] ss:$16 sps:$4 sm:$0xff]   ;;  %v3036_v55 = vld [vmem:[%s3431_s13 + $0x3c0] ss:$16 sps:$4 sm:$0xff]  }
  0x21   : > { %2968 = vmatpush1.bf16.msra.mxu1 %v2993_v7  ;;  %1294 = vmatpush1.bf16.msra.mxu0 %v2993_v7  ;;  %v3084_v56 = vld [vmem:[%s3431_s13 + $0xc0] ss:$16 sps:$4 sm:$0xff]   ;;  %v3039_v58 = vld [vmem:[%s3431_s13 + $0x3e4] ss:$16 sps:$4 sm:$0xff]  }
  0x22   : > { %2953 = vmatprep.subr.bf16.mxu1 %v3358_v1  ;;  %1295 = vmatprep.subr.bf16.mxu0 %v3358_v1  ;;  %v3086_v59 = vld [vmem:[%s3431_s13 + $0xe4] ss:$16 sps:$4 sm:$0xff]   ;;  %v3041_v61 = vld [vmem:[%s3431_s13 + $0x3e0] ss:$16 sps:$4 sm:$0xff]  }
  0x23   : > { %v3038_v60 = vld [vmem:[%s4181_s1 + $0xd0] sm:$0xff]   ;;  %v3043_v3 = vld [vmem:[%s4181_s1 + $0xc0] sm:$0xff]  }
  0x24   : > { %v3090_v62 = vld [vmem:[%s3431_s13 + $0xe0] ss:$16 sps:$4 sm:$0xff]   ;;  %v3092_v2 = vld [vmem:[%s3431_s13 + $0x104] ss:$16 sps:$4 sm:$0xff]  }
  0x25   : > { %2969 = vmatpush1.bf16.msra.mxu1 %v2994_v8  ;;  %1296 = vmatpush1.bf16.msra.mxu0 %v2994_v8  ;;  %v3096_v5 = vld [vmem:[%s3431_s13 + $0x100] ss:$16 sps:$4 sm:$0xff]   ;;  %v3098_v7 = vld [vmem:[%s3431_s13 + $0x124] ss:$16 sps:$4 sm:$0xff]   ;;  %v3055_v8 = vld [vmem:[%s3431_s13 + $0x28] ss:$16 sps:$4 sm:$0xff]  }
  0x26   : > { %2954 = vmatprep.subr.bf16.mxu1 %v3358_v1  ;;  %1297 = vmatprep.subr.bf16.mxu0 %v3358_v1  ;;  %v3110_v14 = vld [vmem:[%s3431_s13 + $0x164] ss:$16 sps:$4 sm:$0xff]  }
  0x29   : > { %2970 = vmatpush1.bf16.msra.mxu1 %v2995_v9  ;;  %1298 = vmatpush1.bf16.msra.mxu0 %v2995_v9  ;;  %v3102_v9 = vld [vmem:[%s3431_s13 + $0x120] ss:$16 sps:$4 sm:$0xff]  }
  0x2a   : > { %2955 = vmatprep.subr.bf16.mxu1 %v3358_v1  ;;  %1299 = vmatprep.subr.bf16.mxu0 %v3358_v1 }
  0x2d   : > { %2971 = vmatpush2.bf16.msra.mxu1 %v2996_v10  ;;  %1300 = vmatpush2.bf16.msra.mxu0 %v2996_v10  ;;  %v3058_v10 = vld [vmem:[%s3431_s13 + $0x4c] ss:$16 sps:$4 sm:$0xff]  }
  0x2e   : > { %2956 = vmatprep.subr.bf16.mxu1 %v3358_v1  ;;  %1301 = vmatprep.subr.bf16.mxu0 %v3358_v1 }
  0x31   : > { %2972 = vmatpush2.bf16.msra.mxu1 %v2997_v11  ;;  %1302 = vmatpush2.bf16.msra.mxu0 %v2997_v11  ;;  %v3104_v11 = vld [vmem:[%s3431_s13 + $0x144] ss:$16 sps:$4 sm:$0xff]  }
  0x32   : > { %2957 = vmatprep.subr.bf16.mxu1 %v3358_v1  ;;  %1303 = vmatprep.subr.bf16.mxu0 %v3358_v1 }
  0x35   : > { %2973 = vmatpush2.bf16.msra.mxu1 %v2998_v12  ;;  %1304 = vmatpush2.bf16.msra.mxu0 %v2998_v12  ;;  %v3108_v12 = vld [vmem:[%s3431_s13 + $0x140] ss:$16 sps:$4 sm:$0xff]  }
  0x36   : > { %2958 = vmatprep.subr.bf16.mxu1 %v3358_v1  ;;  %1305 = vmatprep.subr.bf16.mxu0 %v3358_v1 }
  0x39   : > { %2974 = vmatpush2.bf16.msra.mxu1 %v2999_v13  ;;  %1306 = vmatpush2.bf16.msra.mxu0 %v2999_v13  ;;  %v3064_v13 = vld [vmem:[%s3431_s13 + $0x6c] ss:$16 sps:$4 sm:$0xff]  }
  0x3a   : > { %2959 = vmatprep.subr.bf16.mxu1 %v3358_v1  ;;  %1307 = vmatprep.subr.bf16.mxu0 %v3358_v1 }
  0x3d   : > { %2975 = vmatpush2.bf16.msra.mxu1 %v3000_v15  ;;  %1308 = vmatpush2.bf16.msra.mxu0 %v3000_v15  ;;  %v3156_v15 = vld [vmem:[%s4184_s4 + $0x38] sm:$0xff]  }
  0x3e   : > { %2960 = vmatprep.subr.bf16.mxu1 %v3358_v1  ;;  %1309 = vmatprep.subr.bf16.mxu0 %v3358_v1 }
  0x41   : > { %2976 = vmatpush2.bf16.msra.mxu1 %v3001_v16  ;;  %1310 = vmatpush2.bf16.msra.mxu0 %v3001_v16  ;;  %v3067_v16 = vld [vmem:[%s3431_s13 + $0x68] ss:$16 sps:$4 sm:$0xff]  }
  0x42   : > { %2961 = vmatprep.subr.bf16.mxu1 %v3358_v1  ;;  %1311 = vmatprep.subr.bf16.mxu0 %v3358_v1 }
  0x45   : > { %2977 = vmatpush2.bf16.msra.mxu1 %v3002_v17  ;;  %1312 = vmatpush2.bf16.msra.mxu0 %v3002_v17  ;;  %v3114_v17 = vld [vmem:[%s3431_s13 + $0x160] ss:$16 sps:$4 sm:$0xff]  }
  0x46   : > { %2962 = vmatprep.subr.bf16.mxu1 %v3358_v1  ;;  %1313 = vmatprep.subr.bf16.mxu0 %v3358_v1 }
  0x49   : > { %2978 = vmatpush2.bf16.msra.mxu1 %v3003_v18  ;;  %1314 = vmatpush2.bf16.msra.mxu0 %v3003_v18  ;;  %v3070_v18 = vld [vmem:[%s3431_s13 + $0x8c] ss:$16 sps:$4 sm:$0xff]  }
  0x4a   : > { %1572 = vmatprep.subr.bf16.mxu1 %v3358_v1  ;;  %2867 = vmatprep.subr.bf16.mxu0 %v3156_v15 }
  0x4c   : > { %1508 = vmatmul.mubr.bf16.vlgmr.msra.gmra.mxu1 %v3004_v19  ;;  %1316 = vmatmul.mubr.bf16.vlgmr.msra.gmra.mxu0 %v3044_v21  ;;  %v3116_v19 = vld [vmem:[%s3431_s13 + $0x184] ss:$16 sps:$4 sm:$0xff]   ;;  %v3120_v21 = vld [vmem:[%s3431_s13 + $0x180] ss:$16 sps:$4 sm:$0xff]  }
  0x4d   : > { %1573 = vmatpush1.bf16.msra.mxu1 %v3007_v20  ;;  %1515 = vmatprep.mubr.bf16.mxu1 %v3009_v22  ;;  %v3073_v20 = vld [vmem:[%s3431_s13 + $0x88] ss:$16 sps:$4 sm:$0xff]   ;;  %v3076_v22 = vld [vmem:[%s3431_s13 + $0xac] ss:$16 sps:$4 sm:$0xff]  }
  0x4e   : > { %1574 = vmatprep.subr.bf16.mxu1 %v3358_v1  ;;  %1323 = vmatprep.mubr.bf16.mxu0 %v3050_v23  ;;  %v3122_v23 = vld [vmem:[%s3431_s13 + $0x1a4] ss:$16 sps:$4 sm:$0xff]  }
  0x4f   : > { %2868 = vmatpush3.bf16.msra.mxu0 %v3156_v15 }
  0x51   : > { %1575 = vmatpush1.bf16.msra.mxu1 %v3008_v24  ;;  %v3079_v24 = vld [vmem:[%s3431_s13 + $0xa8] ss:$16 sps:$4 sm:$0xff]  }
  0x52   : > { %1576 = vmatprep.subr.bf16.mxu1 %v3358_v1 }
  0x54   : > { %1516 = vmatmul.mubr.bf16.gmra.mxu1 %v3011_v25  ;;  %1324 = vmatmul.mubr.bf16.gmra.mxu0 %v3054_v28  ;;  %v3126_v25 = vld [vmem:[%s3431_s13 + $0x1a0] ss:$16 sps:$4 sm:$0xff]  }
  0x55   : > { %1577 = vmatpush1.bf16.msra.mxu1 %v3012_v26  ;;  %1523 = vmatprep.mubr.bf16.mxu1 %v3014_v27  ;;  %v3082_v26 = vld [vmem:[%s3431_s13 + $0xcc] ss:$16 sps:$4 sm:$0xff]   ;;  %v3128_v27 = vld [vmem:[%s3431_s13 + $0x1c4] ss:$16 sps:$4 sm:$0xff]  }
  0x56   : > { %1578 = vmatprep.subr.bf16.mxu1 %v3358_v1  ;;  %1331 = vmatprep.mubr.bf16.mxu0 %v3056_v29  ;;  %v3176_v28 = vld [vmem:[%s4184_s4 + $0x30] sm:$0xff]   ;;  %v3085_v29 = vld [vmem:[%s3431_s13 + $0xc8] ss:$16 sps:$4 sm:$0xff]  }
  0x57   : > { %2869 = vmatprep.subr.bf16.mxu0 %v3176_v28 }
  0x58   : > { %2870 = vmatpush3.bf16.msra.mxu0 %v3176_v28 }
  0x59   : > { %1579 = vmatpush1.bf16.msra.mxu1 %v3013_v30  ;;  %v3132_v30 = vld [vmem:[%s3431_s13 + $0x1c0] ss:$16 sps:$4 sm:$0xff]  }
  0x5a   : > { %1580 = vmatprep.subr.bf16.mxu1 %v3358_v1 }
  0x5c   : > { %1524 = vmatmul.mubr.bf16.gmra.mxu1 %v3016_v31  ;;  %1332 = vmatmul.mubr.bf16.gmra.mxu0 %v3060_v32  ;;  %v3088_v31 = vld [vmem:[%s3431_s13 + $0xec] ss:$16 sps:$4 sm:$0xff]   ;;  %v3134_v32 = vld [vmem:[%s3431_s13 + $0x1e4] ss:$16 sps:$4 sm:$0xff]  }
  0x5d   : > { %1581 = vmatpush1.bf16.msra.mxu1 %v3017_v33  ;;  %1531 = vmatprep.mubr.bf16.mxu1 %v3019_v34  ;;  %v3091_v33 = vld [vmem:[%s3431_s13 + $0xe8] ss:$16 sps:$4 sm:$0xff]   ;;  %v3138_v34 = vld [vmem:[%s3431_s13 + $0x1e0] ss:$16 sps:$4 sm:$0xff]  }
  0x5e   : > { %1582 = vmatprep.subr.bf16.mxu1 %v3358_v1  ;;  %1339 = vmatprep.mubr.bf16.mxu0 %v3062_v35  ;;  %v3094_v35 = vld [vmem:[%s3431_s13 + $0x10c] ss:$16 sps:$4 sm:$0xff]  }
  0x61   : > { %1583 = vmatpush1.bf16.msra.mxu1 %v3018_v36  ;;  %v3140_v36 = vld [vmem:[%s3431_s13 + $0x204] ss:$16 sps:$4 sm:$0xff]  }
  0x62   : > { %1584 = vmatprep.subr.bf16.mxu1 %v3358_v1 }
  0x64   : > { %1532 = vmatmul.mubr.bf16.gmra.mxu1 %v3021_v37  ;;  %1340 = vmatmul.mubr.bf16.gmra.mxu0 %v3066_v38  ;;  %v3097_v37 = vld [vmem:[%s3431_s13 + $0x108] ss:$16 sps:$4 sm:$0xff]   ;;  %v3144_v38 = vld [vmem:[%s3431_s13 + $0x200] ss:$16 sps:$4 sm:$0xff]  }
  0x65   : > { %1585 = vmatpush1.bf16.msra.mxu1 %v3022_v39  ;;  %1539 = vmatprep.mubr.bf16.mxu1 %v3024_v40  ;;  %v3100_v39 = vld [vmem:[%s3431_s13 + $0x12c] ss:$16 sps:$4 sm:$0xff]   ;;  %v3146_v40 = vld [vmem:[%s3431_s13 + $0x224] ss:$16 sps:$4 sm:$0xff]  }
  0x66   : > { %1586 = vmatprep.subr.bf16.mxu1 %v3358_v1  ;;  %1347 = vmatprep.mubr.bf16.mxu0 %v3068_v41  ;;  %v3193_v41 = vld [vmem:[%s4184_s4 + $0x28] sm:$0xff]  }
  0x67   : > { %2871 = vmatprep.subr.bf16.mxu0 %v3193_v41 }
  0x68   : > { %2872 = vmatpush3.bf16.msra.mxu0 %v3193_v41 }
  0x69   : > { %1587 = vmatpush1.bf16.msra.mxu1 %v3023_v42  ;;  %v3194_v42 = vld [vmem:[%s4184_s4 + $0x20] sm:$0xff]  }
  0x6a   : > { %1588 = vmatprep.subr.bf16.mxu1 %v3358_v1  ;;  %2873 = vmatprep.subr.bf16.mxu0 %v3194_v42 }
  0x6c   : > { %1540 = vmatmul.mubr.bf16.gmra.mxu1 %v3026_v43  ;;  %1348 = vmatmul.mubr.bf16.gmra.mxu0 %v3072_v44  ;;  %v3103_v43 = vld [vmem:[%s3431_s13 + $0x128] ss:$16 sps:$4 sm:$0xff]   ;;  %v3150_v44 = vld [vmem:[%s3431_s13 + $0x220] ss:$16 sps:$4 sm:$0xff]  }
  0x6d   : > { %1589 = vmatpush2.bf16.msra.mxu1 %v3027_v45  ;;  %1547 = vmatprep.mubr.bf16.mxu1 %v3029_v46  ;;  %v3106_v45 = vld [vmem:[%s3431_s13 + $0x14c] ss:$16 sps:$4 sm:$0xff]   ;;  %v3152_v46 = vld [vmem:[%s3431_s13 + $0x244] ss:$16 sps:$4 sm:$0xff]  }
  0x6e   : > { %1590 = vmatprep.subr.bf16.mxu1 %v3358_v1  ;;  %1355 = vmatprep.mubr.bf16.mxu0 %v3074_v47  ;;  %v3198_v47 = vld [vmem:[%s4184_s4 + $0x18] sm:$0xff]  }
  0x6f   : > { %2874 = vmatpush3.bf16.msra.mxu0 %v3194_v42 }
  0x70   : > { %2875 = vmatprep.subr.bf16.mxu0 %v3198_v47 }
  0x71   : > { %1591 = vmatpush2.bf16.msra.mxu1 %v3028_v48  ;;  %v3199_v48 = vld [vmem:[%s4184_s4 + $0x10] sm:$0xff]  }
  0x72   : > { %1592 = vmatprep.subr.bf16.mxu1 %v3358_v1 }
  0x73   : > { %2876 = vmatpush3.bf16.msra.mxu0 %v3198_v47  ;;  %v3167_v47 = vld [vmem:[%s3431_s13 + $0x288] ss:$16 sps:$4 sm:$0xff]  }
  0x74   : > { %1548 = vmatmul.mubr.bf16.gmra.mxu1 %v3031_v49  ;;  %1356 = vmatmul.mubr.bf16.gmra.mxu0 %v3078_v50  ;;  %v3109_v49 = vld [vmem:[%s3431_s13 + $0x148] ss:$16 sps:$4 sm:$0xff]   ;;  %v3157_v50 = vld [vmem:[%s3431_s13 + $0x240] ss:$16 sps:$4 sm:$0xff]  }
  0x75   : > { %1593 = vmatpush2.bf16.msra.mxu1 %v3032_v51  ;;  %1555 = vmatprep.mubr.bf16.mxu1 %v3034_v52  ;;  %v3112_v51 = vld [vmem:[%s3431_s13 + $0x16c] ss:$16 sps:$4 sm:$0xff]   ;;  %v3159_v52 = vld [vmem:[%s3431_s13 + $0x264] ss:$16 sps:$4 sm:$0xff]  }
  0x76   : > { %1594 = vmatprep.subr.bf16.mxu1 %v3358_v1  ;;  %1363 = vmatprep.mubr.bf16.mxu0 %v3080_v53  ;;  %v3203_v53 = vld [vmem:[%s4184_s4 + $0x8] sm:$0xff]  }
  0x77   : > { %2877 = vmatprep.subr.bf16.mxu0 %v3199_v48 }
  0x78   : > { %2878 = vmatpush3.bf16.msra.mxu0 %v3199_v48 }
  0x79   : > { %1595 = vmatpush2.bf16.msra.mxu1 %v3033_v54  ;;  %2879 = vmatprep.subr.bf16.mxu0 %v3203_v53  ;;  %v3204_v54 = vld [vmem:[%s4184_s4] sm:$0xff]  }
  0x7a   : > { %1596 = vmatprep.subr.bf16.mxu1 %v3358_v1 }
  0x7c   : > { %1556 = vmatmul.mubr.bf16.gmra.mxu1 %v3036_v55  ;;  %1364 = vmatmul.mubr.bf16.gmra.mxu0 %v3084_v56  ;;  %v3115_v55 = vld [vmem:[%s3431_s13 + $0x168] ss:$16 sps:$4 sm:$0xff]   ;;  %v3163_v56 = vld [vmem:[%s3431_s13 + $0x260] ss:$16 sps:$4 sm:$0xff]  }
  0x7d   : > { %1597 = vmatpush2.bf16.msra.mxu1 %v3037_v57  ;;  %1563 = vmatprep.mubr.bf16.mxu1 %v3039_v58  ;;  %v3118_v57 = vld [vmem:[%s3431_s13 + $0x18c] ss:$16 sps:$4 sm:$0xff]   ;;  %v3165_v58 = vld [vmem:[%s3431_s13 + $0x284] ss:$16 sps:$4 sm:$0xff]  }
  0x7e   : > { %1598 = vmatprep.subr.bf16.mxu1 %v3358_v1  ;;  %1371 = vmatprep.mubr.bf16.mxu0 %v3086_v59  ;;  %v3121_v59 = vld [vmem:[%s3431_s13 + $0x188] ss:$16 sps:$4 sm:$0xff]  }
  0x7f   : > { %2880 = vmatpush3.bf16.msra.mxu0 %v3203_v53 }
  0x80   : > { %2881 = vmatprep.subr.bf16.mxu0 %v3204_v54 }
  0x81   : > { %1599 = vmatpush2.bf16.msra.mxu1 %v3038_v60  ;;  %v3170_v60 = vld [vmem:[%s3431_s13 + $0x280] ss:$16 sps:$4 sm:$0xff]  }
  0x82   : > { %1600 = vmatprep.subr.bf16.mxu1 %v3358_v1 }
  0x83   : > { %2882 = vmatpush3.bf16.msra.mxu0 %v3204_v54 }
  0x84   : > { %1564 = vmatmul.mubr.bf16.gmra.mxu1 %v3041_v61  ;;  %1372 = vmatmul.mubr.bf16.gmra.mxu0 %v3090_v62  ;;  %v3124_v61 = vld [vmem:[%s3431_s13 + $0x1ac] ss:$16 sps:$4 sm:$0xff]   ;;  %v3171_v62 = vld [vmem:[%s3431_s13 + $0x2a4] ss:$16 sps:$4 sm:$0xff]  }
  0x85   : > { %1601 = vmatpush2.bf16.msra.mxu1 %v3042_v63  ;;  %1604 = vmatprep.mubr.bf16.mxu1 %v3049_v0  ;;  %v3127_v63 = vld [vmem:[%s3431_s13 + $0x1a8] ss:$16 sps:$4 sm:$0xff]   ;;  %v3177_v0 = vld [vmem:[%s3431_s13 + $0x2a0] ss:$16 sps:$4 sm:$0xff]  }
  0x86   : > { %1602 = vmatprep.subr.bf16.mxu1 %v3358_v1  ;;  %1379 = vmatprep.mubr.bf16.mxu0 %v3092_v2  ;;  %v3061_v1 = vld [vmem:[%s3431_s13 + $0x48] ss:$16 sps:$4 sm:$0xff]   ;;  %v3130_v2 = vld [vmem:[%s3431_s13 + $0x1cc] ss:$16 sps:$4 sm:$0xff]  }
  0x89   : > { %1603 = vmatpush2.bf16.msra.mxu1 %v3043_v3  ;;  %v3178_v3 = vld [vmem:[%s3431_s13 + $0x2c4] ss:$16 sps:$4 sm:$0xff]  }
  0x8c   : > { %1605 = vmatmul.mubr.bf16.vlgmr.msra.gmra.mxu1 %v3047_v4  ;;  %1380 = vmatmul.mubr.bf16.gmra.mxu0 %v3096_v5  ;;  %v3133_v4 = vld [vmem:[%s3431_s13 + $0x1c8] ss:$16 sps:$4 sm:$0xff]   ;;  %v3183_v5 = vld [vmem:[%s3431_s13 + $0x2c0] ss:$16 sps:$4 sm:$0xff]  }
  0x8d   : > { %1612 = vmatprep.mubr.bf16.mxu1 %v3052_v6  ;;  %1387 = vmatprep.mubr.bf16.mxu0 %v3098_v7  ;;  %v3136_v6 = vld [vmem:[%s3431_s13 + $0x1ec] ss:$16 sps:$4 sm:$0xff]   ;;  %v3184_v7 = vld [vmem:[%s3431_s13 + $0x2e4] ss:$16 sps:$4 sm:$0xff]  }
  0x94   : > { %1613 = vmatmul.mubr.bf16.gmra.mxu1 %v3055_v8  ;;  %1388 = vmatmul.mubr.bf16.gmra.mxu0 %v3102_v9  ;;  %v3139_v8 = vld [vmem:[%s3431_s13 + $0x1e8] ss:$16 sps:$4 sm:$0xff]   ;;  %v3189_v9 = vld [vmem:[%s3431_s13 + $0x2e0] ss:$16 sps:$4 sm:$0xff]  }
  0x95   : > { %1620 = vmatprep.mubr.bf16.mxu1 %v3058_v10  ;;  %1395 = vmatprep.mubr.bf16.mxu0 %v3104_v11  ;;  %v3142_v10 = vld [vmem:[%s3431_s13 + $0x20c] ss:$16 sps:$4 sm:$0xff]   ;;  %v3145_v11 = vld [vmem:[%s3431_s13 + $0x208] ss:$16 sps:$4 sm:$0xff]  }
  0x9c   : > { %1621 = vmatmul.mubr.bf16.gmra.mxu1 %v3061_v1  ;;  %1396 = vmatmul.mubr.bf16.gmra.mxu0 %v3108_v12  ;;  %v3148_v1 = vld [vmem:[%s3431_s13 + $0x22c] ss:$16 sps:$4 sm:$0xff]  }
  0x9d   : > { %1628 = vmatprep.mubr.bf16.mxu1 %v3064_v13  ;;  %1403 = vmatprep.mubr.bf16.mxu0 %v3110_v14 }
  0xa4   : > { %1629 = vmatmul.mubr.bf16.gmra.mxu1 %v3067_v16  ;;  %1404 = vmatmul.mubr.bf16.gmra.mxu0 %v3114_v17  ;;  %v3151_v17 = vld [vmem:[%s3431_s13 + $0x228] ss:$16 sps:$4 sm:$0xff]  }
  0xa5   : > { %1636 = vmatprep.mubr.bf16.mxu1 %v3070_v18  ;;  %1411 = vmatprep.mubr.bf16.mxu0 %v3116_v19  ;;  %v3154_v19 = vld [vmem:[%s3431_s13 + $0x24c] ss:$16 sps:$4 sm:$0xff]  }
  0xac   : > { %1637 = vmatmul.mubr.bf16.gmra.mxu1 %v3073_v20  ;;  %1412 = vmatmul.mubr.bf16.gmra.mxu0 %v3120_v21 }
  0xad   : > { %1644 = vmatprep.mubr.bf16.mxu1 %v3076_v22  ;;  %1419 = vmatprep.mubr.bf16.mxu0 %v3122_v23 }
  0xb4   : > { %1645 = vmatmul.mubr.bf16.gmra.mxu1 %v3079_v24  ;;  %1420 = vmatmul.mubr.bf16.gmra.mxu0 %v3126_v25 }
  0xb5   : > { %1652 = vmatprep.mubr.bf16.mxu1 %v3082_v26  ;;  %1427 = vmatprep.mubr.bf16.mxu0 %v3128_v27  ;;  %v3158_v27 = vld [vmem:[%s3431_s13 + $0x248] ss:$16 sps:$4 sm:$0xff]  }
  0xbc   : > { %1653 = vmatmul.mubr.bf16.gmra.mxu1 %v3085_v29  ;;  %1428 = vmatmul.mubr.bf16.gmra.mxu0 %v3132_v30  ;;  %v3161_v29 = vld [vmem:[%s3431_s13 + $0x26c] ss:$16 sps:$4 sm:$0xff]  }
  0xbd   : > { %1660 = vmatprep.mubr.bf16.mxu1 %v3088_v31  ;;  %1435 = vmatprep.mubr.bf16.mxu0 %v3134_v32 }
  0xc4   : > { %1661 = vmatmul.mubr.bf16.gmra.mxu1 %v3091_v33  ;;  %1436 = vmatmul.mubr.bf16.gmra.mxu0 %v3138_v34 }
  0xc5   : > { %1668 = vmatprep.mubr.bf16.mxu1 %v3094_v35  ;;  %1443 = vmatprep.mubr.bf16.mxu0 %v3140_v36 }
  0xcc   : > { %1669 = vmatmul.mubr.bf16.gmra.mxu1 %v3097_v37  ;;  %1444 = vmatmul.mubr.bf16.gmra.mxu0 %v3144_v38  ;;  %v3164_v37 = vld [vmem:[%s3431_s13 + $0x268] ss:$16 sps:$4 sm:$0xff]  }
  0xcd   : > { %1676 = vmatprep.mubr.bf16.mxu1 %v3100_v39  ;;  %1451 = vmatprep.mubr.bf16.mxu0 %v3146_v40  ;;  %v3169_v39 = vld [vmem:[%s3431_s13 + $0x28c] ss:$16 sps:$4 sm:$0xff]  }
  0xd4   : > { %1677 = vmatmul.mubr.bf16.gmra.mxu1 %v3103_v43  ;;  %1452 = vmatmul.mubr.bf16.gmra.mxu0 %v3150_v44 }
  0xd5   : > { %1684 = vmatprep.mubr.bf16.mxu1 %v3106_v45  ;;  %1459 = vmatprep.mubr.bf16.mxu0 %v3152_v46 }
  0xdc   : > { %1685 = vmatmul.mubr.bf16.gmra.mxu1 %v3109_v49  ;;  %1460 = vmatmul.mubr.bf16.gmra.mxu0 %v3157_v50  ;;  %v3175_v49 = vld [vmem:[%s3431_s13 + $0x2ac] ss:$16 sps:$4 sm:$0xff]  }
  0xdd   : > { %1692 = vmatprep.mubr.bf16.mxu1 %v3112_v51  ;;  %1467 = vmatprep.mubr.bf16.mxu0 %v3159_v52 }
  0xe4   : > { %1693 = vmatmul.mubr.bf16.gmra.mxu1 %v3115_v55  ;;  %1468 = vmatmul.mubr.bf16.gmra.mxu0 %v3163_v56 }
  0xe5   : > { %1700 = vmatprep.mubr.bf16.mxu1 %v3118_v57  ;;  %1475 = vmatprep.mubr.bf16.mxu0 %v3165_v58  ;;  %v3173_v57 = vld [vmem:[%s3431_s13 + $0x2a8] ss:$16 sps:$4 sm:$0xff]  }
  0xec   : > { %1701 = vmatmul.mubr.bf16.gmra.mxu1 %v3121_v59  ;;  %1476 = vmatmul.mubr.bf16.gmra.mxu0 %v3170_v60  ;;  %v3182_v59 = vld [vmem:[%s3431_s13 + $0x2cc] ss:$16 sps:$4 sm:$0xff]  }
  0xed   : > { %1708 = vmatprep.mubr.bf16.mxu1 %v3124_v61  ;;  %1483 = vmatprep.mubr.bf16.mxu0 %v3171_v62 }
  0xf4   : > { %1709 = vmatmul.mubr.bf16.gmra.mxu1 %v3127_v63  ;;  %1484 = vmatmul.mubr.bf16.gmra.mxu0 %v3177_v0 }
  0xf5   : > { %1716 = vmatprep.mubr.bf16.mxu1 %v3130_v2  ;;  %1491 = vmatprep.mubr.bf16.mxu0 %v3178_v3 }
  0xfc   : > { %1717 = vmatmul.mubr.bf16.gmra.mxu1 %v3133_v4  ;;  %1492 = vmatmul.mubr.bf16.gmra.mxu0 %v3183_v5  ;;  %v3180_v4 = vld [vmem:[%s3431_s13 + $0x2c8] ss:$16 sps:$4 sm:$0xff]  }
  0xfd   : > { %1724 = vmatprep.mubr.bf16.mxu1 %v3136_v6  ;;  %1499 = vmatprep.mubr.bf16.mxu0 %v3184_v7  ;;  %v3188_v6 = vld [vmem:[%s3431_s13 + $0x2ec] ss:$16 sps:$4 sm:$0xff]  }
 0x104   : > { %1725 = vmatmul.mubr.bf16.gmra.mxu1 %v3139_v8  ;;  %1500 = vmatmul.mubr.bf16.gmra.mxu0 %v3189_v9 }
 0x105   : > { %1732 = vmatprep.mubr.bf16.mxu1 %v3142_v10 }
 0x10c   : > { %v3677_v12 = vpop.f32.mrf.mxu1  ;;  %1733 = vmatmul.mubr.bf16.gmra.mxu1 %v3145_v11  ;;  %v3679_v13 = vpop.f32.mrf.mxu0 }
 0x10d   : > { %1740 = vmatprep.mubr.bf16.mxu1 %v3148_v1 }
 0x10e   : > { %v1511_v14 = vpop.f32.mrf.mxu1  ;;  %v1319_v15 = vpop.f32.mrf.mxu0 }
 0x10f   : > { %v3186_v15 = vld [vmem:[%s3431_s13 + $0x2e8] ss:$16 sps:$4 sm:$0xff]  }
 0x110   : > { %v3681_v16 = vpop.f32.mrf.mxu1  ;;  %v3684_v18 = vpop.f32.mrf.mxu0 }
 0x112   : > { %v1514_v20 = vpop.f32.mrf.mxu1  ;;  %v1322_v21 = vpop.f32.mrf.mxu0 }
 0x114   : > { %v3687_v22 = vpop.f32.mrf.mxu1  ;;  %1741 = vmatmul.mubr.bf16.gmra.mxu1 %v3151_v17  ;;  %v3689_v23 = vpop.f32.mrf.mxu0 }
 0x115   : > { %1748 = vmatprep.mubr.bf16.mxu1 %v3154_v19  ;;  %v3192_v19 = vld [vmem:[%s3431_s13 + $0x30c] ss:$16 sps:$4 sm:$0xff]  }
 0x116   : > { %v1519_v24 = vpop.f32.mrf.mxu1  ;;  %v1327_v25 = vpop.f32.mrf.mxu0 }
 0x118   : > { %v3691_v26 = vpop.f32.mrf.mxu1  ;;  %v3694_v28 = vpop.f32.mrf.mxu0 }
 0x11a   : > { %v1522_v30 = vpop.f32.mrf.mxu1  ;;  %v1330_v31 = vpop.f32.mrf.mxu0 }
 0x11b   : > { %v3190_v31 = vld [vmem:[%s3431_s13 + $0x308] ss:$16 sps:$4 sm:$0xff]  }
 0x11c   : > { %v3697_v32 = vpop.f32.mrf.mxu1  ;;  %1749 = vmatmul.mubr.bf16.gmra.mxu1 %v3158_v27  ;;  %v3699_v33 = vpop.f32.mrf.mxu0 }
 0x11d   : > { %1756 = vmatprep.mubr.bf16.mxu1 %v3161_v29 }
 0x11e   : > { %v1527_v34 = vpop.f32.mrf.mxu1  ;;  %v1335_v35 = vpop.f32.mrf.mxu0 }
 0x11f   : > { %v3197_v35 = vld [vmem:[%s3431_s13 + $0x32c] ss:$16 sps:$4 sm:$0xff]  }
 0x120   : > { %v3701_v36 = vpop.f32.mrf.mxu1  ;;  %v3704_v38 = vpop.f32.mrf.mxu0 }
 0x122   : > { %v1530_v40 = vpop.f32.mrf.mxu1  ;;  %v1338_v41 = vpop.f32.mrf.mxu0 }
 0x123   : > { %v3760_v41 = vld [vmem:[%s4182_s2] ss:$0 sm:$0xff] }
 0x124   : > { %v3707_v42 = vpop.f32.mrf.mxu1  ;;  %1757 = vmatmul.mubr.bf16.gmra.mxu1 %v3164_v37  ;;  %v3709_v43 = vpop.f32.mrf.mxu0 }
 0x125   : > { %1764 = vmatprep.mubr.bf16.mxu1 %v3169_v39 }
 0x126   : > { %v1535_v44 = vpop.f32.mrf.mxu1  ;;  %v1343_v45 = vpop.f32.mrf.mxu0 }
 0x128   : > { %v3711_v46 = vpop.f32.mrf.mxu1  ;;  %v3714_v48 = vpop.f32.mrf.mxu0 }
 0x12a   : > { %v1538_v50 = vpop.f32.mrf.mxu1  ;;  %v1346_v51 = vpop.f32.mrf.mxu0 }
 0x12b   : > { %v3769_v51 = vld [vmem:[%s4183_s3] ss:$0 sm:$0xff] }
 0x12c   : > { %v3717_v52 = vpop.f32.mrf.mxu1  ;;  %1765 = vmatmul.mubr.bf16.gmra.mxu1 %v3167_v47  ;;  %v3719_v53 = vpop.f32.mrf.mxu0 }
 0x12d   : > { %1772 = vmatprep.mubr.bf16.mxu1 %v3175_v49 }
 0x12e   : > { %v1543_v54 = vpop.f32.mrf.mxu1  ;;  %v1351_v55 = vpop.f32.mrf.mxu0 }
 0x12f   : > { %v3195_v55 = vld [vmem:[%s3431_s13 + $0x328] ss:$16 sps:$4 sm:$0xff]  }
 0x130   : > { %v3721_v56 = vpop.f32.mrf.mxu1  ;;  %v3724_v58 = vpop.f32.mrf.mxu0 }
 0x132   : > { %v1546_v60 = vpop.f32.mrf.mxu1  ;;  %v1354_v61 = vpop.f32.mrf.mxu0 }
 0x133   : > { %v3202_v60 = vld [vmem:[%s3431_s13 + $0x34c] ss:$16 sps:$4 sm:$0xff]  }
 0x134   : > { %v3727_v62 = vpop.f32.mrf.mxu1  ;;  %1773 = vmatmul.mubr.bf16.gmra.mxu1 %v3173_v57  ;;  %v3729_v63 = vpop.f32.mrf.mxu0 }
 0x135   : > { %1780 = vmatprep.mubr.bf16.mxu1 %v3182_v59 }
 0x136   : > { %v1551_v0 = vpop.f32.mrf.mxu1  ;;  %v1359_v2 = vpop.f32.mrf.mxu0 }
 0x138   : > { %v3731_v3 = vpop.f32.mrf.mxu1  ;;  %v3734_v5 = vpop.f32.mrf.mxu0 }
 0x13a   : > { %v1554_v7 = vpop.f32.mrf.mxu1  ;;  %v1362_v8 = vpop.f32.mrf.mxu0 }
 0x13c   : > { %v3737_v9 = vpop.f32.mrf.mxu1  ;;  %1781 = vmatmul.mubr.bf16.gmra.mxu1 %v3180_v4  ;;  %v3739_v10 = vpop.f32.mrf.mxu0 }
 0x13d   : > { %1788 = vmatprep.mubr.bf16.mxu1 %v3188_v6 }
 0x13e   : > { %v1559_v11 = vpop.f32.mrf.mxu1  ;;  %v1367_v1 = vpop.f32.mrf.mxu0 }
 0x140   : > { %v3741_v14 = vpop.f32.mrf.mxu1  ;;  %v3744_v17 = vpop.f32.mrf.mxu0 }
 0x142   : > { %v1562_v20 = vpop.f32.mrf.mxu1  ;;  %v1370_v21 = vpop.f32.mrf.mxu0 }
 0x143   : > { %v3200_v21 = vld [vmem:[%s3431_s13 + $0x348] ss:$16 sps:$4 sm:$0xff]  }
 0x144   : > { %v3747_v24 = vpop.f32.mrf.mxu1  ;;  %1789 = vmatmul.mubr.bf16.gmra.mxu1 %v3186_v15  ;;  %v3749_v25 = vpop.f32.mrf.mxu0 }
 0x145   : > { %1796 = vmatprep.mubr.bf16.mxu1 %v3192_v19 }
 0x146   : > { %v1567_v27 = vpop.f32.mrf.mxu1  ;;  %v1375_v29 = vpop.f32.mrf.mxu0 }
 0x148   : > { %v3751_v30 = vpop.f32.mrf.mxu1  ;;  %v3754_v34 = vpop.f32.mrf.mxu0 }
 0x14a   : > { %v1570_v37 = vpop.f32.mrf.mxu1  ;;  %v1378_v39 = vpop.f32.mrf.mxu0 }
 0x14c   : > { %v1606_v40 = vpop.f32.mrf.mxu1  ;;  %1797 = vmatmul.mubr.bf16.gmra.mxu1 %v3190_v31  ;;  %v3762_v44 = vpop.f32.mrf.mxu0 }
 0x14d   : > { %v1607_v45 = vadd.f32 %v1606_v40, %v3679_v13  ;;  %1804 = vmatprep.mubr.bf16.mxu1 %v3197_v35  ;;  %v3207_v35 = vld [vmem:[%s3431_s13 + $0x36c] ss:$16 sps:$4 sm:$0xff]  }
 0x14e   : > { %v1608_v47 = vpop.f32.mrf.mxu1  ;;  %v1383_v49 = vpop.f32.mrf.mxu0 }
 0x14f   : > { %v1868_v50 = vmul.f32 %v3760_v41, %v1607_v45 }
 0x150   : > { %v1609_v54 = vpop.f32.mrf.mxu1  ;;  %v3772_v57 = vpop.f32.mrf.mxu0 }
 0x151   : > { %v1610_v59 = vadd.f32 %v1609_v54, %v3684_v18  ;;  %v1939_v0 = vadd.f32 %v3769_v51, %v1868_v50 }
 0x152   : > { %v1611_v61 = vpop.f32.mrf.mxu1  ;;  %v1386_v13 = vpop.f32.mrf.mxu0 }
 0x153   : > { %v1869_v2 = vmul.f32 %v3760_v41, %v1610_v59  ;;  %v2003_v1 = vmax.f32 %v1939_v0, 0.0  ;;  %v3205_v13 = vld [vmem:[%s3431_s13 + $0x368] ss:$16 sps:$4 sm:$0xff]  }
 0x154   : > { %v1614_v4 = vpop.f32.mrf.mxu1  ;;  %1805 = vmatmul.mubr.bf16.gmra.mxu1 %v3195_v55  ;;  %v3778_v6 = vpop.f32.mrf.mxu0 }
 0x155   : > { %v1940_v7 = vadd.f32 %v3769_v51, %v1869_v2  ;;  %v1615_v8 = vadd.f32 %v1614_v4, %v3689_v23  ;;  %1812 = vmatprep.mubr.bf16.mxu1 %v3202_v60 }
 0x156   : > { %v1616_v11 = vpop.f32.mrf.mxu1  ;;  %v1391_v18 = vpop.f32.mrf.mxu0 }
 0x157   : > { %v2004_v15 = vmax.f32 %v1940_v7, 0.0  ;;  %v1870_v19 = vmul.f32 %v3760_v41, %v1615_v8  ;;  %v3210_v7 = vld [vmem:[%s3431_s13 + $0x38c] ss:$16 sps:$4 sm:$0xff]  }
 0x158   : > { %v1617_v20 = vpop.f32.mrf.mxu1  ;;  %v3784_v27 = vpop.f32.mrf.mxu0 }
 0x159   : > { %v1618_v29 = vadd.f32 %v1617_v20, %v3694_v28  ;;  %v2067_v31 = vpack.c.bf16 %v2004_v15, %v2003_v1  ;;  %v1941_v23 = vadd.f32 %v3769_v51, %v1870_v19 }
 0x15a   : > { %v1619_v37 = vpop.f32.mrf.mxu1  ;;  %v1394_v39 = vpop.f32.mrf.mxu0 }
 0x15b   : > { %v1871_v40 = vmul.f32 %v3760_v41, %v1618_v29  ;;  %2883 = vmatprep.mubr.bf16.mxu0 %v2067_v31  ;;  %v2005_v55 = vmax.f32 %v1941_v23, 0.0  ;;  %v3208_v39 = vld [vmem:[%s3431_s13 + $0x388] ss:$16 sps:$4 sm:$0xff]  }
 0x15c   : > { %v1622_v45 = vpop.f32.mrf.mxu1  ;;  %1813 = vmatmul.mubr.bf16.gmra.mxu1 %v3200_v21  ;;  %v3790_v47 = vpop.f32.mrf.mxu0 }
 0x15d   : > { %v1942_v49 = vadd.f32 %v3769_v51, %v1871_v40  ;;  %v1623_v50 = vadd.f32 %v1622_v45, %v3699_v33  ;;  %1820 = vmatprep.mubr.bf16.mxu1 %v3207_v35 }
 0x15e   : > { %v1624_v28 = vpop.f32.mrf.mxu1  ;;  %v1399_v54 = vpop.f32.mrf.mxu0 }
 0x15f   : > { %v2006_v59 = vmax.f32 %v1942_v49, 0.0  ;;  %v1872_v60 = vmul.f32 %v3760_v41, %v1623_v50  ;;  %v3213_v49 = vld [vmem:[%s3431_s13 + $0x3ac] ss:$16 sps:$4 sm:$0xff]  }
 0x160   : > { %v1625_v61 = vpop.f32.mrf.mxu1  ;;  %v3796_v0 = vpop.f32.mrf.mxu0 }
 0x161   : > { %v2068_v2 = vpack.c.bf16 %v2006_v59, %v2005_v55  ;;  %v1626_v4 = vadd.f32 %v1625_v61, %v3704_v38  ;;  %v1943_v33 = vadd.f32 %v3769_v51, %v1872_v60 }
 0x162   : > { %v1627_v8 = vpop.f32.mrf.mxu1  ;;  %v1402_v11 = vpop.f32.mrf.mxu0 }
 0x163   : > { %v1873_v18 = vmul.f32 %v3760_v41, %v1626_v4  ;;  %2884 = vmatmul.mubr.bf16.vlgmr.msra.gmra.mxu0 %v2068_v2  ;;  %v2007_v29 = vmax.f32 %v1943_v33, 0.0  ;;  %v3211_v11 = vld [vmem:[%s3431_s13 + $0x3a8] ss:$16 sps:$4 sm:$0xff]  }
 0x164   : > { %v1630_v1 = vpop.f32.mrf.mxu1  ;;  %1821 = vmatmul.mubr.bf16.gmra.mxu1 %v3205_v13  ;;  %v3802_v15 = vpop.f32.mrf.mxu0 }
 0x165   : > { %v1944_v19 = vadd.f32 %v3769_v51, %v1873_v18  ;;  %v1631_v20 = vadd.f32 %v1630_v1, %v3709_v43  ;;  %1828 = vmatprep.mubr.bf16.mxu1 %v3210_v7 }
 0x166   : > { %v1632_v38 = vpop.f32.mrf.mxu1  ;;  %v1407_v21 = vpop.f32.mrf.mxu0 }
 0x167   : > { %v2008_v31 = vmax.f32 %v1944_v19, 0.0  ;;  %v1874_v35 = vmul.f32 %v3760_v41, %v1631_v20  ;;  %v3216_v19 = vld [vmem:[%s3431_s13 + $0x3cc] ss:$16 sps:$4 sm:$0xff]  }
 0x168   : > { %v1633_v37 = vpop.f32.mrf.mxu1  ;;  %v3808_v23 = vpop.f32.mrf.mxu0 }
 0x169   : > { %v1634_v40 = vadd.f32 %v1633_v37, %v3714_v48  ;;  %v2069_v45 = vpack.c.bf16 %v2008_v31, %v2007_v29  ;;  %v1945_v43 = vadd.f32 %v3769_v51, %v1874_v35 }
 0x16a   : > { %v1635_v50 = vpop.f32.mrf.mxu1  ;;  %v1410_v28 = vpop.f32.mrf.mxu0 }
 0x16b   : > { %v1875_v54 = vmul.f32 %v3760_v41, %v1634_v40  ;;  %2887 = vmatprep.mubr.bf16.mxu0 %v2069_v45  ;;  %v2009_v2 = vmax.f32 %v1945_v43, 0.0  ;;  %v3214_v28 = vld [vmem:[%s3431_s13 + $0x3c8] ss:$16 sps:$4 sm:$0xff]  }
 0x16c   : > { %v1638_v55 = vpop.f32.mrf.mxu1  ;;  %1829 = vmatmul.mubr.bf16.gmra.mxu1 %v3208_v39  ;;  %v3814_v59 = vpop.f32.mrf.mxu0 }
 0x16d   : > { %v1946_v60 = vadd.f32 %v3769_v51, %v1875_v54  ;;  %v1639_v61 = vadd.f32 %v1638_v55, %v3719_v53  ;;  %1836 = vmatprep.mubr.bf16.mxu1 %v3213_v49 }
 0x16e   : > { %v1640_v48 = vpop.f32.mrf.mxu1  ;;  %v1415_v13 = vpop.f32.mrf.mxu0 }
 0x16f   : > { %v2010_v4 = vmax.f32 %v1946_v60, 0.0  ;;  %v1876_v7 = vmul.f32 %v3760_v41, %v1639_v61  ;;  %v3219_v60 = vld [vmem:[%s3431_s13 + $0x3ec] ss:$16 sps:$4 sm:$0xff]  }
 0x170   : > { %v1641_v8 = vpop.f32.mrf.mxu1  ;;  %v3820_v33 = vpop.f32.mrf.mxu0 }
 0x171   : > { %v1642_v18 = vadd.f32 %v1641_v8, %v3724_v58  ;;  %v2070_v1 = vpack.c.bf16 %v2010_v4, %v2009_v2  ;;  %v1947_v53 = vadd.f32 %v3769_v51, %v1876_v7 }
 0x172   : > { %v1643_v20 = vpop.f32.mrf.mxu1  ;;  %v1418_v38 = vpop.f32.mrf.mxu0 }
 0x173   : > { %v1877_v21 = vmul.f32 %v3760_v41, %v1642_v18  ;;  %2888 = vmatmul.mubr.bf16.gmra.mxu0 %v2070_v1  ;;  %v2011_v40 = vmax.f32 %v1947_v53, 0.0  ;;  %v3217_v38 = vld [vmem:[%s3431_s13 + $0x3e8] ss:$16 sps:$4 sm:$0xff]  }
 0x174   : > { %v1646_v29 = vpop.f32.mrf.mxu1  ;;  %1837 = vmatmul.mubr.bf16.gmra.mxu1 %v3211_v11  ;;  %v3826_v31 = vpop.f32.mrf.mxu0 }
 0x175   : > { %v1948_v35 = vadd.f32 %v3769_v51, %v1877_v21  ;;  %v1647_v37 = vadd.f32 %v1646_v29, %v3729_v63  ;;  %1844 = vmatprep.mubr.bf16.mxu1 %v3216_v19 }
 0x176   : > { %v1648_v58 = vpop.f32.mrf.mxu1  ;;  %v1423_v39 = vpop.f32.mrf.mxu0 }
 0x177   : > { %v2012_v45 = vmax.f32 %v1948_v35, 0.0  ;;  %v1878_v49 = vmul.f32 %v3760_v41, %v1647_v37 }
 0x178   : > { %v1649_v50 = vpop.f32.mrf.mxu1  ;;  %v3832_v43 = vpop.f32.mrf.mxu0 }
 0x179   : > { %v1650_v54 = vadd.f32 %v1649_v50, %v3734_v5  ;;  %v2071_v55 = vpack.c.bf16 %v2012_v45, %v2011_v40  ;;  %v1949_v63 = vadd.f32 %v3769_v51, %v1878_v49 }
 0x17a   : > { %v1651_v61 = vpop.f32.mrf.mxu1  ;;  %v1426_v48 = vpop.f32.mrf.mxu0 }
 0x17b   : > { %v1879_v13 = vmul.f32 %v3760_v41, %v1650_v54  ;;  %2891 = vmatprep.mubr.bf16.mxu0 %v2071_v55  ;;  %v2013_v18 = vmax.f32 %v1949_v63, 0.0 }
 0x17c   : > { %v1654_v2 = vpop.f32.mrf.mxu1  ;;  %1845 = vmatmul.mubr.bf16.gmra.mxu1 %v3214_v28  ;;  %v3838_v4 = vpop.f32.mrf.mxu0 }
 0x17d   : > { %v1950_v7 = vadd.f32 %v3769_v51, %v1879_v13  ;;  %v1655_v8 = vadd.f32 %v1654_v2, %v3739_v10  ;;  %1852 = vmatprep.mubr.bf16.mxu1 %v3219_v60 }
 0x17e   : > { %v1656_v5 = vpop.f32.mrf.mxu1  ;;  %v1431_v11 = vpop.f32.mrf.mxu0 }
 0x17f   : > { %v2014_v1 = vmax.f32 %v1950_v7, 0.0  ;;  %v1880_v19 = vmul.f32 %v3760_v41, %v1655_v8 }
 0x180   : > { %v1657_v20 = vpop.f32.mrf.mxu1  ;;  %v3844_v53 = vpop.f32.mrf.mxu0 }
 0x181   : > { %v1658_v21 = vadd.f32 %v1657_v20, %v3744_v17  ;;  %v2072_v29 = vpack.c.bf16 %v2014_v1, %v2013_v18  ;;  %v1951_v58 = vadd.f32 %v3769_v51, %v1880_v19 }
 0x182   : > { %v1659_v35 = vpop.f32.mrf.mxu1  ;;  %v1434_v37 = vpop.f32.mrf.mxu0 }
 0x183   : > { %v1881_v10 = vmul.f32 %v3760_v41, %v1658_v21  ;;  %2892 = vmatmul.mubr.bf16.gmra.mxu0 %v2072_v29  ;;  %v2015_v54 = vmax.f32 %v1951_v58, 0.0 }
 0x184   : > { %v1662_v39 = vpop.f32.mrf.mxu1  ;;  %1853 = vmatmul.mubr.bf16.gmra.mxu1 %v3217_v38  ;;  %v3849_v40 = vpop.f32.mrf.mxu0 }
 0x185   : > { %v1952_v45 = vadd.f32 %v3769_v51, %v1881_v10  ;;  %v1663_v49 = vadd.f32 %v1662_v39, %v3749_v25 }
 0x186   : > { %v1664_v50 = vpop.f32.mrf.mxu1  ;;  %v1439_v28 = vpop.f32.mrf.mxu0 }
 0x187   : > { %v2016_v17 = vmax.f32 %v1952_v45, 0.0  ;;  %v1882_v55 = vmul.f32 %v3760_v41, %v1663_v49 }
 0x188   : > { %v1665_v60 = vpop.f32.mrf.mxu1  ;;  %v3854_v61 = vpop.f32.mrf.mxu0 }
 0x189   : > { %v1666_v48 = vadd.f32 %v1665_v60, %v3754_v34  ;;  %v2073_v63 = vpack.c.bf16 %v2016_v17, %v2015_v54  ;;  %v1953_v7 = vadd.f32 %v3769_v51, %v1882_v55 }
 0x18a   : > { %v1667_v13 = vpop.f32.mrf.mxu1  ;;  %v1442_v2 = vpop.f32.mrf.mxu0 }
 0x18b   : > { %v1883_v8 = vmul.f32 %v3760_v41, %v1666_v48  ;;  %2895 = vmatprep.mubr.bf16.mxu0 %v2073_v63  ;;  %v2017_v20 = vmax.f32 %v1953_v7, 0.0 }
 0x18c   : > { %v1670_v25 = vpop.f32.mrf.mxu1  ;;  %v3859_v5 = vpop.f32.mrf.mxu0 }
 0x18d   : > { %v1954_v11 = vadd.f32 %v3769_v51, %v1883_v8  ;;  %v1671_v18 = vadd.f32 %v1670_v25, %v3762_v44 }
 0x18e   : > { %v1672_v1 = vpop.f32.mrf.mxu1  ;;  %v1447_v19 = vpop.f32.mrf.mxu0 }
 0x18f   : > { %v2018_v38 = vmax.f32 %v1954_v11, 0.0  ;;  %v1884_v34 = vmul.f32 %v3760_v41, %v1671_v18 }
 0x190   : > { %v1673_v21 = vpop.f32.mrf.mxu1  ;;  %v3864_v29 = vpop.f32.mrf.mxu0 }
 0x191   : > { %v1674_v35 = vadd.f32 %v1673_v21, %v3772_v57  ;;  %v2074_v37 = vpack.c.bf16 %v2018_v38, %v2017_v20  ;;  %v1955_v39 = vadd.f32 %v3769_v51, %v1884_v34 }
 0x192   : > { %v1675_v58 = vpop.f32.mrf.mxu1  ;;  %v1450_v10 = vpop.f32.mrf.mxu0 }
 0x193   : > { %v1885_v45 = vmul.f32 %v3760_v41, %v1674_v35  ;;  %2896 = vmatmul.mubr.bf16.gmra.mxu0 %v2074_v37  ;;  %v2019_v55 = vmax.f32 %v1955_v39, 0.0 }
 0x194   : > { %v1678_v44 = vpop.f32.mrf.mxu1  ;;  %v3869_v49 = vpop.f32.mrf.mxu0 }
 0x195   : > { %v1956_v50 = vadd.f32 %v3769_v51, %v1885_v45  ;;  %v1679_v28 = vadd.f32 %v1678_v44, %v3778_v6 }
 0x196   : > { %v1680_v54 = vpop.f32.mrf.mxu1  ;;  %v1455_v17 = vpop.f32.mrf.mxu0 }
 0x197   : > { %v2020_v60 = vmax.f32 %v1956_v50, 0.0  ;;  %v1886_v57 = vmul.f32 %v3760_v41, %v1679_v28 }
 0x198   : > { %v1681_v48 = vpop.f32.mrf.mxu1  ;;  %v3874_v63 = vpop.f32.mrf.mxu0 }
 0x199   : > { %v1682_v13 = vadd.f32 %v1681_v48, %v3784_v27  ;;  %v2075_v2 = vpack.c.bf16 %v2020_v60, %v2019_v55  ;;  %v1957_v25 = vadd.f32 %v3769_v51, %v1886_v57 }
 0x19a   : > { %v1683_v7 = vpop.f32.mrf.mxu1  ;;  %v1458_v8 = vpop.f32.mrf.mxu0 }
 0x19b   : > { %v1887_v11 = vmul.f32 %v3760_v41, %v1682_v13  ;;  %2899 = vmatprep.mubr.bf16.mxu0 %v2075_v2  ;;  %v2021_v34 = vmax.f32 %v1957_v25, 0.0 }
 0x19c   : > { %v1686_v6 = vpop.f32.mrf.mxu1  ;;  %v3879_v18 = vpop.f32.mrf.mxu0 }
 0x19d   : > { %v1958_v1 = vadd.f32 %v3769_v51, %v1887_v11  ;;  %v1687_v19 = vadd.f32 %v1686_v6, %v3790_v47 }
 0x19e   : > { %v1688_v20 = vpop.f32.mrf.mxu1  ;;  %v1463_v38 = vpop.f32.mrf.mxu0 }
 0x19f   : > { %v2022_v21 = vmax.f32 %v1958_v1, 0.0  ;;  %v1888_v27 = vmul.f32 %v3760_v41, %v1687_v19 }
 0x1a0   : > { %v1689_v35 = vpop.f32.mrf.mxu1  ;;  %v3884_v37 = vpop.f32.mrf.mxu0 }
 0x1a1   : > { %v2076_v58 = vpack.c.bf16 %v2022_v21, %v2021_v34  ;;  %v1690_v10 = vadd.f32 %v1689_v35, %v3796_v0  ;;  %v1959_v44 = vadd.f32 %v3769_v51, %v1888_v27 }
 0x1a2   : > { %v1691_v39 = vpop.f32.mrf.mxu1  ;;  %v1466_v45 = vpop.f32.mrf.mxu0 }
 0x1a3   : > { %v1889_v50 = vmul.f32 %v3760_v41, %v1690_v10  ;;  %2900 = vmatmul.mubr.bf16.gmra.mxu0 %v2076_v58  ;;  %v2023_v57 = vmax.f32 %v1959_v44, 0.0 }
 0x1a4   : > { %v1694_v47 = vpop.f32.mrf.mxu1  ;;  %v3889_v28 = vpop.f32.mrf.mxu0 }
 0x1a5   : > { %v1960_v54 = vadd.f32 %v3769_v51, %v1889_v50  ;;  %v1695_v17 = vadd.f32 %v1694_v47, %v3802_v15 }
 0x1a6   : > { %v1696_v55 = vpop.f32.mrf.mxu1  ;;  %v1471_v60 = vpop.f32.mrf.mxu0 }
 0x1a7   : > { %v2024_v48 = vmax.f32 %v1960_v54, 0.0  ;;  %v1890_v0 = vmul.f32 %v3760_v41, %v1695_v17 }
 0x1a8   : > { %v1697_v13 = vpop.f32.mrf.mxu1  ;;  %v3894_v2 = vpop.f32.mrf.mxu0 }
 0x1a9   : > { %v1698_v7 = vadd.f32 %v1697_v13, %v3808_v23  ;;  %v2077_v8 = vpack.c.bf16 %v2024_v48, %v2023_v57  ;;  %v1961_v6 = vadd.f32 %v3769_v51, %v1890_v0 }
 0x1aa   : > { %v1699_v25 = vpop.f32.mrf.mxu1  ;;  %v1474_v11 = vpop.f32.mrf.mxu0 }
 0x1ab   : > { %v1891_v1 = vmul.f32 %v3760_v41, %v1698_v7  ;;  %2903 = vmatprep.mubr.bf16.mxu0 %v2077_v8  ;;  %v2025_v27 = vmax.f32 %v1961_v6, 0.0 }
 0x1ac   : > { %v1702_v15 = vpop.f32.mrf.mxu1  ;;  %v3899_v19 = vpop.f32.mrf.mxu0 }
 0x1ad   : > { %v1962_v20 = vadd.f32 %v3769_v51, %v1891_v1  ;;  %v1703_v38 = vadd.f32 %v1702_v15, %v3814_v59 }
 0x1ae   : > { %v1704_v34 = vpop.f32.mrf.mxu1  ;;  %v1479_v21 = vpop.f32.mrf.mxu0 }
 0x1af   : > { %v2026_v35 = vmax.f32 %v1962_v20, 0.0  ;;  %v1892_v23 = vmul.f32 %v3760_v41, %v1703_v38 }
 0x1b0   : > { %v1705_v58 = vpop.f32.mrf.mxu1  ;;  %v3904_v10 = vpop.f32.mrf.mxu0 }
 0x1b1   : > { %v2078_v39 = vpack.c.bf16 %v2026_v35, %v2025_v27  ;;  %v1706_v45 = vadd.f32 %v1705_v58, %v3820_v33  ;;  %v1963_v47 = vadd.f32 %v3769_v51, %v1892_v23 }
 0x1b2   : > { %v1707_v44 = vpop.f32.mrf.mxu1  ;;  %v1482_v50 = vpop.f32.mrf.mxu0 }
 0x1b3   : > { %v1893_v54 = vmul.f32 %v3760_v41, %v1706_v45  ;;  %2904 = vmatmul.mubr.bf16.gmra.mxu0 %v2078_v39  ;;  %v2027_v0 = vmax.f32 %v1963_v47, 0.0 }
 0x1b4   : > { %v1710_v59 = vpop.f32.mrf.mxu1  ;;  %v3909_v17 = vpop.f32.mrf.mxu0 }
 0x1b5   : > { %v1964_v55 = vadd.f32 %v3769_v51, %v1893_v54  ;;  %v1711_v60 = vadd.f32 %v1710_v59, %v3826_v31 }
 0x1b6   : > { %v1712_v57 = vpop.f32.mrf.mxu1  ;;  %v1487_v48 = vpop.f32.mrf.mxu0 }
 0x1b7   : > { %v2028_v13 = vmax.f32 %v1964_v55, 0.0  ;;  %v1894_v33 = vmul.f32 %v3760_v41, %v1711_v60 }
 0x1b8   : > { %v1713_v7 = vpop.f32.mrf.mxu1  ;;  %v3914_v8 = vpop.f32.mrf.mxu0 }
 0x1b9   : > { %v1714_v25 = vadd.f32 %v1713_v7, %v3832_v43  ;;  %v2079_v11 = vpack.c.bf16 %v2028_v13, %v2027_v0  ;;  %v1965_v15 = vadd.f32 %v3769_v51, %v1894_v33 }
 0x1ba   : > { %v1715_v6 = vpop.f32.mrf.mxu1  ;;  %v1490_v1 = vpop.f32.mrf.mxu0 }
 0x1bb   : > { %v1895_v20 = vmul.f32 %v3760_v41, %v1714_v25  ;;  %2907 = vmatprep.mubr.bf16.mxu0 %v2079_v11  ;;  %v2029_v23 = vmax.f32 %v1965_v15, 0.0 }
 0x1bc   : > { %v1718_v31 = vpop.f32.mrf.mxu1  ;;  %v3919_v38 = vpop.f32.mrf.mxu0 }
 0x1bd   : > { %v1966_v34 = vadd.f32 %v3769_v51, %v1895_v20  ;;  %v1719_v21 = vadd.f32 %v1718_v31, %v3838_v4 }
 0x1be   : > { %v1720_v27 = vpop.f32.mrf.mxu1  ;;  %v1495_v35 = vpop.f32.mrf.mxu0 }
 0x1bf   : > { %v2030_v58 = vmax.f32 %v1966_v34, 0.0  ;;  %v1896_v43 = vmul.f32 %v3760_v41, %v1719_v21 }
 0x1c0   : > { %v1721_v39 = vpop.f32.mrf.mxu1  ;;  %v3924_v45 = vpop.f32.mrf.mxu0 }
 0x1c1   : > { %v2080_v44 = vpack.c.bf16 %v2030_v58, %v2029_v23  ;;  %v1722_v50 = vadd.f32 %v1721_v39, %v3844_v53  ;;  %v1967_v59 = vadd.f32 %v3769_v51, %v1896_v43 }
 0x1c2   : > { %v1723_v47 = vpop.f32.mrf.mxu1  ;;  %v1498_v54 = vpop.f32.mrf.mxu0 }
 0x1c3   : > { %v1897_v55 = vmul.f32 %v3760_v41, %v1722_v50  ;;  %2908 = vmatmul.mubr.bf16.gmra.mxu0 %v2080_v44  ;;  %v2031_v33 = vmax.f32 %v1967_v59, 0.0 }
 0x1c4   : > { %v1726_v4 = vpop.f32.mrf.mxu1  ;;  %v3929_v60 = vpop.f32.mrf.mxu0 }
 0x1c5   : > { %v1968_v57 = vadd.f32 %v3769_v51, %v1897_v55  ;;  %v1727_v48 = vadd.f32 %v1726_v4, %v3849_v40 }
 0x1c6   : > { %v1728_v0 = vpop.f32.mrf.mxu1  ;;  %v1503_v13 = vpop.f32.mrf.mxu0 }
 0x1c7   : > { %v2032_v7 = vmax.f32 %v1968_v57, 0.0  ;;  %v1898_v53 = vmul.f32 %v3760_v41, %v1727_v48 }
 0x1c8   : > { %v1729_v25 = vpop.f32.mrf.mxu1  ;;  %v3934_v11 = vpop.f32.mrf.mxu0 }
 0x1c9   : > { %v1730_v6 = vadd.f32 %v1729_v25, %v3854_v61  ;;  %v2081_v1 = vpack.c.bf16 %v2032_v7, %v2031_v33  ;;  %v1969_v31 = vadd.f32 %v3769_v51, %v1898_v53 }
 0x1ca   : > { %v1731_v15 = vpop.f32.mrf.mxu1  ;;  %v1506_v20 = vpop.f32.mrf.mxu0 }
 0x1cb   : > { %v1899_v34 = vmul.f32 %v3760_v41, %v1730_v6  ;;  %2911 = vmatprep.mubr.bf16.mxu0 %v2081_v1  ;;  %v2033_v23 = vmax.f32 %v1969_v31, 0.0 }
 0x1cc   : > { %v1734_v40 = vpop.f32.mrf.mxu1 }
 0x1cd   : > { %v1970_v21 = vadd.f32 %v3769_v51, %v1899_v34  ;;  %v1735_v27 = vadd.f32 %v1734_v40, %v3859_v5 }
 0x1ce   : > { %v1736_v35 = vpop.f32.mrf.mxu1 }
 0x1cf   : > { %v2034_v58 = vmax.f32 %v1970_v21, 0.0  ;;  %v1900_v43 = vmul.f32 %v3760_v41, %v1735_v27 }
 0x1d0   : > { %v1737_v39 = vpop.f32.mrf.mxu1 }
 0x1d1   : > { %v2082_v61 = vpack.c.bf16 %v2034_v58, %v2033_v23  ;;  %v1738_v44 = vadd.f32 %v1737_v39, %v3864_v29  ;;  %v1971_v47 = vadd.f32 %v3769_v51, %v1900_v43 }
 0x1d2   : > { %v1739_v50 = vpop.f32.mrf.mxu1 }
 0x1d3   : > { %v1901_v54 = vmul.f32 %v3760_v41, %v1738_v44  ;;  %2912 = vmatmul.mubr.bf16.gmra.mxu0 %v2082_v61  ;;  %v2035_v57 = vmax.f32 %v1971_v47, 0.0 }
 0x1d4   : > { %v1742_v59 = vpop.f32.mrf.mxu1 }
 0x1d5   : > { %v1972_v55 = vadd.f32 %v3769_v51, %v1901_v54  ;;  %v1743_v5 = vadd.f32 %v1742_v59, %v3869_v49 }
 0x1d6   : > { %v1744_v4 = vpop.f32.mrf.mxu1 }
 0x1d7   : > { %v2036_v48 = vmax.f32 %v1972_v55, 0.0  ;;  %v1902_v0 = vmul.f32 %v3760_v41, %v1743_v5 }
 0x1d8   : > { %v1745_v13 = vpop.f32.mrf.mxu1 }
 0x1d9   : > { %v1746_v33 = vadd.f32 %v1745_v13, %v3874_v63  ;;  %v2083_v29 = vpack.c.bf16 %v2036_v48, %v2035_v57  ;;  %v1973_v53 = vadd.f32 %v3769_v51, %v1902_v0 }
 0x1da   : > { %v1747_v7 = vpop.f32.mrf.mxu1 }
 0x1db   : > { %v1903_v25 = vmul.f32 %v3760_v41, %v1746_v33  ;;  %2915 = vmatprep.mubr.bf16.mxu0 %v2083_v29  ;;  %v2037_v20 = vmax.f32 %v1973_v53, 0.0 }
 0x1dc   : > { %v1750_v6 = vpop.f32.mrf.mxu1 }
 0x1dd   : > { %v1974_v1 = vadd.f32 %v3769_v51, %v1903_v25  ;;  %v1751_v49 = vadd.f32 %v1750_v6, %v3879_v18 }
 0x1de   : > { %v1752_v15 = vpop.f32.mrf.mxu1 }
 0x1df   : > { %v2038_v31 = vmax.f32 %v1974_v1, 0.0  ;;  %v1904_v34 = vmul.f32 %v3760_v41, %v1751_v49 }
 0x1e0   : > { %v1753_v40 = vpop.f32.mrf.mxu1 }
 0x1e1   : > { %v2084_v21 = vpack.c.bf16 %v2038_v31, %v2037_v20  ;;  %v1754_v63 = vadd.f32 %v1753_v40, %v3884_v37  ;;  %v1975_v35 = vadd.f32 %v3769_v51, %v1904_v34 }
 0x1e2   : > { %v1755_v27 = vpop.f32.mrf.mxu1 }
 0x1e3   : > { %v1905_v23 = vmul.f32 %v3760_v41, %v1754_v63  ;;  %2916 = vmatmul.mubr.bf16.gmra.mxu0 %v2084_v21  ;;  %v2039_v61 = vmax.f32 %v1975_v35, 0.0 }
 0x1e4   : > { %v1758_v58 = vpop.f32.mrf.mxu1 }
 0x1e5   : > { %v1976_v43 = vadd.f32 %v3769_v51, %v1905_v23  ;;  %v1759_v18 = vadd.f32 %v1758_v58, %v3889_v28 }
 0x1e6   : > { %v1760_v39 = vpop.f32.mrf.mxu1 }
 0x1e7   : > { %v2040_v44 = vmax.f32 %v1976_v43, 0.0  ;;  %v1906_v50 = vmul.f32 %v3760_v41, %v1759_v18 }
 0x1e8   : > { %v1761_v47 = vpop.f32.mrf.mxu1 }
 0x1e9   : > { %v1762_v54 = vadd.f32 %v1761_v47, %v3894_v2  ;;  %v2085_v37 = vpack.c.bf16 %v2040_v44, %v2039_v61  ;;  %v1977_v55 = vadd.f32 %v3769_v51, %v1906_v50 }
 0x1ea   : > { %v1763_v59 = vpop.f32.mrf.mxu1 }
 0x1eb   : > { %v1907_v5 = vmul.f32 %v3760_v41, %v1762_v54  ;;  %2919 = vmatprep.mubr.bf16.mxu0 %v2085_v37  ;;  %v2041_v0 = vmax.f32 %v1977_v55, 0.0 }
 0x1ec   : > { %v1766_v4 = vpop.f32.mrf.mxu1 }
 0x1ed   : > { %v1978_v57 = vadd.f32 %v3769_v51, %v1907_v5  ;;  %v1767_v28 = vadd.f32 %v1766_v4, %v3899_v19 }
 0x1ee   : > { %v1768_v48 = vpop.f32.mrf.mxu1 }
 0x1ef   : > { %v2042_v13 = vmax.f32 %v1978_v57, 0.0  ;;  %v1908_v33 = vmul.f32 %v3760_v41, %v1767_v28 }
 0x1f0   : > { %v1769_v29 = vpop.f32.mrf.mxu1 }
 0x1f1   : > { %v2086_v7 = vpack.c.bf16 %v2042_v13, %v2041_v0  ;;  %v1770_v2 = vadd.f32 %v1769_v29, %v3904_v10  ;;  %v1979_v25 = vadd.f32 %v3769_v51, %v1908_v33 }
 0x1f2   : > { %v1771_v53 = vpop.f32.mrf.mxu1 }
 0x1f3   : > { %v1909_v6 = vmul.f32 %v3760_v41, %v1770_v2  ;;  %2920 = vmatmul.mubr.bf16.gmra.mxu0 %v2086_v7  ;;  %v2043_v20 = vmax.f32 %v1979_v25, 0.0 }
 0x1f4   : > { %v1774_v1 = vpop.f32.mrf.mxu1 }
 0x1f5   : > { %v1980_v49 = vadd.f32 %v3769_v51, %v1909_v6  ;;  %v1775_v19 = vadd.f32 %v1774_v1, %v3909_v17 }
 0x1f6   : > { %v1776_v15 = vpop.f32.mrf.mxu1 }
 0x1f7   : > { %v2044_v31 = vmax.f32 %v1980_v49, 0.0  ;;  %v1910_v34 = vmul.f32 %v3760_v41, %v1775_v19 }
 0x1f8   : > { %v1777_v40 = vpop.f32.mrf.mxu1 }
 0x1f9   : > { %v1778_v21 = vadd.f32 %v1777_v40, %v3914_v8  ;;  %v2087_v10 = vpack.c.bf16 %v2044_v31, %v2043_v20  ;;  %v1981_v27 = vadd.f32 %v3769_v51, %v1910_v34 }
 0x1fa   : > { %v1779_v63 = vpop.f32.mrf.mxu1 }
 0x1fb   : > { %v1911_v35 = vmul.f32 %v3760_v41, %v1778_v21  ;;  %2923 = vmatprep.mubr.bf16.mxu0 %v2087_v10  ;;  %v2045_v18 = vmax.f32 %v1981_v27, 0.0 }
 0x1fc   : > { %v1782_v23 = vpop.f32.mrf.mxu1 }
 0x1fd   : > { %v1982_v58 = vadd.f32 %v3769_v51, %v1911_v35  ;;  %v1783_v17 = vadd.f32 %v1782_v23, %v3919_v38 }
 0x1fe   : > { %v1784_v43 = vpop.f32.mrf.mxu1 }
 0x1ff   : > { %v2046_v39 = vmax.f32 %v1982_v58, 0.0  ;;  %v1912_v61 = vmul.f32 %v3760_v41, %v1783_v17 }
 0x200   : > { %v1785_v44 = vpop.f32.mrf.mxu1 }
 0x201   : > { %v2088_v50 = vpack.c.bf16 %v2046_v39, %v2045_v18  ;;  %v1786_v8 = vadd.f32 %v1785_v44, %v3924_v45  ;;  %v1983_v54 = vadd.f32 %v3769_v51, %v1912_v61 }
 0x202   : > { %v1787_v47 = vpop.f32.mrf.mxu1 }
 0x203   : > { %v1913_v37 = vmul.f32 %v3760_v41, %v1786_v8  ;;  %2924 = vmatmul.mubr.bf16.gmra.mxu0 %v2088_v50  ;;  %v2047_v4 = vmax.f32 %v1983_v54, 0.0 }
 0x204   : > { %v1790_v59 = vpop.f32.mrf.mxu1 }
 0x205   : > { %v1984_v55 = vadd.f32 %v3769_v51, %v1913_v37  ;;  %v1791_v38 = vadd.f32 %v1790_v59, %v3929_v60  ;;  %v4006_v37 = vld [vmem:[%s4185_s5] ss:$0 sm:$0xff] }
 0x206   : > { %v1792_v5 = vpop.f32.mrf.mxu1 }
 0x207   : > { %v2048_v57 = vmax.f32 %v1984_v55, 0.0  ;;  %v1914_v28 = vmul.f32 %v3760_v41, %v1791_v38 }
 0x208   : > { %v1793_v48 = vpop.f32.mrf.mxu1 }
 0x209   : > { %v1794_v0 = vadd.f32 %v1793_v48, %v3934_v11  ;;  %v2089_v45 = vpack.c.bf16 %v2048_v57, %v2047_v4  ;;  %v1985_v33 = vadd.f32 %v3769_v51, %v1914_v28 }
 0x20a   : > { %v1795_v13 = vpop.f32.mrf.mxu1 }
 0x20b   : > { %v1915_v29 = vmul.f32 %v3760_v41, %v1794_v0  ;;  %2927 = vmatprep.mubr.bf16.mxu0 %v2089_v45  ;;  %v2049_v25 = vmax.f32 %v1985_v33, 0.0 }
 0x20c   : > { %v1798_v7 = vpop.f32.mrf.mxu1 }
 0x20d   : > { %v1986_v2 = vadd.f32 %v3769_v51, %v1915_v29  ;;  %v1799_v60 = vadd.f32 %v1798_v7, %v3677_v12 }
 0x20e   : > { %v1800_v53 = vpop.f32.mrf.mxu1 }
 0x20f   : > { %v2050_v6 = vmax.f32 %v1986_v2, 0.0  ;;  %v1916_v1 = vmul.f32 %v3760_v41, %v1799_v60 }
 0x210   : > { %v1801_v49 = vpop.f32.mrf.mxu1 }
 0x211   : > { %v2090_v19 = vpack.c.bf16 %v2050_v6, %v2049_v25  ;;  %v1802_v11 = vadd.f32 %v1801_v49, %v3681_v16  ;;  %v1987_v20 = vadd.f32 %v3769_v51, %v1916_v1 }
 0x212   : > { %v1803_v15 = vpop.f32.mrf.mxu1 }
 0x213   : > { %v1917_v31 = vmul.f32 %v3760_v41, %v1802_v11  ;;  %2928 = vmatmul.mubr.bf16.gmra.mxu0 %v2090_v19  ;;  %v2051_v10 = vmax.f32 %v1987_v20, 0.0 }
 0x214   : > { %v1806_v34 = vpop.f32.mrf.mxu1 }
 0x215   : > { %v1988_v40 = vadd.f32 %v3769_v51, %v1917_v31  ;;  %v1807_v12 = vadd.f32 %v1806_v34, %v3687_v22 }
 0x216   : > { %v1808_v21 = vpop.f32.mrf.mxu1 }
 0x217   : > { %v2052_v63 = vmax.f32 %v1988_v40, 0.0  ;;  %v1918_v27 = vmul.f32 %v3760_v41, %v1807_v12 }
 0x218   : > { %v1809_v35 = vpop.f32.mrf.mxu1 }
 0x219   : > { %v1810_v23 = vadd.f32 %v1809_v35, %v3691_v26  ;;  %v2091_v16 = vpack.c.bf16 %v2052_v63, %v2051_v10  ;;  %v1989_v17 = vadd.f32 %v3769_v51, %v1918_v27 }
 0x21a   : > { %v1811_v58 = vpop.f32.mrf.mxu1 }
 0x21b   : > { %v1919_v43 = vmul.f32 %v3760_v41, %v1810_v23  ;;  %2931 = vmatprep.mubr.bf16.mxu0 %v2091_v16  ;;  %v2053_v44 = vmax.f32 %v1989_v17, 0.0 }
 0x21c   : > { %v1814_v18 = vpop.f32.mrf.mxu1 }
 0x21d   : > { %v1990_v39 = vadd.f32 %v3769_v51, %v1919_v43  ;;  %v1815_v22 = vadd.f32 %v1814_v18, %v3697_v32 }
 0x21e   : > { %v1816_v61 = vpop.f32.mrf.mxu1 }
 0x21f   : > { %v2054_v50 = vmax.f32 %v1990_v39, 0.0  ;;  %v1920_v8 = vmul.f32 %v3760_v41, %v1815_v22 }
 0x220   : > { %v1817_v47 = vpop.f32.mrf.mxu1 }
 0x221   : > { %v2092_v54 = vpack.c.bf16 %v2054_v50, %v2053_v44  ;;  %v1818_v26 = vadd.f32 %v1817_v47, %v3701_v36  ;;  %v1991_v55 = vadd.f32 %v3769_v51, %v1920_v8  ;;  %v4041_v44 = vld [vmem:[%s4182_s2] ss:$0 sm:$0xff] }
 0x222   : > { %v1819_v59 = vpop.f32.mrf.mxu1 }
 0x223   : > { %v1921_v38 = vmul.f32 %v3760_v41, %v1818_v26  ;;  %v2885_v32 = vpop.f32.mrf.mxu0  ;;  %2932 = vmatmul.mubr.bf16.gmra.mxu0 %v2092_v54  ;;  %v2055_v45 = vmax.f32 %v1991_v55, 0.0 }
 0x224   : > { %v2213_v5 = vadd.f32 %v2885_v32, %v4006_v37  ;;  %v1822_v4 = vpop.f32.mrf.mxu1  ;;  %v3349_v32 = vld [vmem:[%s4183_s3] ss:$0 sm:$0xff] }
 0x225   : > { %v1992_v57 = vadd.f32 %v3769_v51, %v1921_v38  ;;  %v1823_v28 = vadd.f32 %v1822_v4, %v3707_v42  ;;  %v2204_v36 = vpop.f32.mrf.mxu0 }
 0x226   : > { %3220 = vtanh.f32 %v2213_v5  ;;  %v2205_v48 = vadd.f32 %v4006_v37, %v2204_v36  ;;  %v1824_v0 = vpop.f32.mrf.mxu1 }
 0x227   : > { %v2056_v13 = vmax.f32 %v1992_v57, 0.0  ;;  %v1922_v33 = vmul.f32 %v3760_v41, %v1823_v28  ;;  %v2886_v29 = vpop.f32.mrf.mxu0 }
 0x228   : > { %3222 = vtanh.f32 %v2205_v48  ;;  %v2216_v7 = vadd.f32 %v2886_v29, %v4006_v37  ;;  %v1825_v2 = vpop.f32.mrf.mxu1 }
 0x229   : > { %v1826_v60 = vadd.f32 %v1825_v2, %v3711_v46  ;;  %v2207_v53 = vpop.f32.mrf.mxu0  ;;  %v2093_v25 = vpack.c.bf16 %v2056_v13, %v2055_v45  ;;  %v1993_v1 = vadd.f32 %v3769_v51, %v1922_v33 }
 0x22a   : > { %3224 = vtanh.f32 %v2216_v7  ;;  %v2208_v42 = vadd.f32 %v4006_v37, %v2207_v53  ;;  %v1827_v6 = vpop.f32.mrf.mxu1 }
 0x22b   : > { %v1923_v49 = vmul.f32 %v3760_v41, %v1826_v60  ;;  %2935 = vmatprep.mubr.bf16.mxu0 %v2093_v25  ;;  %v2057_v46 = vmax.f32 %v1993_v1, 0.0 }
 0x22c   : > { %3226 = vtanh.f32 %v2208_v42  ;;  %v1830_v19 = vpop.f32.mrf.mxu1 }
 0x22d   : > { %v1994_v11 = vadd.f32 %v3769_v51, %v1923_v49  ;;  %v1831_v15 = vadd.f32 %v1830_v19, %v3717_v52 }
 0x22e   : > { %v1832_v20 = vpop.f32.mrf.mxu1 }
 0x22f   : > { %v2058_v31 = vmax.f32 %v1994_v11, 0.0  ;;  %v1924_v34 = vmul.f32 %v3760_v41, %v1831_v15 }
 0x230   : > { %v1833_v40 = vpop.f32.mrf.mxu1 }
 0x231   : > { %v2094_v12 = vpack.c.bf16 %v2058_v31, %v2057_v46  ;;  %v1834_v21 = vadd.f32 %v1833_v40, %v3721_v56  ;;  %v1995_v52 = vadd.f32 %v3769_v51, %v1924_v34 }
 0x232   : > { %v1835_v10 = vpop.f32.mrf.mxu1 }
 0x233   : > { %v3221_v63 = vpop.eup %3220  ;;  %v1925_v27 = vmul.f32 %v3760_v41, %v1834_v21  ;;  %v2889_v35 = vpop.f32.mrf.mxu0  ;;  %2936 = vmatmul.mubr.bf16.gmra.mxu0 %v2094_v12  ;;  %v2059_v22 = vmax.f32 %v1995_v52, 0.0 }
 0x234   : > { %2525 = vst [vmem:[%s4027_s7 + $0x10] sm:$0xff] %v3221_v63  ;;  %v2229_v23 = vadd.f32 %v2889_v35, %v4006_v37  ;;  %v1838_v16 = vpop.f32.mrf.mxu1 }
 0x235   : > { %v3223_v58 = vpop.eup %3222  ;;  %v1996_v17 = vadd.f32 %v3769_v51, %v1925_v27  ;;  %v1839_v43 = vadd.f32 %v1838_v16, %v3727_v62  ;;  %v2220_v18 = vpop.f32.mrf.mxu0 }
 0x236   : > { %2523 = vst [vmem:[%s4027_s7] sm:$0xff] %v3223_v58  ;;  %3228 = vtanh.f32 %v2229_v23  ;;  %v2221_v56 = vadd.f32 %v4006_v37, %v2220_v18  ;;  %v1840_v39 = vpop.f32.mrf.mxu1 }
 0x237   : > { %v3225_v41 = vpop.eup %3224  ;;  %v2060_v61 = vmax.f32 %v1996_v17, 0.0  ;;  %v1926_v50 = vmul.f32 %v4041_v44, %v1839_v43  ;;  %v2890_v51 = vpop.f32.mrf.mxu0 }
 0x238   : > { %2526 = vst [vmem:[%s4027_s7 + $0x18] sm:$0xff] %v3225_v41  ;;  %3230 = vtanh.f32 %v2221_v56  ;;  %v2232_v62 = vadd.f32 %v2890_v51, %v4006_v37  ;;  %v1841_v8 = vpop.f32.mrf.mxu1 }
 0x239   : > { %v3227_v47 = vpop.eup %3226  ;;  %v1842_v54 = vadd.f32 %v1841_v8, %v3731_v3  ;;  %v2223_v26 = vpop.f32.mrf.mxu0  ;;  %v2095_v59 = vpack.c.bf16 %v2060_v61, %v2059_v22  ;;  %v1997_v5 = vadd.f32 %v3349_v32, %v1926_v50 }
 0x23a   : > { %2524 = vst [vmem:[%s4027_s7 + $0x8] sm:$0xff] %v3227_v47  ;;  %3232 = vtanh.f32 %v2232_v62  ;;  %v2224_v55 = vadd.f32 %v4006_v37, %v2223_v26  ;;  %v1843_v38 = vpop.f32.mrf.mxu1 }
 0x23b   : > { %v1927_v4 = vmul.f32 %v4041_v44, %v1842_v54  ;;  %2939 = vmatprep.mubr.bf16.mxu0 %v2095_v59  ;;  %v2061_v48 = vmax.f32 %v1997_v5, 0.0 }
 0x23c   : > { %3234 = vtanh.f32 %v2224_v55  ;;  %v1846_v57 = vpop.f32.mrf.mxu1 }
 0x23d   : > { %v1998_v28 = vadd.f32 %v3349_v32, %v1927_v4  ;;  %v1847_v3 = vadd.f32 %v1846_v57, %v3737_v9 }
 0x23e   : > { %v1848_v36 = vpop.f32.mrf.mxu1 }
 0x23f   : > { %v2062_v0 = vmax.f32 %v1998_v28, 0.0  ;;  %v1928_v45 = vmul.f32 %v4041_v44, %v1847_v3 }
 0x240   : > { %v1849_v13 = vpop.f32.mrf.mxu1 }
 0x241   : > { %v2096_v33 = vpack.c.bf16 %v2062_v0, %v2061_v48  ;;  %v1850_v29 = vadd.f32 %v1849_v13, %v3741_v14  ;;  %v1999_v60 = vadd.f32 %v3349_v32, %v1928_v45 }
 0x242   : > { %v1851_v7 = vpop.f32.mrf.mxu1 }
 0x243   : > { %v3229_v2 = vpop.eup %3228  ;;  %v1929_v53 = vmul.f32 %v4041_v44, %v1850_v29  ;;  %v2893_v25 = vpop.f32.mrf.mxu0  ;;  %2940 = vmatmul.mubr.bf16.gmra.mxu0 %v2096_v33  ;;  %v2063_v20 = vmax.f32 %v1999_v60, 0.0 }
 0x244   : > { %2529 = vst [vmem:[%s4027_s7 + $0x30] sm:$0xff] %v3229_v2  ;;  %v2245_v9 = vadd.f32 %v2893_v25, %v4006_v37  ;;  %v1854_v42 = vpop.f32.mrf.mxu1 }
 0x245   : > { %v3231_v6 = vpop.eup %3230  ;;  %v2000_v1 = vadd.f32 %v3349_v32, %v1929_v53  ;;  %v1855_v49 = vadd.f32 %v1854_v42, %v3747_v24  ;;  %v2236_v19 = vpop.f32.mrf.mxu0 }
 0x246   : > { %2527 = vst [vmem:[%s4027_s7 + $0x20] sm:$0xff] %v3231_v6  ;;  %3236 = vtanh.f32 %v2245_v9  ;;  %v2237_v14 = vadd.f32 %v4006_v37, %v2236_v19  ;;  %v1856_v11 = vpop.f32.mrf.mxu1 }
 0x247   : > { %v3233_v15 = vpop.eup %3232  ;;  %v2064_v46 = vmax.f32 %v2000_v1, 0.0  ;;  %v1930_v31 = vmul.f32 %v4041_v44, %v1855_v49  ;;  %v2894_v34 = vpop.f32.mrf.mxu0 }
 0x248   : > { %2530 = vst [vmem:[%s4027_s7 + $0x38] sm:$0xff] %v3233_v15  ;;  %3238 = vtanh.f32 %v2237_v14  ;;  %v2248_v40 = vadd.f32 %v2894_v34, %v4006_v37  ;;  %v1857_v12 = vpop.f32.mrf.mxu1 }
 0x249   : > { %v3235_v21 = vpop.eup %3234  ;;  %v1858_v24 = vadd.f32 %v1857_v12, %v3751_v30  ;;  %v2239_v10 = vpop.f32.mrf.mxu0  ;;  %v2097_v63 = vpack.c.bf16 %v2064_v46, %v2063_v20  ;;  %v2001_v35 = vadd.f32 %v3349_v32, %v1930_v31 }
 0x24a   : > { %2528 = vst [vmem:[%s4027_s7 + $0x28] sm:$0xff] %v3235_v21  ;;  %3240 = vtanh.f32 %v2248_v40  ;;  %v2240_v52 = vadd.f32 %v4006_v37, %v2239_v10  ;;  %v1859_v27 = vpop.f32.mrf.mxu1 }
 0x24b   : > { %v1931_v23 = vmul.f32 %v4041_v44, %v1858_v24  ;;  %2943 = vmatprep.mubr.bf16.mxu0 %v2097_v63  ;;  %v2065_v58 = vmax.f32 %v2001_v35, 0.0 }
 0x24c   : > { %3242 = vtanh.f32 %v2240_v52 }
 0x24d   : > { %v2002_v16 = vadd.f32 %v3349_v32, %v1931_v23 }
 0x24f   : > { %v2066_v17 = vmax.f32 %v2002_v16, 0.0 }
 0x251   : > { %v2098_v43 = vpack.c.bf16 %v2066_v17, %v2065_v58 }
 0x253   : > { %v3237_v30 = vpop.eup %3236  ;;  %v2897_v18 = vpop.f32.mrf.mxu0  ;;  %2944 = vmatmul.mubr.bf16.gmra.mxu0 %v2098_v43 }
 0x254   : > { %2533 = vst [vmem:[%s4027_s7 + $0x50] sm:$0xff] %v3237_v30  ;;  %v2261_v56 = vadd.f32 %v2897_v18, %v4006_v37 }
 0x255   : > { %v3239_v39 = vpop.eup %3238  ;;  %v2252_v41 = vpop.f32.mrf.mxu0 }
 0x256   : > { %2531 = vst [vmem:[%s4027_s7 + $0x40] sm:$0xff] %v3239_v39  ;;  %3244 = vtanh.f32 %v2261_v56  ;;  %v2253_v22 = vadd.f32 %v4006_v37, %v2252_v41 }
 0x257   : > { %v3241_v61 = vpop.eup %3240  ;;  %v2898_v44 = vpop.f32.mrf.mxu0 }
 0x258   : > { %2534 = vst [vmem:[%s4027_s7 + $0x58] sm:$0xff] %v3241_v61  ;;  %3246 = vtanh.f32 %v2253_v22  ;;  %v2264_v50 = vadd.f32 %v2898_v44, %v4006_v37 }
 0x259   : > { %v3243_v51 = vpop.eup %3242  ;;  %v2255_v62 = vpop.f32.mrf.mxu0 }
 0x25a   : > { %2532 = vst [vmem:[%s4027_s7 + $0x48] sm:$0xff] %v3243_v51  ;;  %3248 = vtanh.f32 %v2264_v50  ;;  %v2256_v8 = vadd.f32 %v4006_v37, %v2255_v62 }
 0x25c   : > { %3250 = vtanh.f32 %v2256_v8 }
 0x263   : > { %v3245_v47 = vpop.eup %3244  ;;  %v2901_v54 = vpop.f32.mrf.mxu0 }
 0x264   : > { %2537 = vst [vmem:[%s4027_s7 + $0x70] sm:$0xff] %v3245_v47  ;;  %v2277_v26 = vadd.f32 %v2901_v54, %v4006_v37 }
 0x265   : > { %v3247_v59 = vpop.eup %3246  ;;  %v2268_v55 = vpop.f32.mrf.mxu0 }
 0x266   : > { %2535 = vst [vmem:[%s4027_s7 + $0x60] sm:$0xff] %v3247_v59  ;;  %3252 = vtanh.f32 %v2277_v26  ;;  %v2269_v38 = vadd.f32 %v4006_v37, %v2268_v55 }
 0x267   : > { %v3249_v32 = vpop.eup %3248  ;;  %v2902_v5 = vpop.f32.mrf.mxu0 }
 0x268   : > { %2538 = vst [vmem:[%s4027_s7 + $0x78] sm:$0xff] %v3249_v32  ;;  %3254 = vtanh.f32 %v2269_v38  ;;  %v2280_v4 = vadd.f32 %v2902_v5, %v4006_v37 }
 0x269   : > { %v3251_v57 = vpop.eup %3250  ;;  %v2271_v28 = vpop.f32.mrf.mxu0 }
 0x26a   : > { %2536 = vst [vmem:[%s4027_s7 + $0x68] sm:$0xff] %v3251_v57  ;;  %3256 = vtanh.f32 %v2280_v4  ;;  %v2272_v3 = vadd.f32 %v4006_v37, %v2271_v28 }
 0x26c   : > { %3258 = vtanh.f32 %v2272_v3 }
 0x273   : > { %v3253_v36 = vpop.eup %3252  ;;  %v2905_v48 = vpop.f32.mrf.mxu0 }
 0x274   : > { %2541 = vst [vmem:[%s4027_s7 + $0x90] sm:$0xff] %v3253_v36  ;;  %v2293_v0 = vadd.f32 %v2905_v48, %v4006_v37 }
 0x275   : > { %v3255_v45 = vpop.eup %3254  ;;  %v2284_v13 = vpop.f32.mrf.mxu0 }
 0x276   : > { %2539 = vst [vmem:[%s4027_s7 + $0x80] sm:$0xff] %v3255_v45  ;;  %3260 = vtanh.f32 %v2293_v0  ;;  %v2285_v33 = vadd.f32 %v4006_v37, %v2284_v13 }
 0x277   : > { %v3257_v29 = vpop.eup %3256  ;;  %v2906_v7 = vpop.f32.mrf.mxu0 }
 0x278   : > { %2542 = vst [vmem:[%s4027_s7 + $0x98] sm:$0xff] %v3257_v29  ;;  %3262 = vtanh.f32 %v2285_v33  ;;  %v2296_v2 = vadd.f32 %v2906_v7, %v4006_v37 }
 0x279   : > { %v3259_v60 = vpop.eup %3258  ;;  %v2287_v53 = vpop.f32.mrf.mxu0 }
 0x27a   : > { %2540 = vst [vmem:[%s4027_s7 + $0x88] sm:$0xff] %v3259_v60  ;;  %3264 = vtanh.f32 %v2296_v2  ;;  %v2288_v25 = vadd.f32 %v4006_v37, %v2287_v53 }
 0x27c   : > { %3266 = vtanh.f32 %v2288_v25 }
 0x283   : > { %v3261_v9 = vpop.eup %3260  ;;  %v2909_v42 = vpop.f32.mrf.mxu0 }
 0x284   : > { %2545 = vst [vmem:[%s4027_s7 + $0xb0] sm:$0xff] %v3261_v9  ;;  %v2309_v6 = vadd.f32 %v2909_v42, %v4006_v37 }
 0x285   : > { %v3263_v1 = vpop.eup %3262  ;;  %v2300_v49 = vpop.f32.mrf.mxu0 }
 0x286   : > { %2543 = vst [vmem:[%s4027_s7 + $0xa0] sm:$0xff] %v3263_v1  ;;  %3268 = vtanh.f32 %v2309_v6  ;;  %v2301_v19 = vadd.f32 %v4006_v37, %v2300_v49 }
 0x287   : > { %v3265_v14 = vpop.eup %3264  ;;  %v2910_v11 = vpop.f32.mrf.mxu0 }
 0x288   : > { %2546 = vst [vmem:[%s4027_s7 + $0xb8] sm:$0xff] %v3265_v14  ;;  %3270 = vtanh.f32 %v2301_v19  ;;  %v2312_v15 = vadd.f32 %v2910_v11, %v4006_v37 }
 0x289   : > { %v3267_v20 = vpop.eup %3266  ;;  %v2303_v46 = vpop.f32.mrf.mxu0 }
 0x28a   : > { %2544 = vst [vmem:[%s4027_s7 + $0xa8] sm:$0xff] %v3267_v20  ;;  %3272 = vtanh.f32 %v2312_v15  ;;  %v2304_v31 = vadd.f32 %v4006_v37, %v2303_v46 }
 0x28c   : > { %3274 = vtanh.f32 %v2304_v31 }
 0x293   : > { %v3269_v34 = vpop.eup %3268  ;;  %v2913_v40 = vpop.f32.mrf.mxu0 }
 0x294   : > { %2549 = vst [vmem:[%s4027_s7 + $0xd0] sm:$0xff] %v3269_v34  ;;  %v2325_v12 = vadd.f32 %v2913_v40, %v4006_v37 }
 0x295   : > { %v3271_v21 = vpop.eup %3270  ;;  %v2316_v24 = vpop.f32.mrf.mxu0 }
 0x296   : > { %2547 = vst [vmem:[%s4027_s7 + $0xc0] sm:$0xff] %v3271_v21  ;;  %3276 = vtanh.f32 %v2325_v12  ;;  %v2317_v10 = vadd.f32 %v4006_v37, %v2316_v24 }
 0x297   : > { %v3273_v63 = vpop.eup %3272  ;;  %v2914_v52 = vpop.f32.mrf.mxu0 }
 0x298   : > { %2550 = vst [vmem:[%s4027_s7 + $0xd8] sm:$0xff] %v3273_v63  ;;  %3278 = vtanh.f32 %v2317_v10  ;;  %v2328_v27 = vadd.f32 %v2914_v52, %v4006_v37 }
 0x299   : > { %v3275_v35 = vpop.eup %3274  ;;  %v2319_v23 = vpop.f32.mrf.mxu0 }
 0x29a   : > { %2548 = vst [vmem:[%s4027_s7 + $0xc8] sm:$0xff] %v3275_v35  ;;  %3280 = vtanh.f32 %v2328_v27  ;;  %v2320_v16 = vadd.f32 %v4006_v37, %v2319_v23 }
 0x29c   : > { %3282 = vtanh.f32 %v2320_v16 }
 0x2a3   : > { %v3277_v58 = vpop.eup %3276  ;;  %v2917_v17 = vpop.f32.mrf.mxu0 }
 0x2a4   : > { %2553 = vst [vmem:[%s4027_s7 + $0xf0] sm:$0xff] %v3277_v58  ;;  %v2341_v43 = vadd.f32 %v2917_v17, %v4006_v37 }
 0x2a5   : > { %v3279_v30 = vpop.eup %3278  ;;  %v2332_v18 = vpop.f32.mrf.mxu0 }
 0x2a6   : > { %2551 = vst [vmem:[%s4027_s7 + $0xe0] sm:$0xff] %v3279_v30  ;;  %3284 = vtanh.f32 %v2341_v43  ;;  %v2333_v56 = vadd.f32 %v4006_v37, %v2332_v18 }
 0x2a7   : > { %v3281_v39 = vpop.eup %3280  ;;  %v2918_v41 = vpop.f32.mrf.mxu0 }
 0x2a8   : > { %2554 = vst [vmem:[%s4027_s7 + $0xf8] sm:$0xff] %v3281_v39  ;;  %3286 = vtanh.f32 %v2333_v56  ;;  %v2344_v22 = vadd.f32 %v2918_v41, %v4006_v37 }
 0x2a9   : > { %v3283_v61 = vpop.eup %3282  ;;  %v2335_v44 = vpop.f32.mrf.mxu0 }
 0x2aa   : > { %2552 = vst [vmem:[%s4027_s7 + $0xe8] sm:$0xff] %v3283_v61  ;;  %3288 = vtanh.f32 %v2344_v22  ;;  %v2336_v50 = vadd.f32 %v4006_v37, %v2335_v44 }
 0x2ac   : > { %3290 = vtanh.f32 %v2336_v50 }
 0x2b3   : > { %v3285_v51 = vpop.eup %3284  ;;  %v2921_v62 = vpop.f32.mrf.mxu0 }
 0x2b4   : > { %2557 = vst [vmem:[%s4027_s7 + $0x110] sm:$0xff] %v3285_v51  ;;  %v2357_v8 = vadd.f32 %v2921_v62, %v4006_v37 }
 0x2b5   : > { %v3287_v47 = vpop.eup %3286  ;;  %v2348_v54 = vpop.f32.mrf.mxu0 }
 0x2b6   : > { %2555 = vst [vmem:[%s4027_s7 + $0x100] sm:$0xff] %v3287_v47  ;;  %3292 = vtanh.f32 %v2357_v8  ;;  %v2349_v26 = vadd.f32 %v4006_v37, %v2348_v54 }
 0x2b7   : > { %v3289_v59 = vpop.eup %3288  ;;  %v2922_v55 = vpop.f32.mrf.mxu0 }
 0x2b8   : > { %2558 = vst [vmem:[%s4027_s7 + $0x118] sm:$0xff] %v3289_v59  ;;  %3294 = vtanh.f32 %v2349_v26  ;;  %v2360_v38 = vadd.f32 %v2922_v55, %v4006_v37 }
 0x2b9   : > { %v3291_v32 = vpop.eup %3290  ;;  %v2351_v5 = vpop.f32.mrf.mxu0 }
 0x2ba   : > { %2556 = vst [vmem:[%s4027_s7 + $0x108] sm:$0xff] %v3291_v32  ;;  %3296 = vtanh.f32 %v2360_v38  ;;  %v2352_v4 = vadd.f32 %v4006_v37, %v2351_v5 }
 0x2bc   : > { %3298 = vtanh.f32 %v2352_v4 }
 0x2c3   : > { %v3293_v57 = vpop.eup %3292  ;;  %v2925_v28 = vpop.f32.mrf.mxu0 }
 0x2c4   : > { %2561 = vst [vmem:[%s4027_s7 + $0x130] sm:$0xff] %v3293_v57  ;;  %v2373_v3 = vadd.f32 %v2925_v28, %v4006_v37 }
 0x2c5   : > { %v3295_v36 = vpop.eup %3294  ;;  %v2364_v48 = vpop.f32.mrf.mxu0 }
 0x2c6   : > { %2559 = vst [vmem:[%s4027_s7 + $0x120] sm:$0xff] %v3295_v36  ;;  %3300 = vtanh.f32 %v2373_v3  ;;  %v2365_v0 = vadd.f32 %v4006_v37, %v2364_v48 }
 0x2c7   : > { %v3297_v45 = vpop.eup %3296  ;;  %v2926_v13 = vpop.f32.mrf.mxu0 }
 0x2c8   : > { %2562 = vst [vmem:[%s4027_s7 + $0x138] sm:$0xff] %v3297_v45  ;;  %3302 = vtanh.f32 %v2365_v0  ;;  %v2376_v33 = vadd.f32 %v2926_v13, %v4006_v37 }
 0x2c9   : > { %v3299_v29 = vpop.eup %3298  ;;  %v2367_v7 = vpop.f32.mrf.mxu0 }
 0x2ca   : > { %2560 = vst [vmem:[%s4027_s7 + $0x128] sm:$0xff] %v3299_v29  ;;  %3304 = vtanh.f32 %v2376_v33  ;;  %v2368_v2 = vadd.f32 %v4006_v37, %v2367_v7 }
 0x2cc   : > { %3306 = vtanh.f32 %v2368_v2 }
 0x2d3   : > { %v3301_v60 = vpop.eup %3300  ;;  %v2929_v53 = vpop.f32.mrf.mxu0 }
 0x2d4   : > { %2565 = vst [vmem:[%s4027_s7 + $0x150] sm:$0xff] %v3301_v60  ;;  %v2389_v25 = vadd.f32 %v2929_v53, %v4006_v37 }
 0x2d5   : > { %v3303_v9 = vpop.eup %3302  ;;  %v2380_v42 = vpop.f32.mrf.mxu0 }
 0x2d6   : > { %2563 = vst [vmem:[%s4027_s7 + $0x140] sm:$0xff] %v3303_v9  ;;  %3308 = vtanh.f32 %v2389_v25  ;;  %v2381_v6 = vadd.f32 %v4006_v37, %v2380_v42 }
 0x2d7   : > { %v3305_v1 = vpop.eup %3304  ;;  %v2930_v49 = vpop.f32.mrf.mxu0 }
 0x2d8   : > { %2566 = vst [vmem:[%s4027_s7 + $0x158] sm:$0xff] %v3305_v1  ;;  %3310 = vtanh.f32 %v2381_v6  ;;  %v2392_v19 = vadd.f32 %v2930_v49, %v4006_v37 }
 0x2d9   : > { %v3307_v14 = vpop.eup %3306  ;;  %v2383_v11 = vpop.f32.mrf.mxu0 }
 0x2da   : > { %2564 = vst [vmem:[%s4027_s7 + $0x148] sm:$0xff] %v3307_v14  ;;  %3312 = vtanh.f32 %v2392_v19  ;;  %v2384_v15 = vadd.f32 %v4006_v37, %v2383_v11 }
 0x2dc   : > { %3314 = vtanh.f32 %v2384_v15 }
 0x2e3   : > { %v3309_v20 = vpop.eup %3308  ;;  %v2933_v46 = vpop.f32.mrf.mxu0 }
 0x2e4   : > { %2569 = vst [vmem:[%s4027_s7 + $0x170] sm:$0xff] %v3309_v20  ;;  %v2405_v31 = vadd.f32 %v2933_v46, %v4006_v37 }
 0x2e5   : > { %v3311_v34 = vpop.eup %3310  ;;  %v2396_v40 = vpop.f32.mrf.mxu0 }
 0x2e6   : > { %2567 = vst [vmem:[%s4027_s7 + $0x160] sm:$0xff] %v3311_v34  ;;  %3316 = vtanh.f32 %v2405_v31  ;;  %v2397_v12 = vadd.f32 %v4006_v37, %v2396_v40 }
 0x2e7   : > { %v3313_v21 = vpop.eup %3312  ;;  %v2934_v24 = vpop.f32.mrf.mxu0 }
 0x2e8   : > { %2570 = vst [vmem:[%s4027_s7 + $0x178] sm:$0xff] %v3313_v21  ;;  %3318 = vtanh.f32 %v2397_v12  ;;  %v2408_v10 = vadd.f32 %v2934_v24, %v4006_v37 }
 0x2e9   : > { %v3315_v63 = vpop.eup %3314  ;;  %v2399_v52 = vpop.f32.mrf.mxu0 }
 0x2ea   : > { %2568 = vst [vmem:[%s4027_s7 + $0x168] sm:$0xff] %v3315_v63  ;;  %3320 = vtanh.f32 %v2408_v10  ;;  %v2400_v27 = vadd.f32 %v4006_v37, %v2399_v52 }
 0x2ec   : > { %3322 = vtanh.f32 %v2400_v27 }
 0x2f3   : > { %v3317_v35 = vpop.eup %3316  ;;  %v2937_v23 = vpop.f32.mrf.mxu0 }
 0x2f4   : > { %2573 = vst [vmem:[%s4027_s7 + $0x190] sm:$0xff] %v3317_v35  ;;  %v2421_v16 = vadd.f32 %v2937_v23, %v4006_v37 }
 0x2f5   : > { %v3319_v58 = vpop.eup %3318  ;;  %v2412_v17 = vpop.f32.mrf.mxu0 }
 0x2f6   : > { %2571 = vst [vmem:[%s4027_s7 + $0x180] sm:$0xff] %v3319_v58  ;;  %3324 = vtanh.f32 %v2421_v16  ;;  %v2413_v43 = vadd.f32 %v4006_v37, %v2412_v17 }
 0x2f7   : > { %v3321_v30 = vpop.eup %3320  ;;  %v2938_v18 = vpop.f32.mrf.mxu0 }
 0x2f8   : > { %2574 = vst [vmem:[%s4027_s7 + $0x198] sm:$0xff] %v3321_v30  ;;  %3326 = vtanh.f32 %v2413_v43  ;;  %v2424_v56 = vadd.f32 %v2938_v18, %v4006_v37 }
 0x2f9   : > { %v3323_v39 = vpop.eup %3322  ;;  %v2415_v41 = vpop.f32.mrf.mxu0 }
 0x2fa   : > { %2572 = vst [vmem:[%s4027_s7 + $0x188] sm:$0xff] %v3323_v39  ;;  %3328 = vtanh.f32 %v2424_v56  ;;  %v2416_v22 = vadd.f32 %v4006_v37, %v2415_v41 }
 0x2fc   : > { %3330 = vtanh.f32 %v2416_v22 }
 0x303   : > { %v3325_v61 = vpop.eup %3324  ;;  %v2941_v44 = vpop.f32.mrf.mxu0 }
 0x304   : > { %2577 = vst [vmem:[%s4027_s7 + $0x1b0] sm:$0xff] %v3325_v61  ;;  %v2437_v50 = vadd.f32 %v2941_v44, %v4006_v37 }
 0x305   : > { %v3327_v51 = vpop.eup %3326  ;;  %v2428_v62 = vpop.f32.mrf.mxu0 }
 0x306   : > { %2575 = vst [vmem:[%s4027_s7 + $0x1a0] sm:$0xff] %v3327_v51  ;;  %3332 = vtanh.f32 %v2437_v50  ;;  %v2429_v8 = vadd.f32 %v4006_v37, %v2428_v62 }
 0x307   : > { %v3329_v47 = vpop.eup %3328  ;;  %v2942_v54 = vpop.f32.mrf.mxu0 }
 0x308   : > { %2578 = vst [vmem:[%s4027_s7 + $0x1b8] sm:$0xff] %v3329_v47  ;;  %3334 = vtanh.f32 %v2429_v8  ;;  %v2440_v26 = vadd.f32 %v2942_v54, %v4006_v37 }
 0x309   : > { %v3331_v59 = vpop.eup %3330  ;;  %v2431_v55 = vpop.f32.mrf.mxu0 }
 0x30a   : > { %2576 = vst [vmem:[%s4027_s7 + $0x1a8] sm:$0xff] %v3331_v59  ;;  %3336 = vtanh.f32 %v2440_v26  ;;  %v2432_v38 = vadd.f32 %v4006_v37, %v2431_v55 }
 0x30c   : > { %3338 = vtanh.f32 %v2432_v38 }
 0x313   : > { %v3333_v32 = vpop.eup %3332  ;;  %v2945_v5 = vpop.f32.mrf.mxu0 }
 0x314   : > { %2581 = vst [vmem:[%s4027_s7 + $0x1d0] sm:$0xff] %v3333_v32  ;;  %v2453_v4 = vadd.f32 %v2945_v5, %v4006_v37 }
 0x315   : > { %v3335_v57 = vpop.eup %3334  ;;  %v2444_v28 = vpop.f32.mrf.mxu0 }
 0x316   : > { %2579 = vst [vmem:[%s4027_s7 + $0x1c0] sm:$0xff] %v3335_v57  ;;  %3340 = vtanh.f32 %v2453_v4  ;;  %v2445_v3 = vadd.f32 %v4006_v37, %v2444_v28 }
 0x317   : > { %v3337_v36 = vpop.eup %3336  ;;  %v2946_v48 = vpop.f32.mrf.mxu0 }
 0x318   : > { %2582 = vst [vmem:[%s4027_s7 + $0x1d8] sm:$0xff] %v3337_v36  ;;  %3342 = vtanh.f32 %v2445_v3  ;;  %v2456_v0 = vadd.f32 %v2946_v48, %v4006_v37 }
 0x319   : > { %v3339_v45 = vpop.eup %3338  ;;  %v2447_v13 = vpop.f32.mrf.mxu0 }
 0x31a   : > { %2580 = vst [vmem:[%s4027_s7 + $0x1c8] sm:$0xff] %v3339_v45  ;;  %3344 = vtanh.f32 %v2456_v0  ;;  %v2448_v33 = vadd.f32 %v4006_v37, %v2447_v13 }
 0x31c   : > { %3346 = vtanh.f32 %v2448_v33 }
 0x323   : > { %v3341_v29 = vpop.eup %3340 }
 0x324   : > { %2585 = vst [vmem:[%s4027_s7 + $0x1f0] sm:$0xff] %v3341_v29 }
 0x325   : > { %v3343_v7 = vpop.eup %3342 }
 0x326   : > { %2583 = vst [vmem:[%s4027_s7 + $0x1e0] sm:$0xff] %v3343_v7 }
 0x327   : > { %v3345_v2 = vpop.eup %3344 }
 0x328   : > { %2586 = vst [vmem:[%s4027_s7 + $0x1f8] sm:$0xff] %v3345_v2 }
 0x329   : > { %v3347_v60 = vpop.eup %3346 }
 0x32a   : > { %2584 = vst [vmem:[%s4027_s7 + $0x1e8] sm:$0xff] %v3347_v60 }
 0x32b PF: > { %s16_s21 = sadd.s32 1, %s3356_s21  }
 0x32c   : > { %p13_p4 = scmp.ge.s32.totalorder %s16_s21, 6  }
 0x32e   :  { %15 = sbr.rel (!%p13_p4) target bundleno = 1 (0x1), region = 74 }

</bundles_post_ra>
